<compile_context>
chip_gen: v5e
topology: v5e:2x2
jax: 0.10.0
libtpu: 0.0.40
codegen_flags: <defaults>
</compile_context>

<pallas_src>
import functools

import jax
import jax.numpy as jnp
from jax.experimental import pallas as pl
from jax.experimental.pallas import tpu as pltpu

BN_EPS = 1e-5
_HI = jax.lax.Precision.HIGHEST


# ---------------------------------------------------------------------------
# Fused UNet kernel.  All parameters live in one packed (R, 32) f32 buffer;
# `layout` maps name -> (row_offset, rows, cols) with 8-aligned row offsets.
# Activations are kept in NLC (B, L, C) so every channel contraction is a clean
# (rows, K) x (K, Cout) MXU matmul; NCL boundary layout is handled in-kernel.
# ---------------------------------------------------------------------------
def unet_kernel(x_ref, p_ref, out_ref, *, layout, num_stages):
    def _eye(n):
        r = jax.lax.broadcasted_iota(jnp.int32, (n, n), 0)
        c = jax.lax.broadcasted_iota(jnp.int32, (n, n), 1)
        return (r == c).astype(jnp.float32)

    def t_last2(a):
        """(B, M, N) -> (B, N, M) via MXU identity dot (A @ B^T form).

        Avoids relying on Mosaic transpose lowering for tiny, unaligned shapes; the
        identity matmul at HIGHEST precision is exact and the MXU is >95% idle anyway.
        """
        b, _, n = a.shape
        eye_n = _eye(n)
        rows = [jax.lax.dot_general(eye_n, a[i], (((1,), (1,)), ((), ())),
                                    preferred_element_type=jnp.float32,
                                    precision=_HI)
                for i in range(b)]
        return jnp.stack(rows, axis=0)

    def conv3_bn_relu(x, name):
        """Conv1d(k=3, pad=1, bias=False) + BatchNorm1d(batch stats) + ReLU.

        Single fused matmul: LHS = lane-concat of the 3 shifted taps (K = 3*Cin <= 96),
        weight block rows = [3*Cin taps ; gamma ; beta] stored contiguously.
        """
        b, l, cin = x.shape
        off, rows, cout = layout[name]
        assert rows == 3 * cin + 2
        blk = p_ref[off:off + rows, :cout]
        w = blk[:3 * cin, :]                              # (3*cin, cout)
        gamma = blk[3 * cin:3 * cin + 1, :]               # (1, cout)
        beta = blk[3 * cin + 1:3 * cin + 2, :]            # (1, cout)

        z = jnp.zeros((b, 1, cin), jnp.float32)
        xp = jnp.concatenate([z, x, z], axis=1)           # (b, l+2, cin), pad along L
        lhs = jnp.concatenate(                            # taps: x[l-1], x[l], x[l+1]
            [xp[:, 0:l, :], xp[:, 1:l + 1, :], xp[:, 2:l + 2, :]], axis=-1)
        y = jnp.dot(lhs.reshape(b * l, 3 * cin), w,
                    preferred_element_type=jnp.float32, precision=_HI)

        # single-pass BN statistics over (batch, length); biased variance, training mode.
        inv_n = 1.0 / float(b * l)
        mean = jnp.sum(y, axis=0, keepdims=True) * inv_n
        var = jnp.sum(y * y, axis=0, keepdims=True) * inv_n - mean * mean
        scale = gamma * jax.lax.rsqrt(jnp.maximum(var, 0.0) + BN_EPS)
        y = jnp.maximum(y * scale + (beta - mean * scale), 0.0)
        return y.reshape(b, l, cout)

    def dconv(x, name):
        return conv3_bn_relu(conv3_bn_relu(x, f'{name}.c1'), f'{name}.c2')

    def maxpool2(x):
        # MaxPool1d(kernel=2, stride=2): free sublane-side reshape + 2-wide sublane reduce.
        b, l, c = x.shape
        return jnp.max(x.reshape(b, l // 2, 2, c), axis=2)

    def tconv2(x, name):
        # ConvTranspose1d(k=2, s=2) + bias; even/odd taps as two matmuls + stack/reshape.
        b, l, cin = x.shape
        off, rows, cout = layout[name]
        assert rows == 2 * cin + 1
        blk = p_ref[off:off + rows, :cout]
        w0 = blk[:cin, :]
        w1 = blk[cin:2 * cin, :]
        bias = blk[2 * cin:2 * cin + 1, :]
        x2 = x.reshape(b * l, cin)
        ye = (jnp.dot(x2, w0, preferred_element_type=jnp.float32, precision=_HI)
              + bias).reshape(b, l, cout)
        yo = (jnp.dot(x2, w1, preferred_element_type=jnp.float32, precision=_HI)
              + bias).reshape(b, l, cout)
        return jnp.stack([ye, yo], axis=2).reshape(b, 2 * l, cout)

    def conv1x1(x, name):
        b, l, cin = x.shape
        off, rows, cout = layout[name]
        assert rows == cin + 1
        blk = p_ref[off:off + rows, :cout]
        w = blk[:cin, :]
        bias = blk[cin:cin + 1, :]
        y = jnp.dot(x.reshape(b * l, cin), w,
                    preferred_element_type=jnp.float32, precision=_HI) + bias
        return y.reshape(b, l, cout)

    # input arrives in PyTorch NCL layout; relayout to NLC in-kernel (no wrapper op).
    x = t_last2(x_ref[...].astype(jnp.float32))            # (B, L, Cin)

    # ------------------------- encoder -------------------------
    skips = [dconv(x, 'init')]
    for i in range(1, num_stages):
        skips.append(dconv(maxpool2(skips[-1]), f'enc{i}'))
    out = skips[-1]                                        # bottleneck (no bottleneck module)

    # ------------------------- decoder + exits -----------------
    exits = []
    for i in range(num_stages - 1):
        skip = skips[num_stages - 2 - i]
        up = tconv2(out, f'dec{i}.up')
        out = dconv(jnp.concatenate([skip, up], axis=-1), f'dec{i}')   # torch.cat([skip, up])
        if f'ad{i}' in layout:
            e = conv1x1(out, f'ad{i}')
            if f'ad{i}.up' in layout:
                e = tconv2(e, f'ad{i}.up')
            exits.append(e)
    out = conv1x1(out, 'final')
    last = num_stages - 1
    if f'ad{last}' in layout:
        e = conv1x1(out, f'ad{last}')
        if f'ad{last}.up' in layout:
            e = tconv2(e, f'ad{last}.up')
        exits.append(e)

    # single merged output slab in NCL layout: (1 + n_exits, B, C_out, L)
    heads = [out] + exits
    assert len(heads) == out_ref.shape[0]
    slab = jnp.stack([t_last2(h) for h in heads], axis=0)
    out_ref[...] = slab.astype(out_ref.dtype)


# ---------------------------------------------------------------------------
# Wrapper: one pallas_call for the whole forward; NCL in / NCL out, no wrapper
# transposes, single merged output.
# ---------------------------------------------------------------------------
def pallas_forward(x_ncl, packed, *, layout, num_stages):
    B, cin, L = x_ncl.shape
    assert L % (2 ** (num_stages - 1)) == 0, "L must be divisible by the total pooling factor"
    R, W = int(packed.shape[0]), int(packed.shape[1])
    exit_out = layout['final'][2]
    n_exits = sum(1 for k in layout if k.startswith('ad') and '.' not in k)
    n_heads = 1 + n_exits

    kernel = functools.partial(unet_kernel, layout=layout, num_stages=num_stages)
    call = pl.pallas_call(
        kernel,
        grid=(1,),
        out_shape=jax.ShapeDtypeStruct((n_heads, B, exit_out, L), jnp.float32),
        in_specs=[pl.BlockSpec((B, cin, L), lambda i: (0, 0, 0)),
                  pl.BlockSpec((R, W), lambda i: (0, 0))],
        out_specs=pl.BlockSpec((n_heads, B, exit_out, L), lambda i: (0, 0, 0, 0)),
        compiler_params=pltpu.CompilerParams(dimension_semantics=("arbitrary",)),
    )
    slab = call(x_ncl, packed)                             # (1+n_exits, B, C_out, L), NCL
    return {'output': slab[0], 'exits': [slab[i] for i in range(1, n_heads)]}


# ---------------------------------------------------------------------------
# Parameter init (deterministic, mirrors the PyTorch module shapes)
# ---------------------------------------------------------------------------
def init_params(key, in_ch=4, filters=(8, 16, 32), exit_out=2, exit_stages=(0, 1, 2)):
    filters = list(filters)
    keys = iter(jax.random.split(key, 64))
    nk = lambda: next(keys)

    def conv3_w(cin, cout):
        # PyTorch Conv1d weight (cout, cin, 3) -> store as (3*cin, cout), taps stacked in rows.
        w = jax.random.normal(nk(), (cout, cin, 3), jnp.float32) / jnp.sqrt(3.0 * cin)
        return jnp.concatenate([w[:, :, k].T for k in range(3)], axis=0)

    def bn(cout):
        g = 1.0 + 0.1 * jax.random.normal(nk(), (1, cout), jnp.float32)
        b = 0.1 * jax.random.normal(nk(), (1, cout), jnp.float32)
        return g, b

    def double_conv_p(cin, cout):
        w1 = conv3_w(cin, cout); g1, b1 = bn(cout)
        w2 = conv3_w(cout, cout); g2, b2 = bn(cout)
        return dict(w1=w1, g1=g1, b1=b1, w2=w2, g2=g2, b2=b2)

    def tconv2(cin, cout):
        # PyTorch ConvTranspose1d weight (cin, cout, 2) -> store as (2, cin, cout)
        w = jax.random.normal(nk(), (cin, cout, 2), jnp.float32) / jnp.sqrt(2.0 * cin)
        b = 0.05 * jax.random.normal(nk(), (1, cout), jnp.float32)
        return jnp.transpose(w, (2, 0, 1)), b

    def c1x1(cin, cout):
        # PyTorch Conv1d weight (cout, cin, 1) -> store as (cin, cout)
        w = jax.random.normal(nk(), (cout, cin, 1), jnp.float32) / jnp.sqrt(1.0 * cin)
        b = 0.05 * jax.random.normal(nk(), (1, cout), jnp.float32)
        return w[:, :, 0].T, b

    params = {}
    params['initial'] = double_conv_p(in_ch, filters[0])
    params['encoders'] = [dict(conv=double_conv_p(filters[i - 1], filters[i]))
                          for i in range(1, len(filters))]
    rev = filters[::-1]
    decs = []
    for i in range(len(filters) - 1):
        uw, ub = tconv2(rev[i], rev[i + 1])
        decs.append(dict(up_w=uw, up_b=ub, conv=double_conv_p(2 * rev[i + 1], rev[i + 1])))
    params['decoders'] = decs
    fw, fb = c1x1(rev[-1], exit_out)
    params['final'] = dict(w=fw, b=fb)

    adapters = {}
    num_stages = len(filters)
    for s in exit_stages:
        if s < num_stages - 1:
            cin_a = rev[s + 1]
            factor = 2 ** (num_stages - 2 - s)
        else:
            cin_a = exit_out
            factor = 1
        aw, ab = c1x1(cin_a, exit_out)
        ad = dict(w=aw, b=ab, up_w=None, up_b=None)
        if factor != 1:
            # up_mode='transpose' -> ConvTranspose1d(exit_out, exit_out, k=factor, s=factor);
            # this config only produces factor == 2.
            ad['up_w'], ad['up_b'] = tconv2(exit_out, exit_out)
        adapters[str(s)] = ad
    params['adapters'] = adapters
    return params


# ---------------------------------------------------------------------------
# Pack every parameter into one (R, 32) f32 buffer (8-aligned row offsets).
# Each conv/bn, tconv and 1x1 unit is ONE contiguous row block:
#   conv3+bn : [3*Cin tap rows ; gamma ; beta]       -> key '<name>.c1' / '<name>.c2'
#   tconv2   : [Cin rows of W[...,0] ; Cin rows of W[...,1] ; bias]  -> '<name>.up'
#   conv1x1  : [Cin rows ; bias]                     -> '<name>'
# Lanes are trimmed to max(Cout) (= 32 here) so the HBM->VMEM weight DMA is ~4.6x smaller
# than a 128-lane-padded layout.
# ---------------------------------------------------------------------------
def pack_params(params):
    entries = []

    def add(name, mats):
        arr = jnp.concatenate([jnp.asarray(m, jnp.float32) for m in mats], axis=0)
        entries.append((name, arr))

    def add_dconv(name, p):
        add(f'{name}.c1', [p['w1'], p['g1'], p['b1']])
        add(f'{name}.c2', [p['w2'], p['g2'], p['b2']])

    add_dconv('init', params['initial'])
    for i, enc in enumerate(params['encoders'], start=1):
        add_dconv(f'enc{i}', enc['conv'])
    for i, dec in enumerate(params['decoders']):
        add(f'dec{i}.up', [dec['up_w'][0], dec['up_w'][1], dec['up_b']])
        add_dconv(f'dec{i}', dec['conv'])
    add('final', [params['final']['w'], params['final']['b']])
    for s, ad in params['adapters'].items():
        add(f'ad{s}', [ad['w'], ad['b']])
        if ad['up_w'] is not None:
            add(f'ad{s}.up', [ad['up_w'][0], ad['up_w'][1], ad['up_b']])

    lanes = max(int(a.shape[1]) for _, a in entries)       # 32 for this config
    layout = {}
    blocks = []
    off = 0
    for name, arr in entries:
        r, c = int(arr.shape[0]), int(arr.shape[1])
        layout[name] = (off, r, c)
        rp = ((r + 7) // 8) * 8
        blk = jnp.zeros((rp, lanes), jnp.float32).at[:r, :c].set(arr)
        blocks.append(blk)
        off += rp
    packed = jnp.concatenate(blocks, axis=0)
    return packed, layout


# ---------------------------------------------------------------------------
# Pure-JAX reference (numerical sanity check only)
# ---------------------------------------------------------------------------
def ref_forward(x_ncl, params):
    def conv3(x, wcat, gamma, beta):
        xp = jnp.pad(x, ((0, 0), (1, 1), (0, 0)))
        xcat = jnp.concatenate([xp[:, :-2], xp[:, 1:-1], xp[:, 2:]], axis=-1)
        y = jnp.einsum('blc,co->blo', xcat, wcat, precision=_HI)
        mean = y.mean(axis=(0, 1), keepdims=True)
        var = jnp.square(y - mean).mean(axis=(0, 1), keepdims=True)
        y = (y - mean) * jax.lax.rsqrt(var + BN_EPS) * gamma[None] + beta[None]
        return jnp.maximum(y, 0.0)

    def dconv(x, p):
        x = conv3(x, p['w1'], p['g1'], p['b1'])
        return conv3(x, p['w2'], p['g2'], p['b2'])

    def pool(x):
        return jnp.maximum(x[:, 0::2, :], x[:, 1::2, :])

    def c11(x, w, b):
        return jnp.einsum('blc,co->blo', x, w, precision=_HI) + b[None]

    def ct2(x, w, b):
        B_, L_, _ = x.shape
        cout = w.shape[2]
        ye = jnp.einsum('blc,co->blo', x, w[0], precision=_HI) + b[None]
        yo = jnp.einsum('blc,co->blo', x, w[1], precision=_HI) + b[None]
        return jnp.stack([ye, yo], axis=2).reshape(B_, 2 * L_, cout)

    x = jnp.transpose(x_ncl, (0, 2, 1))
    skips = [dconv(x, params['initial'])]
    for enc in params['encoders']:
        skips.append(dconv(pool(skips[-1]), enc['conv']))
    out = skips[-1]
    exits = []
    for i, dec in enumerate(params['decoders']):
        skip = skips[len(skips) - 2 - i]
        up = ct2(out, dec['up_w'], dec['up_b'])
        out = dconv(jnp.concatenate([skip, up], axis=-1), dec['conv'])
        ad = params['adapters'].get(str(i))
        if ad is not None:
            e = c11(out, ad['w'], ad['b'])
            if ad['up_w'] is not None:
                e = ct2(e, ad['up_w'], ad['up_b'])
            exits.append(jnp.transpose(e, (0, 2, 1)))
    out = c11(out, params['final']['w'], params['final']['b'])
    ad = params['adapters'].get(str(len(params['decoders'])))
    if ad is not None:
        e = c11(out, ad['w'], ad['b'])
        if ad['up_w'] is not None:
            e = ct2(e, ad['up_w'], ad['up_b'])
        exits.append(jnp.transpose(e, (0, 2, 1)))
    return {'output': jnp.transpose(out, (0, 2, 1)), 'exits': exits}


if __name__ == "__main__":
    key = jax.random.PRNGKey(0)
    kx, kp = jax.random.split(key)
    B, CIN, L = 2, 4, 16
    FILTERS = (8, 16, 32)
    EXIT_OUT = 2

    # Input follows PyTorch Conv1d convention: (N, C_in, L)
    x = jax.random.normal(kx, (B, CIN, L), jnp.float32)
    params = init_params(kp, in_ch=CIN, filters=FILTERS, exit_out=EXIT_OUT,
                         exit_stages=(0, 1, 2))
    packed, layout = pack_params(params)

    fwd = jax.jit(functools.partial(pallas_forward, layout=layout, num_stages=len(FILTERS)))
    out = jax.block_until_ready(fwd(x, packed))

    # Sanity check against a pure-JAX reference.
    ref = ref_forward(x, params)
    assert out['output'].shape == (B, EXIT_OUT, L), out['output'].shape
    assert len(out['exits']) == 3 and all(e.shape == (B, EXIT_OUT, L) for e in out['exits'])
    pairs = [(out['output'], ref['output'])] + list(zip(out['exits'], ref['exits']))
    for a, b in pairs:
        d = float(jnp.max(jnp.abs(a - b)))
        assert d < 5e-2, f"mismatch vs reference: max abs diff {d}"

    print("KERNEL_OK")
</pallas_src>

<mosaic_0001>
module attributes {stable_mosaic.version = 11 : i64} {
  func.func @unet_kernel(%arg0: i32, %arg1: memref<2x4x16xf32, #tpu.memory_space<vmem>>, %arg2: memref<728x32xf32, #tpu.memory_space<vmem>>, %arg3: memref<4x2x2x16xf32, #tpu.memory_space<vmem>>) attributes {dimension_semantics = [#tpu.dimension_semantics<arbitrary>], iteration_bounds = array<i64: 1>, scalar_prefetch = 0 : i64, scratch_operands = 0 : i64, tpu.core_type = #tpu.core_type<tc>, window_params = [{pipeline_mode = #tpu.pipeline_mode<synchronous>, transform_indices = @transform_0, window_bounds = array<i64: 2, 4, 16>}, {pipeline_mode = #tpu.pipeline_mode<synchronous>, transform_indices = @transform_1, window_bounds = array<i64: 728, 32>}, {pipeline_mode = #tpu.pipeline_mode<synchronous>, transform_indices = @transform_2, window_bounds = array<i64: 4, 2, 2, 16>}]} {
    %c0 = arith.constant 0 : index
    %c0_0 = arith.constant 0 : index
    %c0_1 = arith.constant 0 : index
    %0 = vector.load %arg1[%c0, %c0_0, %c0_1] : memref<2x4x16xf32, #tpu.memory_space<vmem>>, vector<2x4x16xf32>
    %1 = tpu.iota {dimensions = array<i32: 0>} : vector<16x16xi32>
    %2 = tpu.iota {dimensions = array<i32: 1>} : vector<16x16xi32>
    %3 = arith.cmpi eq, %1, %2 : vector<16x16xi32>
    %4 = arith.extui %3 : vector<16x16xi1> to vector<16x16xi32>
    %5 = arith.sitofp %4 : vector<16x16xi32> to vector<16x16xf32>
    %6 = vector.extract_strided_slice %0 {offsets = [0, 0, 0], sizes = [1, 4, 16], strides = [1, 1, 1]} : vector<2x4x16xf32> to vector<1x4x16xf32>
    %7 = vector.shape_cast %6 : vector<1x4x16xf32> to vector<4x16xf32>
    %cst = arith.constant dense<0.000000e+00> : vector<16x4xf32>
    %8 = tpu.matmul %5, %7, %cst {dimension_numbers = #tpu.dot_dimension_numbers<[1], [1], [0], [0], [0, 0, 1, 0], [], []>, precision = #tpu.contract_precision<fp32>} : vector<16x16xf32>, vector<4x16xf32>, vector<16x4xf32> -> vector<16x4xf32>
    %9 = vector.extract_strided_slice %0 {offsets = [1, 0, 0], sizes = [1, 4, 16], strides = [1, 1, 1]} : vector<2x4x16xf32> to vector<1x4x16xf32>
    %10 = vector.shape_cast %9 : vector<1x4x16xf32> to vector<4x16xf32>
    %cst_2 = arith.constant dense<0.000000e+00> : vector<16x4xf32>
    %11 = tpu.matmul %5, %10, %cst_2 {dimension_numbers = #tpu.dot_dimension_numbers<[1], [1], [0], [0], [0, 0, 1, 0], [], []>, precision = #tpu.contract_precision<fp32>} : vector<16x16xf32>, vector<4x16xf32>, vector<16x4xf32> -> vector<16x4xf32>
    %12 = vector.shape_cast %8 : vector<16x4xf32> to vector<1x16x4xf32>
    %13 = vector.shape_cast %11 : vector<16x4xf32> to vector<1x16x4xf32>
    %14 = tpu.concatenate %12, %13 in 0 : vector<1x16x4xf32>, vector<1x16x4xf32> -> vector<2x16x4xf32>
    %c0_3 = arith.constant 0 : index
    %c0_4 = arith.constant 0 : index
    %15 = vector.load %arg2[%c0_3, %c0_4] : memref<728x32xf32, #tpu.memory_space<vmem>>, vector<14x8xf32>
    %16 = vector.extract_strided_slice %15 {offsets = [0, 0], sizes = [12, 8], strides = [1, 1]} : vector<14x8xf32> to vector<12x8xf32>
    %17 = vector.extract_strided_slice %15 {offsets = [12, 0], sizes = [1, 8], strides = [1, 1]} : vector<14x8xf32> to vector<1x8xf32>
    %18 = vector.extract_strided_slice %15 {offsets = [13, 0], sizes = [1, 8], strides = [1, 1]} : vector<14x8xf32> to vector<1x8xf32>
    %cst_5 = arith.constant 0.000000e+00 : f32
    %19 = vector.broadcast %cst_5 : f32 to vector<2x1x4xf32>
    %20 = tpu.concatenate %19, %14, %19 in 1 : vector<2x1x4xf32>, vector<2x16x4xf32>, vector<2x1x4xf32> -> vector<2x18x4xf32>
    %21 = vector.extract_strided_slice %20 {offsets = [0, 0, 0], sizes = [2, 16, 4], strides = [1, 1, 1]} : vector<2x18x4xf32> to vector<2x16x4xf32>
    %22 = vector.extract_strided_slice %20 {offsets = [0, 1, 0], sizes = [2, 16, 4], strides = [1, 1, 1]} : vector<2x18x4xf32> to vector<2x16x4xf32>
    %23 = vector.extract_strided_slice %20 {offsets = [0, 2, 0], sizes = [2, 16, 4], strides = [1, 1, 1]} : vector<2x18x4xf32> to vector<2x16x4xf32>
    %24 = tpu.concatenate %21, %22, %23 in 2 : vector<2x16x4xf32>, vector<2x16x4xf32>, vector<2x16x4xf32> -> vector<2x16x12xf32>
    %25 = vector.shape_cast %24 : vector<2x16x12xf32> to vector<32x12xf32>
    %cst_6 = arith.constant dense<0.000000e+00> : vector<32x8xf32>
    %26 = tpu.matmul %25, %16, %cst_6 {dimension_numbers = #tpu.dot_dimension_numbers<[1], [0], [0], [1], [0, 0, 1, 1], [], []>, precision = #tpu.contract_precision<fp32>} : vector<32x12xf32>, vector<12x8xf32>, vector<32x8xf32> -> vector<32x8xf32>
    %cst_7 = arith.constant dense<0.000000e+00> : vector<8xf32>
    %27 = vector.multi_reduction <add>, %26, %cst_7 [0] : vector<32x8xf32> to vector<8xf32>
    %28 = vector.shape_cast %27 : vector<8xf32> to vector<1x8xf32>
    %cst_8 = arith.constant 3.125000e-02 : f32
    %29 = vector.broadcast %cst_8 : f32 to vector<1x8xf32>
    %30 = arith.mulf %28, %29 : vector<1x8xf32>
    %31 = arith.mulf %26, %26 : vector<32x8xf32>
    %cst_9 = arith.constant dense<0.000000e+00> : vector<8xf32>
    %32 = vector.multi_reduction <add>, %31, %cst_9 [0] : vector<32x8xf32> to vector<8xf32>
    %33 = vector.shape_cast %32 : vector<8xf32> to vector<1x8xf32>
    %cst_10 = arith.constant 3.125000e-02 : f32
    %34 = vector.broadcast %cst_10 : f32 to vector<1x8xf32>
    %35 = arith.mulf %33, %34 : vector<1x8xf32>
    %36 = arith.mulf %30, %30 : vector<1x8xf32>
    %37 = arith.subf %35, %36 : vector<1x8xf32>
    %cst_11 = arith.constant 0.000000e+00 : f32
    %38 = vector.broadcast %cst_11 : f32 to vector<1x8xf32>
    %39 = arith.maximumf %37, %38 : vector<1x8xf32>
    %cst_12 = arith.constant 9.99999974E-6 : f32
    %40 = vector.broadcast %cst_12 : f32 to vector<1x8xf32>
    %41 = arith.addf %39, %40 : vector<1x8xf32>
    %42 = math.rsqrt %41 : vector<1x8xf32>
    %43 = arith.mulf %17, %42 : vector<1x8xf32>
    %44 = vector.broadcast %43 : vector<1x8xf32> to vector<32x8xf32>
    %45 = arith.mulf %26, %44 : vector<32x8xf32>
    %46 = arith.mulf %30, %43 : vector<1x8xf32>
    %47 = arith.subf %18, %46 : vector<1x8xf32>
    %48 = vector.broadcast %47 : vector<1x8xf32> to vector<32x8xf32>
    %49 = arith.addf %45, %48 : vector<32x8xf32>
    %cst_13 = arith.constant 0.000000e+00 : f32
    %50 = vector.broadcast %cst_13 : f32 to vector<32x8xf32>
    %51 = arith.maximumf %49, %50 : vector<32x8xf32>
    %52 = vector.shape_cast %51 : vector<32x8xf32> to vector<2x16x8xf32>
    %c16 = arith.constant 16 : index
    %c0_14 = arith.constant 0 : index
    %53 = vector.load %arg2[%c16, %c0_14] : memref<728x32xf32, #tpu.memory_space<vmem>>, vector<26x8xf32>
    %54 = vector.extract_strided_slice %53 {offsets = [0, 0], sizes = [24, 8], strides = [1, 1]} : vector<26x8xf32> to vector<24x8xf32>
    %55 = vector.extract_strided_slice %53 {offsets = [24, 0], sizes = [1, 8], strides = [1, 1]} : vector<26x8xf32> to vector<1x8xf32>
    %56 = vector.extract_strided_slice %53 {offsets = [25, 0], sizes = [1, 8], strides = [1, 1]} : vector<26x8xf32> to vector<1x8xf32>
    %cst_15 = arith.constant 0.000000e+00 : f32
    %57 = vector.broadcast %cst_15 : f32 to vector<2x1x8xf32>
    %58 = tpu.concatenate %57, %52, %57 in 1 : vector<2x1x8xf32>, vector<2x16x8xf32>, vector<2x1x8xf32> -> vector<2x18x8xf32>
    %59 = vector.extract_strided_slice %58 {offsets = [0, 0, 0], sizes = [2, 16, 8], strides = [1, 1, 1]} : vector<2x18x8xf32> to vector<2x16x8xf32>
    %60 = vector.extract_strided_slice %58 {offsets = [0, 1, 0], sizes = [2, 16, 8], strides = [1, 1, 1]} : vector<2x18x8xf32> to vector<2x16x8xf32>
    %61 = vector.extract_strided_slice %58 {offsets = [0, 2, 0], sizes = [2, 16, 8], strides = [1, 1, 1]} : vector<2x18x8xf32> to vector<2x16x8xf32>
    %62 = tpu.concatenate %59, %60, %61 in 2 : vector<2x16x8xf32>, vector<2x16x8xf32>, vector<2x16x8xf32> -> vector<2x16x24xf32>
    %63 = vector.shape_cast %62 : vector<2x16x24xf32> to vector<32x24xf32>
    %cst_16 = arith.constant dense<0.000000e+00> : vector<32x8xf32>
    %64 = tpu.matmul %63, %54, %cst_16 {dimension_numbers = #tpu.dot_dimension_numbers<[1], [0], [0], [1], [0, 0, 1, 1], [], []>, precision = #tpu.contract_precision<fp32>} : vector<32x24xf32>, vector<24x8xf32>, vector<32x8xf32> -> vector<32x8xf32>
    %cst_17 = arith.constant dense<0.000000e+00> : vector<8xf32>
    %65 = vector.multi_reduction <add>, %64, %cst_17 [0] : vector<32x8xf32> to vector<8xf32>
    %66 = vector.shape_cast %65 : vector<8xf32> to vector<1x8xf32>
    %cst_18 = arith.constant 3.125000e-02 : f32
    %67 = vector.broadcast %cst_18 : f32 to vector<1x8xf32>
    %68 = arith.mulf %66, %67 : vector<1x8xf32>
    %69 = arith.mulf %64, %64 : vector<32x8xf32>
    %cst_19 = arith.constant dense<0.000000e+00> : vector<8xf32>
    %70 = vector.multi_reduction <add>, %69, %cst_19 [0] : vector<32x8xf32> to vector<8xf32>
    %71 = vector.shape_cast %70 : vector<8xf32> to vector<1x8xf32>
    %cst_20 = arith.constant 3.125000e-02 : f32
    %72 = vector.broadcast %cst_20 : f32 to vector<1x8xf32>
    %73 = arith.mulf %71, %72 : vector<1x8xf32>
    %74 = arith.mulf %68, %68 : vector<1x8xf32>
    %75 = arith.subf %73, %74 : vector<1x8xf32>
    %cst_21 = arith.constant 0.000000e+00 : f32
    %76 = vector.broadcast %cst_21 : f32 to vector<1x8xf32>
    %77 = arith.maximumf %75, %76 : vector<1x8xf32>
    %cst_22 = arith.constant 9.99999974E-6 : f32
    %78 = vector.broadcast %cst_22 : f32 to vector<1x8xf32>
    %79 = arith.addf %77, %78 : vector<1x8xf32>
    %80 = math.rsqrt %79 : vector<1x8xf32>
    %81 = arith.mulf %55, %80 : vector<1x8xf32>
    %82 = vector.broadcast %81 : vector<1x8xf32> to vector<32x8xf32>
    %83 = arith.mulf %64, %82 : vector<32x8xf32>
    %84 = arith.mulf %68, %81 : vector<1x8xf32>
    %85 = arith.subf %56, %84 : vector<1x8xf32>
    %86 = vector.broadcast %85 : vector<1x8xf32> to vector<32x8xf32>
    %87 = arith.addf %83, %86 : vector<32x8xf32>
    %cst_23 = arith.constant 0.000000e+00 : f32
    %88 = vector.broadcast %cst_23 : f32 to vector<32x8xf32>
    %89 = arith.maximumf %87, %88 : vector<32x8xf32>
    %90 = vector.shape_cast %89 : vector<32x8xf32> to vector<2x16x8xf32>
    %91 = vector.shape_cast %90 : vector<2x16x8xf32> to vector<2x8x2x8xf32>
    %cst_24 = arith.constant dense<0xFF800000> : vector<2x8x8xf32>
    %92 = vector.multi_reduction <maximumf>, %91, %cst_24 [2] : vector<2x8x2x8xf32> to vector<2x8x8xf32>
    %c48 = arith.constant 48 : index
    %c0_25 = arith.constant 0 : index
    %93 = vector.load %arg2[%c48, %c0_25] : memref<728x32xf32, #tpu.memory_space<vmem>>, vector<26x16xf32>
    %94 = vector.extract_strided_slice %93 {offsets = [0, 0], sizes = [24, 16], strides = [1, 1]} : vector<26x16xf32> to vector<24x16xf32>
    %95 = vector.extract_strided_slice %93 {offsets = [24, 0], sizes = [1, 16], strides = [1, 1]} : vector<26x16xf32> to vector<1x16xf32>
    %96 = vector.extract_strided_slice %93 {offsets = [25, 0], sizes = [1, 16], strides = [1, 1]} : vector<26x16xf32> to vector<1x16xf32>
    %cst_26 = arith.constant 0.000000e+00 : f32
    %97 = vector.broadcast %cst_26 : f32 to vector<2x1x8xf32>
    %98 = tpu.concatenate %97, %92, %97 in 1 : vector<2x1x8xf32>, vector<2x8x8xf32>, vector<2x1x8xf32> -> vector<2x10x8xf32>
    %99 = vector.extract_strided_slice %98 {offsets = [0, 0, 0], sizes = [2, 8, 8], strides = [1, 1, 1]} : vector<2x10x8xf32> to vector<2x8x8xf32>
    %100 = vector.extract_strided_slice %98 {offsets = [0, 1, 0], sizes = [2, 8, 8], strides = [1, 1, 1]} : vector<2x10x8xf32> to vector<2x8x8xf32>
    %101 = vector.extract_strided_slice %98 {offsets = [0, 2, 0], sizes = [2, 8, 8], strides = [1, 1, 1]} : vector<2x10x8xf32> to vector<2x8x8xf32>
    %102 = tpu.concatenate %99, %100, %101 in 2 : vector<2x8x8xf32>, vector<2x8x8xf32>, vector<2x8x8xf32> -> vector<2x8x24xf32>
    %103 = vector.shape_cast %102 : vector<2x8x24xf32> to vector<16x24xf32>
    %cst_27 = arith.constant dense<0.000000e+00> : vector<16x16xf32>
    %104 = tpu.matmul %103, %94, %cst_27 {dimension_numbers = #tpu.dot_dimension_numbers<[1], [0], [0], [1], [0, 0, 1, 1], [], []>, precision = #tpu.contract_precision<fp32>} : vector<16x24xf32>, vector<24x16xf32>, vector<16x16xf32> -> vector<16x16xf32>
    %cst_28 = arith.constant dense<0.000000e+00> : vector<16xf32>
    %105 = vector.multi_reduction <add>, %104, %cst_28 [0] : vector<16x16xf32> to vector<16xf32>
    %106 = vector.shape_cast %105 : vector<16xf32> to vector<1x16xf32>
    %cst_29 = arith.constant 6.250000e-02 : f32
    %107 = vector.broadcast %cst_29 : f32 to vector<1x16xf32>
    %108 = arith.mulf %106, %107 : vector<1x16xf32>
    %109 = arith.mulf %104, %104 : vector<16x16xf32>
    %cst_30 = arith.constant dense<0.000000e+00> : vector<16xf32>
    %110 = vector.multi_reduction <add>, %109, %cst_30 [0] : vector<16x16xf32> to vector<16xf32>
    %111 = vector.shape_cast %110 : vector<16xf32> to vector<1x16xf32>
    %cst_31 = arith.constant 6.250000e-02 : f32
    %112 = vector.broadcast %cst_31 : f32 to vector<1x16xf32>
    %113 = arith.mulf %111, %112 : vector<1x16xf32>
    %114 = arith.mulf %108, %108 : vector<1x16xf32>
    %115 = arith.subf %113, %114 : vector<1x16xf32>
    %cst_32 = arith.constant 0.000000e+00 : f32
    %116 = vector.broadcast %cst_32 : f32 to vector<1x16xf32>
    %117 = arith.maximumf %115, %116 : vector<1x16xf32>
    %cst_33 = arith.constant 9.99999974E-6 : f32
    %118 = vector.broadcast %cst_33 : f32 to vector<1x16xf32>
    %119 = arith.addf %117, %118 : vector<1x16xf32>
    %120 = math.rsqrt %119 : vector<1x16xf32>
    %121 = arith.mulf %95, %120 : vector<1x16xf32>
    %122 = vector.broadcast %121 : vector<1x16xf32> to vector<16x16xf32>
    %123 = arith.mulf %104, %122 : vector<16x16xf32>
    %124 = arith.mulf %108, %121 : vector<1x16xf32>
    %125 = arith.subf %96, %124 : vector<1x16xf32>
    %126 = vector.broadcast %125 : vector<1x16xf32> to vector<16x16xf32>
    %127 = arith.addf %123, %126 : vector<16x16xf32>
    %cst_34 = arith.constant 0.000000e+00 : f32
    %128 = vector.broadcast %cst_34 : f32 to vector<16x16xf32>
    %129 = arith.maximumf %127, %128 : vector<16x16xf32>
    %130 = vector.shape_cast %129 : vector<16x16xf32> to vector<2x8x16xf32>
    %c80 = arith.constant 80 : index
    %c0_35 = arith.constant 0 : index
    %131 = vector.load %arg2[%c80, %c0_35] : memref<728x32xf32, #tpu.memory_space<vmem>>, vector<50x16xf32>
    %132 = vector.extract_strided_slice %131 {offsets = [0, 0], sizes = [48, 16], strides = [1, 1]} : vector<50x16xf32> to vector<48x16xf32>
    %133 = vector.extract_strided_slice %131 {offsets = [48, 0], sizes = [1, 16], strides = [1, 1]} : vector<50x16xf32> to vector<1x16xf32>
    %134 = vector.extract_strided_slice %131 {offsets = [49, 0], sizes = [1, 16], strides = [1, 1]} : vector<50x16xf32> to vector<1x16xf32>
    %cst_36 = arith.constant 0.000000e+00 : f32
    %135 = vector.broadcast %cst_36 : f32 to vector<2x1x16xf32>
    %136 = tpu.concatenate %135, %130, %135 in 1 : vector<2x1x16xf32>, vector<2x8x16xf32>, vector<2x1x16xf32> -> vector<2x10x16xf32>
    %137 = vector.extract_strided_slice %136 {offsets = [0, 0, 0], sizes = [2, 8, 16], strides = [1, 1, 1]} : vector<2x10x16xf32> to vector<2x8x16xf32>
    %138 = vector.extract_strided_slice %136 {offsets = [0, 1, 0], sizes = [2, 8, 16], strides = [1, 1, 1]} : vector<2x10x16xf32> to vector<2x8x16xf32>
    %139 = vector.extract_strided_slice %136 {offsets = [0, 2, 0], sizes = [2, 8, 16], strides = [1, 1, 1]} : vector<2x10x16xf32> to vector<2x8x16xf32>
    %140 = tpu.concatenate %137, %138, %139 in 2 : vector<2x8x16xf32>, vector<2x8x16xf32>, vector<2x8x16xf32> -> vector<2x8x48xf32>
    %141 = vector.shape_cast %140 : vector<2x8x48xf32> to vector<16x48xf32>
    %cst_37 = arith.constant dense<0.000000e+00> : vector<16x16xf32>
    %142 = tpu.matmul %141, %132, %cst_37 {dimension_numbers = #tpu.dot_dimension_numbers<[1], [0], [0], [1], [0, 0, 1, 1], [], []>, precision = #tpu.contract_precision<fp32>} : vector<16x48xf32>, vector<48x16xf32>, vector<16x16xf32> -> vector<16x16xf32>
    %cst_38 = arith.constant dense<0.000000e+00> : vector<16xf32>
    %143 = vector.multi_reduction <add>, %142, %cst_38 [0] : vector<16x16xf32> to vector<16xf32>
    %144 = vector.shape_cast %143 : vector<16xf32> to vector<1x16xf32>
    %cst_39 = arith.constant 6.250000e-02 : f32
    %145 = vector.broadcast %cst_39 : f32 to vector<1x16xf32>
    %146 = arith.mulf %144, %145 : vector<1x16xf32>
    %147 = arith.mulf %142, %142 : vector<16x16xf32>
    %cst_40 = arith.constant dense<0.000000e+00> : vector<16xf32>
    %148 = vector.multi_reduction <add>, %147, %cst_40 [0] : vector<16x16xf32> to vector<16xf32>
    %149 = vector.shape_cast %148 : vector<16xf32> to vector<1x16xf32>
    %cst_41 = arith.constant 6.250000e-02 : f32
    %150 = vector.broadcast %cst_41 : f32 to vector<1x16xf32>
    %151 = arith.mulf %149, %150 : vector<1x16xf32>
    %152 = arith.mulf %146, %146 : vector<1x16xf32>
    %153 = arith.subf %151, %152 : vector<1x16xf32>
    %cst_42 = arith.constant 0.000000e+00 : f32
    %154 = vector.broadcast %cst_42 : f32 to vector<1x16xf32>
    %155 = arith.maximumf %153, %154 : vector<1x16xf32>
    %cst_43 = arith.constant 9.99999974E-6 : f32
    %156 = vector.broadcast %cst_43 : f32 to vector<1x16xf32>
    %157 = arith.addf %155, %156 : vector<1x16xf32>
    %158 = math.rsqrt %157 : vector<1x16xf32>
    %159 = arith.mulf %133, %158 : vector<1x16xf32>
    %160 = vector.broadcast %159 : vector<1x16xf32> to vector<16x16xf32>
    %161 = arith.mulf %142, %160 : vector<16x16xf32>
    %162 = arith.mulf %146, %159 : vector<1x16xf32>
    %163 = arith.subf %134, %162 : vector<1x16xf32>
    %164 = vector.broadcast %163 : vector<1x16xf32> to vector<16x16xf32>
    %165 = arith.addf %161, %164 : vector<16x16xf32>
    %cst_44 = arith.constant 0.000000e+00 : f32
    %166 = vector.broadcast %cst_44 : f32 to vector<16x16xf32>
    %167 = arith.maximumf %165, %166 : vector<16x16xf32>
    %168 = vector.shape_cast %167 : vector<16x16xf32> to vector<2x8x16xf32>
    %169 = vector.shape_cast %168 : vector<2x8x16xf32> to vector<2x4x2x16xf32>
    %cst_45 = arith.constant dense<0xFF800000> : vector<2x4x16xf32>
    %170 = vector.multi_reduction <maximumf>, %169, %cst_45 [2] : vector<2x4x2x16xf32> to vector<2x4x16xf32>
    %c136 = arith.constant 136 : index
    %c0_46 = arith.constant 0 : index
    %171 = vector.load %arg2[%c136, %c0_46] : memref<728x32xf32, #tpu.memory_space<vmem>>, vector<50x32xf32>
    %172 = vector.extract_strided_slice %171 {offsets = [0, 0], sizes = [48, 32], strides = [1, 1]} : vector<50x32xf32> to vector<48x32xf32>
    %173 = vector.extract_strided_slice %171 {offsets = [48, 0], sizes = [1, 32], strides = [1, 1]} : vector<50x32xf32> to vector<1x32xf32>
    %174 = vector.extract_strided_slice %171 {offsets = [49, 0], sizes = [1, 32], strides = [1, 1]} : vector<50x32xf32> to vector<1x32xf32>
    %cst_47 = arith.constant 0.000000e+00 : f32
    %175 = vector.broadcast %cst_47 : f32 to vector<2x1x16xf32>
    %176 = tpu.concatenate %175, %170, %175 in 1 : vector<2x1x16xf32>, vector<2x4x16xf32>, vector<2x1x16xf32> -> vector<2x6x16xf32>
    %177 = vector.extract_strided_slice %176 {offsets = [0, 0, 0], sizes = [2, 4, 16], strides = [1, 1, 1]} : vector<2x6x16xf32> to vector<2x4x16xf32>
    %178 = vector.extract_strided_slice %176 {offsets = [0, 1, 0], sizes = [2, 4, 16], strides = [1, 1, 1]} : vector<2x6x16xf32> to vector<2x4x16xf32>
    %179 = vector.extract_strided_slice %176 {offsets = [0, 2, 0], sizes = [2, 4, 16], strides = [1, 1, 1]} : vector<2x6x16xf32> to vector<2x4x16xf32>
    %180 = tpu.concatenate %177, %178, %179 in 2 : vector<2x4x16xf32>, vector<2x4x16xf32>, vector<2x4x16xf32> -> vector<2x4x48xf32>
    %181 = vector.shape_cast %180 : vector<2x4x48xf32> to vector<8x48xf32>
    %cst_48 = arith.constant dense<0.000000e+00> : vector<8x32xf32>
    %182 = tpu.matmul %181, %172, %cst_48 {dimension_numbers = #tpu.dot_dimension_numbers<[1], [0], [0], [1], [0, 0, 1, 1], [], []>, precision = #tpu.contract_precision<fp32>} : vector<8x48xf32>, vector<48x32xf32>, vector<8x32xf32> -> vector<8x32xf32>
    %cst_49 = arith.constant dense<0.000000e+00> : vector<32xf32>
    %183 = vector.multi_reduction <add>, %182, %cst_49 [0] : vector<8x32xf32> to vector<32xf32>
    %184 = vector.shape_cast %183 : vector<32xf32> to vector<1x32xf32>
    %cst_50 = arith.constant 1.250000e-01 : f32
    %185 = vector.broadcast %cst_50 : f32 to vector<1x32xf32>
    %186 = arith.mulf %184, %185 : vector<1x32xf32>
    %187 = arith.mulf %182, %182 : vector<8x32xf32>
    %cst_51 = arith.constant dense<0.000000e+00> : vector<32xf32>
    %188 = vector.multi_reduction <add>, %187, %cst_51 [0] : vector<8x32xf32> to vector<32xf32>
    %189 = vector.shape_cast %188 : vector<32xf32> to vector<1x32xf32>
    %cst_52 = arith.constant 1.250000e-01 : f32
    %190 = vector.broadcast %cst_52 : f32 to vector<1x32xf32>
    %191 = arith.mulf %189, %190 : vector<1x32xf32>
    %192 = arith.mulf %186, %186 : vector<1x32xf32>
    %193 = arith.subf %191, %192 : vector<1x32xf32>
    %cst_53 = arith.constant 0.000000e+00 : f32
    %194 = vector.broadcast %cst_53 : f32 to vector<1x32xf32>
    %195 = arith.maximumf %193, %194 : vector<1x32xf32>
    %cst_54 = arith.constant 9.99999974E-6 : f32
    %196 = vector.broadcast %cst_54 : f32 to vector<1x32xf32>
    %197 = arith.addf %195, %196 : vector<1x32xf32>
    %198 = math.rsqrt %197 : vector<1x32xf32>
    %199 = arith.mulf %173, %198 : vector<1x32xf32>
    %200 = vector.broadcast %199 : vector<1x32xf32> to vector<8x32xf32>
    %201 = arith.mulf %182, %200 : vector<8x32xf32>
    %202 = arith.mulf %186, %199 : vector<1x32xf32>
    %203 = arith.subf %174, %202 : vector<1x32xf32>
    %204 = vector.broadcast %203 : vector<1x32xf32> to vector<8x32xf32>
    %205 = arith.addf %201, %204 : vector<8x32xf32>
    %cst_55 = arith.constant 0.000000e+00 : f32
    %206 = vector.broadcast %cst_55 : f32 to vector<8x32xf32>
    %207 = arith.maximumf %205, %206 : vector<8x32xf32>
    %208 = vector.shape_cast %207 : vector<8x32xf32> to vector<2x4x32xf32>
    %c192 = arith.constant 192 : index
    %c0_56 = arith.constant 0 : index
    %209 = vector.load %arg2[%c192, %c0_56] : memref<728x32xf32, #tpu.memory_space<vmem>>, vector<98x32xf32>
    %210 = vector.extract_strided_slice %209 {offsets = [0, 0], sizes = [96, 32], strides = [1, 1]} : vector<98x32xf32> to vector<96x32xf32>
    %211 = vector.extract_strided_slice %209 {offsets = [96, 0], sizes = [1, 32], strides = [1, 1]} : vector<98x32xf32> to vector<1x32xf32>
    %212 = vector.extract_strided_slice %209 {offsets = [97, 0], sizes = [1, 32], strides = [1, 1]} : vector<98x32xf32> to vector<1x32xf32>
    %cst_57 = arith.constant 0.000000e+00 : f32
    %213 = vector.broadcast %cst_57 : f32 to vector<2x1x32xf32>
    %214 = tpu.concatenate %213, %208, %213 in 1 : vector<2x1x32xf32>, vector<2x4x32xf32>, vector<2x1x32xf32> -> vector<2x6x32xf32>
    %215 = vector.extract_strided_slice %214 {offsets = [0, 0, 0], sizes = [2, 4, 32], strides = [1, 1, 1]} : vector<2x6x32xf32> to vector<2x4x32xf32>
    %216 = vector.extract_strided_slice %214 {offsets = [0, 1, 0], sizes = [2, 4, 32], strides = [1, 1, 1]} : vector<2x6x32xf32> to vector<2x4x32xf32>
    %217 = vector.extract_strided_slice %214 {offsets = [0, 2, 0], sizes = [2, 4, 32], strides = [1, 1, 1]} : vector<2x6x32xf32> to vector<2x4x32xf32>
    %218 = tpu.concatenate %215, %216, %217 in 2 : vector<2x4x32xf32>, vector<2x4x32xf32>, vector<2x4x32xf32> -> vector<2x4x96xf32>
    %219 = vector.shape_cast %218 : vector<2x4x96xf32> to vector<8x96xf32>
    %cst_58 = arith.constant dense<0.000000e+00> : vector<8x32xf32>
    %220 = tpu.matmul %219, %210, %cst_58 {dimension_numbers = #tpu.dot_dimension_numbers<[1], [0], [0], [1], [0, 0, 1, 1], [], []>, precision = #tpu.contract_precision<fp32>} : vector<8x96xf32>, vector<96x32xf32>, vector<8x32xf32> -> vector<8x32xf32>
    %cst_59 = arith.constant dense<0.000000e+00> : vector<32xf32>
    %221 = vector.multi_reduction <add>, %220, %cst_59 [0] : vector<8x32xf32> to vector<32xf32>
    %222 = vector.shape_cast %221 : vector<32xf32> to vector<1x32xf32>
    %cst_60 = arith.constant 1.250000e-01 : f32
    %223 = vector.broadcast %cst_60 : f32 to vector<1x32xf32>
    %224 = arith.mulf %222, %223 : vector<1x32xf32>
    %225 = arith.mulf %220, %220 : vector<8x32xf32>
    %cst_61 = arith.constant dense<0.000000e+00> : vector<32xf32>
    %226 = vector.multi_reduction <add>, %225, %cst_61 [0] : vector<8x32xf32> to vector<32xf32>
    %227 = vector.shape_cast %226 : vector<32xf32> to vector<1x32xf32>
    %cst_62 = arith.constant 1.250000e-01 : f32
    %228 = vector.broadcast %cst_62 : f32 to vector<1x32xf32>
    %229 = arith.mulf %227, %228 : vector<1x32xf32>
    %230 = arith.mulf %224, %224 : vector<1x32xf32>
    %231 = arith.subf %229, %230 : vector<1x32xf32>
    %cst_63 = arith.constant 0.000000e+00 : f32
    %232 = vector.broadcast %cst_63 : f32 to vector<1x32xf32>
    %233 = arith.maximumf %231, %232 : vector<1x32xf32>
    %cst_64 = arith.constant 9.99999974E-6 : f32
    %234 = vector.broadcast %cst_64 : f32 to vector<1x32xf32>
    %235 = arith.addf %233, %234 : vector<1x32xf32>
    %236 = math.rsqrt %235 : vector<1x32xf32>
    %237 = arith.mulf %211, %236 : vector<1x32xf32>
    %238 = vector.broadcast %237 : vector<1x32xf32> to vector<8x32xf32>
    %239 = arith.mulf %220, %238 : vector<8x32xf32>
    %240 = arith.mulf %224, %237 : vector<1x32xf32>
    %241 = arith.subf %212, %240 : vector<1x32xf32>
    %242 = vector.broadcast %241 : vector<1x32xf32> to vector<8x32xf32>
    %243 = arith.addf %239, %242 : vector<8x32xf32>
    %cst_65 = arith.constant 0.000000e+00 : f32
    %244 = vector.broadcast %cst_65 : f32 to vector<8x32xf32>
    %245 = arith.maximumf %243, %244 : vector<8x32xf32>
    %246 = vector.shape_cast %245 : vector<8x32xf32> to vector<2x4x32xf32>
    %c296 = arith.constant 296 : index
    %c0_66 = arith.constant 0 : index
    %247 = vector.load %arg2[%c296, %c0_66] : memref<728x32xf32, #tpu.memory_space<vmem>>, vector<65x16xf32>
    %248 = vector.extract_strided_slice %247 {offsets = [0, 0], sizes = [32, 16], strides = [1, 1]} : vector<65x16xf32> to vector<32x16xf32>
    %249 = vector.extract_strided_slice %247 {offsets = [32, 0], sizes = [32, 16], strides = [1, 1]} : vector<65x16xf32> to vector<32x16xf32>
    %250 = vector.extract_strided_slice %247 {offsets = [64, 0], sizes = [1, 16], strides = [1, 1]} : vector<65x16xf32> to vector<1x16xf32>
    %251 = vector.shape_cast %246 : vector<2x4x32xf32> to vector<8x32xf32>
    %cst_67 = arith.constant dense<0.000000e+00> : vector<8x16xf32>
    %252 = tpu.matmul %251, %248, %cst_67 {dimension_numbers = #tpu.dot_dimension_numbers<[1], [0], [0], [1], [0, 0, 1, 1], [], []>, precision = #tpu.contract_precision<fp32>} : vector<8x32xf32>, vector<32x16xf32>, vector<8x16xf32> -> vector<8x16xf32>
    %253 = vector.broadcast %250 : vector<1x16xf32> to vector<8x16xf32>
    %254 = arith.addf %252, %253 : vector<8x16xf32>
    %255 = vector.shape_cast %254 : vector<8x16xf32> to vector<2x4x16xf32>
    %cst_68 = arith.constant dense<0.000000e+00> : vector<8x16xf32>
    %256 = tpu.matmul %251, %249, %cst_68 {dimension_numbers = #tpu.dot_dimension_numbers<[1], [0], [0], [1], [0, 0, 1, 1], [], []>, precision = #tpu.contract_precision<fp32>} : vector<8x32xf32>, vector<32x16xf32>, vector<8x16xf32> -> vector<8x16xf32>
    %257 = vector.broadcast %250 : vector<1x16xf32> to vector<8x16xf32>
    %258 = arith.addf %256, %257 : vector<8x16xf32>
    %259 = vector.shape_cast %258 : vector<8x16xf32> to vector<2x4x16xf32>
    %260 = vector.shape_cast %255 : vector<2x4x16xf32> to vector<2x4x1x16xf32>
    %261 = vector.shape_cast %259 : vector<2x4x16xf32> to vector<2x4x1x16xf32>
    %262 = tpu.concatenate %260, %261 in 2 : vector<2x4x1x16xf32>, vector<2x4x1x16xf32> -> vector<2x4x2x16xf32>
    %263 = vector.shape_cast %262 : vector<2x4x2x16xf32> to vector<2x8x16xf32>
    %264 = tpu.concatenate %168, %263 in 2 : vector<2x8x16xf32>, vector<2x8x16xf32> -> vector<2x8x32xf32>
    %c368 = arith.constant 368 : index
    %c0_69 = arith.constant 0 : index
    %265 = vector.load %arg2[%c368, %c0_69] : memref<728x32xf32, #tpu.memory_space<vmem>>, vector<98x16xf32>
    %266 = vector.extract_strided_slice %265 {offsets = [0, 0], sizes = [96, 16], strides = [1, 1]} : vector<98x16xf32> to vector<96x16xf32>
    %267 = vector.extract_strided_slice %265 {offsets = [96, 0], sizes = [1, 16], strides = [1, 1]} : vector<98x16xf32> to vector<1x16xf32>
    %268 = vector.extract_strided_slice %265 {offsets = [97, 0], sizes = [1, 16], strides = [1, 1]} : vector<98x16xf32> to vector<1x16xf32>
    %cst_70 = arith.constant 0.000000e+00 : f32
    %269 = vector.broadcast %cst_70 : f32 to vector<2x1x32xf32>
    %270 = tpu.concatenate %269, %264, %269 in 1 : vector<2x1x32xf32>, vector<2x8x32xf32>, vector<2x1x32xf32> -> vector<2x10x32xf32>
    %271 = vector.extract_strided_slice %270 {offsets = [0, 0, 0], sizes = [2, 8, 32], strides = [1, 1, 1]} : vector<2x10x32xf32> to vector<2x8x32xf32>
    %272 = vector.extract_strided_slice %270 {offsets = [0, 1, 0], sizes = [2, 8, 32], strides = [1, 1, 1]} : vector<2x10x32xf32> to vector<2x8x32xf32>
    %273 = vector.extract_strided_slice %270 {offsets = [0, 2, 0], sizes = [2, 8, 32], strides = [1, 1, 1]} : vector<2x10x32xf32> to vector<2x8x32xf32>
    %274 = tpu.concatenate %271, %272, %273 in 2 : vector<2x8x32xf32>, vector<2x8x32xf32>, vector<2x8x32xf32> -> vector<2x8x96xf32>
    %275 = vector.shape_cast %274 : vector<2x8x96xf32> to vector<16x96xf32>
    %cst_71 = arith.constant dense<0.000000e+00> : vector<16x16xf32>
    %276 = tpu.matmul %275, %266, %cst_71 {dimension_numbers = #tpu.dot_dimension_numbers<[1], [0], [0], [1], [0, 0, 1, 1], [], []>, precision = #tpu.contract_precision<fp32>} : vector<16x96xf32>, vector<96x16xf32>, vector<16x16xf32> -> vector<16x16xf32>
    %cst_72 = arith.constant dense<0.000000e+00> : vector<16xf32>
    %277 = vector.multi_reduction <add>, %276, %cst_72 [0] : vector<16x16xf32> to vector<16xf32>
    %278 = vector.shape_cast %277 : vector<16xf32> to vector<1x16xf32>
    %cst_73 = arith.constant 6.250000e-02 : f32
    %279 = vector.broadcast %cst_73 : f32 to vector<1x16xf32>
    %280 = arith.mulf %278, %279 : vector<1x16xf32>
    %281 = arith.mulf %276, %276 : vector<16x16xf32>
    %cst_74 = arith.constant dense<0.000000e+00> : vector<16xf32>
    %282 = vector.multi_reduction <add>, %281, %cst_74 [0] : vector<16x16xf32> to vector<16xf32>
    %283 = vector.shape_cast %282 : vector<16xf32> to vector<1x16xf32>
    %cst_75 = arith.constant 6.250000e-02 : f32
    %284 = vector.broadcast %cst_75 : f32 to vector<1x16xf32>
    %285 = arith.mulf %283, %284 : vector<1x16xf32>
    %286 = arith.mulf %280, %280 : vector<1x16xf32>
    %287 = arith.subf %285, %286 : vector<1x16xf32>
    %cst_76 = arith.constant 0.000000e+00 : f32
    %288 = vector.broadcast %cst_76 : f32 to vector<1x16xf32>
    %289 = arith.maximumf %287, %288 : vector<1x16xf32>
    %cst_77 = arith.constant 9.99999974E-6 : f32
    %290 = vector.broadcast %cst_77 : f32 to vector<1x16xf32>
    %291 = arith.addf %289, %290 : vector<1x16xf32>
    %292 = math.rsqrt %291 : vector<1x16xf32>
    %293 = arith.mulf %267, %292 : vector<1x16xf32>
    %294 = vector.broadcast %293 : vector<1x16xf32> to vector<16x16xf32>
    %295 = arith.mulf %276, %294 : vector<16x16xf32>
    %296 = arith.mulf %280, %293 : vector<1x16xf32>
    %297 = arith.subf %268, %296 : vector<1x16xf32>
    %298 = vector.broadcast %297 : vector<1x16xf32> to vector<16x16xf32>
    %299 = arith.addf %295, %298 : vector<16x16xf32>
    %cst_78 = arith.constant 0.000000e+00 : f32
    %300 = vector.broadcast %cst_78 : f32 to vector<16x16xf32>
    %301 = arith.maximumf %299, %300 : vector<16x16xf32>
    %302 = vector.shape_cast %301 : vector<16x16xf32> to vector<2x8x16xf32>
    %c472 = arith.constant 472 : index
    %c0_79 = arith.constant 0 : index
    %303 = vector.load %arg2[%c472, %c0_79] : memref<728x32xf32, #tpu.memory_space<vmem>>, vector<50x16xf32>
    %304 = vector.extract_strided_slice %303 {offsets = [0, 0], sizes = [48, 16], strides = [1, 1]} : vector<50x16xf32> to vector<48x16xf32>
    %305 = vector.extract_strided_slice %303 {offsets = [48, 0], sizes = [1, 16], strides = [1, 1]} : vector<50x16xf32> to vector<1x16xf32>
    %306 = vector.extract_strided_slice %303 {offsets = [49, 0], sizes = [1, 16], strides = [1, 1]} : vector<50x16xf32> to vector<1x16xf32>
    %cst_80 = arith.constant 0.000000e+00 : f32
    %307 = vector.broadcast %cst_80 : f32 to vector<2x1x16xf32>
    %308 = tpu.concatenate %307, %302, %307 in 1 : vector<2x1x16xf32>, vector<2x8x16xf32>, vector<2x1x16xf32> -> vector<2x10x16xf32>
    %309 = vector.extract_strided_slice %308 {offsets = [0, 0, 0], sizes = [2, 8, 16], strides = [1, 1, 1]} : vector<2x10x16xf32> to vector<2x8x16xf32>
    %310 = vector.extract_strided_slice %308 {offsets = [0, 1, 0], sizes = [2, 8, 16], strides = [1, 1, 1]} : vector<2x10x16xf32> to vector<2x8x16xf32>
    %311 = vector.extract_strided_slice %308 {offsets = [0, 2, 0], sizes = [2, 8, 16], strides = [1, 1, 1]} : vector<2x10x16xf32> to vector<2x8x16xf32>
    %312 = tpu.concatenate %309, %310, %311 in 2 : vector<2x8x16xf32>, vector<2x8x16xf32>, vector<2x8x16xf32> -> vector<2x8x48xf32>
    %313 = vector.shape_cast %312 : vector<2x8x48xf32> to vector<16x48xf32>
    %cst_81 = arith.constant dense<0.000000e+00> : vector<16x16xf32>
    %314 = tpu.matmul %313, %304, %cst_81 {dimension_numbers = #tpu.dot_dimension_numbers<[1], [0], [0], [1], [0, 0, 1, 1], [], []>, precision = #tpu.contract_precision<fp32>} : vector<16x48xf32>, vector<48x16xf32>, vector<16x16xf32> -> vector<16x16xf32>
    %cst_82 = arith.constant dense<0.000000e+00> : vector<16xf32>
    %315 = vector.multi_reduction <add>, %314, %cst_82 [0] : vector<16x16xf32> to vector<16xf32>
    %316 = vector.shape_cast %315 : vector<16xf32> to vector<1x16xf32>
    %cst_83 = arith.constant 6.250000e-02 : f32
    %317 = vector.broadcast %cst_83 : f32 to vector<1x16xf32>
    %318 = arith.mulf %316, %317 : vector<1x16xf32>
    %319 = arith.mulf %314, %314 : vector<16x16xf32>
    %cst_84 = arith.constant dense<0.000000e+00> : vector<16xf32>
    %320 = vector.multi_reduction <add>, %319, %cst_84 [0] : vector<16x16xf32> to vector<16xf32>
    %321 = vector.shape_cast %320 : vector<16xf32> to vector<1x16xf32>
    %cst_85 = arith.constant 6.250000e-02 : f32
    %322 = vector.broadcast %cst_85 : f32 to vector<1x16xf32>
    %323 = arith.mulf %321, %322 : vector<1x16xf32>
    %324 = arith.mulf %318, %318 : vector<1x16xf32>
    %325 = arith.subf %323, %324 : vector<1x16xf32>
    %cst_86 = arith.constant 0.000000e+00 : f32
    %326 = vector.broadcast %cst_86 : f32 to vector<1x16xf32>
    %327 = arith.maximumf %325, %326 : vector<1x16xf32>
    %cst_87 = arith.constant 9.99999974E-6 : f32
    %328 = vector.broadcast %cst_87 : f32 to vector<1x16xf32>
    %329 = arith.addf %327, %328 : vector<1x16xf32>
    %330 = math.rsqrt %329 : vector<1x16xf32>
    %331 = arith.mulf %305, %330 : vector<1x16xf32>
    %332 = vector.broadcast %331 : vector<1x16xf32> to vector<16x16xf32>
    %333 = arith.mulf %314, %332 : vector<16x16xf32>
    %334 = arith.mulf %318, %331 : vector<1x16xf32>
    %335 = arith.subf %306, %334 : vector<1x16xf32>
    %336 = vector.broadcast %335 : vector<1x16xf32> to vector<16x16xf32>
    %337 = arith.addf %333, %336 : vector<16x16xf32>
    %cst_88 = arith.constant 0.000000e+00 : f32
    %338 = vector.broadcast %cst_88 : f32 to vector<16x16xf32>
    %339 = arith.maximumf %337, %338 : vector<16x16xf32>
    %340 = vector.shape_cast %339 : vector<16x16xf32> to vector<2x8x16xf32>
    %c672 = arith.constant 672 : index
    %c0_89 = arith.constant 0 : index
    %341 = vector.load %arg2[%c672, %c0_89] : memref<728x32xf32, #tpu.memory_space<vmem>>, vector<17x2xf32>
    %342 = vector.extract_strided_slice %341 {offsets = [0, 0], sizes = [16, 2], strides = [1, 1]} : vector<17x2xf32> to vector<16x2xf32>
    %343 = vector.extract_strided_slice %341 {offsets = [16, 0], sizes = [1, 2], strides = [1, 1]} : vector<17x2xf32> to vector<1x2xf32>
    %344 = vector.shape_cast %340 : vector<2x8x16xf32> to vector<16x16xf32>
    %cst_90 = arith.constant dense<0.000000e+00> : vector<16x2xf32>
    %345 = tpu.matmul %344, %342, %cst_90 {dimension_numbers = #tpu.dot_dimension_numbers<[1], [0], [0], [1], [0, 0, 1, 1], [], []>, precision = #tpu.contract_precision<fp32>} : vector<16x16xf32>, vector<16x2xf32>, vector<16x2xf32> -> vector<16x2xf32>
    %346 = vector.broadcast %343 : vector<1x2xf32> to vector<16x2xf32>
    %347 = arith.addf %345, %346 : vector<16x2xf32>
    %348 = vector.shape_cast %347 : vector<16x2xf32> to vector<2x8x2xf32>
    %c696 = arith.constant 696 : index
    %c0_91 = arith.constant 0 : index
    %349 = vector.load %arg2[%c696, %c0_91] : memref<728x32xf32, #tpu.memory_space<vmem>>, vector<5x2xf32>
    %350 = vector.extract_strided_slice %349 {offsets = [0, 0], sizes = [2, 2], strides = [1, 1]} : vector<5x2xf32> to vector<2x2xf32>
    %351 = vector.extract_strided_slice %349 {offsets = [2, 0], sizes = [2, 2], strides = [1, 1]} : vector<5x2xf32> to vector<2x2xf32>
    %352 = vector.extract_strided_slice %349 {offsets = [4, 0], sizes = [1, 2], strides = [1, 1]} : vector<5x2xf32> to vector<1x2xf32>
    %353 = vector.shape_cast %348 : vector<2x8x2xf32> to vector<16x2xf32>
    %cst_92 = arith.constant dense<0.000000e+00> : vector<16x2xf32>
    %354 = tpu.matmul %353, %350, %cst_92 {dimension_numbers = #tpu.dot_dimension_numbers<[1], [0], [0], [1], [0, 0, 1, 1], [], []>, precision = #tpu.contract_precision<fp32>} : vector<16x2xf32>, vector<2x2xf32>, vector<16x2xf32> -> vector<16x2xf32>
    %355 = vector.broadcast %352 : vector<1x2xf32> to vector<16x2xf32>
    %356 = arith.addf %354, %355 : vector<16x2xf32>
    %357 = vector.shape_cast %356 : vector<16x2xf32> to vector<2x8x2xf32>
    %cst_93 = arith.constant dense<0.000000e+00> : vector<16x2xf32>
    %358 = tpu.matmul %353, %351, %cst_93 {dimension_numbers = #tpu.dot_dimension_numbers<[1], [0], [0], [1], [0, 0, 1, 1], [], []>, precision = #tpu.contract_precision<fp32>} : vector<16x2xf32>, vector<2x2xf32>, vector<16x2xf32> -> vector<16x2xf32>
    %359 = vector.broadcast %352 : vector<1x2xf32> to vector<16x2xf32>
    %360 = arith.addf %358, %359 : vector<16x2xf32>
    %361 = vector.shape_cast %360 : vector<16x2xf32> to vector<2x8x2xf32>
    %362 = vector.shape_cast %357 : vector<2x8x2xf32> to vector<2x8x1x2xf32>
    %363 = vector.shape_cast %361 : vector<2x8x2xf32> to vector<2x8x1x2xf32>
    %364 = tpu.concatenate %362, %363 in 2 : vector<2x8x1x2xf32>, vector<2x8x1x2xf32> -> vector<2x8x2x2xf32>
    %365 = vector.shape_cast %364 : vector<2x8x2x2xf32> to vector<2x16x2xf32>
    %c528 = arith.constant 528 : index
    %c0_94 = arith.constant 0 : index
    %366 = vector.load %arg2[%c528, %c0_94] : memref<728x32xf32, #tpu.memory_space<vmem>>, vector<33x8xf32>
    %367 = vector.extract_strided_slice %366 {offsets = [0, 0], sizes = [16, 8], strides = [1, 1]} : vector<33x8xf32> to vector<16x8xf32>
    %368 = vector.extract_strided_slice %366 {offsets = [16, 0], sizes = [16, 8], strides = [1, 1]} : vector<33x8xf32> to vector<16x8xf32>
    %369 = vector.extract_strided_slice %366 {offsets = [32, 0], sizes = [1, 8], strides = [1, 1]} : vector<33x8xf32> to vector<1x8xf32>
    %370 = vector.shape_cast %340 : vector<2x8x16xf32> to vector<16x16xf32>
    %cst_95 = arith.constant dense<0.000000e+00> : vector<16x8xf32>
    %371 = tpu.matmul %370, %367, %cst_95 {dimension_numbers = #tpu.dot_dimension_numbers<[1], [0], [0], [1], [0, 0, 1, 1], [], []>, precision = #tpu.contract_precision<fp32>} : vector<16x16xf32>, vector<16x8xf32>, vector<16x8xf32> -> vector<16x8xf32>
    %372 = vector.broadcast %369 : vector<1x8xf32> to vector<16x8xf32>
    %373 = arith.addf %371, %372 : vector<16x8xf32>
    %374 = vector.shape_cast %373 : vector<16x8xf32> to vector<2x8x8xf32>
    %cst_96 = arith.constant dense<0.000000e+00> : vector<16x8xf32>
    %375 = tpu.matmul %370, %368, %cst_96 {dimension_numbers = #tpu.dot_dimension_numbers<[1], [0], [0], [1], [0, 0, 1, 1], [], []>, precision = #tpu.contract_precision<fp32>} : vector<16x16xf32>, vector<16x8xf32>, vector<16x8xf32> -> vector<16x8xf32>
    %376 = vector.broadcast %369 : vector<1x8xf32> to vector<16x8xf32>
    %377 = arith.addf %375, %376 : vector<16x8xf32>
    %378 = vector.shape_cast %377 : vector<16x8xf32> to vector<2x8x8xf32>
    %379 = vector.shape_cast %374 : vector<2x8x8xf32> to vector<2x8x1x8xf32>
    %380 = vector.shape_cast %378 : vector<2x8x8xf32> to vector<2x8x1x8xf32>
    %381 = tpu.concatenate %379, %380 in 2 : vector<2x8x1x8xf32>, vector<2x8x1x8xf32> -> vector<2x8x2x8xf32>
    %382 = vector.shape_cast %381 : vector<2x8x2x8xf32> to vector<2x16x8xf32>
    %383 = tpu.concatenate %90, %382 in 2 : vector<2x16x8xf32>, vector<2x16x8xf32> -> vector<2x16x16xf32>
    %c568 = arith.constant 568 : index
    %c0_97 = arith.constant 0 : index
    %384 = vector.load %arg2[%c568, %c0_97] : memref<728x32xf32, #tpu.memory_space<vmem>>, vector<50x8xf32>
    %385 = vector.extract_strided_slice %384 {offsets = [0, 0], sizes = [48, 8], strides = [1, 1]} : vector<50x8xf32> to vector<48x8xf32>
    %386 = vector.extract_strided_slice %384 {offsets = [48, 0], sizes = [1, 8], strides = [1, 1]} : vector<50x8xf32> to vector<1x8xf32>
    %387 = vector.extract_strided_slice %384 {offsets = [49, 0], sizes = [1, 8], strides = [1, 1]} : vector<50x8xf32> to vector<1x8xf32>
    %cst_98 = arith.constant 0.000000e+00 : f32
    %388 = vector.broadcast %cst_98 : f32 to vector<2x1x16xf32>
    %389 = tpu.concatenate %388, %383, %388 in 1 : vector<2x1x16xf32>, vector<2x16x16xf32>, vector<2x1x16xf32> -> vector<2x18x16xf32>
    %390 = vector.extract_strided_slice %389 {offsets = [0, 0, 0], sizes = [2, 16, 16], strides = [1, 1, 1]} : vector<2x18x16xf32> to vector<2x16x16xf32>
    %391 = vector.extract_strided_slice %389 {offsets = [0, 1, 0], sizes = [2, 16, 16], strides = [1, 1, 1]} : vector<2x18x16xf32> to vector<2x16x16xf32>
    %392 = vector.extract_strided_slice %389 {offsets = [0, 2, 0], sizes = [2, 16, 16], strides = [1, 1, 1]} : vector<2x18x16xf32> to vector<2x16x16xf32>
    %393 = tpu.concatenate %390, %391, %392 in 2 : vector<2x16x16xf32>, vector<2x16x16xf32>, vector<2x16x16xf32> -> vector<2x16x48xf32>
    %394 = vector.shape_cast %393 : vector<2x16x48xf32> to vector<32x48xf32>
    %cst_99 = arith.constant dense<0.000000e+00> : vector<32x8xf32>
    %395 = tpu.matmul %394, %385, %cst_99 {dimension_numbers = #tpu.dot_dimension_numbers<[1], [0], [0], [1], [0, 0, 1, 1], [], []>, precision = #tpu.contract_precision<fp32>} : vector<32x48xf32>, vector<48x8xf32>, vector<32x8xf32> -> vector<32x8xf32>
    %cst_100 = arith.constant dense<0.000000e+00> : vector<8xf32>
    %396 = vector.multi_reduction <add>, %395, %cst_100 [0] : vector<32x8xf32> to vector<8xf32>
    %397 = vector.shape_cast %396 : vector<8xf32> to vector<1x8xf32>
    %cst_101 = arith.constant 3.125000e-02 : f32
    %398 = vector.broadcast %cst_101 : f32 to vector<1x8xf32>
    %399 = arith.mulf %397, %398 : vector<1x8xf32>
    %400 = arith.mulf %395, %395 : vector<32x8xf32>
    %cst_102 = arith.constant dense<0.000000e+00> : vector<8xf32>
    %401 = vector.multi_reduction <add>, %400, %cst_102 [0] : vector<32x8xf32> to vector<8xf32>
    %402 = vector.shape_cast %401 : vector<8xf32> to vector<1x8xf32>
    %cst_103 = arith.constant 3.125000e-02 : f32
    %403 = vector.broadcast %cst_103 : f32 to vector<1x8xf32>
    %404 = arith.mulf %402, %403 : vector<1x8xf32>
    %405 = arith.mulf %399, %399 : vector<1x8xf32>
    %406 = arith.subf %404, %405 : vector<1x8xf32>
    %cst_104 = arith.constant 0.000000e+00 : f32
    %407 = vector.broadcast %cst_104 : f32 to vector<1x8xf32>
    %408 = arith.maximumf %406, %407 : vector<1x8xf32>
    %cst_105 = arith.constant 9.99999974E-6 : f32
    %409 = vector.broadcast %cst_105 : f32 to vector<1x8xf32>
    %410 = arith.addf %408, %409 : vector<1x8xf32>
    %411 = math.rsqrt %410 : vector<1x8xf32>
    %412 = arith.mulf %386, %411 : vector<1x8xf32>
    %413 = vector.broadcast %412 : vector<1x8xf32> to vector<32x8xf32>
    %414 = arith.mulf %395, %413 : vector<32x8xf32>
    %415 = arith.mulf %399, %412 : vector<1x8xf32>
    %416 = arith.subf %387, %415 : vector<1x8xf32>
    %417 = vector.broadcast %416 : vector<1x8xf32> to vector<32x8xf32>
    %418 = arith.addf %414, %417 : vector<32x8xf32>
    %cst_106 = arith.constant 0.000000e+00 : f32
    %419 = vector.broadcast %cst_106 : f32 to vector<32x8xf32>
    %420 = arith.maximumf %418, %419 : vector<32x8xf32>
    %421 = vector.shape_cast %420 : vector<32x8xf32> to vector<2x16x8xf32>
    %c624 = arith.constant 624 : index
    %c0_107 = arith.constant 0 : index
    %422 = vector.load %arg2[%c624, %c0_107] : memref<728x32xf32, #tpu.memory_space<vmem>>, vector<26x8xf32>
    %423 = vector.extract_strided_slice %422 {offsets = [0, 0], sizes = [24, 8], strides = [1, 1]} : vector<26x8xf32> to vector<24x8xf32>
    %424 = vector.extract_strided_slice %422 {offsets = [24, 0], sizes = [1, 8], strides = [1, 1]} : vector<26x8xf32> to vector<1x8xf32>
    %425 = vector.extract_strided_slice %422 {offsets = [25, 0], sizes = [1, 8], strides = [1, 1]} : vector<26x8xf32> to vector<1x8xf32>
    %cst_108 = arith.constant 0.000000e+00 : f32
    %426 = vector.broadcast %cst_108 : f32 to vector<2x1x8xf32>
    %427 = tpu.concatenate %426, %421, %426 in 1 : vector<2x1x8xf32>, vector<2x16x8xf32>, vector<2x1x8xf32> -> vector<2x18x8xf32>
    %428 = vector.extract_strided_slice %427 {offsets = [0, 0, 0], sizes = [2, 16, 8], strides = [1, 1, 1]} : vector<2x18x8xf32> to vector<2x16x8xf32>
    %429 = vector.extract_strided_slice %427 {offsets = [0, 1, 0], sizes = [2, 16, 8], strides = [1, 1, 1]} : vector<2x18x8xf32> to vector<2x16x8xf32>
    %430 = vector.extract_strided_slice %427 {offsets = [0, 2, 0], sizes = [2, 16, 8], strides = [1, 1, 1]} : vector<2x18x8xf32> to vector<2x16x8xf32>
    %431 = tpu.concatenate %428, %429, %430 in 2 : vector<2x16x8xf32>, vector<2x16x8xf32>, vector<2x16x8xf32> -> vector<2x16x24xf32>
    %432 = vector.shape_cast %431 : vector<2x16x24xf32> to vector<32x24xf32>
    %cst_109 = arith.constant dense<0.000000e+00> : vector<32x8xf32>
    %433 = tpu.matmul %432, %423, %cst_109 {dimension_numbers = #tpu.dot_dimension_numbers<[1], [0], [0], [1], [0, 0, 1, 1], [], []>, precision = #tpu.contract_precision<fp32>} : vector<32x24xf32>, vector<24x8xf32>, vector<32x8xf32> -> vector<32x8xf32>
    %cst_110 = arith.constant dense<0.000000e+00> : vector<8xf32>
    %434 = vector.multi_reduction <add>, %433, %cst_110 [0] : vector<32x8xf32> to vector<8xf32>
    %435 = vector.shape_cast %434 : vector<8xf32> to vector<1x8xf32>
    %cst_111 = arith.constant 3.125000e-02 : f32
    %436 = vector.broadcast %cst_111 : f32 to vector<1x8xf32>
    %437 = arith.mulf %435, %436 : vector<1x8xf32>
    %438 = arith.mulf %433, %433 : vector<32x8xf32>
    %cst_112 = arith.constant dense<0.000000e+00> : vector<8xf32>
    %439 = vector.multi_reduction <add>, %438, %cst_112 [0] : vector<32x8xf32> to vector<8xf32>
    %440 = vector.shape_cast %439 : vector<8xf32> to vector<1x8xf32>
    %cst_113 = arith.constant 3.125000e-02 : f32
    %441 = vector.broadcast %cst_113 : f32 to vector<1x8xf32>
    %442 = arith.mulf %440, %441 : vector<1x8xf32>
    %443 = arith.mulf %437, %437 : vector<1x8xf32>
    %444 = arith.subf %442, %443 : vector<1x8xf32>
    %cst_114 = arith.constant 0.000000e+00 : f32
    %445 = vector.broadcast %cst_114 : f32 to vector<1x8xf32>
    %446 = arith.maximumf %444, %445 : vector<1x8xf32>
    %cst_115 = arith.constant 9.99999974E-6 : f32
    %447 = vector.broadcast %cst_115 : f32 to vector<1x8xf32>
    %448 = arith.addf %446, %447 : vector<1x8xf32>
    %449 = math.rsqrt %448 : vector<1x8xf32>
    %450 = arith.mulf %424, %449 : vector<1x8xf32>
    %451 = vector.broadcast %450 : vector<1x8xf32> to vector<32x8xf32>
    %452 = arith.mulf %433, %451 : vector<32x8xf32>
    %453 = arith.mulf %437, %450 : vector<1x8xf32>
    %454 = arith.subf %425, %453 : vector<1x8xf32>
    %455 = vector.broadcast %454 : vector<1x8xf32> to vector<32x8xf32>
    %456 = arith.addf %452, %455 : vector<32x8xf32>
    %cst_116 = arith.constant 0.000000e+00 : f32
    %457 = vector.broadcast %cst_116 : f32 to vector<32x8xf32>
    %458 = arith.maximumf %456, %457 : vector<32x8xf32>
    %459 = vector.shape_cast %458 : vector<32x8xf32> to vector<2x16x8xf32>
    %c704 = arith.constant 704 : index
    %c0_117 = arith.constant 0 : index
    %460 = vector.load %arg2[%c704, %c0_117] : memref<728x32xf32, #tpu.memory_space<vmem>>, vector<9x2xf32>
    %461 = vector.extract_strided_slice %460 {offsets = [0, 0], sizes = [8, 2], strides = [1, 1]} : vector<9x2xf32> to vector<8x2xf32>
    %462 = vector.extract_strided_slice %460 {offsets = [8, 0], sizes = [1, 2], strides = [1, 1]} : vector<9x2xf32> to vector<1x2xf32>
    %463 = vector.shape_cast %459 : vector<2x16x8xf32> to vector<32x8xf32>
    %cst_118 = arith.constant dense<0.000000e+00> : vector<32x2xf32>
    %464 = tpu.matmul %463, %461, %cst_118 {dimension_numbers = #tpu.dot_dimension_numbers<[1], [0], [0], [1], [0, 0, 1, 1], [], []>, precision = #tpu.contract_precision<fp32>} : vector<32x8xf32>, vector<8x2xf32>, vector<32x2xf32> -> vector<32x2xf32>
    %465 = vector.broadcast %462 : vector<1x2xf32> to vector<32x2xf32>
    %466 = arith.addf %464, %465 : vector<32x2xf32>
    %467 = vector.shape_cast %466 : vector<32x2xf32> to vector<2x16x2xf32>
    %c656 = arith.constant 656 : index
    %c0_119 = arith.constant 0 : index
    %468 = vector.load %arg2[%c656, %c0_119] : memref<728x32xf32, #tpu.memory_space<vmem>>, vector<9x2xf32>
    %469 = vector.extract_strided_slice %468 {offsets = [0, 0], sizes = [8, 2], strides = [1, 1]} : vector<9x2xf32> to vector<8x2xf32>
    %470 = vector.extract_strided_slice %468 {offsets = [8, 0], sizes = [1, 2], strides = [1, 1]} : vector<9x2xf32> to vector<1x2xf32>
    %471 = vector.shape_cast %459 : vector<2x16x8xf32> to vector<32x8xf32>
    %cst_120 = arith.constant dense<0.000000e+00> : vector<32x2xf32>
    %472 = tpu.matmul %471, %469, %cst_120 {dimension_numbers = #tpu.dot_dimension_numbers<[1], [0], [0], [1], [0, 0, 1, 1], [], []>, precision = #tpu.contract_precision<fp32>} : vector<32x8xf32>, vector<8x2xf32>, vector<32x2xf32> -> vector<32x2xf32>
    %473 = vector.broadcast %470 : vector<1x2xf32> to vector<32x2xf32>
    %474 = arith.addf %472, %473 : vector<32x2xf32>
    %475 = vector.shape_cast %474 : vector<32x2xf32> to vector<2x16x2xf32>
    %c720 = arith.constant 720 : index
    %c0_121 = arith.constant 0 : index
    %476 = vector.load %arg2[%c720, %c0_121] : memref<728x32xf32, #tpu.memory_space<vmem>>, vector<3x2xf32>
    %477 = vector.extract_strided_slice %476 {offsets = [0, 0], sizes = [2, 2], strides = [1, 1]} : vector<3x2xf32> to vector<2x2xf32>
    %478 = vector.extract_strided_slice %476 {offsets = [2, 0], sizes = [1, 2], strides = [1, 1]} : vector<3x2xf32> to vector<1x2xf32>
    %479 = vector.shape_cast %475 : vector<2x16x2xf32> to vector<32x2xf32>
    %cst_122 = arith.constant dense<0.000000e+00> : vector<32x2xf32>
    %480 = tpu.matmul %479, %477, %cst_122 {dimension_numbers = #tpu.dot_dimension_numbers<[1], [0], [0], [1], [0, 0, 1, 1], [], []>, precision = #tpu.contract_precision<fp32>} : vector<32x2xf32>, vector<2x2xf32>, vector<32x2xf32> -> vector<32x2xf32>
    %481 = vector.broadcast %478 : vector<1x2xf32> to vector<32x2xf32>
    %482 = arith.addf %480, %481 : vector<32x2xf32>
    %483 = vector.shape_cast %482 : vector<32x2xf32> to vector<2x16x2xf32>
    %484 = tpu.iota {dimensions = array<i32: 0>} : vector<2x2xi32>
    %485 = tpu.iota {dimensions = array<i32: 1>} : vector<2x2xi32>
    %486 = arith.cmpi eq, %484, %485 : vector<2x2xi32>
    %487 = arith.extui %486 : vector<2x2xi1> to vector<2x2xi32>
    %488 = arith.sitofp %487 : vector<2x2xi32> to vector<2x2xf32>
    %489 = vector.extract_strided_slice %475 {offsets = [0, 0, 0], sizes = [1, 16, 2], strides = [1, 1, 1]} : vector<2x16x2xf32> to vector<1x16x2xf32>
    %490 = vector.shape_cast %489 : vector<1x16x2xf32> to vector<16x2xf32>
    %cst_123 = arith.constant dense<0.000000e+00> : vector<2x16xf32>
    %491 = tpu.matmul %488, %490, %cst_123 {dimension_numbers = #tpu.dot_dimension_numbers<[1], [1], [0], [0], [0, 0, 1, 0], [], []>, precision = #tpu.contract_precision<fp32>} : vector<2x2xf32>, vector<16x2xf32>, vector<2x16xf32> -> vector<2x16xf32>
    %492 = vector.extract_strided_slice %475 {offsets = [1, 0, 0], sizes = [1, 16, 2], strides = [1, 1, 1]} : vector<2x16x2xf32> to vector<1x16x2xf32>
    %493 = vector.shape_cast %492 : vector<1x16x2xf32> to vector<16x2xf32>
    %cst_124 = arith.constant dense<0.000000e+00> : vector<2x16xf32>
    %494 = tpu.matmul %488, %493, %cst_124 {dimension_numbers = #tpu.dot_dimension_numbers<[1], [1], [0], [0], [0, 0, 1, 0], [], []>, precision = #tpu.contract_precision<fp32>} : vector<2x2xf32>, vector<16x2xf32>, vector<2x16xf32> -> vector<2x16xf32>
    %495 = vector.shape_cast %491 : vector<2x16xf32> to vector<1x2x16xf32>
    %496 = vector.shape_cast %494 : vector<2x16xf32> to vector<1x2x16xf32>
    %497 = tpu.concatenate %495, %496 in 0 : vector<1x2x16xf32>, vector<1x2x16xf32> -> vector<2x2x16xf32>
    %498 = tpu.iota {dimensions = array<i32: 0>} : vector<2x2xi32>
    %499 = tpu.iota {dimensions = array<i32: 1>} : vector<2x2xi32>
    %500 = arith.cmpi eq, %498, %499 : vector<2x2xi32>
    %501 = arith.extui %500 : vector<2x2xi1> to vector<2x2xi32>
    %502 = arith.sitofp %501 : vector<2x2xi32> to vector<2x2xf32>
    %503 = vector.extract_strided_slice %365 {offsets = [0, 0, 0], sizes = [1, 16, 2], strides = [1, 1, 1]} : vector<2x16x2xf32> to vector<1x16x2xf32>
    %504 = vector.shape_cast %503 : vector<1x16x2xf32> to vector<16x2xf32>
    %cst_125 = arith.constant dense<0.000000e+00> : vector<2x16xf32>
    %505 = tpu.matmul %502, %504, %cst_125 {dimension_numbers = #tpu.dot_dimension_numbers<[1], [1], [0], [0], [0, 0, 1, 0], [], []>, precision = #tpu.contract_precision<fp32>} : vector<2x2xf32>, vector<16x2xf32>, vector<2x16xf32> -> vector<2x16xf32>
    %506 = vector.extract_strided_slice %365 {offsets = [1, 0, 0], sizes = [1, 16, 2], strides = [1, 1, 1]} : vector<2x16x2xf32> to vector<1x16x2xf32>
    %507 = vector.shape_cast %506 : vector<1x16x2xf32> to vector<16x2xf32>
    %cst_126 = arith.constant dense<0.000000e+00> : vector<2x16xf32>
    %508 = tpu.matmul %502, %507, %cst_126 {dimension_numbers = #tpu.dot_dimension_numbers<[1], [1], [0], [0], [0, 0, 1, 0], [], []>, precision = #tpu.contract_precision<fp32>} : vector<2x2xf32>, vector<16x2xf32>, vector<2x16xf32> -> vector<2x16xf32>
    %509 = vector.shape_cast %505 : vector<2x16xf32> to vector<1x2x16xf32>
    %510 = vector.shape_cast %508 : vector<2x16xf32> to vector<1x2x16xf32>
    %511 = tpu.concatenate %509, %510 in 0 : vector<1x2x16xf32>, vector<1x2x16xf32> -> vector<2x2x16xf32>
    %512 = tpu.iota {dimensions = array<i32: 0>} : vector<2x2xi32>
    %513 = tpu.iota {dimensions = array<i32: 1>} : vector<2x2xi32>
    %514 = arith.cmpi eq, %512, %513 : vector<2x2xi32>
    %515 = arith.extui %514 : vector<2x2xi1> to vector<2x2xi32>
    %516 = arith.sitofp %515 : vector<2x2xi32> to vector<2x2xf32>
    %517 = vector.extract_strided_slice %467 {offsets = [0, 0, 0], sizes = [1, 16, 2], strides = [1, 1, 1]} : vector<2x16x2xf32> to vector<1x16x2xf32>
    %518 = vector.shape_cast %517 : vector<1x16x2xf32> to vector<16x2xf32>
    %cst_127 = arith.constant dense<0.000000e+00> : vector<2x16xf32>
    %519 = tpu.matmul %516, %518, %cst_127 {dimension_numbers = #tpu.dot_dimension_numbers<[1], [1], [0], [0], [0, 0, 1, 0], [], []>, precision = #tpu.contract_precision<fp32>} : vector<2x2xf32>, vector<16x2xf32>, vector<2x16xf32> -> vector<2x16xf32>
    %520 = vector.extract_strided_slice %467 {offsets = [1, 0, 0], sizes = [1, 16, 2], strides = [1, 1, 1]} : vector<2x16x2xf32> to vector<1x16x2xf32>
    %521 = vector.shape_cast %520 : vector<1x16x2xf32> to vector<16x2xf32>
    %cst_128 = arith.constant dense<0.000000e+00> : vector<2x16xf32>
    %522 = tpu.matmul %516, %521, %cst_128 {dimension_numbers = #tpu.dot_dimension_numbers<[1], [1], [0], [0], [0, 0, 1, 0], [], []>, precision = #tpu.contract_precision<fp32>} : vector<2x2xf32>, vector<16x2xf32>, vector<2x16xf32> -> vector<2x16xf32>
    %523 = vector.shape_cast %519 : vector<2x16xf32> to vector<1x2x16xf32>
    %524 = vector.shape_cast %522 : vector<2x16xf32> to vector<1x2x16xf32>
    %525 = tpu.concatenate %523, %524 in 0 : vector<1x2x16xf32>, vector<1x2x16xf32> -> vector<2x2x16xf32>
    %526 = tpu.iota {dimensions = array<i32: 0>} : vector<2x2xi32>
    %527 = tpu.iota {dimensions = array<i32: 1>} : vector<2x2xi32>
    %528 = arith.cmpi eq, %526, %527 : vector<2x2xi32>
    %529 = arith.extui %528 : vector<2x2xi1> to vector<2x2xi32>
    %530 = arith.sitofp %529 : vector<2x2xi32> to vector<2x2xf32>
    %531 = vector.extract_strided_slice %483 {offsets = [0, 0, 0], sizes = [1, 16, 2], strides = [1, 1, 1]} : vector<2x16x2xf32> to vector<1x16x2xf32>
    %532 = vector.shape_cast %531 : vector<1x16x2xf32> to vector<16x2xf32>
    %cst_129 = arith.constant dense<0.000000e+00> : vector<2x16xf32>
    %533 = tpu.matmul %530, %532, %cst_129 {dimension_numbers = #tpu.dot_dimension_numbers<[1], [1], [0], [0], [0, 0, 1, 0], [], []>, precision = #tpu.contract_precision<fp32>} : vector<2x2xf32>, vector<16x2xf32>, vector<2x16xf32> -> vector<2x16xf32>
    %534 = vector.extract_strided_slice %483 {offsets = [1, 0, 0], sizes = [1, 16, 2], strides = [1, 1, 1]} : vector<2x16x2xf32> to vector<1x16x2xf32>
    %535 = vector.shape_cast %534 : vector<1x16x2xf32> to vector<16x2xf32>
    %cst_130 = arith.constant dense<0.000000e+00> : vector<2x16xf32>
    %536 = tpu.matmul %530, %535, %cst_130 {dimension_numbers = #tpu.dot_dimension_numbers<[1], [1], [0], [0], [0, 0, 1, 0], [], []>, precision = #tpu.contract_precision<fp32>} : vector<2x2xf32>, vector<16x2xf32>, vector<2x16xf32> -> vector<2x16xf32>
    %537 = vector.shape_cast %533 : vector<2x16xf32> to vector<1x2x16xf32>
    %538 = vector.shape_cast %536 : vector<2x16xf32> to vector<1x2x16xf32>
    %539 = tpu.concatenate %537, %538 in 0 : vector<1x2x16xf32>, vector<1x2x16xf32> -> vector<2x2x16xf32>
    %540 = vector.shape_cast %497 : vector<2x2x16xf32> to vector<1x2x2x16xf32>
    %541 = vector.shape_cast %511 : vector<2x2x16xf32> to vector<1x2x2x16xf32>
    %542 = vector.shape_cast %525 : vector<2x2x16xf32> to vector<1x2x2x16xf32>
    %543 = vector.shape_cast %539 : vector<2x2x16xf32> to vector<1x2x2x16xf32>
    %544 = tpu.concatenate %540, %541, %542, %543 in 0 : vector<1x2x2x16xf32>, vector<1x2x2x16xf32>, vector<1x2x2x16xf32>, vector<1x2x2x16xf32> -> vector<4x2x2x16xf32>
    %c0_131 = arith.constant 0 : index
    %c0_132 = arith.constant 0 : index
    %c0_133 = arith.constant 0 : index
    %c0_134 = arith.constant 0 : index
    %545 = vector.load %arg3[%c0_131, %c0_132, %c0_133, %c0_134] : memref<4x2x2x16xf32, #tpu.memory_space<vmem>>, vector<4x2x2x16xf32>
    tpu.vector_store %arg3[%c0_131, %c0_132, %c0_133, %c0_134], %544 {strides = array<i32>} : memref<4x2x2x16xf32, #tpu.memory_space<vmem>>, vector<4x2x2x16xf32>,
    return
  }
  func.func @transform_0(%arg0: i32) -> (i32, i32, i32) {
    %c0_i32 = arith.constant 0 : i32
    %c0_i32_0 = arith.constant 0 : i32
    %c0_i32_1 = arith.constant 0 : i32
    %c0_i32_2 = arith.constant 0 : i32
    return %c0_i32, %c0_i32_0, %c0_i32_1 : i32, i32, i32
  }
  func.func @transform_1(%arg0: i32) -> (i32, i32) {
    %c0_i32 = arith.constant 0 : i32
    %c0_i32_0 = arith.constant 0 : i32
    %c0_i32_1 = arith.constant 0 : i32
    return %c0_i32, %c0_i32_0 : i32, i32
  }
  func.func @transform_2(%arg0: i32) -> (i32, i32, i32, i32) {
    %c0_i32 = arith.constant 0 : i32
    %c0_i32_0 = arith.constant 0 : i32
    %c0_i32_1 = arith.constant 0 : i32
    %c0_i32_2 = arith.constant 0 : i32
    %c0_i32_3 = arith.constant 0 : i32
    return %c0_i32, %c0_i32_0, %c0_i32_1, %c0_i32_2 : i32, i32, i32, i32
  }
}

</mosaic_0001>

<bundles_post_ra>
// kernel: pallas_forward.1
= control target key start
LH: loop header
LB: loop body
LE: loop exit
PB: predicated region body
PF: predicated region fallthrough
CT: control target
= control target key end

     0   :  { %vm24_vm0 = vcmask 130048   ;;  %v13_v0 = vlaneseq  ;;  %v8354_v11 = vmov 0.0   ;;  %vm397_vm3 = vcmask 1040384   ;;  %s8356_s13 = smov 8   ;;  %s8357_s18 = smov 16   ;;  %s10134_s0 = inlined_call_operand.vmem [shape: f32[2,4,16], index: 0, kind: input, shape index: {}]   ;;  %s10135_s1 = inlined_call_operand.vmem [shape: f32[728,32], index: 1, kind: input, shape index: {}]   ;;  %s10136_s2 = inlined_call_operand.vmem [shape: f32[4,2,2,16], index: 2, kind: output, shape index: {}]  }
   0x1   :  { %v11_v1 = vld [vmem:[%s10134_s0] sm:$0xf]  ;;  %v12_v2 = vld [vmem:[%s10134_s0 + $0x4] sm:$0xf]  ;;  %vm418_vm4 = vcmask 1046528   ;;  %s8355_s0 = smov 4  }
   0x2   :  { %v32_v3 = vsel %vm24_vm0, %v11_v1, 0  ;;  %v14_v4 = vshrl.u32 %v13_v0, 7  ;;  %v17_v5 = vand.u32 127, %v13_v0  ;;  %v212_v6 = vsel %vm24_vm0, %v12_v2, 0  ;;  %s8358_s7 = smov 32   ;;  %s8359_s10 = smov 64  }
   0x3   :  { %v49_v7 = vand.u32 4294901760, %v32_v3  ;;  %v229_v8 = vand.u32 4294901760, %v212_v6  ;;  %vm441_vm5 = vcmask 1045504   ;;  %vm487_vm6 = vcmask 1043456  }
   0x4   :  { %vm18_vm1 = vcmp.eq.s32.totalorder %v14_v4, %v17_v5  ;;  %v15_v9 = vadd.s32 8, %v14_v4  ;;  %vm464_vm7 = vcmask 31744   ;;  %vm469_vm8 = vcmask 64512  }
   0x5   :  { %v84_v10 = vsub.f32 %v32_v3, %v49_v7  ;;  %143 = vmatpush.xpose.msra.mxu3 %v49_v7  ;;  %50 = vmatpush.xpose.msra.mxu0 %v49_v7  ;;  %v8383_v12 = vsel %vm18_vm1, 1.0, %v8354_v11  ;;  %v264_v13 = vsub.f32 %v212_v6, %v229_v8  ;;  %vm474_vm9 = vcmask 97280  }
   0x6   :  { %v26_v14 = vsel %vm24_vm0, %v8383_v12, 0  ;;  %vm19_vm2 = vcmp.eq.s32.totalorder %v15_v9, %v17_v5  ;;  %vm889_vm13 = vcmask 195584  }
   0x7   :  { %115 = vmatpush.xpose.msra.mxu2 %v84_v10  ;;  %v52_v15 = vsub.f32 %v26_v14, %v26_v14  ;;  %v85_v16 = vand.u32 4294901760, %v84_v10  ;;  %v8286_v17 = vsel %vm19_vm2, 1.0, %v8354_v11  ;;  %v265_v18 = vand.u32 4294901760, %v264_v13 }
   0x8   :  { %v29_v19 = vsel %vm24_vm0, %v8286_v17, 0  ;;  %vm1261_vm2 = vcmask 58368  }
   0x9   :  { %v86_v20 = vsub.f32 %v84_v10, %v85_v16  ;;  %v53_v21 = vand.u32 4294901760, %v52_v15  ;;  %175 = vmatpush.xpose.msrb.mxu0 %v85_v16  ;;  %v60_v22 = vsub.f32 %v29_v19, %v29_v19  ;;  %v266_v23 = vsub.f32 %v264_v13, %v265_v18 }
   0xa   :  { %118 = vmatmul.f32.vlgmr.msra.gmra.mxu2 %v52_v15 }
   0xb   :  { %230 = vmatpush.xpose.msrb.mxu2 %v229_v8  ;;  %v87_v24 = vand.u32 4294901760, %v86_v20  ;;  %147 = vmatmul.f32.vlgmr.msra.gmra.mxu3 %v53_v21  ;;  %v54_v25 = vsub.f32 %v52_v15, %v53_v21  ;;  %v61_v26 = vand.u32 4294901760, %v60_v22  ;;  %v267_v27 = vand.u32 4294901760, %v266_v23 }
   0xd   :  { %88 = vmatpush.xpose.msra.mxu1 %v87_v24  ;;  %v55_v28 = vand.u32 4294901760, %v54_v25  ;;  %268 = vmatpush.xpose.msrb.mxu3 %v267_v27  ;;  %v62_v29 = vsub.f32 %v60_v22, %v61_v26 }
   0xf   :  { %355 = vmatpush.xpose.msra.mxu2 %v265_v18  ;;  %56 = vmatmul.f32.vlgmr.msra.gmra.mxu0 %v55_v28  ;;  %v63_v30 = vand.u32 4294901760, %v62_v29 }
  0x10   :  { %8287 = vmatmul.msk.f32.vlgmr.msra.gmra.mxu1 %vm24_vm0, %v8383_v12  ;;  %295 = vmatpush.xpose.msra.mxu0 %v264_v13 }
  0x11   :  { %201 = vmatpush.xpose.msrb.mxu1 %v49_v7  ;;  %381 = vmatpush.xpose.msra.mxu3 %v229_v8 }
  0x12   :  { %123 = vmatmul.f32.gmra.mxu2 %v60_v22 }
  0x13   :  { %153 = vmatmul.f32.gmra.mxu3 %v61_v26 }
  0x15   :  { %323 = vmatpush.xpose.msra.mxu1 %v229_v8 }
  0x17   :  { %64 = vmatmul.f32.gmra.mxu0 %v63_v30 }
  0x18   :  { %8288 = vmatmul.msk.f32.gmra.mxu1 %vm24_vm0, %v8286_v17 }
  0x1a   :  { %236 = vmatmul.f32.vlgmr.msrb.gmra.mxu2 %v55_v28 }
  0x1b   :  { %8293 = vmatmul.msk.f32.vlgmr.msrb.gmra.mxu3 %vm24_vm0, %v8383_v12 }
  0x1f   :  { %8289 = vmatmul.msk.f32.vlgmr.msrb.gmra.mxu0 %vm24_vm0, %v8383_v12 }
  0x20   :  { %8291 = vmatmul.msk.f32.vlgmr.msrb.gmra.mxu1 %vm24_vm0, %v8383_v12 }
  0x22   :  { %244 = vmatmul.f32.gmra.mxu2 %v63_v30 }
  0x23   :  { %8294 = vmatmul.msk.f32.gmra.mxu3 %vm24_vm0, %v8286_v17 }
  0x27   :  { %8290 = vmatmul.msk.f32.gmra.mxu0 %vm24_vm0, %v8286_v17 }
  0x28   :  { %8292 = vmatmul.msk.f32.gmra.mxu1 %vm24_vm0, %v8286_v17 }
  0x2a   :  { %8295 = vmatmul.msk.f32.vlgmr.msra.gmra.mxu2 %vm24_vm0, %v8383_v12 }
  0x2b   :  { %8297 = vmatmul.msk.f32.vlgmr.msra.gmra.mxu3 %vm24_vm0, %v8383_v12 }
  0x2f   :  { %298 = vmatmul.f32.vlgmr.msra.gmra.mxu0 %v52_v15 }
  0x30   :  { %327 = vmatmul.f32.vlgmr.msra.gmra.mxu1 %v53_v21 }
  0x32   :  { %8296 = vmatmul.msk.f32.gmra.mxu2 %vm24_vm0, %v8286_v17 }
  0x33   :  { %8298 = vmatmul.msk.f32.gmra.mxu3 %vm24_vm0, %v8286_v17 }
  0x37   :  { %303 = vmatmul.f32.gmra.mxu0 %v60_v22 }
  0x38   :  { %333 = vmatmul.f32.gmra.mxu1 %v61_v26 }
  0x8c   :  { %v57_v31 = vpop.f32.mrf.mxu0 }
  0x8d   :  { %v91_v32 = vpop.f32.mrf.mxu1  ;;  %v119_v33 = vpop.f32.mrf.mxu2 }
  0x8e   :  { %v148_v34 = vpop.f32.mrf.mxu3  ;;  %v92_v35 = vadd.f32 %v91_v32, %v57_v31 }
  0x90   :  { %v120_v40 = vadd.f32 %v119_v33, %v92_v35 }
  0x92   :  { %v149_v41 = vadd.f32 %v148_v34, %v120_v40 }
  0x94   :  { %v65_v36 = vpop.f32.mrf.mxu0 }
  0x95   :  { %v95_v37 = vpop.f32.mrf.mxu1  ;;  %v124_v38 = vpop.f32.mrf.mxu2 }
  0x96   :  { %v154_v39 = vpop.f32.mrf.mxu3  ;;  %v96_v42 = vadd.f32 %v95_v37, %v65_v36 }
  0x98   :  { %v125_v48 = vadd.f32 %v124_v38, %v96_v42  ;;  %v8443_v42 = vld [vmem:[%s10135_s1 + $0x8] sm:$0x3f] }
  0x9a   :  { %v155_v50 = vadd.f32 %v154_v39, %v125_v48 }
  0x9c   :  { %v178_v43 = vpop.f32.mrf.mxu0 }
  0x9d   :  { %v179_v44 = vadd.f32 %v178_v43, %v149_v41  ;;  %v204_v45 = vpop.f32.mrf.mxu1  ;;  %v237_v46 = vpop.f32.mrf.mxu2  ;;  %v489_v43 = vsel %vm487_vm6, %v8443_v42, 0  ;;  %vm1394_vm6 = vcmask 1042434  }
  0x9e   :  { %v271_v47 = vpop.f32.mrf.mxu3 }
  0x9f   :  { %v205_v49 = vadd.f32 %v204_v45, %v179_v44  ;;  %v272_v59 = vadd.f32 %v271_v47, %v237_v46  ;;  %v505_v44 = vand.u32 4294901760, %v489_v43  ;;  %v391_v45 = vld [vmem:[%s10135_s1] sm:$0xff] }
  0xa0   :  { %v507_v47 = vand.u32 4294901760, %v391_v45 }
  0xa1   :  { %v398_v52 = vrot.slane %v205_v49, 7  ;;  %506 = vmatpush.msrb.mxu0 %v505_v44  ;;  %v557_v46 = vsub.f32 %v489_v43, %v505_v44  ;;  %641 = vmatpush.msrb.mxu3 %v505_v44 }
  0xa2   :  { %v563_v49 = vsub.f32 %v391_v45, %v507_v47 }
  0xa3   :  { %v8407_v58 = vsel %vm397_vm3, 0.0, %v398_v52  ;;  %v558_v48 = vand.u32 4294901760, %v557_v46  ;;  %601 = vmatpush.msrb.mxu2 %v557_v46  ;;  %508 = vmatpush.msrb.mxu0 %v507_v47 }
  0xa4   :  { %v182_v51 = vpop.f32.mrf.mxu0  ;;  %v419_v2 = vrot.slane %v8407_v58, 1  ;;  %v442_v17 = vrot.slane %v8407_v58, 2  ;;  %643 = vmatpush.msrb.mxu3 %v507_v47 }
  0xa5   :  { %v183_v53 = vadd.f32 %v182_v51, %v155_v50  ;;  %v208_v54 = vpop.f32.mrf.mxu1  ;;  %v245_v55 = vpop.f32.mrf.mxu2  ;;  %v559_v50 = vsub.f32 %v557_v46, %v558_v48  ;;  %v564_v51 = vand.u32 4294901760, %v563_v49  ;;  %604 = vmatpush.msrb.mxu2 %v563_v49  ;;  %686 = vmatpush.msra.mxu0 %v558_v48 }
  0xa6   :  { %v275_v56 = vpop.f32.mrf.mxu3 }
  0xa7   :  { %v209_v57 = vadd.f32 %v208_v54, %v183_v53  ;;  %v276_v10 = vadd.f32 %v275_v56, %v245_v55  ;;  %v565_v53 = vsub.f32 %v563_v49, %v564_v51  ;;  %690 = vmatpush.msra.mxu0 %v564_v51 }
  0xa9   :  { %v399_v60 = vrot.slane %v209_v57, 7  ;;  %v566_v54 = vand.u32 4294901760, %v565_v53 }
  0xab   :  { %v8410_v61 = vsel %vm397_vm3, %v398_v52, %v399_v60  ;;  %v412_v62 = vsel %vm397_vm3, %v399_v60, 0.0  ;;  %v560_v52 = vand.u32 4294901760, %v559_v50 }
  0xac   :  { %v299_v63 = vpop.f32.mrf.mxu0  ;;  %v420_v0 = vrot.slane %v8410_v61, 1  ;;  %v422_v1 = vrot.slane %v412_v62, 1  ;;  %v445_v13 = vrot.slane %v412_v62, 2  ;;  %v443_v14 = vrot.slane %v8410_v61, 2 }
  0xad   :  { %v300_v3 = vadd.f32 %v299_v63, %v272_v59  ;;  %v328_v4 = vpop.f32.mrf.mxu1  ;;  %v358_v5 = vpop.f32.mrf.mxu2  ;;  %561 = vmatpush.msrb.mxu1 %v560_v52 }
  0xae   :  { %v423_v6 = vsel %vm418_vm4, %v420_v0, %v422_v1  ;;  %v421_v7 = vsel %vm418_vm4, %v419_v2, %v420_v0  ;;  %v384_v8 = vpop.f32.mrf.mxu3  ;;  %v446_v20 = vsel %vm441_vm5, %v443_v14, %v445_v13  ;;  %v444_v21 = vsel %vm441_vm5, %v442_v17, %v443_v14 }
  0xaf   :  { %v329_v9 = vadd.f32 %v328_v4, %v300_v3  ;;  %431 = vrot.lane.b32.xlu1 %v423_v6, %s8355_s0  ;;  %429 = vrot.lane.b32.xlu0 %v421_v7, %s8355_s0 }
  0xb0   :  { %567 = vmatpush.msrb.mxu1 %v566_v54 }
  0xb1   :  { %v359_v11 = vadd.f32 %v358_v5, %v329_v9 }
  0xb2   :  { %723 = vmatpush.msra.mxu1 %v505_v44 }
  0xb3   :  { %v385_v15 = vadd.f32 %v384_v8, %v359_v11 }
  0xb4   :  { %v304_v16 = vpop.f32.mrf.mxu0  ;;  %725 = vmatpush.msra.mxu1 %v507_v47 }
  0xb5   :  { %v305_v18 = vadd.f32 %v304_v16, %v276_v10  ;;  %v334_v19 = vpop.f32.mrf.mxu1  ;;  %v362_v22 = vpop.f32.mrf.mxu2  ;;  %v401_v24 = vrot.slane %v385_v15, 7 }
  0xb6   :  { %v388_v25 = vpop.f32.mrf.mxu3 }
  0xb7   :  { %v335_v23 = vadd.f32 %v334_v19, %v305_v18  ;;  %454 = vrot.lane.b32.xlu1 %v446_v20, %s8356_s13  ;;  %452 = vrot.lane.b32.xlu0 %v444_v21, %s8356_s13  ;;  %v411_v28 = vsel %vm397_vm3, 0.0, %v401_v24 }
  0xb8   :  { %v424_v32 = vrot.slane %v411_v28, 1  ;;  %v447_v40 = vrot.slane %v411_v28, 2 }
  0xb9   :  { %v363_v26 = vadd.f32 %v362_v22, %v335_v23 }
  0xbb   :  { %v389_v27 = vadd.f32 %v388_v25, %v363_v26 }
  0xbd   :  { %v402_v29 = vrot.slane %v389_v27, 7 }
  0xbf   :  { %v8427_v30 = vsel %vm397_vm3, %v401_v24, %v402_v29  ;;  %v413_v31 = vsel %vm397_vm3, %v402_v29, 0.0 }
  0xc0   :  { %v427_v33 = vrot.slane %v413_v31, 1  ;;  %v450_v34 = vrot.slane %v413_v31, 2  ;;  %v425_v35 = vrot.slane %v8427_v30, 1  ;;  %v448_v36 = vrot.slane %v8427_v30, 2 }
  0xc2   :  { %v426_v37 = vsel %vm418_vm4, %v424_v32, %v425_v35  ;;  %v451_v38 = vsel %vm441_vm5, %v448_v36, %v450_v34  ;;  %v428_v39 = vsel %vm418_vm4, %v425_v35, %v427_v33  ;;  %v449_v41 = vsel %vm441_vm5, %v447_v40, %v448_v36 }
  0xc3   :  { %433 = vrot.lane.b32.xlu2 %v426_v37, %s8355_s0  ;;  %458 = vrot.lane.b32.xlu1 %v451_v38, %s8356_s13 }
  0xc4   :  { %435 = vrot.lane.b32.xlu0 %v428_v39, %s8355_s0 }
  0xcb   :  { %456 = vrot.lane.b32.xlu2 %v449_v41, %s8356_s13 }
 0x11d   :  { %v434_v55 = vpop.permute.xlu2 %433 }
 0x121   :  { %v432_v56 = vpop.permute.xlu1 %431  ;;  %v430_v57 = vpop.permute.xlu0 %429 }
 0x122   :  { %v466_v59 = vsel %vm464_vm7, %v8410_v61, %v432_v56  ;;  %v465_v60 = vsel %vm464_vm7, %v8407_v58, %v430_v57  ;;  %v467_v61 = vsel %vm464_vm7, %v411_v28, %v434_v55 }
 0x125   :  { %v457_v2 = vpop.permute.xlu2 %456 }
 0x126   :  { %v472_v7 = vsel %vm469_vm8, %v467_v61, %v457_v2 }
 0x127   :  { %v482_v10 = vsel %vm474_vm9, %v472_v7, 0 }
 0x128   :  { %v525_v13 = vand.u32 4294901760, %v482_v10 }
 0x129   :  { %v455_v62 = vpop.permute.xlu1 %454  ;;  %v453_v63 = vpop.permute.xlu0 %452 }
 0x12a   :  { %v471_v0 = vsel %vm469_vm8, %v466_v59, %v455_v62  ;;  %v470_v1 = vsel %vm469_vm8, %v465_v60, %v453_v63  ;;  %v526_v19 = vsub.f32 %v482_v10, %v525_v13 }
 0x12b   :  { %v479_v3 = vsel %vm474_vm9, %v471_v0, 0  ;;  %v476_v4 = vsel %vm474_vm9, %v470_v1, 0 }
 0x12c   :  { %v517_v5 = vand.u32 4294901760, %v479_v3  ;;  %v509_v6 = vand.u32 4294901760, %v476_v4  ;;  %v527_v25 = vand.u32 4294901760, %v526_v19 }
 0x12e   :  { %v510_v58 = vsub.f32 %v476_v4, %v509_v6  ;;  %569 = vmatmul.f32.vlgmr.msrb.gmra.mxu1 %v509_v6  ;;  %v518_v8 = vsub.f32 %v479_v3, %v517_v5  ;;  %v528_v26 = vsub.f32 %v526_v19, %v527_v25 }
 0x130   :  { %607 = vmatmul.f32.vlgmr.msrb.gmra.mxu2 %v510_v58  ;;  %v511_v9 = vand.u32 4294901760, %v510_v58  ;;  %v519_v15 = vand.u32 4294901760, %v518_v8  ;;  %v529_v28 = vand.u32 4294901760, %v528_v26 }
 0x132   :  { %647 = vmatmul.f32.vlgmr.msrb.gmra.mxu3 %v511_v9  ;;  %v512_v11 = vsub.f32 %v510_v58, %v511_v9  ;;  %v520_v21 = vsub.f32 %v518_v8, %v519_v15 }
 0x134   :  { %v513_v14 = vand.u32 4294901760, %v512_v11  ;;  %v521_v24 = vand.u32 4294901760, %v520_v21 }
 0x135   :  { %v459_v16 = vpop.permute.xlu1 %458 }
 0x136   :  { %v436_v17 = vpop.permute.xlu0 %435  ;;  %514 = vmatmul.f32.vlgmr.msrb.gmra.mxu0 %v513_v14  ;;  %573 = vmatmul.f32.gmra.mxu1 %v517_v5 }
 0x137   :  { %v468_v18 = vsel %vm464_vm7, %v8427_v30, %v436_v17  ;;  %vm1396_vm7 = vcmask 1043459  }
 0x138   :  { %v473_v20 = vsel %vm469_vm8, %v468_v18, %v459_v16  ;;  %612 = vmatmul.f32.gmra.mxu2 %v518_v8 }
 0x139   :  { %v485_v22 = vsel %vm474_vm9, %v473_v20, 0  ;;  %vm1398_vm9 = vcmask 1044484  }
 0x13a   :  { %653 = vmatmul.f32.gmra.mxu3 %v519_v15  ;;  %v533_v23 = vand.u32 4294901760, %v485_v22 }
 0x13c   :  { %v534_v27 = vsub.f32 %v485_v22, %v533_v23 }
 0x13e   :  { %522 = vmatmul.f32.gmra.mxu0 %v521_v24  ;;  %577 = vmatmul.f32.gmra.mxu1 %v525_v13  ;;  %v535_v29 = vand.u32 4294901760, %v534_v27 }
 0x140   :  { %617 = vmatmul.f32.gmra.mxu2 %v526_v19  ;;  %v536_v30 = vsub.f32 %v534_v27, %v535_v29 }
 0x142   :  { %659 = vmatmul.f32.gmra.mxu3 %v527_v25  ;;  %v537_v31 = vand.u32 4294901760, %v536_v30 }
 0x146   :  { %530 = vmatmul.f32.gmra.mxu0 %v529_v28  ;;  %581 = vmatmul.f32.gmra.mxu1 %v533_v23 }
 0x148   :  { %622 = vmatmul.f32.gmra.mxu2 %v534_v27 }
 0x14a   :  { %665 = vmatmul.f32.gmra.mxu3 %v535_v29 }
 0x14e   :  { %538 = vmatmul.f32.gmra.mxu0 %v537_v31  ;;  %727 = vmatmul.f32.vlgmr.msra.gmra.mxu1 %v509_v6 }
 0x156   :  { %692 = vmatmul.f32.vlgmr.msra.gmra.mxu0 %v509_v6  ;;  %731 = vmatmul.f32.gmra.mxu1 %v517_v5 }
 0x15e   :  { %696 = vmatmul.f32.gmra.mxu0 %v517_v5  ;;  %735 = vmatmul.f32.gmra.mxu1 %v525_v13 }
 0x166   :  { %700 = vmatmul.f32.gmra.mxu0 %v525_v13  ;;  %739 = vmatmul.f32.gmra.mxu1 %v533_v23 }
 0x16e   :  { %704 = vmatmul.f32.gmra.mxu0 %v533_v23 }
 0x1ab   :  { %v570_v32 = vpop.f32.mrf.mxu1 }
 0x1b3   :  { %v515_v33 = vpop.f32.mrf.mxu0  ;;  %v574_v34 = vpop.f32.mrf.mxu1 }
 0x1b4   :  { %v608_v39 = vpop.f32.mrf.mxu2  ;;  %v571_v48 = vadd.f32 %v570_v32, %v515_v33 }
 0x1b5   :  { %v648_v40 = vpop.f32.mrf.mxu3 }
 0x1b6   :  { %v609_v54 = vadd.f32 %v608_v39, %v571_v48 }
 0x1b8   :  { %v649_v59 = vadd.f32 %v648_v40, %v609_v54 }
 0x1bb   :  { %v523_v35 = vpop.f32.mrf.mxu0  ;;  %v578_v36 = vpop.f32.mrf.mxu1 }
 0x1bc   :  { %v613_v44 = vpop.f32.mrf.mxu2  ;;  %v575_v47 = vadd.f32 %v574_v34, %v523_v35 }
 0x1bd   :  { %v654_v46 = vpop.f32.mrf.mxu3 }
 0x1be   :  { %v614_v50 = vadd.f32 %v613_v44, %v575_v47 }
 0x1c0   :  { %v655_v55 = vadd.f32 %v654_v46, %v614_v50 }
 0x1c3   :  { %v531_v37 = vpop.f32.mrf.mxu0  ;;  %v582_v38 = vpop.f32.mrf.mxu1 }
 0x1c4   :  { %v579_v51 = vadd.f32 %v578_v36, %v531_v37  ;;  %v618_v52 = vpop.f32.mrf.mxu2 }
 0x1c5   :  { %v660_v57 = vpop.f32.mrf.mxu3 }
 0x1c6   :  { %v619_v56 = vadd.f32 %v618_v52, %v579_v51 }
 0x1c8   :  { %v661_v62 = vadd.f32 %v660_v57, %v619_v56 }
 0x1cb   :  { %v539_v41 = vpop.f32.mrf.mxu0  ;;  %v728_v43 = vpop.f32.mrf.mxu1 }
 0x1cc   :  { %v583_v63 = vadd.f32 %v582_v38, %v539_v41  ;;  %v623_v5 = vpop.f32.mrf.mxu2 }
 0x1cd   :  { %v666_v8 = vpop.f32.mrf.mxu3 }
 0x1ce   :  { %v624_v6 = vadd.f32 %v623_v5, %v583_v63 }
 0x1d0   :  { %v667_v9 = vadd.f32 %v666_v8, %v624_v6 }
 0x1d3   :  { %v693_v45 = vpop.f32.mrf.mxu0  ;;  %v732_v49 = vpop.f32.mrf.mxu1 }
 0x1d4   :  { %v694_v0 = vadd.f32 %v693_v45, %v649_v59 }
 0x1d6   :  { %v729_v61 = vadd.f32 %v728_v43, %v694_v0 }
 0x1d8   :  { %v757_v10 = vmul.f32 %v729_v61, %v729_v61  ;;  %v743_v15 = vsel %vm469_vm8, %v729_v61, 0.0 }
 0x1da   :  { %v761_v21 = vsel %vm469_vm8, %v757_v10, 0.0 }
 0x1db   :  { %v697_v53 = vpop.f32.mrf.mxu0  ;;  %v736_v1 = vpop.f32.mrf.mxu1 }
 0x1dc   :  { %v698_v60 = vadd.f32 %v697_v53, %v655_v55 }
 0x1de   :  { %v8464_v3 = vadd.f32 %v732_v49, %v698_v60 }
 0x1e0   :  { %v758_v58 = vmul.f32 %v8464_v3, %v8464_v3  ;;  %v744_v11 = vsel %vm469_vm8, %v8464_v3, 0.0 }
 0x1e1   :  { %v745_v19 = vadd.f32 %v744_v11, %v743_v15 }
 0x1e2   :  { %v762_v16 = vsel %vm469_vm8, %v758_v58, 0.0 }
 0x1e3   :  { %v701_v2 = vpop.f32.mrf.mxu0  ;;  %v740_v20 = vpop.f32.mrf.mxu1  ;;  %v763_v24 = vadd.f32 %v762_v16, %v761_v21 }
 0x1e4   :  { %v702_v4 = vadd.f32 %v701_v2, %v661_v62 }
 0x1e6   :  { %v8466_v7 = vadd.f32 %v736_v1, %v702_v4 }
 0x1e8   :  { %v759_v13 = vmul.f32 %v8466_v7, %v8466_v7  ;;  %v746_v17 = vsel %vm469_vm8, %v8466_v7, 0.0 }
 0x1e9   :  { %v747_v25 = vadd.f32 %v746_v17, %v745_v19 }
 0x1ea   :  { %v764_v22 = vsel %vm469_vm8, %v759_v13, 0.0 }
 0x1eb   :  { %v705_v14 = vpop.f32.mrf.mxu0  ;;  %v765_v28 = vadd.f32 %v764_v22, %v763_v24 }
 0x1ec   :  { %v706_v18 = vadd.f32 %v705_v14, %v667_v9 }
 0x1ee   :  { %v741_v23 = vadd.f32 %v740_v20, %v706_v18 }
 0x1f0   :  { %v748_v26 = vsel %vm469_vm8, %v741_v23, 0.0  ;;  %v760_v27 = vmul.f32 %v741_v23, %v741_v23 }
 0x1f1   :  { %v749_v29 = vadd.f32 %v748_v26, %v747_v25 }
 0x1f2   :  { %v766_v30 = vsel %vm469_vm8, %v760_v27, 0.0 }
 0x1f3   :  { %v750_v31 = vrot.slane %v749_v29, 4  ;;  %v767_v32 = vadd.f32 %v766_v30, %v765_v28 }
 0x1f5   :  { %v751_v33 = vadd.f32 %v750_v31, %v749_v29  ;;  %v768_v34 = vrot.slane %v767_v32, 4 }
 0x1f7   :  { %v752_v35 = vrot.slane %v751_v33, 2  ;;  %v769_v36 = vadd.f32 %v768_v34, %v767_v32 }
 0x1f9   :  { %v753_v37 = vadd.f32 %v752_v35, %v751_v33  ;;  %v770_v38 = vrot.slane %v769_v36, 2 }
 0x1fb   :  { %v754_v39 = vrot.slane %v753_v37, 1  ;;  %v771_v40 = vadd.f32 %v770_v38, %v769_v36 }
 0x1fd   :  { %v755_v41 = vadd.f32 %v754_v39, %v753_v37  ;;  %v772_v43 = vrot.slane %v771_v40, 1 }
 0x1ff   :  { %v756_v44 = vmul.f32 0.03125, %v755_v41  ;;  %v773_v45 = vadd.f32 %v772_v43, %v771_v40  ;;  %v811_v43 = vld [vmem:[%s10135_s1 + $0x20] sm:$0xff] }
 0x201   :  { %v774_v46 = vmul.f32 0.03125, %v773_v45  ;;  %v775_v47 = vmul.f32 %v756_v44, %v756_v44 }
 0x203   :  { %v776_v48 = vsub.f32 %v774_v46, %v775_v47 }
 0x205   :  { %v777_v49 = vmax.f32 %v776_v48, 0.0 }
 0x207   :  { %v778_v50 = vadd.f32 1e-05, %v777_v49  ;;  %v810_v49 = vld [vmem:[%s10135_s1 + $0x18] sm:$0xff] }
 0x209   :  { %8334 = vrsqrt.f32 %v778_v50  ;;  %vm785_vm11 = vweird.f32 %v778_v50 }
 0x20f   :  { %v8335_v51 = vpop.eup %8334 }
 0x210   :  { %v780_v52 = vmul.f32 %v8335_v51, %v778_v50  ;;  %vm786_vm10 = vweird.f32 %v8335_v51  ;;  %v917_v50 = vand.u32 4294901760, %v810_v49 }
 0x211   :  { %vm787_vm12 = vmor %vm785_vm11, %vm786_vm10  ;;  %vm1400_vm10 = vcmask 1045509   ;;  %vm1402_vm11 = vcmask 1046534  }
 0x212   :  { %v781_v53 = vmul.f32 %v8335_v51, %v780_v52  ;;  %v809_v52 = vld [vmem:[%s10135_s1 + $0x10] sm:$0xff] }
 0x214   :  { %v782_v54 = vmul.f32 0.5, %v781_v53  ;;  %v919_v53 = vand.u32 4294901760, %v809_v52 }
 0x216   :  { %v783_v55 = vsub.f32 1.5, %v782_v54 }
 0x218   :  { %v784_v56 = vmul.f32 %v8335_v51, %v783_v55  ;;  %v980_v55 = vsub.f32 %v809_v52, %v919_v53 }
 0x21a   :  { %v788_v57 = vsel %vm787_vm12, %v8335_v51, %v784_v56  ;;  %v974_v51 = vsub.f32 %v810_v49, %v917_v50  ;;  %vm1404_vm12 = vcmask 1047559  }
 0x21b   :  { %v789_v59 = vmul.f32 %v788_v57, %v8443_v42  ;;  %v981_v57 = vand.u32 4294901760, %v980_v55 }
 0x21c   :  { %v975_v54 = vand.u32 4294901760, %v974_v51 }
 0x21d   :  { %v795_v60 = vmul.f32 %v789_v59, %v756_v44  ;;  %v790_v62 = vperm.slane %v789_v59, 4  ;;  %v915_v44 = vand.u32 4294901760, %v811_v43 }
 0x21e   :  { %v976_v56 = vsub.f32 %v974_v51, %v975_v54 }
 0x21f   :  { %v797_v63 = vrot.slane %v795_v60, 7  ;;  %v794_v1 = vmul.f32 %v790_v62, %v741_v23  ;;  %v791_v4 = vmul.f32 %v790_v62, %v729_v61  ;;  %v792_v5 = vmul.f32 %v790_v62, %v8464_v3  ;;  %916 = vmatpush.msra.mxu2 %v915_v44  ;;  %1059 = vmatpush.msrb.mxu1 %v915_v44 }
 0x220   :  { %v793_v6 = vmul.f32 %v790_v62, %v8466_v7  ;;  %v968_v45 = vsub.f32 %v811_v43, %v915_v44  ;;  %v977_v59 = vand.u32 4294901760, %v976_v56  ;;  %v982_v60 = vsub.f32 %v980_v55, %v981_v57 }
 0x221   :  { %v799_v0 = vsub.f32 %v8443_v42, %v797_v63  ;;  %918 = vmatpush.msra.mxu2 %v917_v50  ;;  %1061 = vmatpush.msrb.mxu1 %v917_v50 }
 0x222   :  { %v969_v46 = vand.u32 4294901760, %v968_v45  ;;  %1017 = vmatpush.msrb.mxu0 %v968_v45  ;;  %v983_v62 = vand.u32 4294901760, %v982_v60 }
 0x223   :  { %v800_v2 = vperm.slane %v799_v0, 5  ;;  %920 = vmatpush.msra.mxu2 %v919_v53  ;;  %1063 = vmatpush.msrb.mxu1 %v919_v53 }
 0x224   :  { %v970_v47 = vsub.f32 %v968_v45, %v969_v46  ;;  %1020 = vmatpush.msrb.mxu0 %v974_v51 }
 0x225   :  { %v804_v58 = vadd.f32 %v800_v2, %v794_v1  ;;  %v801_v8 = vadd.f32 %v800_v2, %v791_v4  ;;  %v802_v9 = vadd.f32 %v800_v2, %v792_v5  ;;  %v803_v10 = vadd.f32 %v800_v2, %v793_v6  ;;  %1105 = vmatpush.msrb.mxu2 %v969_v46 }
 0x226   :  { %v971_v48 = vand.u32 4294901760, %v970_v47  ;;  %1023 = vmatpush.msrb.mxu0 %v980_v55 }
 0x227   :  { %v808_v11 = vmax.f32 %v804_v58, 0.0  ;;  %v805_v13 = vmax.f32 %v801_v8, 0.0  ;;  %v806_v14 = vmax.f32 %v802_v9, 0.0  ;;  %v807_v15 = vmax.f32 %v803_v10, 0.0  ;;  %1109 = vmatpush.msrb.mxu2 %v975_v54 }
 0x228   :  { %972 = vmatpush.msra.mxu3 %v971_v48 }
 0x229   :  { %v817_v16 = vrot.slane %v805_v13, 7  ;;  %v818_v17 = vrot.slane %v806_v14, 7  ;;  %v821_v18 = vrot.slane %v808_v11, 7  ;;  %v820_v7 = vrot.slane %v807_v15, 7  ;;  %1113 = vmatpush.msrb.mxu2 %v981_v57 }
 0x22a   :  { %978 = vmatpush.msra.mxu3 %v977_v59 }
 0x22b   :  { %v8487_v42 = vsel %vm397_vm3, %v817_v16, %v818_v17  ;;  %v8490_v61 = vsel %vm397_vm3, 0.0, %v817_v16  ;;  %v831_v3 = vsel %vm397_vm3, %v818_v17, 0.0  ;;  %v8503_v27 = vsel %vm397_vm3, %v820_v7, %v821_v18 }
 0x22c   :  { %v859_v19 = vrot.slane %v8490_v61, 2  ;;  %v860_v20 = vrot.slane %v8487_v42, 2  ;;  %v838_v21 = vrot.slane %v8487_v42, 1  ;;  %v840_v22 = vrot.slane %v831_v3, 1  ;;  %984 = vmatpush.msra.mxu3 %v983_v62 }
 0x22d   :  { %v837_v23 = vrot.slane %v8490_v61, 1  ;;  %v8506_v28 = vsel %vm397_vm3, 0.0, %v820_v7  ;;  %v843_v30 = vrot.slane %v8503_v27, 1  ;;  %v865_v32 = vrot.slane %v8503_v27, 2 }
 0x22e   :  { %v861_v24 = vsel %vm441_vm5, %v859_v19, %v860_v20  ;;  %v841_v25 = vsel %vm418_vm4, %v838_v21, %v840_v22  ;;  %v842_v29 = vrot.slane %v8506_v28, 1  ;;  %v864_v31 = vrot.slane %v8506_v28, 2  ;;  %1145 = vmatpush.msrb.mxu3 %v915_v44 }
 0x22f   :  { %869 = vrot.lane.b32.xlu0 %v861_v24, %s8357_s18  ;;  %849 = vrot.lane.b32.xlu1 %v841_v25, %s8356_s13  ;;  %v839_v26 = vsel %vm418_vm4, %v837_v23, %v838_v21  ;;  %v862_v33 = vrot.slane %v831_v3, 2  ;;  %v832_v37 = vsel %vm397_vm3, %v821_v18, 0.0 }
 0x230   :  { %847 = vrot.lane.b32.xlu2 %v839_v26, %s8356_s13  ;;  %v844_v34 = vsel %vm418_vm4, %v842_v29, %v843_v30  ;;  %v866_v35 = vsel %vm441_vm5, %v864_v31, %v865_v32  ;;  %v867_v38 = vrot.slane %v832_v37, 2  ;;  %v845_v39 = vrot.slane %v832_v37, 1  ;;  %1147 = vmatpush.msrb.mxu3 %v917_v50 }
 0x231   :  { %v863_v36 = vsel %vm441_vm5, %v860_v20, %v862_v33 }
 0x232   :  { %v868_v40 = vsel %vm441_vm5, %v865_v32, %v867_v38  ;;  %v846_v41 = vsel %vm418_vm4, %v843_v30, %v845_v39  ;;  %1149 = vmatpush.msrb.mxu3 %v919_v53 }
 0x237   :  { %851 = vrot.lane.b32.xlu0 %v844_v34, %s8356_s13  ;;  %873 = vrot.lane.b32.xlu1 %v866_v35, %s8357_s18 }
 0x238   :  { %871 = vrot.lane.b32.xlu2 %v863_v36, %s8357_s18 }
 0x23f   :  { %875 = vrot.lane.b32.xlu0 %v868_v40, %s8357_s18 }
 0x240   :  { %853 = vrot.lane.b32.xlu2 %v846_v41, %s8356_s13 }
 0x28a   :  { %v848_v63 = vpop.permute.xlu2 %847 }
 0x28b   :  { %v881_v0 = vsel %vm469_vm8, %v8490_v61, %v848_v63 }
 0x292   :  { %v872_v4 = vpop.permute.xlu2 %871 }
 0x29a   :  { %v854_v21 = vpop.permute.xlu2 %853 }
 0x29b   :  { %v884_v24 = vsel %vm469_vm8, %v8503_v27, %v854_v21 }
 0x2a1   :  { %v870_v1 = vpop.permute.xlu0 %869  ;;  %v850_v2 = vpop.permute.xlu1 %849 }
 0x2a2   :  { %v885_v5 = vsel %vm24_vm0, %v881_v0, %v870_v1  ;;  %v882_v6 = vsel %vm469_vm8, %v8487_v42, %v850_v2 }
 0x2a3   :  { %v891_v58 = vsel %vm889_vm13, %v885_v5, 0  ;;  %v886_v8 = vsel %vm24_vm0, %v882_v6, %v872_v4 }
 0x2a4   :  { %v921_v9 = vand.u32 4294901760, %v891_v58  ;;  %v894_v10 = vsel %vm889_vm13, %v886_v8, 0 }
 0x2a5   :  { %v929_v11 = vand.u32 4294901760, %v894_v10 }
 0x2a6   :  { %v922_v13 = vsub.f32 %v891_v58, %v921_v9  ;;  %986 = vmatmul.f32.vlgmr.msra.gmra.mxu3 %v921_v9 }
 0x2a7   :  { %v930_v15 = vsub.f32 %v894_v10, %v929_v11 }
 0x2a8   :  { %1026 = vmatmul.f32.vlgmr.msrb.gmra.mxu0 %v922_v13  ;;  %v923_v14 = vand.u32 4294901760, %v922_v13 }
 0x2a9   :  { %v852_v16 = vpop.permute.xlu0 %851  ;;  %v874_v17 = vpop.permute.xlu1 %873  ;;  %v931_v19 = vand.u32 4294901760, %v930_v15 }
 0x2aa   :  { %v883_v18 = vsel %vm469_vm8, %v8506_v28, %v852_v16  ;;  %1067 = vmatmul.f32.vlgmr.msrb.gmra.mxu1 %v923_v14  ;;  %v924_v42 = vsub.f32 %v922_v13, %v923_v14 }
 0x2ab   :  { %v887_v61 = vsel %vm24_vm0, %v883_v18, %v874_v17  ;;  %v932_v23 = vsub.f32 %v930_v15, %v931_v19 }
 0x2ac   :  { %v897_v3 = vsel %vm889_vm13, %v887_v61, 0  ;;  %v925_v7 = vand.u32 4294901760, %v924_v42 }
 0x2ad   :  { %v937_v20 = vand.u32 4294901760, %v897_v3  ;;  %v933_v30 = vand.u32 4294901760, %v932_v23 }
 0x2ae   :  { %926 = vmatmul.f32.vlgmr.msra.gmra.mxu2 %v925_v7  ;;  %990 = vmatmul.f32.gmra.mxu3 %v929_v11 }
 0x2af   :  { %v938_v22 = vsub.f32 %v897_v3, %v937_v20 }
 0x2b0   :  { %1031 = vmatmul.f32.gmra.mxu0 %v930_v15 }
 0x2b1   :  { %v876_v25 = vpop.permute.xlu0 %875  ;;  %v939_v31 = vand.u32 4294901760, %v938_v22 }
 0x2b2   :  { %v888_v26 = vsel %vm24_vm0, %v884_v24, %v876_v25  ;;  %1073 = vmatmul.f32.gmra.mxu1 %v931_v19 }
 0x2b3   :  { %v900_v28 = vsel %vm889_vm13, %v888_v26, 0  ;;  %v940_v33 = vsub.f32 %v938_v22, %v939_v31 }
 0x2b4   :  { %v945_v29 = vand.u32 4294901760, %v900_v28 }
 0x2b5   :  { %v941_v34 = vand.u32 4294901760, %v940_v33 }
 0x2b6   :  { %934 = vmatmul.f32.gmra.mxu2 %v933_v30  ;;  %994 = vmatmul.f32.gmra.mxu3 %v937_v20  ;;  %v946_v32 = vsub.f32 %v900_v28, %v945_v29 }
 0x2b8   :  { %1036 = vmatmul.f32.gmra.mxu0 %v938_v22  ;;  %v947_v35 = vand.u32 4294901760, %v946_v32 }
 0x2ba   :  { %1079 = vmatmul.f32.gmra.mxu1 %v939_v31  ;;  %v948_v27 = vsub.f32 %v946_v32, %v947_v35 }
 0x2bc   :  { %v949_v36 = vand.u32 4294901760, %v948_v27 }
 0x2be   :  { %942 = vmatmul.f32.gmra.mxu2 %v941_v34  ;;  %998 = vmatmul.f32.gmra.mxu3 %v945_v29 }
 0x2c0   :  { %1041 = vmatmul.f32.gmra.mxu0 %v946_v32 }
 0x2c2   :  { %1085 = vmatmul.f32.gmra.mxu1 %v947_v35 }
 0x2c6   :  { %950 = vmatmul.f32.gmra.mxu2 %v949_v36  ;;  %1151 = vmatmul.f32.vlgmr.msrb.gmra.mxu3 %v921_v9 }
 0x2ce   :  { %1115 = vmatmul.f32.vlgmr.msrb.gmra.mxu2 %v921_v9  ;;  %1155 = vmatmul.f32.gmra.mxu3 %v929_v11 }
 0x2d6   :  { %1119 = vmatmul.f32.gmra.mxu2 %v929_v11  ;;  %1159 = vmatmul.f32.gmra.mxu3 %v937_v20 }
 0x2de   :  { %1123 = vmatmul.f32.gmra.mxu2 %v937_v20  ;;  %1163 = vmatmul.f32.gmra.mxu3 %v945_v29 }
 0x2e6   :  { %1127 = vmatmul.f32.gmra.mxu2 %v945_v29 }
 0x325   :  { %v1027_v45 = vpop.f32.mrf.mxu0 }
 0x327   :  { %v1068_v46 = vpop.f32.mrf.mxu1 }
 0x329   :  { %v987_v37 = vpop.f32.mrf.mxu3 }
 0x32d   :  { %v1032_v49 = vpop.f32.mrf.mxu0 }
 0x32f   :  { %v1074_v51 = vpop.f32.mrf.mxu1 }
 0x331   :  { %v927_v38 = vpop.f32.mrf.mxu2  ;;  %v991_v39 = vpop.f32.mrf.mxu3 }
 0x332   :  { %v988_v53 = vadd.f32 %v987_v37, %v927_v38 }
 0x334   :  { %v1028_v60 = vadd.f32 %v1027_v45, %v988_v53 }
 0x335   :  { %v1037_v57 = vpop.f32.mrf.mxu0 }
 0x336   :  { %v1069_v1 = vadd.f32 %v1068_v46, %v1028_v60 }
 0x337   :  { %v1080_v0 = vpop.f32.mrf.mxu1 }
 0x339   :  { %v935_v40 = vpop.f32.mrf.mxu2  ;;  %v995_v41 = vpop.f32.mrf.mxu3 }
 0x33a   :  { %v992_v52 = vadd.f32 %v991_v39, %v935_v40 }
 0x33c   :  { %v1033_v55 = vadd.f32 %v1032_v49, %v992_v52 }
 0x33d   :  { %v1042_v11 = vpop.f32.mrf.mxu0 }
 0x33e   :  { %v1075_v63 = vadd.f32 %v1074_v51, %v1033_v55 }
 0x33f   :  { %v1086_v17 = vpop.f32.mrf.mxu1 }
 0x341   :  { %v943_v43 = vpop.f32.mrf.mxu2  ;;  %v999_v44 = vpop.f32.mrf.mxu3 }
 0x342   :  { %v996_v56 = vadd.f32 %v995_v41, %v943_v43 }
 0x344   :  { %v1038_v62 = vadd.f32 %v1037_v57, %v996_v56 }
 0x346   :  { %v1081_v6 = vadd.f32 %v1080_v0, %v1038_v62  ;;  %v812_v62 = vld [vmem:[%s10135_s1 + $0x28] sm:$0x3] }
 0x349   :  { %v951_v47 = vpop.f32.mrf.mxu2  ;;  %v1152_v48 = vpop.f32.mrf.mxu3 }
 0x34a   :  { %v1000_v4 = vadd.f32 %v999_v44, %v951_v47 }
 0x34c   :  { %v1043_v13 = vadd.f32 %v1042_v11, %v1000_v4 }
 0x34e   :  { %v1087_v3 = vadd.f32 %v1086_v17, %v1043_v13 }
 0x351   :  { %v1116_v50 = vpop.f32.mrf.mxu2  ;;  %v1156_v54 = vpop.f32.mrf.mxu3 }
 0x352   :  { %v1117_v5 = vadd.f32 %v1116_v50, %v1069_v1 }
 0x354   :  { %v1153_v14 = vadd.f32 %v1152_v48, %v1117_v5 }
 0x356   :  { %v1181_v18 = vmul.f32 %v1153_v14, %v1153_v14  ;;  %v1167_v19 = vsel %vm469_vm8, %v1153_v14, 0.0 }
 0x358   :  { %v1185_v25 = vsel %vm469_vm8, %v1181_v18, 0.0 }
 0x359   :  { %v1120_v59 = vpop.f32.mrf.mxu2  ;;  %v1160_v58 = vpop.f32.mrf.mxu3 }
 0x35a   :  { %v1121_v2 = vadd.f32 %v1120_v59, %v1075_v63 }
 0x35c   :  { %v8549_v9 = vadd.f32 %v1156_v54, %v1121_v2 }
 0x35e   :  { %v1182_v16 = vmul.f32 %v8549_v9, %v8549_v9  ;;  %v1168_v42 = vsel %vm469_vm8, %v8549_v9, 0.0 }
 0x35f   :  { %v1169_v23 = vadd.f32 %v1168_v42, %v1167_v19 }
 0x360   :  { %v1186_v20 = vsel %vm469_vm8, %v1182_v16, 0.0 }
 0x361   :  { %v1124_v8 = vpop.f32.mrf.mxu2  ;;  %v1164_v24 = vpop.f32.mrf.mxu3  ;;  %v1187_v29 = vadd.f32 %v1186_v20, %v1185_v25 }
 0x362   :  { %v1125_v10 = vadd.f32 %v1124_v8, %v1081_v6 }
 0x364   :  { %v1161_v15 = vadd.f32 %v1160_v58, %v1125_v10 }
 0x366   :  { %v1183_v61 = vmul.f32 %v1161_v15, %v1161_v15  ;;  %v1170_v21 = vsel %vm469_vm8, %v1161_v15, 0.0 }
 0x367   :  { %v1171_v30 = vadd.f32 %v1170_v21, %v1169_v23 }
 0x368   :  { %v1188_v26 = vsel %vm469_vm8, %v1183_v61, 0.0 }
 0x369   :  { %v1128_v7 = vpop.f32.mrf.mxu2  ;;  %v1189_v33 = vadd.f32 %v1188_v26, %v1187_v29 }
 0x36a   :  { %v1129_v22 = vadd.f32 %v1128_v7, %v1087_v3 }
 0x36c   :  { %v1165_v28 = vadd.f32 %v1164_v24, %v1129_v22 }
 0x36e   :  { %v1172_v31 = vsel %vm469_vm8, %v1165_v28, 0.0  ;;  %v1184_v32 = vmul.f32 %v1165_v28, %v1165_v28 }
 0x36f   :  { %v1173_v34 = vadd.f32 %v1172_v31, %v1171_v30 }
 0x370   :  { %v1190_v35 = vsel %vm469_vm8, %v1184_v32, 0.0 }
 0x371   :  { %v1174_v27 = vrot.slane %v1173_v34, 4  ;;  %v1191_v36 = vadd.f32 %v1190_v35, %v1189_v33 }
 0x373   :  { %v1175_v37 = vadd.f32 %v1174_v27, %v1173_v34  ;;  %v1192_v38 = vrot.slane %v1191_v36, 4 }
 0x375   :  { %v1176_v39 = vrot.slane %v1175_v37, 2  ;;  %v1193_v40 = vadd.f32 %v1192_v38, %v1191_v36 }
 0x377   :  { %v1177_v41 = vadd.f32 %v1176_v39, %v1175_v37  ;;  %v1194_v43 = vrot.slane %v1193_v40, 2 }
 0x379   :  { %v1178_v44 = vrot.slane %v1177_v41, 1  ;;  %v1195_v45 = vadd.f32 %v1194_v43, %v1193_v40 }
 0x37b   :  { %v1179_v46 = vadd.f32 %v1178_v44, %v1177_v41  ;;  %v1196_v47 = vrot.slane %v1195_v45, 1 }
 0x37d   :  { %v1180_v48 = vmul.f32 0.03125, %v1179_v46  ;;  %v1197_v49 = vadd.f32 %v1196_v47, %v1195_v45 }
 0x37f   :  { %v1198_v50 = vmul.f32 0.03125, %v1197_v49  ;;  %v1199_v51 = vmul.f32 %v1180_v48, %v1180_v48 }
 0x381   :  { %v1200_v52 = vsub.f32 %v1198_v50, %v1199_v51 }
 0x383   :  { %v1201_v53 = vmax.f32 %v1200_v52, 0.0 }
 0x385   :  { %v1202_v54 = vadd.f32 1e-05, %v1201_v53 }
 0x387   :  { %8336 = vrsqrt.f32 %v1202_v54  ;;  %vm1209_vm15 = vweird.f32 %v1202_v54 }
 0x38d   :  { %v8337_v55 = vpop.eup %8336 }
 0x38e   :  { %v1204_v56 = vmul.f32 %v8337_v55, %v1202_v54  ;;  %vm1210_vm14 = vweird.f32 %v8337_v55 }
 0x38f   :  { %vm1211_vm1 = vmor %vm1209_vm15, %vm1210_vm14 }
 0x390   :  { %v1205_v57 = vmul.f32 %v8337_v55, %v1204_v56 }
 0x392   :  { %v1206_v59 = vmul.f32 0.5, %v1205_v57 }
 0x394   :  { %v1207_v60 = vsub.f32 1.5, %v1206_v59 }
 0x396   :  { %v1208_v63 = vmul.f32 %v8337_v55, %v1207_v60 }
 0x398   :  { %v1212_v0 = vsel %vm1211_vm1, %v8337_v55, %v1208_v63 }
 0x399   :  { %v1213_v1 = vmul.f32 %v1212_v0, %v812_v62 }
 0x39b   :  { %v1219_v2 = vmul.f32 %v1213_v1, %v1180_v48  ;;  %v1214_v4 = vperm.slane %v1213_v1, 0 }
 0x39d   :  { %v1221_v5 = vrot.slane %v1219_v2, 7  ;;  %v1215_v58 = vmul.f32 %v1214_v4, %v1153_v14  ;;  %v1216_v8 = vmul.f32 %v1214_v4, %v8549_v9  ;;  %v1217_v10 = vmul.f32 %v1214_v4, %v1161_v15 }
 0x39e   :  { %v1218_v11 = vmul.f32 %v1214_v4, %v1165_v28 }
 0x39f   :  { %v1223_v6 = vsub.f32 %v812_v62, %v1221_v5 }
 0x3a1   :  { %v1224_v13 = vperm.slane %v1223_v6, 1 }
 0x3a3   :  { %v1225_v16 = vadd.f32 %v1224_v13, %v1215_v58  ;;  %v1226_v17 = vadd.f32 %v1224_v13, %v1216_v8  ;;  %v1227_v18 = vadd.f32 %v1224_v13, %v1217_v10  ;;  %v1228_v42 = vadd.f32 %v1224_v13, %v1218_v11 }
 0x3a5   :  { %v8566_v61 = vmax.f32 %v1227_v18, 0.0  ;;  %v8568_v3 = vmax.f32 %v1228_v42, 0.0  ;;  %v8570_v7 = vmax.f32 %v1225_v16, 0.0  ;;  %v8572_v19 = vmax.f32 %v1226_v17, 0.0 }
 0x3a7   :  { %v1346_v14 = vsel %vm1261_vm2, %v8568_v3, -inf  ;;  %v1243_v9 = vrot.slane %v8566_v61, 2  ;;  %v1244_v15 = vrot.slane %v8566_v61, 4  ;;  %v1245_v20 = vrot.slane %v8566_v61, 6 }
 0x3a8   :  { %v1347_v21 = vrot.slane %v1346_v14, 4  ;;  %v1246_v22 = vrot.slane %v8568_v3, 2  ;;  %v1247_v23 = vrot.slane %v8568_v3, 4  ;;  %v1248_v24 = vrot.slane %v8568_v3, 6 }
 0x3a9   :  { %v1318_v25 = vsel %vm1261_vm2, %v8566_v61, -inf  ;;  %v1325_v26 = vsel %vm1261_vm2, %v1243_v9, -inf  ;;  %v1332_v28 = vsel %vm1261_vm2, %v1244_v15, -inf  ;;  %v1339_v29 = vsel %vm1261_vm2, %v1245_v20, -inf }
 0x3aa   :  { %v1319_v30 = vrot.slane %v1318_v25, 4  ;;  %v1326_v31 = vrot.slane %v1325_v26, 4  ;;  %v1333_v32 = vrot.slane %v1332_v28, 4  ;;  %v1340_v33 = vrot.slane %v1339_v29, 4 }
 0x3ab   :  { %v1348_v34 = vmax.f32 %v1346_v14, %v1347_v21  ;;  %v1353_v35 = vsel %vm1261_vm2, %v1246_v22, -inf  ;;  %v1360_v27 = vsel %vm1261_vm2, %v1247_v23, -inf  ;;  %v1367_v36 = vsel %vm1261_vm2, %v1248_v24, -inf }
 0x3ac   :  { %v1320_v37 = vmax.f32 %v1318_v25, %v1319_v30  ;;  %v1327_v38 = vmax.f32 %v1325_v26, %v1326_v31  ;;  %v1334_v39 = vmax.f32 %v1332_v28, %v1333_v32  ;;  %v1341_v40 = vmax.f32 %v1339_v29, %v1340_v33 }
 0x3ad   :  { %v1349_v41 = vrot.slane %v1348_v34, 2  ;;  %v1354_v43 = vrot.slane %v1353_v35, 4  ;;  %v1361_v44 = vrot.slane %v1360_v27, 4  ;;  %v1368_v45 = vrot.slane %v1367_v36, 4 }
 0x3ae   :  { %v1321_v46 = vrot.slane %v1320_v37, 2  ;;  %v1328_v47 = vrot.slane %v1327_v38, 2  ;;  %v1335_v48 = vrot.slane %v1334_v39, 2  ;;  %v1342_v49 = vrot.slane %v1341_v40, 2 }
 0x3af   :  { %v1350_v50 = vmax.f32 %v1348_v34, %v1349_v41  ;;  %v1355_v51 = vmax.f32 %v1353_v35, %v1354_v43  ;;  %v1362_v52 = vmax.f32 %v1360_v27, %v1361_v44  ;;  %v1369_v53 = vmax.f32 %v1367_v36, %v1368_v45 }
 0x3b0   :  { %v1322_v54 = vmax.f32 %v1320_v37, %v1321_v46  ;;  %v1329_v55 = vmax.f32 %v1327_v38, %v1328_v47  ;;  %v1336_v56 = vmax.f32 %v1334_v39, %v1335_v48  ;;  %v1343_v57 = vmax.f32 %v1341_v40, %v1342_v49 }
 0x3b1   :  { %v1351_v59 = vrot.slane %v1350_v50, 1  ;;  %v1356_v60 = vrot.slane %v1355_v51, 2  ;;  %v1363_v62 = vrot.slane %v1362_v52, 2  ;;  %v1370_v63 = vrot.slane %v1369_v53, 2 }
 0x3b2   :  { %v1323_v0 = vrot.slane %v1322_v54, 1  ;;  %v1330_v1 = vrot.slane %v1329_v55, 1  ;;  %v1337_v2 = vrot.slane %v1336_v56, 1  ;;  %v1344_v4 = vrot.slane %v1343_v57, 1 }
 0x3b3   :  { %v1352_v5 = vmax.f32 %v1350_v50, %v1351_v59  ;;  %v1357_v6 = vmax.f32 %v1355_v51, %v1356_v60  ;;  %v1364_v58 = vmax.f32 %v1362_v52, %v1363_v62  ;;  %v1371_v8 = vmax.f32 %v1369_v53, %v1370_v63 }
 0x3b4   :  { %v1324_v10 = vmax.f32 %v1322_v54, %v1323_v0  ;;  %v1331_v11 = vmax.f32 %v1329_v55, %v1330_v1  ;;  %v1338_v13 = vmax.f32 %v1336_v56, %v1337_v2  ;;  %v1345_v16 = vmax.f32 %v1343_v57, %v1344_v4 }
 0x3b5   :  { %v1358_v17 = vrot.slane %v1357_v6, 1  ;;  %v1365_v18 = vrot.slane %v1364_v58, 1  ;;  %v1372_v42 = vrot.slane %v1371_v8, 1  ;;  %v1237_v14 = vrot.slane %v8570_v7, 2 }
 0x3b6   :  { %v1406_v9 = vsel %vm1394_vm6, %v1331_v11, %v1324_v10  ;;  %v1238_v15 = vrot.slane %v8570_v7, 4  ;;  %v1239_v20 = vrot.slane %v8570_v7, 6  ;;  %v1240_v21 = vrot.slane %v8572_v19, 2 }
 0x3b7   :  { %v1359_v22 = vmax.f32 %v1357_v6, %v1358_v17  ;;  %v1366_v23 = vmax.f32 %v1364_v58, %v1365_v18  ;;  %v1373_v24 = vmax.f32 %v1371_v8, %v1372_v42  ;;  %v1407_v25 = vsel %vm1396_vm7, %v1338_v13, %v1406_v9 }
 0x3b8   :  { %v1408_v26 = vsel %vm1398_vm9, %v1345_v16, %v1407_v25  ;;  %v1241_v28 = vrot.slane %v8572_v19, 4  ;;  %v1242_v29 = vrot.slane %v8572_v19, 6  ;;  %v1262_v30 = vsel %vm1261_vm2, %v8570_v7, -inf }
 0x3b9   :  { %v1409_v31 = vsel %vm1400_vm10, %v1352_v5, %v1408_v26  ;;  %v8603_v32 = vsel %vm397_vm3, %v1373_v24, 0.0  ;;  %v1263_v33 = vrot.slane %v1262_v30, 4  ;;  %v1269_v34 = vsel %vm1261_vm2, %v1237_v14, -inf }
 0x3ba   :  { %v1410_v35 = vsel %vm1402_vm11, %v1359_v22, %v1409_v31  ;;  %v1428_v27 = vrot.slane %v8603_v32, 1  ;;  %v1270_v36 = vrot.slane %v1269_v34, 4  ;;  %v1276_v37 = vsel %vm1261_vm2, %v1238_v15, -inf }
 0x3bb   :  { %v1411_v38 = vsel %vm1404_vm12, %v1366_v23, %v1410_v35  ;;  %v1264_v39 = vmax.f32 %v1262_v30, %v1263_v33  ;;  %v1277_v40 = vrot.slane %v1276_v37, 4  ;;  %v1283_v41 = vsel %vm1261_vm2, %v1239_v20, -inf }
 0x3bc   :  { %v8612_v43 = vsel %vm397_vm3, 0.0, %v1411_v38  ;;  %v1271_v44 = vmax.f32 %v1269_v34, %v1270_v36  ;;  %v1284_v45 = vrot.slane %v1283_v41, 4  ;;  %v1290_v46 = vsel %vm1261_vm2, %v8572_v19, -inf }
 0x3bd   :  { %v1427_v47 = vrot.slane %v8612_v43, 1  ;;  %v1265_v48 = vrot.slane %v1264_v39, 2  ;;  %v1278_v49 = vmax.f32 %v1276_v37, %v1277_v40  ;;  %v1291_v50 = vrot.slane %v1290_v46, 4 }
 0x3be   :  { %v1272_v51 = vrot.slane %v1271_v44, 2  ;;  %v1285_v52 = vmax.f32 %v1283_v41, %v1284_v45  ;;  %v1297_v53 = vsel %vm1261_vm2, %v1240_v21, -inf  ;;  %v1304_v54 = vsel %vm1261_vm2, %v1241_v28, -inf }
 0x3bf   :  { %v1429_v55 = vsel %vm418_vm4, %v1427_v47, %v1428_v27  ;;  %v1266_v56 = vmax.f32 %v1264_v39, %v1265_v48  ;;  %v1279_v57 = vrot.slane %v1278_v49, 2  ;;  %v1292_v59 = vmax.f32 %v1290_v46, %v1291_v50 }
 0x3c0   :  { %1432 = vrot.lane.b32.xlu0 %v1429_v55, %s8356_s13  ;;  %v1273_v60 = vmax.f32 %v1271_v44, %v1272_v51  ;;  %v1286_v62 = vrot.slane %v1285_v52, 2  ;;  %v1298_v63 = vrot.slane %v1297_v53, 4  ;;  %v1305_v0 = vrot.slane %v1304_v54, 4  ;;  %v1375_v55 = vld [vmem:[%s10135_s1 + $0x38] sm:$0xff] }
 0x3c1   :  { %v1267_v1 = vrot.slane %v1266_v56, 1  ;;  %v1280_v2 = vmax.f32 %v1278_v49, %v1279_v57  ;;  %v1293_v4 = vrot.slane %v1292_v59, 2  ;;  %v1311_v5 = vsel %vm1261_vm2, %v1242_v29, -inf }
 0x3c2   :  { %v1274_v6 = vrot.slane %v1273_v60, 1  ;;  %v1287_v58 = vmax.f32 %v1285_v52, %v1286_v62  ;;  %v1299_v8 = vmax.f32 %v1297_v53, %v1298_v63  ;;  %v1306_v10 = vmax.f32 %v1304_v54, %v1305_v0  ;;  %v1376_v54 = vld [vmem:[%s10135_s1 + $0x40] sm:$0xff] }
 0x3c3   :  { %v1268_v11 = vmax.f32 %v1266_v56, %v1267_v1  ;;  %v1281_v13 = vrot.slane %v1280_v2, 1  ;;  %v1294_v16 = vmax.f32 %v1292_v59, %v1293_v4  ;;  %v1312_v17 = vrot.slane %v1311_v5, 4  ;;  %v1374_v4 = vld [vmem:[%s10135_s1 + $0x30] sm:$0xff] }
 0x3c4   :  { %v1275_v18 = vmax.f32 %v1273_v60, %v1274_v6  ;;  %v1288_v42 = vrot.slane %v1287_v58, 1  ;;  %v1300_v14 = vrot.slane %v1299_v8, 2  ;;  %v1307_v9 = vrot.slane %v1306_v10, 2 }
 0x3c5   :  { %v1282_v15 = vmax.f32 %v1280_v2, %v1281_v13  ;;  %v1295_v20 = vrot.slane %v1294_v16, 1  ;;  %v1313_v21 = vmax.f32 %v1311_v5, %v1312_v17  ;;  %v1439_v51 = vrot.slane %v8612_v43, 2 }
 0x3c6   :  { %v1289_v22 = vmax.f32 %v1287_v58, %v1288_v42  ;;  %v1301_v23 = vmax.f32 %v1299_v8, %v1300_v14  ;;  %v1308_v24 = vmax.f32 %v1306_v10, %v1307_v9  ;;  %v1395_v25 = vsel %vm1394_vm6, %v1275_v18, %v1268_v11 }
 0x3c7   :  { %v1296_v26 = vmax.f32 %v1294_v16, %v1295_v20  ;;  %v1314_v28 = vrot.slane %v1313_v21, 2  ;;  %v1397_v29 = vsel %vm1396_vm7, %v1282_v15, %v1395_v25  ;;  %v1440_v52 = vrot.slane %v8603_v32, 2 }
 0x3c8   :  { %v1302_v30 = vrot.slane %v1301_v23, 1  ;;  %v1309_v31 = vrot.slane %v1308_v24, 1  ;;  %v1399_v33 = vsel %vm1398_vm9, %v1289_v22, %v1397_v29  ;;  %v1471_v56 = vand.u32 4294901760, %v1376_v54 }
 0x3c9   :  { %v1315_v34 = vmax.f32 %v1313_v21, %v1314_v28  ;;  %v1401_v35 = vsel %vm1400_vm10, %v1296_v26, %v1399_v33  ;;  %v1441_v53 = vsel %vm441_vm5, %v1439_v51, %v1440_v52  ;;  %v1473_v57 = vand.u32 4294901760, %v1375_v55 }
 0x3ca   :  { %v1303_v27 = vmax.f32 %v1301_v23, %v1302_v30  ;;  %v1310_v36 = vmax.f32 %v1308_v24, %v1309_v31  ;;  %1472 = vmatpush.msra.mxu0 %v1471_v56  ;;  %v1508_v59 = vsub.f32 %v1376_v54, %v1471_v56  ;;  %1581 = vmatpush.msra.mxu3 %v1471_v56  ;;  %v1475_v5 = vand.u32 4294901760, %v1374_v4 }
 0x3cb   :  { %v1316_v37 = vrot.slane %v1315_v34, 1  ;;  %v1514_v60 = vsub.f32 %v1375_v55, %v1473_v57  ;;  %vm1758_vm2 = vcmask 261120   ;;  %vm1761_vm10 = vcmask 392192  }
 0x3cc   :  { %v1403_v38 = vsel %vm1402_vm11, %v1303_v27, %v1401_v35  ;;  %v1509_v62 = vand.u32 4294901760, %v1508_v59  ;;  %1549 = vmatpush.msra.mxu2 %v1508_v59  ;;  %1474 = vmatpush.msra.mxu0 %v1473_v57  ;;  %v1520_v6 = vsub.f32 %v1374_v4, %v1475_v5 }
 0x3cd   :  { %v1317_v39 = vmax.f32 %v1315_v34, %v1316_v37  ;;  %v1405_v40 = vsel %vm1404_vm12, %v1310_v36, %v1403_v38  ;;  %v1515_v32 = vand.u32 4294901760, %v1514_v60  ;;  %1583 = vmatpush.msra.mxu3 %v1473_v57 }
 0x3ce   :  { %v1416_v41 = vsel %vm397_vm3, 0.0, %v1405_v40  ;;  %v1510_v63 = vsub.f32 %v1508_v59, %v1509_v62  ;;  %1552 = vmatpush.msra.mxu2 %v1514_v60  ;;  %1476 = vmatpush.msra.mxu0 %v1475_v5  ;;  %v1521_v58 = vand.u32 4294901760, %v1520_v6 }
 0x3cf   :  { %v1418_v44 = vsel %vm397_vm3, %v1317_v39, 0.0  ;;  %v1436_v45 = vrot.slane %v1416_v41, 2  ;;  %v1424_v46 = vrot.slane %v1416_v41, 1  ;;  %v1516_v0 = vsub.f32 %v1514_v60, %v1515_v32  ;;  %1585 = vmatpush.msra.mxu3 %v1475_v5 }
 0x3d0   :  { %v1437_v47 = vrot.slane %v1418_v44, 2  ;;  %v1425_v48 = vrot.slane %v1418_v44, 1  ;;  %v1511_v1 = vand.u32 4294901760, %v1510_v63  ;;  %1615 = vmatpush.msrb.mxu0 %v1509_v62  ;;  %1555 = vmatpush.msra.mxu2 %v1520_v6  ;;  %v1522_v8 = vsub.f32 %v1520_v6, %v1521_v58 }
 0x3d1   :  { %v1517_v2 = vand.u32 4294901760, %v1516_v0 }
 0x3d2   :  { %v1438_v49 = vsel %vm441_vm5, %v1436_v45, %v1437_v47  ;;  %v1426_v50 = vsel %vm418_vm4, %v1424_v46, %v1425_v48  ;;  %1512 = vmatpush.msra.mxu1 %v1511_v1  ;;  %1619 = vmatpush.msrb.mxu0 %v1515_v32  ;;  %v1523_v10 = vand.u32 4294901760, %v1522_v8 }
 0x3d3   :  { %1442 = vrot.lane.b32.xlu2 %v1438_v49, %s8357_s18  ;;  %1430 = vrot.lane.b32.xlu1 %v1426_v50, %s8356_s13 }
 0x3d4   :  { %1518 = vmatpush.msra.mxu1 %v1517_v2  ;;  %1623 = vmatpush.msrb.mxu0 %v1521_v58 }
 0x3d6   :  { %1524 = vmatpush.msra.mxu1 %v1523_v10 }
 0x3d8   :  { %1647 = vmatpush.msrb.mxu1 %v1471_v56 }
 0x3da   :  { %1649 = vmatpush.msrb.mxu1 %v1473_v57 }
 0x3db   :  { %1444 = vrot.lane.b32.xlu1 %v1441_v53, %s8357_s18 }
 0x3dc   :  { %1651 = vmatpush.msrb.mxu1 %v1475_v5 }
 0x42d   :  { %v1443_v13 = vpop.permute.xlu2 %1442 }
 0x432   :  { %v1433_v14 = vpop.permute.xlu0 %1432 }
 0x433   :  { %v1449_v15 = vsel %vm469_vm8, %v8612_v43, %v1433_v14 }
 0x445   :  { %v1431_v11 = vpop.permute.xlu1 %1430 }
 0x446   :  { %v1448_v16 = vsel %vm469_vm8, %v1416_v41, %v1431_v11 }
 0x447   :  { %v1450_v17 = vsel %vm24_vm0, %v1448_v16, %v1443_v13 }
 0x448   :  { %v1453_v18 = vsel %vm889_vm13, %v1450_v17, 0 }
 0x449   :  { %v1477_v42 = vand.u32 4294901760, %v1453_v18 }
 0x44b   :  { %v1478_v9 = vsub.f32 %v1453_v18, %v1477_v42  ;;  %1526 = vmatmul.f32.vlgmr.msra.gmra.mxu1 %v1477_v42 }
 0x44d   :  { %1558 = vmatmul.f32.vlgmr.msra.gmra.mxu2 %v1478_v9  ;;  %v1445_v20 = vpop.permute.xlu1 %1444  ;;  %v1479_v21 = vand.u32 4294901760, %v1478_v9 }
 0x44e   :  { %v1451_v22 = vsel %vm24_vm0, %v1449_v15, %v1445_v20 }
 0x44f   :  { %v1456_v23 = vsel %vm889_vm13, %v1451_v22, 0  ;;  %1589 = vmatmul.f32.vlgmr.msra.gmra.mxu3 %v1479_v21  ;;  %v1480_v24 = vsub.f32 %v1478_v9, %v1479_v21 }
 0x450   :  { %v1485_v25 = vand.u32 4294901760, %v1456_v23 }
 0x451   :  { %v1481_v26 = vand.u32 4294901760, %v1480_v24 }
 0x452   :  { %v1486_v28 = vsub.f32 %v1456_v23, %v1485_v25 }
 0x453   :  { %1482 = vmatmul.f32.vlgmr.msra.gmra.mxu0 %v1481_v26  ;;  %1530 = vmatmul.f32.gmra.mxu1 %v1485_v25 }
 0x454   :  { %v1487_v29 = vand.u32 4294901760, %v1486_v28 }
 0x455   :  { %1563 = vmatmul.f32.gmra.mxu2 %v1486_v28 }
 0x456   :  { %v1488_v30 = vsub.f32 %v1486_v28, %v1487_v29 }
 0x457   :  { %1595 = vmatmul.f32.gmra.mxu3 %v1487_v29 }
 0x458   :  { %v1489_v31 = vand.u32 4294901760, %v1488_v30 }
 0x45b   :  { %1490 = vmatmul.f32.gmra.mxu0 %v1489_v31  ;;  %1653 = vmatmul.f32.vlgmr.msrb.gmra.mxu1 %v1477_v42 }
 0x463   :  { %1625 = vmatmul.f32.vlgmr.msrb.gmra.mxu0 %v1477_v42  ;;  %1657 = vmatmul.f32.gmra.mxu1 %v1485_v25 }
 0x46b   :  { %1629 = vmatmul.f32.gmra.mxu0 %v1485_v25  ;;  %v1377_v25 = vld [vmem:[%s10135_s1 + $0x48] sm:$0x3] }
 0x4c8   :  { %v1527_v43 = vpop.f32.mrf.mxu1 }
 0x4d0   :  { %v1483_v33 = vpop.f32.mrf.mxu0  ;;  %v1531_v34 = vpop.f32.mrf.mxu1 }
 0x4d1   :  { %v1559_v35 = vpop.f32.mrf.mxu2  ;;  %v1528_v36 = vadd.f32 %v1527_v43, %v1483_v33 }
 0x4d2   :  { %v1590_v37 = vpop.f32.mrf.mxu3 }
 0x4d3   :  { %v1560_v38 = vadd.f32 %v1559_v35, %v1528_v36 }
 0x4d5   :  { %v1591_v44 = vadd.f32 %v1590_v37, %v1560_v38 }
 0x4d8   :  { %v1491_v27 = vpop.f32.mrf.mxu0  ;;  %v1654_v40 = vpop.f32.mrf.mxu1 }
 0x4d9   :  { %v1532_v39 = vadd.f32 %v1531_v34, %v1491_v27  ;;  %v1564_v45 = vpop.f32.mrf.mxu2 }
 0x4da   :  { %v1596_v48 = vpop.f32.mrf.mxu3 }
 0x4db   :  { %v1565_v46 = vadd.f32 %v1564_v45, %v1532_v39 }
 0x4dd   :  { %v1597_v49 = vadd.f32 %v1596_v48, %v1565_v46 }
 0x4e0   :  { %v1626_v41 = vpop.f32.mrf.mxu0  ;;  %v1658_v53 = vpop.f32.mrf.mxu1 }
 0x4e1   :  { %v1627_v47 = vadd.f32 %v1626_v41, %v1591_v44 }
 0x4e3   :  { %v1655_v50 = vadd.f32 %v1654_v40, %v1627_v47 }
 0x4e5   :  { %v1671_v54 = vmul.f32 %v1655_v50, %v1655_v50  ;;  %v1661_v56 = vsel %vm24_vm0, %v1655_v50, 0.0 }
 0x4e7   :  { %v1673_v62 = vsel %vm24_vm0, %v1671_v54, 0.0 }
 0x4e8   :  { %v1630_v51 = vpop.f32.mrf.mxu0 }
 0x4e9   :  { %v1631_v52 = vadd.f32 %v1630_v51, %v1597_v49 }
 0x4eb   :  { %v1659_v55 = vadd.f32 %v1658_v53, %v1631_v52 }
 0x4ed   :  { %v1662_v57 = vsel %vm24_vm0, %v1659_v55, 0.0  ;;  %v1672_v59 = vmul.f32 %v1659_v55, %v1659_v55 }
 0x4ee   :  { %v1663_v60 = vadd.f32 %v1662_v57, %v1661_v56 }
 0x4ef   :  { %v1674_v32 = vsel %vm24_vm0, %v1672_v59, 0.0 }
 0x4f0   :  { %v1664_v63 = vrot.slane %v1663_v60, 4  ;;  %v1675_v0 = vadd.f32 %v1674_v32, %v1673_v62  ;;  %v1716_v62 = vld [vmem:[%s10135_s1 + $0x78] sm:$0xff]  ;;  %v1715_v32 = vld [vmem:[%s10135_s1 + $0x70] sm:$0xff] }
 0x4f2   :  { %v1665_v1 = vadd.f32 %v1664_v63, %v1663_v60  ;;  %v1676_v2 = vrot.slane %v1675_v0, 4  ;;  %v1714_v63 = vld [vmem:[%s10135_s1 + $0x68] sm:$0xff] }
 0x4f4   :  { %v1666_v4 = vrot.slane %v1665_v1, 2  ;;  %v1677_v5 = vadd.f32 %v1676_v2, %v1675_v0  ;;  %v1778_v0 = vand.u32 4294901760, %v1716_v62  ;;  %v1782_v2 = vand.u32 4294901760, %v1714_v63 }
 0x4f6   :  { %v1667_v6 = vadd.f32 %v1666_v4, %v1665_v1  ;;  %v1678_v58 = vrot.slane %v1677_v5, 2  ;;  %v1780_v1 = vand.u32 4294901760, %v1715_v32  ;;  %v1713_v4 = vld [vmem:[%s10135_s1 + $0x60] sm:$0xff]  ;;  %1779 = vmatpush.msrb.mxu2 %v1778_v0  ;;  %1912 = vmatpush.msra.mxu1 %v1778_v0 }
 0x4f8   :  { %v1668_v8 = vrot.slane %v1667_v6, 1  ;;  %v1679_v10 = vadd.f32 %v1678_v58, %v1677_v5  ;;  %v1784_v5 = vand.u32 4294901760, %v1713_v4  ;;  %v1824_v58 = vsub.f32 %v1715_v32, %v1780_v1  ;;  %1914 = vmatpush.msra.mxu1 %v1780_v1  ;;  %1781 = vmatpush.msrb.mxu2 %v1780_v1 }
 0x4fa   :  { %v1669_v11 = vadd.f32 %v1668_v8, %v1667_v6  ;;  %v1680_v13 = vrot.slane %v1679_v10, 1  ;;  %v1818_v6 = vsub.f32 %v1716_v62, %v1778_v0  ;;  %v1830_v8 = vsub.f32 %v1714_v63, %v1782_v2  ;;  %1916 = vmatpush.msra.mxu1 %v1782_v2  ;;  %1783 = vmatpush.msrb.mxu2 %v1782_v2 }
 0x4fc   :  { %v1670_v16 = vmul.f32 0.0625, %v1669_v11  ;;  %v1681_v17 = vadd.f32 %v1680_v13, %v1679_v10  ;;  %v1836_v10 = vsub.f32 %v1713_v4, %v1784_v5  ;;  %v1819_v11 = vand.u32 4294901760, %v1818_v6  ;;  %1874 = vmatpush.msra.mxu0 %v1818_v6  ;;  %1918 = vmatpush.msra.mxu1 %v1784_v5 }
 0x4fd   :  { %v1825_v13 = vand.u32 4294901760, %v1824_v58  ;;  %1785 = vmatpush.msrb.mxu2 %v1784_v5 }
 0x4fe   :  { %v1682_v18 = vmul.f32 0.0625, %v1681_v17  ;;  %v1683_v42 = vmul.f32 %v1670_v16, %v1670_v16  ;;  %v1837_v17 = vand.u32 4294901760, %v1836_v10  ;;  %1877 = vmatpush.msra.mxu0 %v1824_v58 }
 0x500   :  { %v1684_v14 = vsub.f32 %v1682_v18, %v1683_v42  ;;  %v1820_v18 = vsub.f32 %v1818_v6, %v1819_v11  ;;  %v1826_v42 = vsub.f32 %v1824_v58, %v1825_v13  ;;  %1880 = vmatpush.msra.mxu0 %v1830_v8 }
 0x502   :  { %v1685_v9 = vmax.f32 %v1684_v14, 0.0  ;;  %1883 = vmatpush.msra.mxu0 %v1836_v10 }
 0x504   :  { %v1686_v15 = vadd.f32 1e-05, %v1685_v9  ;;  %v1821_v9 = vand.u32 4294901760, %v1820_v18 }
 0x506   :  { %8338 = vrsqrt.f32 %v1686_v15  ;;  %vm1693_vm15 = vweird.f32 %v1686_v15  ;;  %1822 = vmatpush.msrb.mxu3 %v1821_v9 }
 0x50c   :  { %v8339_v20 = vpop.eup %8338 }
 0x50d   :  { %v1688_v21 = vmul.f32 %v8339_v20, %v1686_v15  ;;  %vm1694_vm14 = vweird.f32 %v8339_v20  ;;  %v1827_v15 = vand.u32 4294901760, %v1826_v42 }
 0x50e   :  { %vm1695_vm1 = vmor %vm1693_vm15, %vm1694_vm14  ;;  %vm2074_vm15 = vcmask 123904  }
 0x50f   :  { %v1689_v22 = vmul.f32 %v8339_v20, %v1688_v21  ;;  %1828 = vmatpush.msrb.mxu3 %v1827_v15 }
 0x511   :  { %v1690_v23 = vmul.f32 0.5, %v1689_v22  ;;  %v1712_v22 = vld [vmem:[%s10135_s1 + $0x58] sm:$0xff] }
 0x513   :  { %v1691_v24 = vsub.f32 1.5, %v1690_v23 }
 0x515   :  { %v1692_v26 = vmul.f32 %v8339_v20, %v1691_v24  ;;  %v1786_v24 = vand.u32 4294901760, %v1712_v22 }
 0x517   :  { %v1696_v28 = vsel %vm1695_vm1, %v8339_v20, %v1692_v26  ;;  %v1838_v20 = vsub.f32 %v1836_v10, %v1837_v17  ;;  %v1842_v26 = vsub.f32 %v1712_v22, %v1786_v24  ;;  %1920 = vmatpush.msra.mxu1 %v1786_v24  ;;  %1787 = vmatpush.msrb.mxu2 %v1786_v24  ;;  %vm2156_vm1 = vcmask 1044480  }
 0x518   :  { %v1697_v29 = vmul.f32 %v1696_v28, %v1377_v25 }
 0x519   :  { %v1839_v23 = vand.u32 4294901760, %v1838_v20  ;;  %1886 = vmatpush.msra.mxu0 %v1842_v26 }
 0x51a   :  { %v1701_v30 = vmul.f32 %v1697_v29, %v1670_v16  ;;  %v1698_v31 = vperm.slane %v1697_v29, 0  ;;  %v1831_v16 = vand.u32 4294901760, %v1830_v8  ;;  %v1843_v29 = vand.u32 4294901760, %v1842_v26 }
 0x51c   :  { %v1703_v43 = vrot.slane %v1701_v30, 7  ;;  %v1700_v34 = vmul.f32 %v1698_v31, %v1659_v55  ;;  %v1699_v27 = vmul.f32 %v1698_v31, %v1655_v50  ;;  %v1832_v14 = vsub.f32 %v1830_v8, %v1831_v16 }
 0x51d   :  { %v1844_v31 = vsub.f32 %v1842_v26, %v1843_v29 }
 0x51e   :  { %v1705_v33 = vsub.f32 %v1377_v25, %v1703_v43  ;;  %v1833_v21 = vand.u32 4294901760, %v1832_v14  ;;  %v1711_v25 = vld [vmem:[%s10135_s1 + $0x50] sm:$0xff] }
 0x51f   :  { %v1788_v28 = vand.u32 4294901760, %v1711_v25 }
 0x520   :  { %v1706_v35 = vperm.slane %v1705_v33, 1  ;;  %1834 = vmatpush.msrb.mxu3 %v1833_v21  ;;  %v1845_v33 = vand.u32 4294901760, %v1844_v31 }
 0x521   :  { %v1848_v30 = vsub.f32 %v1711_v25, %v1788_v28  ;;  %1922 = vmatpush.msra.mxu1 %v1788_v28  ;;  %1789 = vmatpush.msrb.mxu2 %v1788_v28 }
 0x522   :  { %v1708_v36 = vadd.f32 %v1706_v35, %v1700_v34  ;;  %v1707_v37 = vadd.f32 %v1706_v35, %v1699_v27  ;;  %1840 = vmatpush.msrb.mxu3 %v1839_v23 }
 0x523   :  { %v1849_v43 = vand.u32 4294901760, %v1848_v30  ;;  %1889 = vmatpush.msra.mxu0 %v1848_v30  ;;  %1949 = vmatpush.msra.mxu2 %v1819_v11 }
 0x524   :  { %v1710_v38 = vmax.f32 %v1708_v36, 0.0  ;;  %v1709_v39 = vmax.f32 %v1707_v37, 0.0  ;;  %1846 = vmatpush.msrb.mxu3 %v1845_v33 }
 0x525   :  { %v1850_v34 = vsub.f32 %v1848_v30, %v1849_v43  ;;  %1953 = vmatpush.msra.mxu2 %v1825_v13 }
 0x526   :  { %v1721_v40 = vrot.slane %v1710_v38, 7  ;;  %v1720_v41 = vrot.slane %v1709_v39, 7 }
 0x527   :  { %v1851_v35 = vand.u32 4294901760, %v1850_v34  ;;  %1957 = vmatpush.msra.mxu2 %v1831_v16 }
 0x528   :  { %v8662_v44 = vsel %vm397_vm3, 0.0, %v1721_v40  ;;  %v1727_v45 = vsel %vm397_vm3, %v1721_v40, 0.0  ;;  %v8666_v46 = vsel %vm397_vm3, 0.0, %v1720_v41  ;;  %v1726_v47 = vsel %vm397_vm3, %v1720_v41, 0.0 }
 0x529   :  { %v1735_v48 = vrot.slane %v8662_v44, 1  ;;  %v1736_v49 = vrot.slane %v1727_v45, 1  ;;  %v1744_v50 = vrot.slane %v8666_v46, 2  ;;  %v1745_v51 = vrot.slane %v1726_v47, 2  ;;  %1852 = vmatpush.msrb.mxu3 %v1851_v35  ;;  %1961 = vmatpush.msra.mxu2 %v1837_v17 }
 0x52a   :  { %v1732_v52 = vrot.slane %v8666_v46, 1  ;;  %v1733_v53 = vrot.slane %v1726_v47, 1  ;;  %v1747_v57 = vrot.slane %v8662_v44, 2  ;;  %v1748_v59 = vrot.slane %v1727_v45, 2 }
 0x52b   :  { %v1737_v54 = vsel %vm418_vm4, %v1735_v48, %v1736_v49  ;;  %v1746_v55 = vsel %vm441_vm5, %v1744_v50, %v1745_v51  ;;  %1990 = vmatpush.msra.mxu3 %v1778_v0  ;;  %1965 = vmatpush.msra.mxu2 %v1843_v29 }
 0x52c   :  { %1740 = vrot.lane.b32.xlu1 %v1737_v54, %s8357_s18  ;;  %1750 = vrot.lane.b32.xlu0 %v1746_v55, %s8358_s7  ;;  %v1734_v56 = vsel %vm418_vm4, %v1732_v52, %v1733_v53  ;;  %v1749_v60 = vsel %vm441_vm5, %v1747_v57, %v1748_v59 }
 0x52d   :  { %1738 = vrot.lane.b32.xlu2 %v1734_v56, %s8357_s18  ;;  %1992 = vmatpush.msra.mxu3 %v1780_v1 }
 0x52e   :  { %1969 = vmatpush.msra.mxu2 %v1849_v43 }
 0x52f   :  { %1994 = vmatpush.msra.mxu3 %v1782_v2 }
 0x531   :  { %1996 = vmatpush.msra.mxu3 %v1784_v5 }
 0x533   :  { %1998 = vmatpush.msra.mxu3 %v1786_v24 }
 0x535   :  { %1752 = vrot.lane.b32.xlu2 %v1749_v60, %s8358_s7  ;;  %2000 = vmatpush.msra.mxu3 %v1788_v28 }
 0x587   :  { %v1739_v27 = vpop.permute.xlu2 %1738 }
 0x588   :  { %v1756_v36 = vsel %vm24_vm0, %v8666_v46, %v1739_v27 }
 0x58f   :  { %v1753_v39 = vpop.permute.xlu2 %1752 }
 0x59e   :  { %v1741_v37 = vpop.permute.xlu1 %1740  ;;  %v1751_v38 = vpop.permute.xlu0 %1750 }
 0x59f   :  { %v1757_v40 = vsel %vm24_vm0, %v8662_v44, %v1741_v37  ;;  %v1759_v41 = vsel %vm1758_vm2, %v1756_v36, %v1751_v38 }
 0x5a0   :  { %v1760_v45 = vsel %vm1758_vm2, %v1757_v40, %v1753_v39  ;;  %v1763_v47 = vsel %vm1761_vm10, %v1759_v41, 0 }
 0x5a1   :  { %v1766_v48 = vsel %vm1761_vm10, %v1760_v45, 0  ;;  %v1790_v49 = vand.u32 4294901760, %v1763_v47 }
 0x5a2   :  { %v1798_v50 = vand.u32 4294901760, %v1766_v48 }
 0x5a3   :  { %v1791_v51 = vsub.f32 %v1763_v47, %v1790_v49  ;;  %1854 = vmatmul.f32.vlgmr.msrb.gmra.mxu3 %v1790_v49 }
 0x5a4   :  { %v1799_v52 = vsub.f32 %v1766_v48, %v1798_v50 }
 0x5a5   :  { %1892 = vmatmul.f32.vlgmr.msra.gmra.mxu0 %v1791_v51  ;;  %v1792_v46 = vand.u32 4294901760, %v1791_v51 }
 0x5a6   :  { %v1800_v55 = vand.u32 4294901760, %v1799_v52 }
 0x5a7   :  { %1926 = vmatmul.f32.vlgmr.msra.gmra.mxu1 %v1792_v46  ;;  %v1793_v53 = vsub.f32 %v1791_v51, %v1792_v46 }
 0x5a8   :  { %v1801_v44 = vsub.f32 %v1799_v52, %v1800_v55 }
 0x5a9   :  { %v1794_v54 = vand.u32 4294901760, %v1793_v53 }
 0x5aa   :  { %v1802_v56 = vand.u32 4294901760, %v1801_v44 }
 0x5ab   :  { %1795 = vmatmul.f32.vlgmr.msrb.gmra.mxu2 %v1794_v54  ;;  %1858 = vmatmul.f32.gmra.mxu3 %v1798_v50 }
 0x5ad   :  { %1897 = vmatmul.f32.gmra.mxu0 %v1799_v52  ;;  %v1717_v52 = vld [vmem:[%s10135_s1 + $0x80] sm:$0x3] }
 0x5af   :  { %1932 = vmatmul.f32.gmra.mxu1 %v1800_v55 }
 0x5b3   :  { %1803 = vmatmul.f32.gmra.mxu2 %v1802_v56  ;;  %2002 = vmatmul.f32.vlgmr.msra.gmra.mxu3 %v1790_v49 }
 0x5bb   :  { %1971 = vmatmul.f32.vlgmr.msra.gmra.mxu2 %v1790_v49  ;;  %2006 = vmatmul.f32.gmra.mxu3 %v1798_v50 }
 0x5c3   :  { %1975 = vmatmul.f32.gmra.mxu2 %v1798_v50 }
 0x622   :  { %v1893_v62 = vpop.f32.mrf.mxu0 }
 0x624   :  { %v1927_v0 = vpop.f32.mrf.mxu1 }
 0x626   :  { %v1855_v57 = vpop.f32.mrf.mxu3 }
 0x62a   :  { %v1898_v58 = vpop.f32.mrf.mxu0 }
 0x62c   :  { %v1933_v11 = vpop.f32.mrf.mxu1 }
 0x62e   :  { %v1796_v59 = vpop.f32.mrf.mxu2  ;;  %v1859_v60 = vpop.f32.mrf.mxu3 }
 0x62f   :  { %v1856_v63 = vadd.f32 %v1855_v57, %v1796_v59 }
 0x631   :  { %v1894_v1 = vadd.f32 %v1893_v62, %v1856_v63 }
 0x633   :  { %v1928_v6 = vadd.f32 %v1927_v0, %v1894_v1 }
 0x636   :  { %v1804_v32 = vpop.f32.mrf.mxu2  ;;  %v2003_v4 = vpop.f32.mrf.mxu3 }
 0x637   :  { %v1860_v2 = vadd.f32 %v1859_v60, %v1804_v32 }
 0x639   :  { %v1899_v8 = vadd.f32 %v1898_v58, %v1860_v2 }
 0x63b   :  { %v1934_v16 = vadd.f32 %v1933_v11, %v1899_v8 }
 0x63e   :  { %v1972_v5 = vpop.f32.mrf.mxu2  ;;  %v2007_v42 = vpop.f32.mrf.mxu3 }
 0x63f   :  { %v1973_v10 = vadd.f32 %v1972_v5, %v1928_v6 }
 0x641   :  { %v2004_v13 = vadd.f32 %v2003_v4, %v1973_v10 }
 0x643   :  { %v2020_v14 = vmul.f32 %v2004_v13, %v2004_v13  ;;  %v2010_v15 = vsel %vm24_vm0, %v2004_v13, 0.0 }
 0x645   :  { %v2022_v23 = vsel %vm24_vm0, %v2020_v14, 0.0 }
 0x646   :  { %v1976_v17 = vpop.f32.mrf.mxu2 }
 0x647   :  { %v1977_v18 = vadd.f32 %v1976_v17, %v1934_v16 }
 0x649   :  { %v2008_v9 = vadd.f32 %v2007_v42, %v1977_v18 }
 0x64b   :  { %v2011_v20 = vsel %vm24_vm0, %v2008_v9, 0.0  ;;  %v2021_v21 = vmul.f32 %v2008_v9, %v2008_v9 }
 0x64c   :  { %v2012_v22 = vadd.f32 %v2011_v20, %v2010_v15 }
 0x64d   :  { %v2023_v24 = vsel %vm24_vm0, %v2021_v21, 0.0 }
 0x64e   :  { %v2013_v25 = vrot.slane %v2012_v22, 4  ;;  %v2024_v26 = vadd.f32 %v2023_v24, %v2022_v23 }
 0x650   :  { %v2014_v28 = vadd.f32 %v2013_v25, %v2012_v22  ;;  %v2025_v29 = vrot.slane %v2024_v26, 4 }
 0x652   :  { %v2015_v30 = vrot.slane %v2014_v28, 2  ;;  %v2026_v31 = vadd.f32 %v2025_v29, %v2024_v26 }
 0x654   :  { %v2016_v43 = vadd.f32 %v2015_v30, %v2014_v28  ;;  %v2027_v33 = vrot.slane %v2026_v31, 2 }
 0x656   :  { %v2017_v34 = vrot.slane %v2016_v43, 1  ;;  %v2028_v35 = vadd.f32 %v2027_v33, %v2026_v31 }
 0x658   :  { %v2018_v27 = vadd.f32 %v2017_v34, %v2016_v43  ;;  %v2029_v36 = vrot.slane %v2028_v35, 1 }
 0x65a   :  { %v2019_v37 = vmul.f32 0.0625, %v2018_v27  ;;  %v2030_v38 = vadd.f32 %v2029_v36, %v2028_v35 }
 0x65c   :  { %v2031_v39 = vmul.f32 0.0625, %v2030_v38  ;;  %v2032_v40 = vmul.f32 %v2019_v37, %v2019_v37 }
 0x65e   :  { %v2033_v41 = vsub.f32 %v2031_v39, %v2032_v40 }
 0x660   :  { %v2034_v45 = vmax.f32 %v2033_v41, 0.0 }
 0x662   :  { %v2035_v47 = vadd.f32 1e-05, %v2034_v45 }
 0x664   :  { %8340 = vrsqrt.f32 %v2035_v47  ;;  %vm2042_vm12 = vweird.f32 %v2035_v47 }
 0x66a   :  { %v8341_v48 = vpop.eup %8340 }
 0x66b   :  { %v2037_v49 = vmul.f32 %v8341_v48, %v2035_v47  ;;  %vm2043_vm11 = vweird.f32 %v8341_v48 }
 0x66c   :  { %vm2044_vm14 = vmor %vm2042_vm12, %vm2043_vm11  ;;  %vm2490_vm11 = vcmask 523264   ;;  %vm2499_vm12 = vcmask 785408  }
 0x66d   :  { %v2038_v50 = vmul.f32 %v8341_v48, %v2037_v49 }
 0x66f   :  { %v2039_v51 = vmul.f32 0.5, %v2038_v50 }
 0x671   :  { %v2040_v46 = vsub.f32 1.5, %v2039_v51 }
 0x673   :  { %v2041_v53 = vmul.f32 %v8341_v48, %v2040_v46 }
 0x675   :  { %v2045_v54 = vsel %vm2044_vm14, %v8341_v48, %v2041_v53 }
 0x676   :  { %v2046_v55 = vmul.f32 %v2045_v54, %v1717_v52 }
 0x678   :  { %v2050_v44 = vmul.f32 %v2046_v55, %v2019_v37  ;;  %v2047_v56 = vperm.slane %v2046_v55, 0 }
 0x67a   :  { %v2052_v57 = vrot.slane %v2050_v44, 7  ;;  %v2048_v60 = vmul.f32 %v2047_v56, %v2004_v13  ;;  %v2049_v62 = vmul.f32 %v2047_v56, %v2008_v9 }
 0x67c   :  { %v2054_v59 = vsub.f32 %v1717_v52, %v2052_v57 }
 0x67e   :  { %v2055_v32 = vperm.slane %v2054_v59, 1 }
 0x680   :  { %v2056_v63 = vadd.f32 %v2055_v32, %v2048_v60  ;;  %v2057_v0 = vadd.f32 %v2055_v32, %v2049_v62 }
 0x682   :  { %v8714_v1 = vmax.f32 %v2056_v63, 0.0  ;;  %v8716_v2 = vmax.f32 %v2057_v0, 0.0 }
 0x684   :  { %v2065_v4 = vrot.slane %v8716_v2, 2  ;;  %v2066_v5 = vrot.slane %v8716_v2, 4  ;;  %v2067_v6 = vrot.slane %v8716_v2, 6  ;;  %v2103_v58 = vsel %vm2074_vm15, %v8716_v2, -inf }
 0x685   :  { %v2104_v8 = vrot.slane %v2103_v58, 4  ;;  %v2062_v10 = vrot.slane %v8714_v1, 2  ;;  %v2063_v11 = vrot.slane %v8714_v1, 4  ;;  %v2064_v13 = vrot.slane %v8714_v1, 6 }
 0x686   :  { %v2110_v16 = vsel %vm2074_vm15, %v2065_v4, -inf  ;;  %v2117_v17 = vsel %vm2074_vm15, %v2066_v5, -inf  ;;  %v2124_v18 = vsel %vm2074_vm15, %v2067_v6, -inf  ;;  %v2075_v42 = vsel %vm2074_vm15, %v8714_v1, -inf }
 0x687   :  { %v2105_v14 = vmax.f32 %v2103_v58, %v2104_v8  ;;  %v2111_v9 = vrot.slane %v2110_v16, 4  ;;  %v2118_v15 = vrot.slane %v2117_v17, 4  ;;  %v2125_v20 = vrot.slane %v2124_v18, 4 }
 0x688   :  { %v2076_v21 = vrot.slane %v2075_v42, 4  ;;  %v2082_v22 = vsel %vm2074_vm15, %v2062_v10, -inf  ;;  %v2089_v23 = vsel %vm2074_vm15, %v2063_v11, -inf  ;;  %v2096_v24 = vsel %vm2074_vm15, %v2064_v13, -inf }
 0x689   :  { %v2106_v25 = vrot.slane %v2105_v14, 2  ;;  %v2112_v26 = vmax.f32 %v2110_v16, %v2111_v9  ;;  %v2119_v28 = vmax.f32 %v2117_v17, %v2118_v15  ;;  %v2126_v29 = vmax.f32 %v2124_v18, %v2125_v20 }
 0x68a   :  { %v2077_v30 = vmax.f32 %v2075_v42, %v2076_v21  ;;  %v2083_v31 = vrot.slane %v2082_v22, 4  ;;  %v2090_v43 = vrot.slane %v2089_v23, 4  ;;  %v2097_v33 = vrot.slane %v2096_v24, 4 }
 0x68b   :  { %v2107_v34 = vmax.f32 %v2105_v14, %v2106_v25  ;;  %v2113_v35 = vrot.slane %v2112_v26, 2  ;;  %v2120_v27 = vrot.slane %v2119_v28, 2  ;;  %v2127_v36 = vrot.slane %v2126_v29, 2 }
 0x68c   :  { %v2078_v37 = vrot.slane %v2077_v30, 2  ;;  %v2084_v38 = vmax.f32 %v2082_v22, %v2083_v31  ;;  %v2091_v39 = vmax.f32 %v2089_v23, %v2090_v43  ;;  %v2098_v40 = vmax.f32 %v2096_v24, %v2097_v33  ;;  %v2136_v24 = vld [vmem:[%s10135_s1 + $0xb0] sm:$0xff] }
 0x68d   :  { %v2108_v41 = vrot.slane %v2107_v34, 1  ;;  %v2114_v45 = vmax.f32 %v2112_v26, %v2113_v35  ;;  %v2121_v47 = vmax.f32 %v2119_v28, %v2120_v27  ;;  %v2128_v48 = vmax.f32 %v2126_v29, %v2127_v36  ;;  %v2135_v26 = vld [vmem:[%s10135_s1 + $0xa8] sm:$0xff] }
 0x68e   :  { %v2079_v49 = vmax.f32 %v2077_v30, %v2078_v37  ;;  %v2085_v50 = vrot.slane %v2084_v38, 2  ;;  %v2092_v51 = vrot.slane %v2091_v39, 2  ;;  %v2099_v46 = vrot.slane %v2098_v40, 2  ;;  %v2134_v30 = vld [vmem:[%s10135_s1 + $0xa0] sm:$0xff] }
 0x68f   :  { %v2115_v52 = vrot.slane %v2114_v45, 1  ;;  %v2122_v53 = vrot.slane %v2121_v47, 1  ;;  %v2129_v54 = vrot.slane %v2128_v48, 1  ;;  %v2109_v59 = vmax.f32 %v2107_v34, %v2108_v41  ;;  %v2133_v34 = vld [vmem:[%s10135_s1 + $0x98] sm:$0xff] }
 0x690   :  { %v2080_v55 = vrot.slane %v2079_v49, 1  ;;  %v2086_v44 = vmax.f32 %v2084_v38, %v2085_v50  ;;  %v2093_v56 = vmax.f32 %v2091_v39, %v2092_v51  ;;  %v2100_v57 = vmax.f32 %v2098_v40, %v2099_v46  ;;  %v2132_v38 = vld [vmem:[%s10135_s1 + $0x90] sm:$0xff] }
 0x691   :  { %v2116_v60 = vmax.f32 %v2114_v45, %v2115_v52  ;;  %v2123_v62 = vmax.f32 %v2121_v47, %v2122_v53  ;;  %v2130_v4 = vmax.f32 %v2128_v48, %v2129_v54  ;;  %v2199_v25 = vand.u32 4294901760, %v2136_v24  ;;  %v2131_v48 = vld [vmem:[%s10135_s1 + $0x88] sm:$0xff] }
 0x692   :  { %v2087_v32 = vrot.slane %v2086_v44, 1  ;;  %v2094_v63 = vrot.slane %v2093_v56, 1  ;;  %v2101_v0 = vrot.slane %v2100_v57, 1  ;;  %v2081_v58 = vmax.f32 %v2079_v49, %v2080_v55 }
 0x693   :  { %v2149_v5 = vsel %vm1394_vm6, %v2116_v60, %v2109_v59  ;;  %v2231_v28 = vsub.f32 %v2136_v24, %v2199_v25  ;;  %v2201_v29 = vand.u32 4294901760, %v2135_v26  ;;  %2200 = vmatpush.msrb.mxu0 %v2199_v25  ;;  %2316 = vmatpush.msrb.mxu3 %v2199_v25  ;;  %v2203_v33 = vand.u32 4294901760, %v2134_v30 }
 0x694   :  { %v2150_v6 = vsel %vm1396_vm7, %v2123_v62, %v2149_v5  ;;  %v2088_v8 = vmax.f32 %v2086_v44, %v2087_v32  ;;  %v2095_v10 = vmax.f32 %v2093_v56, %v2094_v63  ;;  %v2102_v16 = vmax.f32 %v2100_v57, %v2101_v0 }
 0x695   :  { %v2151_v11 = vsel %vm1398_vm9, %v2130_v4, %v2150_v6  ;;  %v2232_v31 = vand.u32 4294901760, %v2231_v28  ;;  %v2237_v43 = vsub.f32 %v2135_v26, %v2201_v29  ;;  %2283 = vmatpush.msrb.mxu2 %v2231_v28  ;;  %2318 = vmatpush.msrb.mxu3 %v2201_v29  ;;  %v2243_v36 = vsub.f32 %v2134_v30, %v2203_v33 }
 0x696   :  { %v2155_v13 = vsel %vm397_vm3, 0.0, %v2151_v11  ;;  %v2146_v17 = vsel %vm1394_vm6, %v2088_v8, %v2081_v58  ;;  %2202 = vmatpush.msrb.mxu0 %v2201_v29  ;;  %v2205_v37 = vand.u32 4294901760, %v2133_v34  ;;  %v2207_v47 = vand.u32 4294901760, %v2132_v38 }
 0x697   :  { %v8740_v18 = vsel %vm2156_vm1, %v2155_v13, 0.0  ;;  %v2147_v42 = vsel %vm1396_vm7, %v2095_v10, %v2146_v17  ;;  %v2233_v35 = vsub.f32 %v2231_v28, %v2232_v31  ;;  %v2238_v27 = vand.u32 4294901760, %v2237_v43  ;;  %2286 = vmatpush.msrb.mxu2 %v2237_v43  ;;  %2320 = vmatpush.msrb.mxu3 %v2203_v33 }
 0x698   :  { %v2162_v14 = vrot.slane %v8740_v18, 1  ;;  %v2148_v9 = vsel %vm1398_vm9, %v2102_v16, %v2147_v42  ;;  %v2170_v23 = vrot.slane %v8740_v18, 2  ;;  %2204 = vmatpush.msrb.mxu0 %v2203_v33  ;;  %v2244_v41 = vand.u32 4294901760, %v2243_v36 }
 0x699   :  { %v2154_v15 = vsel %vm397_vm3, 0.0, %v2148_v9  ;;  %v2234_v39 = vand.u32 4294901760, %v2233_v35  ;;  %v2239_v40 = vsub.f32 %v2237_v43, %v2238_v27  ;;  %v2249_v45 = vsub.f32 %v2133_v34, %v2205_v37  ;;  %2289 = vmatpush.msrb.mxu2 %v2243_v36  ;;  %2322 = vmatpush.msrb.mxu3 %v2205_v37 }
 0x69a   :  { %2165 = vrot.lane.b32.xlu1 %v2162_v14, %s8357_s18  ;;  %v8748_v20 = vsel %vm2156_vm1, %v2154_v15, 0.0  ;;  %2206 = vmatpush.msrb.mxu0 %v2205_v37  ;;  %v2245_v50 = vsub.f32 %v2243_v36, %v2244_v41  ;;  %v2209_v46 = vand.u32 4294901760, %v2131_v48  ;;  %v2255_v52 = vsub.f32 %v2132_v38, %v2207_v47 }
 0x69b   :  { %v2169_v21 = vrot.slane %v8748_v20, 2  ;;  %v2161_v22 = vrot.slane %v8748_v20, 1  ;;  %2235 = vmatpush.msrb.mxu1 %v2234_v39  ;;  %v2240_v49 = vand.u32 4294901760, %v2239_v40  ;;  %v2250_v51 = vand.u32 4294901760, %v2249_v45  ;;  %2292 = vmatpush.msrb.mxu2 %v2249_v45 }
 0x69c   :  { %2324 = vmatpush.msrb.mxu3 %v2207_v47  ;;  %2208 = vmatpush.msrb.mxu0 %v2207_v47  ;;  %v2246_v53 = vand.u32 4294901760, %v2245_v50  ;;  %v2261_v55 = vsub.f32 %v2131_v48, %v2209_v46  ;;  %v2256_v44 = vand.u32 4294901760, %v2255_v52 }
 0x69d   :  { %2171 = vrot.lane.b32.xlu2 %v2169_v21, %s8358_s7  ;;  %2163 = vrot.lane.b32.xlu0 %v2161_v22, %s8357_s18  ;;  %v2251_v54 = vsub.f32 %v2249_v45, %v2250_v51 }
 0x69e   :  { %2241 = vmatpush.msrb.mxu1 %v2240_v49  ;;  %2295 = vmatpush.msrb.mxu2 %v2255_v52  ;;  %v2262_v57 = vand.u32 4294901760, %v2261_v55  ;;  %v2257_v59 = vsub.f32 %v2255_v52, %v2256_v44 }
 0x69f   :  { %2326 = vmatpush.msrb.mxu3 %v2209_v46  ;;  %v2252_v56 = vand.u32 4294901760, %v2251_v54  ;;  %2210 = vmatpush.msrb.mxu0 %v2209_v46 }
 0x6a0   :  { %2247 = vmatpush.msrb.mxu1 %v2246_v53  ;;  %2298 = vmatpush.msrb.mxu2 %v2261_v55  ;;  %v2263_v60 = vsub.f32 %v2261_v55, %v2262_v57  ;;  %v2258_v62 = vand.u32 4294901760, %v2257_v59 }
 0x6a1   :  { %2347 = vmatpush.msra.mxu0 %v2232_v31 }
 0x6a2   :  { %2253 = vmatpush.msrb.mxu1 %v2252_v56  ;;  %v2264_v32 = vand.u32 4294901760, %v2263_v60 }
 0x6a3   :  { %2351 = vmatpush.msra.mxu0 %v2238_v27 }
 0x6a4   :  { %2259 = vmatpush.msrb.mxu1 %v2258_v62 }
 0x6a5   :  { %2173 = vrot.lane.b32.xlu0 %v2170_v23, %s8358_s7  ;;  %2355 = vmatpush.msra.mxu0 %v2244_v41 }
 0x6a6   :  { %2265 = vmatpush.msrb.mxu1 %v2264_v32 }
 0x6a7   :  { %2359 = vmatpush.msra.mxu0 %v2250_v51 }
 0x6a8   :  { %2384 = vmatpush.msra.mxu1 %v2199_v25 }
 0x6a9   :  { %2363 = vmatpush.msra.mxu0 %v2256_v44 }
 0x6aa   :  { %2386 = vmatpush.msra.mxu1 %v2201_v29 }
 0x6ab   :  { %2367 = vmatpush.msra.mxu0 %v2262_v57  ;;  %v2137_v57 = vld [vmem:[%s10135_s1 + $0xb8] sm:$0x3] }
 0x6ac   :  { %2388 = vmatpush.msra.mxu1 %v2203_v33 }
 0x6ae   :  { %2390 = vmatpush.msra.mxu1 %v2205_v37 }
 0x6b0   :  { %2392 = vmatpush.msra.mxu1 %v2207_v47 }
 0x6b2   :  { %2394 = vmatpush.msra.mxu1 %v2209_v46 }
 0x6f7   :  { %v2172_v0 = vpop.permute.xlu2 %2171 }
 0x70c   :  { %v2166_v6 = vpop.permute.xlu1 %2165 }
 0x70d   :  { %v2178_v58 = vsel %vm24_vm0, %v8740_v18, %v2166_v6 }
 0x70f   :  { %v2164_v63 = vpop.permute.xlu0 %2163 }
 0x710   :  { %v2177_v4 = vsel %vm24_vm0, %v8748_v20, %v2164_v63 }
 0x711   :  { %v2179_v5 = vsel %vm1758_vm2, %v2177_v4, %v2172_v0 }
 0x712   :  { %2183 = vst [vmem:[#allocation1] ss:$2 sm:$0xff] %v2179_v5 }
 0x717   :  { %v2174_v8 = vpop.permute.xlu0 %2173 }
 0x718   :  { %v2180_v10 = vsel %vm1758_vm2, %v2178_v58, %v2174_v8 }
 0x719   :  { %2185 = vst [vmem:[#allocation1 + $0x1] ss:$2 sm:$0xff] %v2180_v10 }
 0x720   :  { %v2186_v11 = vld.sshfl [vmem:[#allocation1] sm:$0xff pattern:$0x75316420] }
 0x721   :  { %v2187_v13 = vsel %vm1761_vm10, %v2186_v11, 0 }
 0x722   :  { %v2211_v16 = vand.u32 4294901760, %v2187_v13 }
 0x724   :  { %2267 = vmatmul.f32.vlgmr.msrb.gmra.mxu1 %v2211_v16  ;;  %v2212_v17 = vsub.f32 %v2187_v13, %v2211_v16 }
 0x726   :  { %2301 = vmatmul.f32.vlgmr.msrb.gmra.mxu2 %v2212_v17  ;;  %v2213_v42 = vand.u32 4294901760, %v2212_v17 }
 0x728   :  { %2330 = vmatmul.f32.vlgmr.msrb.gmra.mxu3 %v2213_v42  ;;  %v2214_v14 = vsub.f32 %v2212_v17, %v2213_v42 }
 0x72a   :  { %v2215_v9 = vand.u32 4294901760, %v2214_v14 }
 0x72c   :  { %2216 = vmatmul.f32.vlgmr.msrb.gmra.mxu0 %v2215_v9  ;;  %2396 = vmatmul.f32.vlgmr.msra.gmra.mxu1 %v2211_v16 }
 0x734   :  { %2369 = vmatmul.f32.vlgmr.msra.gmra.mxu0 %v2211_v16 }
 0x7a1   :  { %v2268_v15 = vpop.f32.mrf.mxu1 }
 0x7a9   :  { %v2217_v18 = vpop.f32.mrf.mxu0  ;;  %v2302_v21 = vpop.f32.mrf.mxu2 }
 0x7aa   :  { %v2269_v20 = vadd.f32 %v2268_v15, %v2217_v18  ;;  %v2397_v28 = vpop.f32.mrf.mxu1 }
 0x7ab   :  { %v2331_v23 = vpop.f32.mrf.mxu3 }
 0x7ac   :  { %v2303_v22 = vadd.f32 %v2302_v21, %v2269_v20 }
 0x7ae   :  { %v2332_v24 = vadd.f32 %v2331_v23, %v2303_v22  ;;  %v2455_v23 = vld [vmem:[%s10135_s1 + $0x118] sm:$0xff] }
 0x7b1   :  { %v2370_v25 = vpop.f32.mrf.mxu0 }
 0x7b2   :  { %v2371_v26 = vadd.f32 %v2370_v25, %v2332_v24  ;;  %v8805_v24 = vand.u32 4294901760, %v2455_v23  ;;  %v2454_v25 = vld [vmem:[%s10135_s1 + $0x110] sm:$0xff] }
 0x7b4   :  { %v2398_v29 = vadd.f32 %v2397_v28, %v2371_v26  ;;  %v8811_v26 = vsub.f32 %v2455_v23, %v8805_v24  ;;  %v8813_v28 = vand.u32 4294901760, %v2454_v25  ;;  %2507 = vmatpush.msra.mxu2 %v8805_v24  ;;  %2671 = vmatpush.msrb.mxu1 %v8805_v24 }
 0x7b6   :  { %v2400_v30 = vsel %vm1758_vm2, %v2398_v29, 0.0  ;;  %v2408_v31 = vmul.f32 %v2398_v29, %v2398_v29  ;;  %2509 = vmatpush.msra.mxu2 %v8813_v28  ;;  %2626 = vmatpush.msrb.mxu0 %v8811_v26 }
 0x7b7   :  { %v2401_v43 = vrot.slane %v2400_v30, 4  ;;  %2673 = vmatpush.msrb.mxu1 %v8813_v28 }
 0x7b8   :  { %v2409_v33 = vsel %vm1758_vm2, %v2408_v31, 0.0  ;;  %v2451_v31 = vld [vmem:[%s10135_s1 + $0xf8] sm:$0xff] }
 0x7b9   :  { %v2402_v34 = vadd.f32 %v2401_v43, %v2400_v30  ;;  %v2410_v35 = vrot.slane %v2409_v33, 4  ;;  %v2452_v30 = vld [vmem:[%s10135_s1 + $0x100] sm:$0xff]  ;;  %v2545_v43 = vand.u32 4294901760, %v8811_v26 }
 0x7bb   :  { %v2403_v27 = vrot.slane %v2402_v34, 2  ;;  %v2411_v36 = vadd.f32 %v2410_v35, %v2409_v33  ;;  %v8828_v33 = vsub.f32 %v2454_v25, %v8813_v28  ;;  %v8832_v35 = vand.u32 4294901760, %v2452_v30 }
 0x7bd   :  { %v2404_v37 = vadd.f32 %v2403_v27, %v2402_v34  ;;  %v2412_v38 = vrot.slane %v2411_v36, 2  ;;  %v2450_v27 = vld [vmem:[%s10135_s1 + $0xf0] sm:$0xff]  ;;  %2629 = vmatpush.msrb.mxu0 %v8828_v33 }
 0x7bf   :  { %v2405_v39 = vrot.slane %v2404_v37, 1  ;;  %v2413_v40 = vadd.f32 %v2412_v38, %v2411_v36  ;;  %v2449_v36 = vld [vmem:[%s10135_s1 + $0xe8] sm:$0xff]  ;;  %v8845_v38 = vand.u32 4294901760, %v2451_v31 }
 0x7c1   :  { %v2406_v41 = vadd.f32 %v2405_v39, %v2404_v37  ;;  %v2414_v45 = vrot.slane %v2413_v40, 1  ;;  %v2448_v37 = vld [vmem:[%s10135_s1 + $0xe0] sm:$0xff]  ;;  %v8847_v39 = vand.u32 4294901760, %v2450_v27 }
 0x7c3   :  { %v2407_v47 = vmul.f32 0.125, %v2406_v41  ;;  %v2415_v48 = vadd.f32 %v2414_v45, %v2413_v40  ;;  %v8849_v40 = vand.u32 4294901760, %v2449_v36  ;;  %v8851_v41 = vand.u32 4294901760, %v2448_v37 }
 0x7c4   :  { %v2546_v45 = vsub.f32 %v8811_v26, %v2545_v43 }
 0x7c5   :  { %v2416_v49 = vmul.f32 0.125, %v2415_v48  ;;  %v2417_v50 = vmul.f32 %v2407_v47, %v2407_v47 }
 0x7c7   :  { %v2418_v51 = vsub.f32 %v2416_v49, %v2417_v50  ;;  %v8862_v49 = vsub.f32 %v2452_v30, %v8832_v35  ;;  %v8867_v50 = vsub.f32 %v2451_v31, %v8845_v38  ;;  %v2444_v30 = vld [vmem:[%s10135_s1 + $0xc0] sm:$0xff] }
 0x7c9   :  { %v2419_v46 = vmax.f32 %v2418_v51, 0.0  ;;  %v8870_v51 = vsub.f32 %v2450_v27, %v8847_v39 }
 0x7cb   :  { %v2420_v52 = vadd.f32 1e-05, %v2419_v46  ;;  %v8873_v46 = vsub.f32 %v2449_v36, %v8849_v40 }
 0x7cd   :  { %8342 = vrsqrt.f32 %v2420_v52  ;;  %vm2427_vm7 = vweird.f32 %v2420_v52 }
 0x7d3   :  { %v8343_v53 = vpop.eup %8342 }
 0x7d4   :  { %v2422_v54 = vmul.f32 %v8343_v53, %v2420_v52  ;;  %vm2428_vm6 = vweird.f32 %v8343_v53  ;;  %v8876_v52 = vsub.f32 %v2448_v37, %v8851_v41  ;;  %v2528_v37 = vand.u32 4294901760, %v2444_v30 }
 0x7d5   :  { %vm2429_vm9 = vmor %vm2427_vm7, %vm2428_vm6 }
 0x7d6   :  { %v2423_v55 = vmul.f32 %v8343_v53, %v2422_v54  ;;  %v2547_v54 = vand.u32 4294901760, %v2546_v45 }
 0x7d8   :  { %v2424_v44 = vmul.f32 0.5, %v2423_v55  ;;  %2548 = vmatpush.msra.mxu3 %v2547_v54  ;;  %v2610_v54 = vsub.f32 %v2444_v30, %v2528_v37 }
 0x7da   :  { %v2425_v56 = vsub.f32 1.5, %v2424_v44 }
 0x7dc   :  { %v2426_v59 = vmul.f32 %v8343_v53, %v2425_v56  ;;  %v2563_v56 = vand.u32 4294901760, %v8862_v49 }
 0x7de   :  { %v2430_v60 = vsel %vm2429_vm9, %v8343_v53, %v2426_v59  ;;  %v2447_v53 = vld [vmem:[%s10135_s1 + $0xd8] sm:$0xff]  ;;  %v2575_v59 = vand.u32 4294901760, %v8870_v51 }
 0x7df   :  { %v2431_v62 = vmul.f32 %v2430_v60, %v2137_v57  ;;  %v2581_v60 = vand.u32 4294901760, %v8873_v46 }
 0x7e1   :  { %v2434_v32 = vmul.f32 %v2431_v62, %v2407_v47  ;;  %v2432_v63 = vperm.slane %v2431_v62, 0  ;;  %v2551_v47 = vand.u32 4294901760, %v8828_v33 }
 0x7e3   :  { %v2436_v0 = vrot.slane %v2434_v32, 7  ;;  %v2433_v5 = vmul.f32 %v2432_v63, %v2398_v29  ;;  %v2453_v29 = vld [vmem:[%s10135_s1 + $0x108] sm:$0xff]  ;;  %v2552_v55 = vsub.f32 %v8828_v33, %v2551_v47  ;;  %v2564_v63 = vsub.f32 %v8862_v49, %v2563_v56 }
 0x7e4   :  { %v8830_v34 = vand.u32 4294901760, %v2453_v29 }
 0x7e5   :  { %v2438_v4 = vsub.f32 %v2137_v57, %v2436_v0  ;;  %v2569_v57 = vand.u32 4294901760, %v8867_v50  ;;  %v2553_v62 = vand.u32 4294901760, %v2552_v55  ;;  %v8900_v0 = vand.u32 4294901760, %v2447_v53 }
 0x7e6   :  { %v8859_v48 = vsub.f32 %v2453_v29, %v8830_v34  ;;  %2511 = vmatpush.msra.mxu2 %v8830_v34  ;;  %2675 = vmatpush.msrb.mxu1 %v8830_v34 }
 0x7e7   :  { %v2439_v6 = vperm.slane %v2438_v4, 1  ;;  %v2570_v4 = vsub.f32 %v8867_v50, %v2569_v57  ;;  %2554 = vmatpush.msra.mxu3 %v2553_v62 }
 0x7e8   :  { %v2557_v44 = vand.u32 4294901760, %v8859_v48  ;;  %2513 = vmatpush.msra.mxu2 %v8832_v35  ;;  %2632 = vmatpush.msrb.mxu0 %v8859_v48 }
 0x7e9   :  { %v2440_v58 = vadd.f32 %v2439_v6, %v2433_v5  ;;  %2677 = vmatpush.msrb.mxu1 %v8832_v35  ;;  %v2587_v5 = vand.u32 4294901760, %v8876_v52 }
 0x7ea   :  { %v2558_v32 = vsub.f32 %v8859_v48, %v2557_v44  ;;  %2515 = vmatpush.msra.mxu2 %v8845_v38  ;;  %2635 = vmatpush.msrb.mxu0 %v8862_v49 }
 0x7eb   :  { %v2441_v8 = vmax.f32 %v2440_v58, 0.0  ;;  %v2565_v58 = vand.u32 4294901760, %v2564_v63  ;;  %2679 = vmatpush.msrb.mxu1 %v8845_v38 }
 0x7ec   :  { %v2559_v6 = vand.u32 4294901760, %v2558_v32  ;;  %2517 = vmatpush.msra.mxu2 %v8847_v39  ;;  %2638 = vmatpush.msrb.mxu0 %v8867_v50  ;;  %v2611_v32 = vand.u32 4294901760, %v2610_v54 }
 0x7ed   :  { %v2443_v10 = vrot.slane %v2441_v8, 4  ;;  %2457 = vst [vmem:[#allocation1] ss:$2 sm:$0xff] %v2441_v8  ;;  %v2576_v8 = vsub.f32 %v8870_v51, %v2575_v59  ;;  %2681 = vmatpush.msrb.mxu1 %v8847_v39 }
 0x7ee   :  { %2560 = vmatpush.msra.mxu3 %v2559_v6  ;;  %2519 = vmatpush.msra.mxu2 %v8849_v40 }
 0x7ef   :  { %2460 = vst [vmem:[#allocation1 + $0x10] ss:$2 sm:$0xff] %v2443_v10  ;;  %v8911_v10 = vsub.f32 %v2447_v53, %v8900_v0  ;;  %2641 = vmatpush.msrb.mxu0 %v8870_v51  ;;  %2683 = vmatpush.msrb.mxu1 %v8849_v40 }
 0x7f0   :  { %2566 = vmatpush.msra.mxu3 %v2565_v58  ;;  %2521 = vmatpush.msra.mxu2 %v8851_v41 }
 0x7f1   :  { %2644 = vmatpush.msrb.mxu0 %v8873_v46  ;;  %2685 = vmatpush.msrb.mxu1 %v8851_v41 }
 0x7f2   :  { %2523 = vmatpush.msra.mxu2 %v8900_v0 }
 0x7f3   :  { %2647 = vmatpush.msrb.mxu0 %v8876_v52  ;;  %2687 = vmatpush.msrb.mxu1 %v8900_v0 }
 0x7f4   :  { %v2458_v11 = vld.sshfl [vmem:[#allocation1] sm:$0xff pattern:$0x75316420] }
 0x7f5   :  { %v2462_v13 = vrot.slane %v2458_v11, 7  ;;  %v2571_v11 = vand.u32 4294901760, %v2570_v4  ;;  %2650 = vmatpush.msrb.mxu0 %v8911_v10  ;;  %v2612_v4 = vsub.f32 %v2610_v54, %v2611_v32 }
 0x7f6   :  { %v2461_v16 = vld.sshfl [vmem:[#allocation1 + $0x10] sm:$0xff pattern:$0x75316420] }
 0x7f7   :  { %v2466_v17 = vsel %vm397_vm3, 0.0, %v2462_v13  ;;  %v2463_v42 = vrot.slane %v2461_v16, 7  ;;  %v2582_v13 = vsub.f32 %v8873_v46, %v2581_v60  ;;  %v2593_v16 = vand.u32 4294901760, %v8911_v10  ;;  %2572 = vmatpush.msra.mxu3 %v2571_v11 }
 0x7f8   :  { %v8788_v14 = vsel %vm2156_vm1, %v2466_v17, 0.0  ;;  %v2577_v17 = vand.u32 4294901760, %v2576_v8  ;;  %v2613_v26 = vand.u32 4294901760, %v2612_v4 }
 0x7f9   :  { %v2480_v9 = vrot.slane %v8788_v14, 2  ;;  %v2472_v15 = vrot.slane %v8788_v14, 1  ;;  %v2467_v18 = vsel %vm397_vm3, 0.0, %v2463_v42  ;;  %v2588_v42 = vsub.f32 %v8876_v52, %v2587_v5 }
 0x7fa   :  { %v8794_v20 = vsel %vm2156_vm1, %v2467_v18, 0.0  ;;  %v2594_v18 = vsub.f32 %v8911_v10, %v2593_v16  ;;  %2578 = vmatpush.msra.mxu3 %v2577_v17 }
 0x7fb   :  { %2482 = vrot.lane.b32.xlu0 %v2480_v9, %s8359_s10  ;;  %2474 = vrot.lane.b32.xlu1 %v2472_v15, %s8358_s7  ;;  %v2473_v21 = vrot.slane %v8794_v20, 1  ;;  %v2481_v22 = vrot.slane %v8794_v20, 2  ;;  %v2446_v9 = vld [vmem:[%s10135_s1 + $0xd0] sm:$0xff]  ;;  %v2583_v15 = vand.u32 4294901760, %v2582_v13  ;;  %v2589_v23 = vand.u32 4294901760, %v2588_v42 }
 0x7fc   :  { %v2595_v31 = vand.u32 4294901760, %v2594_v18 }
 0x7fd   :  { %2476 = vrot.lane.b32.xlu2 %v2473_v21, %s8358_s7  ;;  %v2524_v21 = vand.u32 4294901760, %v2446_v9  ;;  %2584 = vmatpush.msra.mxu3 %v2583_v15 }
 0x7ff   :  { %v2598_v25 = vsub.f32 %v2446_v9, %v2524_v21  ;;  %2525 = vmatpush.msra.mxu2 %v2524_v21  ;;  %2689 = vmatpush.msrb.mxu1 %v2524_v21 }
 0x800   :  { %2590 = vmatpush.msra.mxu3 %v2589_v23  ;;  %v2836_v23 = vld [vmem:[%s10135_s1 + $0x140] sm:$0xff] }
 0x801   :  { %v2599_v27 = vand.u32 4294901760, %v2598_v25  ;;  %2653 = vmatpush.msrb.mxu0 %v2598_v25 }
 0x802   :  { %2596 = vmatpush.msra.mxu3 %v2595_v31  ;;  %v2835_v31 = vld [vmem:[%s10135_s1 + $0x138] sm:$0xff] }
 0x803   :  { %2484 = vrot.lane.b32.xlu1 %v2481_v22, %s8359_s10  ;;  %v2445_v22 = vld [vmem:[%s10135_s1 + $0xc8] sm:$0xff]  ;;  %v2600_v45 = vsub.f32 %v2598_v25, %v2599_v27  ;;  %v2858_v25 = vand.u32 4294901760, %v2836_v23 }
 0x804   :  { %v2526_v29 = vand.u32 4294901760, %v2445_v22 }
 0x805   :  { %v2601_v55 = vand.u32 4294901760, %v2600_v45 }
 0x806   :  { %v2604_v36 = vsub.f32 %v2445_v22, %v2526_v29  ;;  %2527 = vmatpush.msra.mxu2 %v2526_v29  ;;  %2691 = vmatpush.msrb.mxu1 %v2526_v29 }
 0x807   :  { %2602 = vmatpush.msra.mxu3 %v2601_v55 }
 0x808   :  { %v2605_v53 = vand.u32 4294901760, %v2604_v36  ;;  %2529 = vmatpush.msra.mxu2 %v2528_v37  ;;  %2656 = vmatpush.msrb.mxu0 %v2604_v36 }
 0x809   :  { %2693 = vmatpush.msrb.mxu1 %v2528_v37 }
 0x80a   :  { %2708 = vmatpush.msrb.mxu2 %v2545_v43  ;;  %v2606_v62 = vsub.f32 %v2604_v36, %v2605_v53  ;;  %2659 = vmatpush.msrb.mxu0 %v2610_v54  ;;  %v2860_v36 = vand.u32 4294901760, %v2835_v31 }
 0x80c   :  { %2712 = vmatpush.msrb.mxu2 %v2551_v47  ;;  %v2607_v63 = vand.u32 4294901760, %v2606_v62  ;;  %2859 = vmatpush.msra.mxu0 %v2858_v25  ;;  %v2894_v55 = vsub.f32 %v2835_v31, %v2860_v36 }
 0x80e   :  { %2716 = vmatpush.msrb.mxu2 %v2557_v44  ;;  %2608 = vmatpush.msra.mxu3 %v2607_v63  ;;  %v2833_v63 = vld [vmem:[%s10135_s1 + $0x128] sm:$0xff] }
 0x80f   :  { %2861 = vmatpush.msra.mxu0 %v2860_v36 }
 0x810   :  { %2720 = vmatpush.msrb.mxu2 %v2563_v56  ;;  %2614 = vmatpush.msra.mxu3 %v2613_v26  ;;  %v2895_v26 = vand.u32 4294901760, %v2894_v55 }
 0x812   :  { %2763 = vmatpush.msrb.mxu3 %v8805_v24  ;;  %2724 = vmatpush.msrb.mxu2 %v2569_v57 }
 0x814   :  { %2765 = vmatpush.msrb.mxu3 %v8813_v28  ;;  %2728 = vmatpush.msrb.mxu2 %v2575_v59 }
 0x816   :  { %2767 = vmatpush.msrb.mxu3 %v8830_v34  ;;  %2732 = vmatpush.msrb.mxu2 %v2581_v60 }
 0x818   :  { %2769 = vmatpush.msrb.mxu3 %v8832_v35  ;;  %2736 = vmatpush.msrb.mxu2 %v2587_v5 }
 0x81a   :  { %2771 = vmatpush.msrb.mxu3 %v8845_v38  ;;  %2740 = vmatpush.msrb.mxu2 %v2593_v16 }
 0x81c   :  { %2773 = vmatpush.msrb.mxu3 %v8847_v39  ;;  %2744 = vmatpush.msrb.mxu2 %v2599_v27  ;;  %v2888_v27 = vsub.f32 %v2836_v23, %v2858_v25 }
 0x81e   :  { %2775 = vmatpush.msrb.mxu3 %v8849_v40  ;;  %2748 = vmatpush.msrb.mxu2 %v2605_v53  ;;  %v2834_v53 = vld [vmem:[%s10135_s1 + $0x130] sm:$0xff]  ;;  %v2889_v54 = vand.u32 4294901760, %v2888_v27 }
 0x81f   :  { %v2862_v62 = vand.u32 4294901760, %v2834_v53 }
 0x820   :  { %2777 = vmatpush.msrb.mxu3 %v8851_v41  ;;  %2752 = vmatpush.msrb.mxu2 %v2611_v32  ;;  %v2890_v4 = vsub.f32 %v2888_v27, %v2889_v54 }
 0x821   :  { %2863 = vmatpush.msra.mxu0 %v2862_v62 }
 0x822   :  { %2779 = vmatpush.msrb.mxu3 %v8900_v0 }
 0x824   :  { %2781 = vmatpush.msrb.mxu3 %v2524_v21 }
 0x826   :  { %2783 = vmatpush.msrb.mxu3 %v2526_v29 }
 0x828   :  { %2785 = vmatpush.msrb.mxu3 %v2528_v37 }
 0x857   :  { %v2477_v34 = vpop.permute.xlu2 %2476 }
 0x858   :  { %v2489_v35 = vsel %vm1758_vm2, %v8794_v20, %v2477_v34  ;;  %v2896_v34 = vsub.f32 %v2894_v55, %v2895_v26 }
 0x86d   :  { %v2483_v24 = vpop.permute.xlu0 %2482  ;;  %v2475_v28 = vpop.permute.xlu1 %2474 }
 0x86e   :  { %v2488_v43 = vsel %vm1758_vm2, %v8788_v14, %v2475_v28  ;;  %v2864_v28 = vand.u32 4294901760, %v2833_v63 }
 0x86f   :  { %v2491_v33 = vsel %vm2490_vm11, %v2488_v43, %v2483_v24  ;;  %v2900_v24 = vsub.f32 %v2834_v53, %v2862_v62 }
 0x870   :  { %2495 = vst [vmem:[#allocation1] ss:$2 sm:$0xff] %v2491_v33  ;;  %v2891_v33 = vand.u32 4294901760, %v2890_v4  ;;  %2865 = vmatpush.msra.mxu0 %v2864_v28 }
 0x872   :  { %2892 = vmatpush.msra.mxu1 %v2891_v33 }
 0x875   :  { %v2485_v38 = vpop.permute.xlu1 %2484 }
 0x876   :  { %v2492_v39 = vsel %vm2490_vm11, %v2489_v35, %v2485_v38  ;;  %v2901_v35 = vand.u32 4294901760, %v2900_v24  ;;  %v2906_v38 = vsub.f32 %v2833_v63, %v2864_v28 }
 0x877   :  { %2497 = vst [vmem:[#allocation1 + $0x1] ss:$2 sm:$0xff] %v2492_v39 }
 0x87e   :  { %v2498_v40 = vld.sshfl [vmem:[#allocation1] sm:$0xff pattern:$0x75316420] }
 0x87f   :  { %v2500_v41 = vsel %vm2499_vm12, %v2498_v40, 0  ;;  %v2897_v40 = vand.u32 4294901760, %v2896_v34 }
 0x880   :  { %v2530_v47 = vand.u32 4294901760, %v2500_v41 }
 0x881   :  { %2898 = vmatpush.msra.mxu1 %v2897_v40 }
 0x882   :  { %2616 = vmatmul.f32.vlgmr.msra.gmra.mxu3 %v2530_v47  ;;  %v2531_v48 = vsub.f32 %v2500_v41, %v2530_v47  ;;  %v2902_v41 = vsub.f32 %v2900_v24, %v2901_v35 }
 0x883   :  { %3019 = vmatpush.msra.mxu3 %v2858_v25 }
 0x884   :  { %2662 = vmatmul.f32.vlgmr.msrb.gmra.mxu0 %v2531_v48  ;;  %v2532_v14 = vand.u32 4294901760, %v2531_v48 }
 0x885   :  { %3021 = vmatpush.msra.mxu3 %v2860_v36  ;;  %2930 = vmatpush.msrb.mxu0 %v2888_v27 }
 0x886   :  { %2697 = vmatmul.f32.vlgmr.msrb.gmra.mxu1 %v2532_v14  ;;  %v2533_v49 = vsub.f32 %v2531_v48, %v2532_v14  ;;  %v2903_v48 = vand.u32 4294901760, %v2902_v41 }
 0x887   :  { %3023 = vmatpush.msra.mxu3 %v2862_v62  ;;  %2933 = vmatpush.msrb.mxu0 %v2894_v55 }
 0x888   :  { %v2534_v50 = vand.u32 4294901760, %v2533_v49  ;;  %v2840_v49 = vld [vmem:[%s10135_s1 + $0x160] sm:$0xff]  ;;  %2904 = vmatpush.msra.mxu1 %v2903_v48 }
 0x889   :  { %3025 = vmatpush.msra.mxu3 %v2864_v28  ;;  %2936 = vmatpush.msrb.mxu0 %v2900_v24 }
 0x88a   :  { %2535 = vmatmul.f32.vlgmr.msra.gmra.mxu2 %v2534_v50  ;;  %2787 = vmatmul.f32.vlgmr.msrb.gmra.mxu3 %v2530_v47 }
 0x88b   :  { %2988 = vmatpush.msra.mxu2 %v2889_v54  ;;  %2939 = vmatpush.msrb.mxu0 %v2906_v38 }
 0x88d   :  { %2992 = vmatpush.msra.mxu2 %v2895_v26 }
 0x88f   :  { %2996 = vmatpush.msra.mxu2 %v2901_v35 }
 0x892   :  { %2754 = vmatmul.f32.vlgmr.msrb.gmra.mxu2 %v2530_v47  ;;  %v2907_v47 = vand.u32 4294901760, %v2906_v38 }
 0x894   :  { %v2908_v14 = vsub.f32 %v2906_v38, %v2907_v47  ;;  %3000 = vmatpush.msra.mxu2 %v2907_v47  ;;  %v8329_v38 = vld [vmem:[%s10135_s1 + $0x168] ss:$0 sm:$0xff] }
 0x896   :  { %v2909_v50 = vand.u32 4294901760, %v2908_v14 }
 0x898   :  { %2910 = vmatpush.msra.mxu1 %v2909_v50 }
 0x89a   :  { %2959 = vmatpush.msrb.mxu1 %v2858_v25 }
 0x89c   :  { %2961 = vmatpush.msrb.mxu1 %v2860_v36 }
 0x89e   :  { %2963 = vmatpush.msrb.mxu1 %v2862_v62 }
 0x8a0   :  { %2965 = vmatpush.msrb.mxu1 %v2864_v28 }
 0x901   :  { %v2663_v52 = vpop.f32.mrf.mxu0 }
 0x903   :  { %v2698_v56 = vpop.f32.mrf.mxu1 }
 0x905   :  { %v2617_v20 = vpop.f32.mrf.mxu3 }
 0x90d   :  { %v2536_v51 = vpop.f32.mrf.mxu2  ;;  %v2788_v0 = vpop.f32.mrf.mxu3 }
 0x90e   :  { %v2618_v46 = vadd.f32 %v2617_v20, %v2536_v51  ;;  %v9006_v20 = vand.u32 4294901760, %v2840_v49  ;;  %v2839_v51 = vld [vmem:[%s10135_s1 + $0x158] sm:$0xff] }
 0x910   :  { %v2664_v44 = vadd.f32 %v2663_v52, %v2618_v46  ;;  %v2838_v46 = vld [vmem:[%s10135_s1 + $0x150] sm:$0xff]  ;;  %v2837_v52 = vld [vmem:[%s10135_s1 + $0x148] sm:$0xff]  ;;  %3144 = vmatpush.msrb.mxu3 %v9006_v20 }
 0x912   :  { %v2699_v57 = vadd.f32 %v2698_v56, %v2664_v44  ;;  %v9018_v44 = vsub.f32 %v2840_v49, %v9006_v20  ;;  %v9021_v56 = vand.u32 4294901760, %v2839_v51 }
 0x914   :  { %3115 = vmatpush.msrb.mxu2 %v9018_v44  ;;  %3146 = vmatpush.msrb.mxu3 %v9021_v56  ;;  %v3074_v23 = vand.u32 4294901760, %v9018_v44 }
 0x915   :  { %v2755_v59 = vpop.f32.mrf.mxu2 }
 0x916   :  { %v2756_v60 = vadd.f32 %v2755_v59, %v2699_v57  ;;  %v9023_v57 = vand.u32 4294901760, %v2838_v46  ;;  %v9025_v59 = vand.u32 4294901760, %v2837_v52  ;;  %v3075_v36 = vsub.f32 %v9018_v44, %v3074_v23 }
 0x918   :  { %v8980_v5 = vadd.f32 %v2788_v0, %v2756_v60  ;;  %3148 = vmatpush.msrb.mxu3 %v9023_v57  ;;  %v3076_v55 = vand.u32 4294901760, %v3075_v36 }
 0x91a   :  { %v2791_v6 = vsel %vm1758_vm2, %v8980_v5, 0.0  ;;  %v2799_v58 = vmul.f32 %v8980_v5, %v8980_v5  ;;  %3150 = vmatpush.msrb.mxu3 %v9025_v59 }
 0x91b   :  { %v2792_v8 = vrot.slane %v2791_v6, 4 }
 0x91c   :  { %v2800_v10 = vsel %vm1758_vm2, %v2799_v58, 0.0  ;;  %v9033_v58 = vsub.f32 %v2838_v46, %v9023_v57 }
 0x91d   :  { %v2793_v11 = vadd.f32 %v2792_v8, %v2791_v6  ;;  %v2801_v13 = vrot.slane %v2800_v10, 4  ;;  %v9029_v6 = vsub.f32 %v2839_v51, %v9021_v56 }
 0x91f   :  { %v2794_v16 = vrot.slane %v2793_v11, 2  ;;  %v2802_v17 = vadd.f32 %v2801_v13, %v2800_v10  ;;  %3118 = vmatpush.msrb.mxu2 %v9029_v6  ;;  %v9038_v10 = vsub.f32 %v2837_v52, %v9025_v59  ;;  %v3080_v31 = vand.u32 4294901760, %v9029_v6 }
 0x921   :  { %v2795_v42 = vadd.f32 %v2794_v16, %v2793_v11  ;;  %v2803_v9 = vrot.slane %v2802_v17, 2  ;;  %3121 = vmatpush.msrb.mxu2 %v9033_v58  ;;  %v2456_v16 = vld [vmem:[%s10135_s1 + $0x120] sm:$0x3]  ;;  %v3081_v53 = vsub.f32 %v9029_v6, %v3080_v31 }
 0x923   :  { %v2796_v15 = vrot.slane %v2795_v42, 1  ;;  %v2804_v18 = vadd.f32 %v2803_v9, %v2802_v17  ;;  %3124 = vmatpush.msrb.mxu2 %v9038_v10 }
 0x925   :  { %v2797_v21 = vadd.f32 %v2796_v15, %v2795_v42  ;;  %v2805_v22 = vrot.slane %v2804_v18, 1 }
 0x927   :  { %v8990_v29 = vmul.f32 0.125, %v2797_v21  ;;  %v2806_v30 = vadd.f32 %v2805_v22, %v2804_v18 }
 0x929   :  { %v2807_v37 = vmul.f32 0.125, %v2806_v30  ;;  %v2808_v45 = vmul.f32 %v8990_v29, %v8990_v29 }
 0x92b   :  { %v2809_v32 = vsub.f32 %v2807_v37, %v2808_v45  ;;  %v3086_v37 = vand.u32 4294901760, %v9033_v58 }
 0x92d   :  { %v2810_v43 = vmax.f32 %v2809_v32, 0.0  ;;  %v3087_v62 = vsub.f32 %v9033_v58, %v3086_v37 }
 0x92f   :  { %v2811_v39 = vadd.f32 1e-05, %v2810_v43  ;;  %v3088_v26 = vand.u32 4294901760, %v3087_v62 }
 0x931   :  { %8344 = vrsqrt.f32 %v2811_v39  ;;  %vm2818_vm1 = vweird.f32 %v2811_v39 }
 0x937   :  { %v8345_v60 = vpop.eup %8344 }
 0x938   :  { %v2813_v0 = vmul.f32 %v8345_v60, %v2811_v39  ;;  %vm2819_vm14 = vweird.f32 %v8345_v60 }
 0x939   :  { %vm2820_vm6 = vmor %vm2818_vm1, %vm2819_vm14 }
 0x93a   :  { %v2814_v8 = vmul.f32 %v8345_v60, %v2813_v0 }
 0x93c   :  { %v2815_v11 = vmul.f32 0.5, %v2814_v8 }
 0x93e   :  { %v2816_v13 = vsub.f32 1.5, %v2815_v11 }
 0x940   :  { %v2817_v17 = vmul.f32 %v8345_v60, %v2816_v13 }
 0x942   :  { %v2821_v42 = vsel %vm2820_vm6, %v8345_v60, %v2817_v17  ;;  %vm4283_vm6 = vcmask 1041408  }
 0x943   :  { %v2822_v9 = vmul.f32 %v2821_v42, %v2456_v16 }
 0x945   :  { %v2825_v15 = vmul.f32 %v2822_v9, %v8990_v29  ;;  %v2823_v18 = vperm.slane %v2822_v9, 0  ;;  %v3092_v29 = vand.u32 4294901760, %v9038_v10 }
 0x947   :  { %v2827_v21 = vrot.slane %v2825_v15, 7  ;;  %v2824_v25 = vmul.f32 %v2823_v18, %v8980_v5  ;;  %v3082_v5 = vand.u32 4294901760, %v3081_v53  ;;  %v3093_v63 = vsub.f32 %v9038_v10, %v3092_v29 }
 0x949   :  { %v2829_v22 = vsub.f32 %v2456_v16, %v2827_v21  ;;  %v3094_v28 = vand.u32 4294901760, %v3093_v63 }
 0x94b   :  { %v2830_v30 = vperm.slane %v2829_v22, 1 }
 0x94d   :  { %v2831_v27 = vadd.f32 %v2830_v30, %v2824_v25 }
 0x94f   :  { %v2832_v45 = vmax.f32 %v2831_v27, 0.0 }
 0x951   :  { %v2844_v54 = vsel %vm1758_vm2, %v2832_v45, 0 }
 0x952   :  { %v2866_v32 = vand.u32 4294901760, %v2844_v54 }
 0x954   :  { %v2867_v4 = vsub.f32 %v2844_v54, %v2866_v32  ;;  %2912 = vmatmul.f32.vlgmr.msra.gmra.mxu1 %v2866_v32  ;;  %3002 = vmatmul.f32.vlgmr.msra.gmra.mxu2 %v2866_v32 }
 0x955   :  { %3027 = vmatmul.f32.vlgmr.msra.gmra.mxu3 %v2866_v32  ;;  %3077 = vmatpush.msra.mxu1 %v3076_v55 }
 0x956   :  { %v2868_v24 = vand.u32 4294901760, %v2867_v4 }
 0x957   :  { %3083 = vmatpush.msra.mxu1 %v3082_v5 }
 0x958   :  { %v2869_v43 = vsub.f32 %v2867_v4, %v2868_v24 }
 0x959   :  { %3089 = vmatpush.msra.mxu1 %v3088_v26 }
 0x95a   :  { %v2870_v33 = vand.u32 4294901760, %v2869_v43 }
 0x95b   :  { %3095 = vmatpush.msra.mxu1 %v3094_v28 }
 0x95c   :  { %2871 = vmatmul.f32.vlgmr.msra.gmra.mxu0 %v2870_v33  ;;  %2969 = vmatmul.f32.vlgmr.msrb.gmra.mxu1 %v2868_v24 }
 0x95d   :  { %3127 = vmatmul.f32.vlgmr.msrb.gmra.mxu2 %v2867_v4  ;;  %3154 = vmatmul.f32.vlgmr.msrb.gmra.mxu3 %v2868_v24 }
 0x95e   :  { %3044 = vmatpush.msra.mxu0 %v9006_v20  ;;  %3204 = vmatpush.msrb.mxu1 %v9006_v20 }
 0x960   :  { %3046 = vmatpush.msra.mxu0 %v9021_v56  ;;  %3206 = vmatpush.msrb.mxu1 %v9021_v56 }
 0x962   :  { %3048 = vmatpush.msra.mxu0 %v9023_v57  ;;  %3208 = vmatpush.msrb.mxu1 %v9023_v57 }
 0x964   :  { %2942 = vmatmul.f32.vlgmr.msrb.gmra.mxu0 %v2867_v4  ;;  %3097 = vmatmul.f32.vlgmr.msra.gmra.mxu1 %v2866_v32 }
 0x965   :  { %3050 = vmatpush.msra.mxu0 %v9025_v59  ;;  %3210 = vmatpush.msrb.mxu1 %v9025_v59 }
 0x967   :  { %3173 = vmatpush.msrb.mxu0 %v3074_v23 }
 0x969   :  { %3177 = vmatpush.msrb.mxu0 %v3080_v31 }
 0x96b   :  { %3181 = vmatpush.msrb.mxu0 %v3086_v37 }
 0x96c   :  { %3056 = vmatmul.f32.vlgmr.msra.gmra.mxu0 %v2870_v33  ;;  %3212 = vmatmul.f32.vlgmr.msrb.gmra.mxu1 %v2866_v32 }
 0x96d   :  { %3185 = vmatpush.msrb.mxu0 %v3092_v29 }
 0x974   :  { %3187 = vmatmul.f32.vlgmr.msrb.gmra.mxu0 %v2866_v32 }
 0x9d1   :  { %v2913_v34 = vpop.f32.mrf.mxu1 }
 0x9d7   :  { %v3003_v47 = vpop.f32.mrf.mxu2 }
 0x9d8   :  { %v3028_v14 = vpop.f32.mrf.mxu3 }
 0x9d9   :  { %v2872_v35 = vpop.f32.mrf.mxu0  ;;  %v2970_v40 = vpop.f32.mrf.mxu1 }
 0x9da   :  { %v2873_v39 = vadd.f32 %v8329_v38, %v2872_v35 }
 0x9dc   :  { %v2914_v48 = vadd.f32 %v2913_v34, %v2873_v39 }
 0x9e0   :  { %v3128_v44 = vpop.f32.mrf.mxu2  ;;  %v3155_v59 = vpop.f32.mrf.mxu3 }
 0x9e1   :  { %v2943_v41 = vpop.f32.mrf.mxu0  ;;  %v3098_v51 = vpop.f32.mrf.mxu1 }
 0x9e2   :  { %v2944_v49 = vadd.f32 %v2943_v41, %v2914_v48 }
 0x9e4   :  { %v2971_v20 = vadd.f32 %v2970_v40, %v2944_v49 }
 0x9e6   :  { %v3004_v56 = vadd.f32 %v3003_v47, %v2971_v20 }
 0x9e8   :  { %v3029_v6 = vadd.f32 %v3028_v14, %v3004_v56 }
 0x9e9   :  { %v3057_v50 = vpop.f32.mrf.mxu0  ;;  %v3213_v8 = vpop.f32.mrf.mxu1 }
 0x9ea   :  { %v3058_v46 = vadd.f32 %v8329_v38, %v3057_v50  ;;  %v3217_v11 = vrot.slane %v3029_v6, 1  ;;  %v3218_v13 = vrot.slane %v3029_v6, 2  ;;  %v3219_v16 = vrot.slane %v3029_v6, 3 }
 0x9eb   :  { %v3220_v17 = vrot.slane %v3029_v6, 4  ;;  %v3221_v37 = vrot.slane %v3029_v6, 5  ;;  %v3222_v5 = vrot.slane %v3029_v6, 6  ;;  %v3223_v4 = vrot.slane %v3029_v6, 7 }
 0x9ec   :  { %v3099_v52 = vadd.f32 %v3098_v51, %v3058_v46 }
 0x9ee   :  { %v3129_v57 = vadd.f32 %v3128_v44, %v3099_v52 }
 0x9f0   :  { %v3156_v60 = vadd.f32 %v3155_v59, %v3129_v57 }
 0x9f1   :  { %v3188_v0 = vpop.f32.mrf.mxu0 }
 0x9f2   :  { %v3189_v58 = vadd.f32 %v3188_v0, %v3156_v60 }
 0x9f4   :  { %v3214_v10 = vadd.f32 %v3213_v8, %v3189_v58  ;;  %v3305_v58 = vld [vmem:[%s10135_s1 + $0x1b8] sm:$0xff] }
 0x9f6   :  { %v3232_v42 = vrot.slane %v3214_v10, 1  ;;  %v3233_v9 = vrot.slane %v3214_v10, 2  ;;  %v3234_v15 = vrot.slane %v3214_v10, 3  ;;  %v3235_v18 = vrot.slane %v3214_v10, 4 }
 0x9f7   :  { %v3236_v21 = vrot.slane %v3214_v10, 5  ;;  %v3237_v22 = vrot.slane %v3214_v10, 6  ;;  %v3238_v23 = vrot.slane %v3214_v10, 7  ;;  %v3239_v25 = vperm.slane %v3214_v10, 0 }
 0x9f8   :  { %v3240_v30 = vperm.slane %v3232_v42, 0  ;;  %v3241_v31 = vperm.slane %v3233_v9, 0  ;;  %v3242_v27 = vperm.slane %v3234_v15, 0  ;;  %v3243_v36 = vperm.slane %v3235_v18, 0  ;;  %v3301_v18 = vld [vmem:[%s10135_s1 + $0x198] sm:$0xff] }
 0x9f9   :  { %v3244_v45 = vperm.slane %v3236_v21, 0  ;;  %v3245_v53 = vperm.slane %v3237_v22, 0  ;;  %v3255_v29 = vsel %vm397_vm3, %v3029_v6, %v3239_v25  ;;  %v3246_v54 = vperm.slane %v3238_v23, 0  ;;  %v3306_v6 = vld [vmem:[%s10135_s1 + $0x1c0] sm:$0xff]  ;;  %v3300_v21 = vld [vmem:[%s10135_s1 + $0x190] sm:$0xff] }
 0x9fa   :  { %v3256_v55 = vsel %vm397_vm3, %v3217_v11, %v3240_v30  ;;  %v3257_v62 = vsel %vm397_vm3, %v3218_v13, %v3241_v31  ;;  %v3258_v32 = vsel %vm397_vm3, %v3219_v16, %v3242_v27  ;;  %3271 = vst [vmem:[#allocation1] ss:$4 sm:$0xff] %v3255_v29  ;;  %v3259_v63 = vsel %vm397_vm3, %v3220_v17, %v3243_v36  ;;  %v3304_v13 = vld [vmem:[%s10135_s1 + $0x1b0] sm:$0xff]  ;;  %v3303_v16 = vld [vmem:[%s10135_s1 + $0x1a8] sm:$0xff]  ;;  %v3302_v17 = vld [vmem:[%s10135_s1 + $0x1a0] sm:$0xff] }
 0x9fb   :  { %3273 = vst [vmem:[#allocation1 + $0x1] ss:$4 sm:$0xff] %v3256_v55  ;;  %v3260_v26 = vsel %vm397_vm3, %v3221_v37, %v3244_v45  ;;  %v3261_v24 = vsel %vm397_vm3, %v3222_v5, %v3245_v53  ;;  %v3262_v28 = vsel %vm397_vm3, %v3223_v4, %v3246_v54  ;;  %v9113_v10 = vand.u32 4294901760, %v3306_v6 }
 0x9fc   :  { %3275 = vst [vmem:[#allocation1 + $0x2] ss:$4 sm:$0xff] %v3257_v62  ;;  %v9115_v11 = vand.u32 4294901760, %v3305_v58  ;;  %v9126_v42 = vand.u32 4294901760, %v3304_v13  ;;  %v9128_v9 = vand.u32 4294901760, %v3303_v16  ;;  %v9130_v15 = vand.u32 4294901760, %v3302_v17 }
 0x9fd   :  { %3277 = vst [vmem:[#allocation1 + $0x3] ss:$4 sm:$0xff] %v3258_v32  ;;  %v9142_v23 = vsub.f32 %v3306_v6, %v9113_v10  ;;  %v9149_v30 = vand.u32 4294901760, %v3301_v18  ;;  %v9165_v29 = vand.u32 4294901760, %v3300_v21  ;;  %v3296_v6 = vld [vmem:[%s10135_s1 + $0x170] sm:$0xff] }
 0x9fe   :  { %3280 = vst [vmem:[#allocation1 + $0x20] ss:$4 sm:$0xff] %v3259_v63  ;;  %v9145_v25 = vsub.f32 %v3305_v58, %v9115_v11  ;;  %v9152_v31 = vsub.f32 %v3304_v13, %v9126_v42  ;;  %v9155_v27 = vsub.f32 %v3303_v16, %v9128_v9  ;;  %v9158_v36 = vsub.f32 %v3302_v17, %v9130_v15 }
 0x9ff   :  { %3282 = vst [vmem:[#allocation1 + $0x21] ss:$4 sm:$0xff] %v3260_v26  ;;  %v3414_v45 = vand.u32 4294901760, %v9142_v23  ;;  %v9170_v55 = vsub.f32 %v3301_v18, %v9149_v30  ;;  %v3299_v26 = vld [vmem:[%s10135_s1 + $0x188] sm:$0xff]  ;;  %v3383_v17 = vand.u32 4294901760, %v3296_v6 }
 0xa00   :  { %3284 = vst [vmem:[#allocation1 + $0x22] ss:$4 sm:$0xff] %v3261_v24  ;;  %v3420_v53 = vand.u32 4294901760, %v9145_v25  ;;  %v3426_v54 = vand.u32 4294901760, %v9152_v31  ;;  %v3432_v63 = vand.u32 4294901760, %v9155_v27  ;;  %v3438_v4 = vand.u32 4294901760, %v9158_v36 }
 0xa01   :  { %3286 = vst [vmem:[#allocation1 + $0x23] ss:$4 sm:$0xff] %v3262_v28  ;;  %v3415_v32 = vsub.f32 %v9142_v23, %v3414_v45 }
 0xa02   :  { %v3421_v5 = vsub.f32 %v9145_v25, %v3420_v53 }
 0xa03   :  { %v3416_v28 = vand.u32 4294901760, %v3415_v32 }
 0xa04   :  { %v3278_v43 = vld.sshfl [vmem:[#allocation1] sm:$0xff pattern:$0x73625140] }
 0xa05   :  { %3288 = vrot.lane.b32.xlu2 %v3278_v43, %s8357_s18  ;;  %v3427_v43 = vsub.f32 %v9152_v31, %v3426_v54 }
 0xa08   :  { %v3287_v33 = vld.sshfl [vmem:[#allocation1 + $0x20] sm:$0xff pattern:$0x73625140] }
 0xa09   :  { %3290 = vrot.lane.b32.xlu0 %v3287_v33, %s8357_s18  ;;  %v9195_v33 = vsub.f32 %v3300_v21, %v9165_v29 }
 0xa5f   :  { %v3289_v34 = vpop.permute.xlu2 %3288 }
 0xa60   :  { %v3294_v35 = vsel %vm24_vm0, %v8714_v1, %v3289_v34  ;;  %v3422_v34 = vand.u32 4294901760, %v3421_v5 }
 0xa61   :  { %v3311_v38 = vrot.slane %v3294_v35, 7  ;;  %v3433_v35 = vsub.f32 %v9155_v27, %v3432_v63 }
 0xa63   :  { %v9081_v39 = vsel %vm397_vm3, 0.0, %v3311_v38  ;;  %v3317_v40 = vsel %vm397_vm3, %v3311_v38, 0.0  ;;  %v3444_v38 = vand.u32 4294901760, %v9170_v55 }
 0xa64   :  { %v3324_v41 = vrot.slane %v3317_v40, 1  ;;  %v3336_v47 = vrot.slane %v3317_v40, 2  ;;  %v3335_v48 = vrot.slane %v9081_v39, 2  ;;  %v3323_v14 = vrot.slane %v9081_v39, 1 }
 0xa65   :  { %v9203_v40 = vand.u32 4294901760, %v3299_v26 }
 0xa66   :  { %v3337_v49 = vsel %vm441_vm5, %v3335_v48, %v3336_v47  ;;  %v3325_v50 = vsel %vm418_vm4, %v3323_v14, %v3324_v41  ;;  %v3428_v41 = vand.u32 4294901760, %v3427_v43  ;;  %v3439_v47 = vsub.f32 %v9158_v36, %v3438_v4 }
 0xa67   :  { %3341 = vrot.lane.b32.xlu2 %v3337_v49, %s8359_s10  ;;  %3329 = vrot.lane.b32.xlu1 %v3325_v50, %s8358_s7  ;;  %v3450_v48 = vand.u32 4294901760, %v9195_v33  ;;  %v9213_v14 = vsub.f32 %v3299_v26, %v9203_v40  ;;  %v3434_v49 = vand.u32 4294901760, %v3433_v35  ;;  %v3445_v50 = vsub.f32 %v9170_v55, %v3444_v38 }
 0xa7b   :  { %v3291_v1 = vpop.permute.xlu0 %3290 }
 0xa7c   :  { %v3295_v20 = vsel %vm24_vm0, %v8716_v2, %v3291_v1  ;;  %v3307_v2 = vld [vmem:[%s10135_s1 + $0x1c8] sm:$0xff]  ;;  %v3456_v1 = vand.u32 4294901760, %v9213_v14 }
 0xa7d   :  { %v3312_v51 = vrot.slane %v3295_v20, 7  ;;  %v9111_v8 = vand.u32 4294901760, %v3307_v2  ;;  %v3440_v20 = vand.u32 4294901760, %v3439_v47 }
 0xa7f   :  { %v9093_v46 = vsel %vm397_vm3, 0.0, %v3312_v51  ;;  %v3318_v52 = vsel %vm397_vm3, %v3312_v51, 0.0  ;;  %v9139_v22 = vsub.f32 %v3307_v2, %v9111_v8  ;;  %3543 = vmatpush.msra.mxu1 %v9111_v8  ;;  %3362 = vmatpush.msra.mxu2 %v9111_v8  ;;  %v3451_v51 = vsub.f32 %v9195_v33, %v3450_v48 }
 0xa80   :  { %v3327_v44 = vrot.slane %v3318_v52, 1  ;;  %v3339_v56 = vrot.slane %v3318_v52, 2  ;;  %v3326_v57 = vrot.slane %v9093_v46, 1  ;;  %v3338_v59 = vrot.slane %v9093_v46, 2  ;;  %v3298_v52 = vld [vmem:[%s10135_s1 + $0x180] sm:$0xff] }
 0xa81   :  { %v3408_v37 = vand.u32 4294901760, %v9139_v22  ;;  %3493 = vmatpush.msra.mxu0 %v9139_v22  ;;  %3545 = vmatpush.msra.mxu1 %v9113_v10 }
 0xa82   :  { %v3328_v60 = vsel %vm418_vm4, %v3326_v57, %v3327_v44  ;;  %v3340_v0 = vsel %vm441_vm5, %v3338_v59, %v3339_v56  ;;  %3364 = vmatpush.msra.mxu2 %v9113_v10  ;;  %v3446_v44 = vand.u32 4294901760, %v3445_v50  ;;  %v3457_v56 = vsub.f32 %v9213_v14, %v3456_v1  ;;  %v3297_v59 = vld [vmem:[%s10135_s1 + $0x178] sm:$0xff] }
 0xa83   :  { %3331 = vrot.lane.b32.xlu0 %v3328_v60, %s8358_s7  ;;  %3343 = vrot.lane.b32.xlu1 %v3340_v0, %s8359_s10  ;;  %v3409_v62 = vsub.f32 %v9139_v22, %v3408_v37  ;;  %v3379_v57 = vand.u32 4294901760, %v3298_v52  ;;  %v3452_v60 = vand.u32 4294901760, %v3451_v51  ;;  %v3381_v2 = vand.u32 4294901760, %v3297_v59 }
 0xa84   :  { %3496 = vmatpush.msra.mxu0 %v9142_v23  ;;  %3547 = vmatpush.msra.mxu1 %v9115_v11  ;;  %v3458_v58 = vand.u32 4294901760, %v3457_v56 }
 0xa85   :  { %3366 = vmatpush.msra.mxu2 %v9115_v11  ;;  %v3410_v24 = vand.u32 4294901760, %v3409_v62  ;;  %v3461_v0 = vsub.f32 %v3298_v52, %v3379_v57  ;;  %v3467_v16 = vsub.f32 %v3297_v59, %v3381_v2  ;;  %v3473_v62 = vsub.f32 %v3296_v6, %v3383_v17 }
 0xa86   :  { %3499 = vmatpush.msra.mxu0 %v9145_v25  ;;  %3549 = vmatpush.msra.mxu1 %v9126_v42 }
 0xa87   :  { %3368 = vmatpush.msra.mxu2 %v9126_v42  ;;  %3411 = vmatpush.msra.mxu3 %v3410_v24  ;;  %v3462_v13 = vand.u32 4294901760, %v3461_v0  ;;  %v3468_v21 = vand.u32 4294901760, %v3467_v16  ;;  %v3474_v26 = vand.u32 4294901760, %v3473_v62 }
 0xa88   :  { %3502 = vmatpush.msra.mxu0 %v9152_v31  ;;  %3551 = vmatpush.msra.mxu1 %v9128_v9 }
 0xa89   :  { %3370 = vmatpush.msra.mxu2 %v9128_v9  ;;  %3417 = vmatpush.msra.mxu3 %v3416_v28  ;;  %v3463_v18 = vsub.f32 %v3461_v0, %v3462_v13  ;;  %v3469_v5 = vsub.f32 %v3467_v16, %v3468_v21  ;;  %v3475_v28 = vsub.f32 %v3473_v62, %v3474_v26 }
 0xa8a   :  { %3505 = vmatpush.msra.mxu0 %v9155_v27  ;;  %3553 = vmatpush.msra.mxu1 %v9130_v15 }
 0xa8b   :  { %3372 = vmatpush.msra.mxu2 %v9130_v15  ;;  %3423 = vmatpush.msra.mxu3 %v3422_v34  ;;  %v3464_v32 = vand.u32 4294901760, %v3463_v18  ;;  %v3470_v24 = vand.u32 4294901760, %v3469_v5  ;;  %v3476_v43 = vand.u32 4294901760, %v3475_v28 }
 0xa8c   :  { %3508 = vmatpush.msra.mxu0 %v9158_v36  ;;  %3555 = vmatpush.msra.mxu1 %v9149_v30 }
 0xa8d   :  { %3374 = vmatpush.msra.mxu2 %v9149_v30  ;;  %3429 = vmatpush.msra.mxu3 %v3428_v41 }
 0xa8e   :  { %3511 = vmatpush.msra.mxu0 %v9170_v55  ;;  %3557 = vmatpush.msra.mxu1 %v9165_v29 }
 0xa8f   :  { %3376 = vmatpush.msra.mxu2 %v9165_v29  ;;  %3435 = vmatpush.msra.mxu3 %v3434_v49 }
 0xa90   :  { %3514 = vmatpush.msra.mxu0 %v9195_v33  ;;  %3559 = vmatpush.msra.mxu1 %v9203_v40 }
 0xa91   :  { %3378 = vmatpush.msra.mxu2 %v9203_v40  ;;  %3441 = vmatpush.msra.mxu3 %v3440_v20 }
 0xa92   :  { %3517 = vmatpush.msra.mxu0 %v9213_v14  ;;  %3561 = vmatpush.msra.mxu1 %v3379_v57 }
 0xa93   :  { %3380 = vmatpush.msra.mxu2 %v3379_v57  ;;  %3447 = vmatpush.msra.mxu3 %v3446_v44 }
 0xa94   :  { %3520 = vmatpush.msra.mxu0 %v3461_v0  ;;  %3563 = vmatpush.msra.mxu1 %v3381_v2 }
 0xa95   :  { %3382 = vmatpush.msra.mxu2 %v3381_v2  ;;  %3453 = vmatpush.msra.mxu3 %v3452_v60 }
 0xa96   :  { %3523 = vmatpush.msra.mxu0 %v3467_v16  ;;  %3565 = vmatpush.msra.mxu1 %v3383_v17 }
 0xa97   :  { %3384 = vmatpush.msra.mxu2 %v3383_v17  ;;  %3459 = vmatpush.msra.mxu3 %v3458_v58 }
 0xa98   :  { %3526 = vmatpush.msra.mxu0 %v3473_v62 }
 0xa99   :  { %3586 = vmatpush.msrb.mxu2 %v3408_v37  ;;  %3465 = vmatpush.msra.mxu3 %v3464_v32 }
 0xa9b   :  { %3590 = vmatpush.msrb.mxu2 %v3414_v45  ;;  %3471 = vmatpush.msra.mxu3 %v3470_v24 }
 0xa9d   :  { %3594 = vmatpush.msrb.mxu2 %v3420_v53  ;;  %3477 = vmatpush.msra.mxu3 %v3476_v43 }
 0xa9f   :  { %3645 = vmatpush.msrb.mxu3 %v9111_v8  ;;  %3598 = vmatpush.msrb.mxu2 %v3426_v54 }
 0xaa1   :  { %3647 = vmatpush.msrb.mxu3 %v9113_v10  ;;  %3602 = vmatpush.msrb.mxu2 %v3432_v63 }
 0xaa3   :  { %3649 = vmatpush.msrb.mxu3 %v9115_v11  ;;  %3606 = vmatpush.msrb.mxu2 %v3438_v4 }
 0xaa5   :  { %3651 = vmatpush.msrb.mxu3 %v9126_v42  ;;  %3610 = vmatpush.msrb.mxu2 %v3444_v38 }
 0xaa7   :  { %3653 = vmatpush.msrb.mxu3 %v9128_v9  ;;  %3614 = vmatpush.msrb.mxu2 %v3450_v48 }
 0xaa9   :  { %3655 = vmatpush.msrb.mxu3 %v9130_v15  ;;  %3618 = vmatpush.msrb.mxu2 %v3456_v1 }
 0xaab   :  { %3657 = vmatpush.msrb.mxu3 %v9149_v30  ;;  %3622 = vmatpush.msrb.mxu2 %v3462_v13 }
 0xaad   :  { %3659 = vmatpush.msrb.mxu3 %v9165_v29  ;;  %3626 = vmatpush.msrb.mxu2 %v3468_v21 }
 0xaaf   :  { %3661 = vmatpush.msrb.mxu3 %v9203_v40  ;;  %3630 = vmatpush.msrb.mxu2 %v3474_v26 }
 0xab1   :  { %3663 = vmatpush.msrb.mxu3 %v3379_v57 }
 0xab3   :  { %3665 = vmatpush.msrb.mxu3 %v3381_v2 }
 0xab5   :  { %3667 = vmatpush.msrb.mxu3 %v3383_v17 }
 0xac1   :  { %v3342_v10 = vpop.permute.xlu2 %3341 }
 0xad9   :  { %v3330_v8 = vpop.permute.xlu1 %3329 }
 0xada   :  { %v3347_v11 = vsel %vm1758_vm2, %v9081_v39, %v3330_v8 }
 0xadb   :  { %v3349_v42 = vsel %vm2490_vm11, %v3347_v11, %v3342_v10 }
 0xadc   :  { %v3352_v9 = vsel %vm2499_vm12, %v3349_v42, 0 }
 0xadd   :  { %v3385_v15 = vand.u32 4294901760, %v3352_v9 }
 0xadf   :  { %v3386_v22 = vsub.f32 %v3352_v9, %v3385_v15  ;;  %3479 = vmatmul.f32.vlgmr.msra.gmra.mxu3 %v3385_v15 }
 0xae1   :  { %v3387_v23 = vand.u32 4294901760, %v3386_v22  ;;  %3529 = vmatmul.f32.vlgmr.msra.gmra.mxu0 %v3386_v22 }
 0xae3   :  { %v3388_v25 = vsub.f32 %v3386_v22, %v3387_v23  ;;  %3569 = vmatmul.f32.vlgmr.msra.gmra.mxu1 %v3387_v23 }
 0xae5   :  { %v3389_v30 = vand.u32 4294901760, %v3388_v25 }
 0xae7   :  { %3390 = vmatmul.f32.vlgmr.msra.gmra.mxu2 %v3389_v30 }
 0xaf5   :  { %v3332_v31 = vpop.permute.xlu0 %3331  ;;  %v3344_v27 = vpop.permute.xlu1 %3343 }
 0xaf6   :  { %v3348_v36 = vsel %vm1758_vm2, %v9093_v46, %v3332_v31 }
 0xaf7   :  { %v3350_v39 = vsel %vm2490_vm11, %v3348_v36, %v3344_v27 }
 0xaf8   :  { %v3355_v37 = vsel %vm2499_vm12, %v3350_v39, 0 }
 0xaf9   :  { %v3393_v45 = vand.u32 4294901760, %v3355_v37 }
 0xafb   :  { %v3394_v53 = vsub.f32 %v3355_v37, %v3393_v45  ;;  %3483 = vmatmul.f32.gmra.mxu3 %v3393_v45  ;;  %v3308_v37 = vld [vmem:[%s10135_s1 + $0x1d0] sm:$0x3] }
 0xafd   :  { %3534 = vmatmul.f32.gmra.mxu0 %v3394_v53  ;;  %v3395_v29 = vand.u32 4294901760, %v3394_v53 }
 0xaff   :  { %3575 = vmatmul.f32.gmra.mxu1 %v3395_v29  ;;  %v3396_v54 = vsub.f32 %v3394_v53, %v3395_v29 }
 0xb01   :  { %v3397_v55 = vand.u32 4294901760, %v3396_v54 }
 0xb03   :  { %3398 = vmatmul.f32.gmra.mxu2 %v3397_v55  ;;  %3669 = vmatmul.f32.vlgmr.msrb.gmra.mxu3 %v3385_v15 }
 0xb0b   :  { %3632 = vmatmul.f32.vlgmr.msrb.gmra.mxu2 %v3385_v15  ;;  %3673 = vmatmul.f32.gmra.mxu3 %v3393_v45 }
 0xb13   :  { %3636 = vmatmul.f32.gmra.mxu2 %v3393_v45 }
 0xb5e   :  { %v3530_v35 = vpop.f32.mrf.mxu0 }
 0xb60   :  { %v3570_v40 = vpop.f32.mrf.mxu1 }
 0xb62   :  { %v3480_v63 = vpop.f32.mrf.mxu3 }
 0xb6a   :  { %v3391_v4 = vpop.f32.mrf.mxu2 }
 0xb6b   :  { %v3481_v34 = vadd.f32 %v3480_v63, %v3391_v4 }
 0xb6d   :  { %v3531_v38 = vadd.f32 %v3530_v35, %v3481_v34 }
 0xb6f   :  { %v3571_v14 = vadd.f32 %v3570_v40, %v3531_v38 }
 0xb7a   :  { %v3535_v49 = vpop.f32.mrf.mxu0 }
 0xb7c   :  { %v3576_v20 = vpop.f32.mrf.mxu1 }
 0xb7e   :  { %v3484_v46 = vpop.f32.mrf.mxu3 }
 0xb86   :  { %v3399_v33 = vpop.f32.mrf.mxu2  ;;  %v3670_v47 = vpop.f32.mrf.mxu3 }
 0xb87   :  { %v3485_v41 = vadd.f32 %v3484_v46, %v3399_v33 }
 0xb89   :  { %v3536_v50 = vadd.f32 %v3535_v49, %v3485_v41 }
 0xb8b   :  { %v3577_v52 = vadd.f32 %v3576_v20, %v3536_v50 }
 0xb8e   :  { %v3633_v48 = vpop.f32.mrf.mxu2  ;;  %v3674_v57 = vpop.f32.mrf.mxu3 }
 0xb8f   :  { %v3634_v1 = vadd.f32 %v3633_v48, %v3571_v14 }
 0xb91   :  { %v3671_v51 = vadd.f32 %v3670_v47, %v3634_v1 }
 0xb93   :  { %v3687_v59 = vmul.f32 %v3671_v51, %v3671_v51  ;;  %v3677_v0 = vsel %vm24_vm0, %v3671_v51, 0.0 }
 0xb95   :  { %v3689_v13 = vsel %vm24_vm0, %v3687_v59, 0.0 }
 0xb96   :  { %v3637_v44 = vpop.f32.mrf.mxu2 }
 0xb97   :  { %v3638_v56 = vadd.f32 %v3637_v44, %v3577_v52 }
 0xb99   :  { %v3675_v60 = vadd.f32 %v3674_v57, %v3638_v56 }
 0xb9b   :  { %v3678_v2 = vsel %vm24_vm0, %v3675_v60, 0.0  ;;  %v3688_v6 = vmul.f32 %v3675_v60, %v3675_v60 }
 0xb9c   :  { %v3679_v58 = vadd.f32 %v3678_v2, %v3677_v0 }
 0xb9d   :  { %v3690_v16 = vsel %vm24_vm0, %v3688_v6, 0.0 }
 0xb9e   :  { %v3680_v17 = vrot.slane %v3679_v58, 4  ;;  %v3691_v18 = vadd.f32 %v3690_v16, %v3689_v13  ;;  %v3732_v13 = vld [vmem:[%s10135_s1 + $0x200] sm:$0xff] }
 0xb9f   :  { %v3792_v16 = vand.u32 4294901760, %v3732_v13 }
 0xba0   :  { %v3681_v21 = vadd.f32 %v3680_v17, %v3679_v58  ;;  %v3692_v62 = vrot.slane %v3691_v18, 4  ;;  %v3731_v17 = vld [vmem:[%s10135_s1 + $0x1f8] sm:$0xff] }
 0xba1   :  { %4004 = vmatpush.msra.mxu3 %v3792_v16  ;;  %3793 = vmatpush.msrb.mxu0 %v3792_v16 }
 0xba2   :  { %v3682_v32 = vrot.slane %v3681_v21, 2  ;;  %v3693_v5 = vadd.f32 %v3692_v62, %v3691_v18  ;;  %v3730_v18 = vld [vmem:[%s10135_s1 + $0x1f0] sm:$0xff]  ;;  %v3794_v62 = vand.u32 4294901760, %v3731_v17 }
 0xba4   :  { %v3683_v26 = vadd.f32 %v3682_v32, %v3681_v21  ;;  %v3694_v24 = vrot.slane %v3693_v5, 2  ;;  %v3729_v21 = vld [vmem:[%s10135_s1 + $0x1e8] sm:$0xff]  ;;  %v3796_v32 = vand.u32 4294901760, %v3730_v18  ;;  %4006 = vmatpush.msra.mxu3 %v3794_v62  ;;  %3795 = vmatpush.msrb.mxu0 %v3794_v62 }
 0xba6   :  { %v3684_v28 = vrot.slane %v3683_v26, 1  ;;  %v3695_v43 = vadd.f32 %v3694_v24, %v3693_v5  ;;  %v3798_v5 = vand.u32 4294901760, %v3729_v21  ;;  %v3838_v24 = vsub.f32 %v3731_v17, %v3794_v62  ;;  %4008 = vmatpush.msra.mxu3 %v3796_v32  ;;  %3797 = vmatpush.msrb.mxu0 %v3796_v32 }
 0xba8   :  { %v3685_v8 = vadd.f32 %v3684_v28, %v3683_v26  ;;  %v3696_v10 = vrot.slane %v3695_v43, 1  ;;  %v3832_v26 = vsub.f32 %v3732_v13, %v3792_v16  ;;  %v3844_v28 = vsub.f32 %v3730_v18, %v3796_v32  ;;  %4010 = vmatpush.msra.mxu3 %v3798_v5  ;;  %3799 = vmatpush.msrb.mxu0 %v3798_v5 }
 0xbaa   :  { %v3686_v11 = vmul.f32 0.0625, %v3685_v8  ;;  %v3697_v42 = vadd.f32 %v3696_v10, %v3695_v43  ;;  %v3850_v43 = vsub.f32 %v3729_v21, %v3798_v5  ;;  %v3833_v8 = vand.u32 4294901760, %v3832_v26 }
 0xbab   :  { %v3839_v10 = vand.u32 4294901760, %v3838_v24 }
 0xbac   :  { %v3698_v9 = vmul.f32 0.0625, %v3697_v42  ;;  %v3699_v15 = vmul.f32 %v3686_v11, %v3686_v11  ;;  %v3851_v42 = vand.u32 4294901760, %v3850_v43  ;;  %3963 = vmatpush.msra.mxu2 %v3833_v8 }
 0xbae   :  { %v3700_v22 = vsub.f32 %v3698_v9, %v3699_v15  ;;  %v3834_v9 = vsub.f32 %v3832_v26, %v3833_v8  ;;  %v3840_v15 = vsub.f32 %v3838_v24, %v3839_v10  ;;  %3967 = vmatpush.msra.mxu2 %v3839_v10 }
 0xbb0   :  { %v3701_v23 = vmax.f32 %v3700_v22, 0.0 }
 0xbb2   :  { %v3702_v25 = vadd.f32 1e-05, %v3701_v23  ;;  %v3728_v23 = vld [vmem:[%s10135_s1 + $0x1e0] sm:$0xff] }
 0xbb4   :  { %8346 = vrsqrt.f32 %v3702_v25  ;;  %vm3709_vm9 = vweird.f32 %v3702_v25 }
 0xbba   :  { %v8347_v30 = vpop.eup %8346 }
 0xbbb   :  { %v3704_v31 = vmul.f32 %v8347_v30, %v3702_v25  ;;  %vm3710_vm7 = vweird.f32 %v8347_v30  ;;  %v3835_v25 = vand.u32 4294901760, %v3834_v9 }
 0xbbc   :  { %vm3711_vm11 = vmor %vm3709_vm9, %vm3710_vm7  ;;  %vm4276_vm7 = vcmask 15360  }
 0xbbd   :  { %v3705_v27 = vmul.f32 %v8347_v30, %v3704_v31  ;;  %v3800_v31 = vand.u32 4294901760, %v3728_v23  ;;  %3836 = vmatpush.msrb.mxu1 %v3835_v25 }
 0xbbf   :  { %v3706_v36 = vmul.f32 0.5, %v3705_v27  ;;  %v3841_v27 = vand.u32 4294901760, %v3840_v15  ;;  %4012 = vmatpush.msra.mxu3 %v3800_v31  ;;  %3801 = vmatpush.msrb.mxu0 %v3800_v31 }
 0xbc1   :  { %v3707_v39 = vsub.f32 1.5, %v3706_v36  ;;  %v3727_v36 = vld [vmem:[%s10135_s1 + $0x1d8] sm:$0xff]  ;;  %3842 = vmatpush.msrb.mxu1 %v3841_v27 }
 0xbc3   :  { %v3708_v45 = vmul.f32 %v8347_v30, %v3707_v39 }
 0xbc5   :  { %v3712_v53 = vsel %vm3711_vm11, %v8347_v30, %v3708_v45  ;;  %v3852_v30 = vsub.f32 %v3850_v43, %v3851_v42  ;;  %v3802_v45 = vand.u32 4294901760, %v3727_v36 }
 0xbc6   :  { %v3713_v29 = vmul.f32 %v3712_v53, %v3308_v37 }
 0xbc7   :  { %v3853_v53 = vand.u32 4294901760, %v3852_v30  ;;  %4014 = vmatpush.msra.mxu3 %v3802_v45  ;;  %3803 = vmatpush.msrb.mxu0 %v3802_v45 }
 0xbc8   :  { %v3717_v54 = vmul.f32 %v3713_v29, %v3686_v11  ;;  %v3714_v55 = vperm.slane %v3713_v29, 0  ;;  %v3845_v11 = vand.u32 4294901760, %v3844_v28 }
 0xbc9   :  { %3888 = vmatpush.msra.mxu0 %v3832_v26 }
 0xbca   :  { %v3719_v63 = vrot.slane %v3717_v54, 7  ;;  %v3716_v46 = vmul.f32 %v3714_v55, %v3675_v60  ;;  %v3715_v34 = vmul.f32 %v3714_v55, %v3671_v51  ;;  %v3846_v22 = vsub.f32 %v3844_v28, %v3845_v11  ;;  %3971 = vmatpush.msra.mxu2 %v3845_v11 }
 0xbcb   :  { %v3862_v54 = vsub.f32 %v3727_v36, %v3802_v45  ;;  %3891 = vmatpush.msra.mxu0 %v3838_v24 }
 0xbcc   :  { %v3721_v4 = vsub.f32 %v3308_v37, %v3719_v63  ;;  %v3847_v39 = vand.u32 4294901760, %v3846_v22  ;;  %v3856_v37 = vsub.f32 %v3728_v23, %v3800_v31  ;;  %3975 = vmatpush.msra.mxu2 %v3851_v42 }
 0xbcd   :  { %v3863_v63 = vand.u32 4294901760, %v3862_v54  ;;  %3894 = vmatpush.msra.mxu0 %v3844_v28 }
 0xbce   :  { %v3722_v33 = vperm.slane %v3721_v4, 1  ;;  %v3857_v29 = vand.u32 4294901760, %v3856_v37  ;;  %3848 = vmatpush.msrb.mxu1 %v3847_v39 }
 0xbcf   :  { %3897 = vmatpush.msra.mxu0 %v3850_v43 }
 0xbd0   :  { %v3724_v35 = vadd.f32 %v3722_v33, %v3716_v46  ;;  %v3723_v38 = vadd.f32 %v3722_v33, %v3715_v34  ;;  %v3858_v55 = vsub.f32 %v3856_v37, %v3857_v29  ;;  %3979 = vmatpush.msra.mxu2 %v3857_v29  ;;  %3854 = vmatpush.msrb.mxu1 %v3853_v53 }
 0xbd1   :  { %v3864_v46 = vsub.f32 %v3862_v54, %v3863_v63  ;;  %3900 = vmatpush.msra.mxu0 %v3856_v37 }
 0xbd2   :  { %v3726_v40 = vmax.f32 %v3724_v35, 0.0  ;;  %v3725_v41 = vmax.f32 %v3723_v38, 0.0  ;;  %v3859_v4 = vand.u32 4294901760, %v3858_v55  ;;  %3983 = vmatpush.msra.mxu2 %v3863_v63 }
 0xbd3   :  { %v3865_v33 = vand.u32 4294901760, %v3864_v46  ;;  %3903 = vmatpush.msra.mxu0 %v3862_v54 }
 0xbd4   :  { %v3737_v47 = vrot.slane %v3726_v40, 7  ;;  %v3736_v48 = vrot.slane %v3725_v41, 7  ;;  %3860 = vmatpush.msrb.mxu1 %v3859_v4 }
 0xbd6   :  { %v9289_v14 = vsel %vm397_vm3, 0.0, %v3737_v47  ;;  %v3743_v49 = vsel %vm397_vm3, %v3737_v47, 0.0  ;;  %v9293_v50 = vsel %vm397_vm3, 0.0, %v3736_v48  ;;  %v3742_v1 = vsel %vm397_vm3, %v3736_v48, 0.0  ;;  %3866 = vmatpush.msrb.mxu1 %v3865_v33 }
 0xbd7   :  { %v3751_v20 = vrot.slane %v9289_v14, 1  ;;  %v3752_v52 = vrot.slane %v3743_v49, 1  ;;  %v3760_v51 = vrot.slane %v9293_v50, 2  ;;  %v3761_v44 = vrot.slane %v3742_v1, 2 }
 0xbd8   :  { %v3748_v56 = vrot.slane %v9293_v50, 1  ;;  %v3749_v57 = vrot.slane %v3742_v1, 1  ;;  %v3763_v2 = vrot.slane %v9289_v14, 2  ;;  %v3764_v6 = vrot.slane %v3743_v49, 2  ;;  %3926 = vmatpush.msra.mxu1 %v3792_v16 }
 0xbd9   :  { %v3753_v59 = vsel %vm418_vm4, %v3751_v20, %v3752_v52  ;;  %v3762_v60 = vsel %vm441_vm5, %v3760_v51, %v3761_v44 }
 0xbda   :  { %3756 = vrot.lane.b32.xlu1 %v3753_v59, %s8357_s18  ;;  %3766 = vrot.lane.b32.xlu0 %v3762_v60, %s8358_s7  ;;  %v3750_v0 = vsel %vm418_vm4, %v3748_v56, %v3749_v57  ;;  %v3765_v58 = vsel %vm441_vm5, %v3763_v2, %v3764_v6 }
 0xbdb   :  { %3754 = vrot.lane.b32.xlu2 %v3750_v0, %s8357_s18  ;;  %3928 = vmatpush.msra.mxu1 %v3794_v62 }
 0xbdd   :  { %3930 = vmatpush.msra.mxu1 %v3796_v32 }
 0xbdf   :  { %3932 = vmatpush.msra.mxu1 %v3798_v5 }
 0xbe1   :  { %3934 = vmatpush.msra.mxu1 %v3800_v31 }
 0xbe3   :  { %3768 = vrot.lane.b32.xlu2 %v3765_v58, %s8358_s7  ;;  %3936 = vmatpush.msra.mxu1 %v3802_v45 }
 0xc35   :  { %v3755_v34 = vpop.permute.xlu2 %3754 }
 0xc36   :  { %v3772_v35 = vsel %vm24_vm0, %v9293_v50, %v3755_v34 }
 0xc3d   :  { %v3769_v41 = vpop.permute.xlu2 %3768 }
 0xc4c   :  { %v3757_v38 = vpop.permute.xlu1 %3756  ;;  %v3767_v40 = vpop.permute.xlu0 %3766 }
 0xc4d   :  { %v3773_v47 = vsel %vm24_vm0, %v9289_v14, %v3757_v38  ;;  %v3774_v48 = vsel %vm1758_vm2, %v3772_v35, %v3767_v40 }
 0xc4e   :  { %v3775_v49 = vsel %vm1758_vm2, %v3773_v47, %v3769_v41  ;;  %v3777_v1 = vsel %vm1761_vm10, %v3774_v48, 0  ;;  %v4075_v41 = vld [vmem:[%s10135_s1 + $0x2a8] sm:$0xff] }
 0xc4f   :  { %v3780_v20 = vsel %vm1761_vm10, %v3775_v49, 0  ;;  %v3804_v52 = vand.u32 4294901760, %v3777_v1  ;;  %v4098_v47 = vand.u32 4294901760, %v4075_v41 }
 0xc50   :  { %v3812_v51 = vand.u32 4294901760, %v3780_v20 }
 0xc51   :  { %v3805_v44 = vsub.f32 %v3777_v1, %v3804_v52  ;;  %3868 = vmatmul.f32.vlgmr.msrb.gmra.mxu1 %v3804_v52  ;;  %3985 = vmatmul.f32.vlgmr.msra.gmra.mxu2 %v3804_v52  ;;  %v4074_v1 = vld [vmem:[%s10135_s1 + $0x2a0] sm:$0xff] }
 0xc52   :  { %4016 = vmatmul.f32.vlgmr.msra.gmra.mxu3 %v3804_v52  ;;  %v3813_v50 = vsub.f32 %v3780_v20, %v3812_v51  ;;  %v4134_v20 = vsub.f32 %v4075_v41, %v4098_v47  ;;  %v4100_v52 = vand.u32 4294901760, %v4074_v1 }
 0xc53   :  { %v3806_v56 = vand.u32 4294901760, %v3805_v44  ;;  %4200 = vmatpush.msrb.mxu3 %v4098_v47 }
 0xc54   :  { %v3814_v60 = vand.u32 4294901760, %v3813_v50  ;;  %4170 = vmatpush.msrb.mxu2 %v4134_v20 }
 0xc55   :  { %v3807_v57 = vsub.f32 %v3805_v44, %v3806_v56  ;;  %4202 = vmatpush.msrb.mxu3 %v4100_v52 }
 0xc56   :  { %v3815_v14 = vsub.f32 %v3813_v50, %v3814_v60 }
 0xc57   :  { %v3808_v59 = vand.u32 4294901760, %v3807_v57 }
 0xc58   :  { %v3816_v0 = vand.u32 4294901760, %v3815_v14 }
 0xc59   :  { %3809 = vmatmul.f32.vlgmr.msrb.gmra.mxu0 %v3808_v59  ;;  %3872 = vmatmul.f32.gmra.mxu1 %v3812_v51 }
 0xc5a   :  { %3989 = vmatmul.f32.gmra.mxu2 %v3812_v51  ;;  %4020 = vmatmul.f32.gmra.mxu3 %v3812_v51 }
 0xc5b   :  { %4099 = vmatpush.msrb.mxu0 %v4098_v47 }
 0xc5d   :  { %4101 = vmatpush.msrb.mxu0 %v4100_v52 }
 0xc61   :  { %3817 = vmatmul.f32.gmra.mxu0 %v3816_v0  ;;  %3940 = vmatmul.f32.vlgmr.msra.gmra.mxu1 %v3806_v56 }
 0xc69   :  { %3906 = vmatmul.f32.vlgmr.msra.gmra.mxu0 %v3805_v44  ;;  %3946 = vmatmul.f32.gmra.mxu1 %v3814_v60  ;;  %v4135_v44 = vand.u32 4294901760, %v4134_v20 }
 0xc6b   :  { %v4136_v57 = vsub.f32 %v4134_v20, %v4135_v44  ;;  %4233 = vmatpush.msra.mxu0 %v4135_v44 }
 0xc6d   :  { %v4137_v14 = vand.u32 4294901760, %v4136_v57 }
 0xc6f   :  { %4138 = vmatpush.msrb.mxu1 %v4137_v14 }
 0xc71   :  { %3911 = vmatmul.f32.gmra.mxu0 %v3813_v50  ;;  %v4140_v50 = vsub.f32 %v4074_v1, %v4100_v52 }
 0xc73   :  { %v4141_v59 = vand.u32 4294901760, %v4140_v50  ;;  %4173 = vmatpush.msrb.mxu2 %v4140_v50 }
 0xc75   :  { %v4142_v0 = vsub.f32 %v4140_v50, %v4141_v59  ;;  %4237 = vmatpush.msra.mxu0 %v4141_v59 }
 0xcce   :  { %v3869_v2 = vpop.f32.mrf.mxu1 }
 0xcd4   :  { %v3986_v62 = vpop.f32.mrf.mxu2 }
 0xcd5   :  { %v4017_v5 = vpop.f32.mrf.mxu3 }
 0xcd6   :  { %v3810_v6 = vpop.f32.mrf.mxu0  ;;  %v3873_v58 = vpop.f32.mrf.mxu1 }
 0xcd7   :  { %v3870_v16 = vadd.f32 %v3869_v2, %v3810_v6  ;;  %v4143_v2 = vand.u32 4294901760, %v4142_v0 }
 0xcd9   :  { %4144 = vmatpush.msrb.mxu1 %v4143_v2 }
 0xcdb   :  { %4262 = vmatpush.msra.mxu1 %v4098_v47 }
 0xcdd   :  { %v3990_v42 = vpop.f32.mrf.mxu2  ;;  %v4021_v15 = vpop.f32.mrf.mxu3  ;;  %4264 = vmatpush.msra.mxu1 %v4100_v52 }
 0xcde   :  { %v3818_v13 = vpop.f32.mrf.mxu0  ;;  %v3941_v17 = vpop.f32.mrf.mxu1 }
 0xcdf   :  { %v3874_v26 = vadd.f32 %v3873_v58, %v3818_v13 }
 0xce6   :  { %v3907_v18 = vpop.f32.mrf.mxu0  ;;  %v3947_v8 = vpop.f32.mrf.mxu1 }
 0xce7   :  { %v3908_v21 = vadd.f32 %v3907_v18, %v3870_v16  ;;  %v3733_v18 = vld [vmem:[%s10135_s1 + $0x208] sm:$0x3] }
 0xce9   :  { %v3942_v32 = vadd.f32 %v3941_v17, %v3908_v21 }
 0xceb   :  { %v3987_v24 = vadd.f32 %v3986_v62, %v3942_v32 }
 0xced   :  { %v9334_v10 = vadd.f32 %v4017_v5, %v3987_v24 }
 0xcee   :  { %v3912_v28 = vpop.f32.mrf.mxu0 }
 0xcef   :  { %v3913_v43 = vadd.f32 %v3912_v28, %v3874_v26  ;;  %v4034_v22 = vmul.f32 %v9334_v10, %v9334_v10  ;;  %v4024_v25 = vsel %vm24_vm0, %v9334_v10, 0.0 }
 0xcf1   :  { %v3948_v11 = vadd.f32 %v3947_v8, %v3913_v43  ;;  %v4036_v36 = vsel %vm24_vm0, %v4034_v22, 0.0 }
 0xcf3   :  { %v3991_v9 = vadd.f32 %v3990_v42, %v3948_v11 }
 0xcf5   :  { %v9338_v23 = vadd.f32 %v4021_v15, %v3991_v9 }
 0xcf7   :  { %v4025_v30 = vsel %vm24_vm0, %v9338_v23, 0.0  ;;  %v4035_v31 = vmul.f32 %v9338_v23, %v9338_v23 }
 0xcf8   :  { %v4026_v27 = vadd.f32 %v4025_v30, %v4024_v25 }
 0xcf9   :  { %v4037_v39 = vsel %vm24_vm0, %v4035_v31, 0.0 }
 0xcfa   :  { %v4027_v37 = vrot.slane %v4026_v27, 4  ;;  %v4038_v45 = vadd.f32 %v4037_v39, %v4036_v36 }
 0xcfc   :  { %v4028_v53 = vadd.f32 %v4027_v37, %v4026_v27  ;;  %v4039_v29 = vrot.slane %v4038_v45, 4 }
 0xcfe   :  { %v4029_v54 = vrot.slane %v4028_v53, 2  ;;  %v4040_v55 = vadd.f32 %v4039_v29, %v4038_v45 }
 0xd00   :  { %v4030_v63 = vadd.f32 %v4029_v54, %v4028_v53  ;;  %v4041_v4 = vrot.slane %v4040_v55, 2  ;;  %v9400_v54 = vld [vmem:[%s10135_s1 + $0x2b8] sm:$0x1f] }
 0xd02   :  { %v4031_v46 = vrot.slane %v4030_v63, 1  ;;  %v4042_v33 = vadd.f32 %v4041_v4, %v4040_v55  ;;  %v4285_v55 = vsel %vm4283_vm6, %v9400_v54, 0 }
 0xd04   :  { %v4032_v34 = vadd.f32 %v4031_v46, %v4030_v63  ;;  %v4043_v35 = vrot.slane %v4042_v33, 1  ;;  %v4302_v63 = vand.u32 4294901760, %v4285_v55 }
 0xd06   :  { %v4033_v38 = vmul.f32 0.0625, %v4032_v34  ;;  %v4044_v40 = vadd.f32 %v4043_v35, %v4042_v33  ;;  %4303 = vmatpush.msra.mxu2 %v4302_v63  ;;  %v4337_v4 = vsub.f32 %v4285_v55, %v4302_v63 }
 0xd08   :  { %v4045_v48 = vmul.f32 0.0625, %v4044_v40  ;;  %v4046_v49 = vmul.f32 %v4033_v38, %v4033_v38  ;;  %v4338_v46 = vand.u32 4294901760, %v4337_v4  ;;  %v4464_v40 = vrot.slane %v9400_v54, 2 }
 0xd0a   :  { %v4047_v51 = vsub.f32 %v4045_v48, %v4046_v49  ;;  %v4339_v33 = vsub.f32 %v4337_v4, %v4338_v46  ;;  %v4465_v47 = vsel %vm4283_vm6, %v4464_v40, 0 }
 0xd0b   :  { %v4482_v48 = vand.u32 4294901760, %v4465_v47 }
 0xd0c   :  { %v4048_v56 = vmax.f32 %v4047_v51, 0.0  ;;  %v4340_v34 = vand.u32 4294901760, %v4339_v33 }
 0xd0d   :  { %v4517_v1 = vsub.f32 %v4465_v47, %v4482_v48 }
 0xd0e   :  { %v4049_v60 = vadd.f32 1e-05, %v4048_v56  ;;  %4341 = vmatpush.msra.mxu3 %v4340_v34 }
 0xd0f   :  { %v4518_v52 = vand.u32 4294901760, %v4517_v1 }
 0xd10   :  { %8348 = vrsqrt.f32 %v4049_v60  ;;  %vm4056_vm14 = vweird.f32 %v4049_v60 }
 0xd11   :  { %v4519_v56 = vsub.f32 %v4517_v1, %v4518_v52 }
 0xd13   :  { %v4520_v57 = vand.u32 4294901760, %v4519_v56 }
 0xd16   :  { %v8349_v6 = vpop.eup %8348 }
 0xd17   :  { %v4051_v58 = vmul.f32 %v8349_v6, %v4049_v60  ;;  %vm4057_vm12 = vweird.f32 %v8349_v6 }
 0xd18   :  { %vm4058_vm1 = vmor %vm4056_vm14, %vm4057_vm12 }
 0xd19   :  { %v4052_v13 = vmul.f32 %v8349_v6, %v4051_v58 }
 0xd1b   :  { %v4053_v16 = vmul.f32 0.5, %v4052_v13 }
 0xd1d   :  { %v4054_v17 = vsub.f32 1.5, %v4053_v16 }
 0xd1f   :  { %v4055_v21 = vmul.f32 %v8349_v6, %v4054_v17 }
 0xd21   :  { %v4059_v62 = vsel %vm4058_vm1, %v8349_v6, %v4055_v21 }
 0xd22   :  { %v4060_v32 = vmul.f32 %v4059_v62, %v3733_v18 }
 0xd24   :  { %v4064_v5 = vmul.f32 %v4060_v32, %v4033_v38  ;;  %v4061_v26 = vperm.slane %v4060_v32, 0  ;;  %v8330_v38 = vld [vmem:[%s10135_s1 + $0x2b0] ss:$0 sm:$0xff] }
 0xd26   :  { %v4066_v24 = vrot.slane %v4064_v5, 7  ;;  %v4062_v43 = vmul.f32 %v4061_v26, %v9334_v10  ;;  %v4063_v8 = vmul.f32 %v4061_v26, %v9338_v23 }
 0xd28   :  { %v4068_v28 = vsub.f32 %v3733_v18, %v4066_v24 }
 0xd2a   :  { %v4069_v11 = vperm.slane %v4068_v28, 1 }
 0xd2c   :  { %v4070_v42 = vadd.f32 %v4069_v11, %v4062_v43  ;;  %v4071_v9 = vadd.f32 %v4069_v11, %v4063_v8 }
 0xd2e   :  { %v4072_v15 = vmax.f32 %v4070_v42, 0.0  ;;  %v4073_v22 = vmax.f32 %v4071_v9, 0.0  ;;  %v4739_v42 = vld [vmem:[%s10135_s1 + $0x218] sm:$0xff] }
 0xd30   :  { %v4079_v25 = vsel %vm24_vm0, %v4072_v15, 0  ;;  %v4082_v30 = vsel %vm24_vm0, %v4073_v22, 0  ;;  %v4758_v15 = vand.u32 4294901760, %v4739_v42 }
 0xd31   :  { %v9361_v31 = vand.u32 4294901760, %v4079_v25  ;;  %v9363_v27 = vand.u32 4294901760, %v4082_v30 }
 0xd33   :  { %4146 = vmatmul.f32.vlgmr.msrb.gmra.mxu1 %v9361_v31  ;;  %v9367_v36 = vsub.f32 %v4079_v25, %v9361_v31  ;;  %v9374_v23 = vsub.f32 %v4082_v30, %v9363_v27  ;;  %v4738_v25 = vld [vmem:[%s10135_s1 + $0x210] sm:$0xff] }
 0xd34   :  { %4396 = vmatpush.msrb.mxu1 %v4302_v63  ;;  %v4760_v55 = vand.u32 4294901760, %v4738_v25 }
 0xd35   :  { %4176 = vmatmul.f32.vlgmr.msrb.gmra.mxu2 %v9367_v36  ;;  %v9371_v10 = vand.u32 4294901760, %v9367_v36  ;;  %v9382_v45 = vand.u32 4294901760, %v9374_v23 }
 0xd36   :  { %4428 = vmatpush.msrb.mxu2 %v4338_v46  ;;  %v4800_v46 = vsub.f32 %v4738_v25, %v4760_v55 }
 0xd37   :  { %4206 = vmatmul.f32.vlgmr.msrb.gmra.mxu3 %v9371_v10  ;;  %v4105_v39 = vsub.f32 %v9367_v36, %v9371_v10  ;;  %v4113_v53 = vsub.f32 %v9374_v23, %v9382_v45 }
 0xd38   :  { %4454 = vmatpush.msrb.mxu3 %v4302_v63 }
 0xd39   :  { %v9379_v37 = vand.u32 4294901760, %v4105_v39  ;;  %v9390_v29 = vand.u32 4294901760, %v4113_v53  ;;  %v4794_v53 = vsub.f32 %v4739_v42, %v4758_v15 }
 0xd3b   :  { %4107 = vmatmul.f32.vlgmr.msrb.gmra.mxu0 %v9379_v37  ;;  %4150 = vmatmul.f32.gmra.mxu1 %v9363_v27 }
 0xd3c   :  { %4368 = vmatpush.msrb.mxu0 %v4337_v4  ;;  %v4795_v4 = vand.u32 4294901760, %v4794_v53 }
 0xd3d   :  { %4181 = vmatmul.f32.gmra.mxu2 %v9374_v23 }
 0xd3e   :  { %v4796_v34 = vsub.f32 %v4794_v53, %v4795_v4 }
 0xd3f   :  { %4212 = vmatmul.f32.gmra.mxu3 %v9382_v45 }
 0xd43   :  { %4115 = vmatmul.f32.gmra.mxu0 %v9390_v29  ;;  %4266 = vmatmul.f32.vlgmr.msra.gmra.mxu1 %v9361_v31 }
 0xd44   :  { %4521 = vmatpush.msra.mxu1 %v4520_v57 }
 0xd4b   :  { %4239 = vmatmul.f32.vlgmr.msra.gmra.mxu0 %v9361_v31  ;;  %4270 = vmatmul.f32.gmra.mxu1 %v9363_v27 }
 0xd4c   :  { %4483 = vmatpush.msra.mxu0 %v4482_v48 }
 0xd53   :  { %4243 = vmatmul.f32.gmra.mxu0 %v9363_v27 }
 0xdb0   :  { %v4147_v35 = vpop.f32.mrf.mxu1 }
 0xdb8   :  { %v4108_v41 = vpop.f32.mrf.mxu0  ;;  %v4151_v20 = vpop.f32.mrf.mxu1 }
 0xdb9   :  { %v4109_v49 = vadd.f32 %v8330_v38, %v4108_v41  ;;  %v4177_v44 = vpop.f32.mrf.mxu2  ;;  %v4797_v41 = vand.u32 4294901760, %v4796_v34 }
 0xdba   :  { %v4207_v14 = vpop.f32.mrf.mxu3 }
 0xdbb   :  { %v4148_v51 = vadd.f32 %v4147_v35, %v4109_v49  ;;  %v4801_v35 = vand.u32 4294901760, %v4800_v46  ;;  %v4741_v49 = vld [vmem:[%s10135_s1 + $0x228] sm:$0xff] }
 0xdbd   :  { %v4178_v59 = vadd.f32 %v4177_v44, %v4148_v51  ;;  %v4802_v40 = vsub.f32 %v4800_v46, %v4801_v35 }
 0xdbf   :  { %v4208_v0 = vadd.f32 %v4207_v14, %v4178_v59 }
 0xdc0   :  { %v4116_v50 = vpop.f32.mrf.mxu0  ;;  %v4267_v6 = vpop.f32.mrf.mxu1 }
 0xdc1   :  { %v4117_v60 = vadd.f32 %v8330_v38, %v4116_v50  ;;  %v4182_v16 = vpop.f32.mrf.mxu2 }
 0xdc2   :  { %v4213_v62 = vpop.f32.mrf.mxu3 }
 0xdc3   :  { %v4152_v2 = vadd.f32 %v4151_v20, %v4117_v60  ;;  %v4740_v20 = vld [vmem:[%s10135_s1 + $0x220] sm:$0xff] }
 0xdc4   :  { %v4950_v51 = vand.u32 4294901760, %v4740_v20 }
 0xdc5   :  { %v4183_v17 = vadd.f32 %v4182_v16, %v4152_v2 }
 0xdc6   :  { %v4990_v50 = vsub.f32 %v4740_v20, %v4950_v51 }
 0xdc7   :  { %v4214_v5 = vadd.f32 %v4213_v62, %v4183_v17 }
 0xdc8   :  { %v4240_v58 = vpop.f32.mrf.mxu0  ;;  %v4271_v43 = vpop.f32.mrf.mxu1  ;;  %v4991_v57 = vand.u32 4294901760, %v4990_v50 }
 0xdc9   :  { %v4241_v13 = vadd.f32 %v4240_v58, %v4208_v0 }
 0xdca   :  { %v4992_v59 = vsub.f32 %v4990_v50, %v4991_v57 }
 0xdcb   :  { %v4268_v18 = vadd.f32 %v4267_v6, %v4241_v13 }
 0xdcc   :  { %v4993_v14 = vand.u32 4294901760, %v4992_v59 }
 0xdcd   :  { %v4278_v21 = vsel %vm4276_vm7, %v4268_v18, 0 }
 0xdce   :  { %v9410_v32 = vand.u32 4294901760, %v4278_v21 }
 0xdd0   :  { %v9413_v26 = vsub.f32 %v4278_v21, %v9410_v32  ;;  %v4244_v24 = vpop.f32.mrf.mxu0  ;;  %4343 = vmatmul.f32.vlgmr.msra.gmra.mxu3 %v9410_v32 }
 0xdd1   :  { %v4245_v28 = vadd.f32 %v4244_v24, %v4214_v5  ;;  %4576 = vmatpush.msra.mxu3 %v4482_v48 }
 0xdd2   :  { %4371 = vmatmul.f32.vlgmr.msrb.gmra.mxu0 %v9413_v26  ;;  %v4306_v8 = vand.u32 4294901760, %v9413_v26 }
 0xdd3   :  { %v4272_v11 = vadd.f32 %v4271_v43, %v4245_v28  ;;  %4608 = vmatpush.msrb.mxu0 %v4518_v52 }
 0xdd4   :  { %4400 = vmatmul.f32.vlgmr.msrb.gmra.mxu1 %v4306_v8  ;;  %v4307_v9 = vsub.f32 %v9413_v26, %v4306_v8 }
 0xdd5   :  { %v4281_v22 = vsel %vm4276_vm7, %v4272_v11, 0  ;;  %4634 = vmatpush.msrb.mxu1 %v4482_v48  ;;  %v4803_v48 = vand.u32 4294901760, %v4802_v40 }
 0xdd6   :  { %v4312_v30 = vand.u32 4294901760, %v4281_v22  ;;  %v4308_v39 = vand.u32 4294901760, %v4307_v9 }
 0xdd8   :  { %v4313_v63 = vsub.f32 %v4281_v22, %v4312_v30  ;;  %4309 = vmatmul.f32.vlgmr.msra.gmra.mxu2 %v4308_v39  ;;  %4347 = vmatmul.f32.gmra.mxu3 %v4312_v30 }
 0xdd9   :  { %4548 = vmatpush.msra.mxu2 %v4517_v1  ;;  %v4948_v1 = vand.u32 4294901760, %v4741_v49 }
 0xdda   :  { %4376 = vmatmul.f32.gmra.mxu0 %v4313_v63  ;;  %v4314_v33 = vand.u32 4294901760, %v4313_v63 }
 0xddb   :  { %v4984_v52 = vsub.f32 %v4741_v49, %v4948_v1 }
 0xddc   :  { %4406 = vmatmul.f32.gmra.mxu1 %v4314_v33  ;;  %v4315_v38 = vsub.f32 %v4313_v63, %v4314_v33 }
 0xddd   :  { %v4985_v44 = vand.u32 4294901760, %v4984_v52 }
 0xdde   :  { %v4316_v47 = vand.u32 4294901760, %v4315_v38 }
 0xddf   :  { %v4986_v56 = vsub.f32 %v4984_v52, %v4985_v44 }
 0xde0   :  { %4317 = vmatmul.f32.gmra.mxu2 %v4316_v47  ;;  %4456 = vmatmul.f32.vlgmr.msrb.gmra.mxu3 %v9410_v32 }
 0xde1   :  { %4798 = vmatpush.msrb.mxu3 %v4797_v41  ;;  %v4987_v60 = vand.u32 4294901760, %v4986_v56 }
 0xde2   :  { %4489 = vmatmul.f32.vlgmr.msra.gmra.mxu0 %v4308_v39  ;;  %v8331_v39 = vld [vmem:[%s10135_s1 + $0x230] ss:$0 sm:$0xff] }
 0xde3   :  { %4804 = vmatpush.msrb.mxu3 %v4803_v48  ;;  %4830 = vmatpush.msra.mxu0 %v4794_v53 }
 0xde4   :  { %4523 = vmatmul.f32.vlgmr.msra.gmra.mxu1 %v9410_v32 }
 0xde5   :  { %4833 = vmatpush.msra.mxu0 %v4800_v46  ;;  %4860 = vmatpush.msra.mxu1 %v4758_v15 }
 0xde7   :  { %4862 = vmatpush.msra.mxu1 %v4760_v55 }
 0xde8   :  { %4430 = vmatmul.f32.vlgmr.msrb.gmra.mxu2 %v9410_v32  ;;  %4460 = vmatmul.f32.gmra.mxu3 %v4312_v30 }
 0xde9   :  { %4759 = vmatpush.msrb.mxu2 %v4758_v15 }
 0xdea   :  { %4497 = vmatmul.f32.gmra.mxu0 %v4316_v47 }
 0xdeb   :  { %4761 = vmatpush.msrb.mxu2 %v4760_v55 }
 0xdec   :  { %4527 = vmatmul.f32.gmra.mxu1 %v4312_v30 }
 0xdf0   :  { %4434 = vmatmul.f32.gmra.mxu2 %v4312_v30  ;;  %4580 = vmatmul.f32.vlgmr.msra.gmra.mxu3 %v4306_v8 }
 0xdf1   :  { %4922 = vmatpush.msra.mxu3 %v4758_v15 }
 0xdf2   :  { %4610 = vmatmul.f32.vlgmr.msrb.gmra.mxu0 %v9410_v32 }
 0xdf3   :  { %4924 = vmatpush.msra.mxu3 %v4760_v55  ;;  %4949 = vmatpush.msrb.mxu0 %v4948_v1 }
 0xdf4   :  { %4636 = vmatmul.f32.vlgmr.msrb.gmra.mxu1 %v9410_v32 }
 0xdf5   :  { %4951 = vmatpush.msrb.mxu0 %v4950_v51  ;;  %4988 = vmatpush.msrb.mxu1 %v4987_v60 }
 0xdf7   :  { %4994 = vmatpush.msrb.mxu1 %v4993_v14 }
 0xdf8   :  { %4551 = vmatmul.f32.vlgmr.msra.gmra.mxu2 %v9413_v26  ;;  %4586 = vmatmul.f32.gmra.mxu3 %v4314_v33 }
 0xdf9   :  { %4893 = vmatpush.msra.mxu2 %v4795_v4 }
 0xdfa   :  { %4614 = vmatmul.f32.gmra.mxu0 %v4312_v30 }
 0xdfb   :  { %4897 = vmatpush.msra.mxu2 %v4801_v35 }
 0xdfc   :  { %4640 = vmatmul.f32.gmra.mxu1 %v4312_v30 }
 0xe00   :  { %4556 = vmatmul.f32.gmra.mxu2 %v4313_v63  ;;  %4806 = vmatmul.f32.vlgmr.msrb.gmra.mxu3 %v9361_v31 }
 0xe01   :  { %5050 = vmatpush.msrb.mxu3 %v4948_v1 }
 0xe02   :  { %4836 = vmatmul.f32.vlgmr.msra.gmra.mxu0 %v9367_v36 }
 0xe03   :  { %5052 = vmatpush.msrb.mxu3 %v4950_v51  ;;  %5083 = vmatpush.msra.mxu0 %v4985_v44 }
 0xe04   :  { %4866 = vmatmul.f32.vlgmr.msra.gmra.mxu1 %v9371_v10 }
 0xe05   :  { %5087 = vmatpush.msra.mxu0 %v4991_v57  ;;  %5112 = vmatpush.msra.mxu1 %v4948_v1  ;;  %v9506_v1 = vperm.slane %v9400_v54, 4 }
 0xe07   :  { %5114 = vmatpush.msra.mxu1 %v4950_v51 }
 0xe08   :  { %4767 = vmatmul.f32.vlgmr.msrb.gmra.mxu2 %v9379_v37  ;;  %4810 = vmatmul.f32.gmra.mxu3 %v9363_v27 }
 0xe09   :  { %5020 = vmatpush.msrb.mxu2 %v4984_v52 }
 0xe0a   :  { %4841 = vmatmul.f32.gmra.mxu0 %v9374_v23 }
 0xe0b   :  { %5023 = vmatpush.msrb.mxu2 %v4990_v50 }
 0xe0c   :  { %4872 = vmatmul.f32.gmra.mxu1 %v9382_v45 }
 0xe10   :  { %4775 = vmatmul.f32.gmra.mxu2 %v9390_v29  ;;  %4926 = vmatmul.f32.vlgmr.msra.gmra.mxu3 %v9361_v31 }
 0xe12   :  { %4957 = vmatmul.f32.vlgmr.msrb.gmra.mxu0 %v9379_v37 }
 0xe14   :  { %4996 = vmatmul.f32.vlgmr.msrb.gmra.mxu1 %v9361_v31 }
 0xe18   :  { %4899 = vmatmul.f32.vlgmr.msra.gmra.mxu2 %v9361_v31  ;;  %4930 = vmatmul.f32.gmra.mxu3 %v9363_v27 }
 0xe1a   :  { %4965 = vmatmul.f32.gmra.mxu0 %v9390_v29 }
 0xe1c   :  { %5000 = vmatmul.f32.gmra.mxu1 %v9363_v27 }
 0xe20   :  { %4903 = vmatmul.f32.gmra.mxu2 %v9363_v27  ;;  %5056 = vmatmul.f32.vlgmr.msrb.gmra.mxu3 %v9371_v10 }
 0xe22   :  { %5089 = vmatmul.f32.vlgmr.msra.gmra.mxu0 %v9361_v31 }
 0xe24   :  { %5116 = vmatmul.f32.vlgmr.msra.gmra.mxu1 %v9361_v31 }
 0xe28   :  { %5026 = vmatmul.f32.vlgmr.msrb.gmra.mxu2 %v9367_v36  ;;  %5062 = vmatmul.f32.gmra.mxu3 %v9382_v45 }
 0xe2a   :  { %5093 = vmatmul.f32.gmra.mxu0 %v9363_v27 }
 0xe2c   :  { %5120 = vmatmul.f32.gmra.mxu1 %v9363_v27 }
 0xe30   :  { %5031 = vmatmul.f32.gmra.mxu2 %v9374_v23 }
 0xe4f   :  { %v9462_v37 = vpop.f32.mrf.mxu0 }
 0xe51   :  { %v9464_v29 = vpop.f32.mrf.mxu1 }
 0xe53   :  { %v4344_v0 = vpop.f32.mrf.mxu3 }
 0xe57   :  { %v9466_v10 = vpop.f32.mrf.mxu0 }
 0xe59   :  { %v9468_v2 = vpop.f32.mrf.mxu1 }
 0xe5b   :  { %v4310_v31 = vpop.f32.mrf.mxu2  ;;  %v9470_v6 = vpop.f32.mrf.mxu3 }
 0xe5c   :  { %v4311_v57 = vadd.f32 %v4310_v31, %v9506_v1 }
 0xe5f   :  { %v4490_v36 = vpop.f32.mrf.mxu0 }
 0xe60   :  { %v4491_v44 = vadd.f32 %v4490_v36, %v9506_v1 }
 0xe61   :  { %v4524_v45 = vpop.f32.mrf.mxu1 }
 0xe63   :  { %v9472_v58 = vpop.f32.mrf.mxu2  ;;  %v9474_v13 = vpop.f32.mrf.mxu3 }
 0xe67   :  { %v9476_v27 = vpop.f32.mrf.mxu0 }
 0xe69   :  { %v9478_v23 = vpop.f32.mrf.mxu1 }
 0xe6b   :  { %v9480_v16 = vpop.f32.mrf.mxu2  ;;  %v9482_v17 = vpop.f32.mrf.mxu3 }
 0xe6f   :  { %v9484_v18 = vpop.f32.mrf.mxu0 }
 0xe71   :  { %v9490_v32 = vpop.f32.mrf.mxu1 }
 0xe73   :  { %v9486_v21 = vpop.f32.mrf.mxu2  ;;  %v9488_v62 = vpop.f32.mrf.mxu3 }
 0xe77   :  { %v9494_v24 = vpop.f32.mrf.mxu0 }
 0xe79   :  { %v9496_v28 = vpop.f32.mrf.mxu1 }
 0xe7b   :  { %v4552_v5 = vpop.f32.mrf.mxu2  ;;  %v9492_v26 = vpop.f32.mrf.mxu3 }
 0xe7f   :  { %v4837_v11 = vpop.f32.mrf.mxu0 }
 0xe81   :  { %v4867_v42 = vpop.f32.mrf.mxu1 }
 0xe83   :  { %v9498_v43 = vpop.f32.mrf.mxu2  ;;  %v4807_v8 = vpop.f32.mrf.mxu3 }
 0xe87   :  { %v4842_v22 = vpop.f32.mrf.mxu0 }
 0xe89   :  { %v4873_v25 = vpop.f32.mrf.mxu1 }
 0xe8b   :  { %v4768_v9 = vpop.f32.mrf.mxu2  ;;  %v4811_v15 = vpop.f32.mrf.mxu3 }
 0xe8c   :  { %v4769_v4 = vadd.f32 %v8331_v39, %v4768_v9  ;;  %v4525_v9 = vadd.f32 %v4524_v45, %v4491_v44 }
 0xe8e   :  { %v4808_v33 = vadd.f32 %v4807_v8, %v4769_v4  ;;  %v4553_v54 = vadd.f32 %v4552_v5, %v4525_v9 }
 0xe8f   :  { %v4958_v55 = vpop.f32.mrf.mxu0 }
 0xe90   :  { %v4838_v38 = vadd.f32 %v4837_v11, %v4808_v33  ;;  %v4959_v41 = vadd.f32 %v8331_v39, %v4958_v55  ;;  %v4345_v55 = vadd.f32 %v4344_v0, %v4311_v57 }
 0xe91   :  { %v4997_v46 = vpop.f32.mrf.mxu1 }
 0xe92   :  { %v4868_v49 = vadd.f32 %v4867_v42, %v4838_v38  ;;  %v4998_v20 = vadd.f32 %v4997_v46, %v4959_v41 }
 0xe93   :  { %v4776_v30 = vpop.f32.mrf.mxu2  ;;  %v4927_v53 = vpop.f32.mrf.mxu3 }
 0xe94   :  { %v4777_v47 = vadd.f32 %v8331_v39, %v4776_v30 }
 0xe96   :  { %v4812_v52 = vadd.f32 %v4811_v15, %v4777_v47 }
 0xe97   :  { %v4966_v40 = vpop.f32.mrf.mxu0 }
 0xe98   :  { %v4967_v60 = vadd.f32 %v8331_v39, %v4966_v40  ;;  %v4843_v8 = vadd.f32 %v4842_v22, %v4812_v52 }
 0xe99   :  { %v5001_v48 = vpop.f32.mrf.mxu1 }
 0xe9a   :  { %v5002_v46 = vadd.f32 %v5001_v48, %v4967_v60 }
 0xe9b   :  { %v4900_v63 = vpop.f32.mrf.mxu2  ;;  %v9503_v34 = vpop.f32.mrf.mxu3 }
 0xe9c   :  { %v4901_v51 = vadd.f32 %v4900_v63, %v4868_v49  ;;  %v4874_v63 = vadd.f32 %v4873_v25, %v4843_v8 }
 0xe9e   :  { %v4928_v14 = vadd.f32 %v4927_v53, %v4901_v51 }
 0xe9f   :  { %v5090_v30 = vpop.f32.mrf.mxu0 }
 0xea0   :  { %v5126_v15 = vrot.slane %v4928_v14, 1  ;;  %v5127_v36 = vrot.slane %v4928_v14, 2  ;;  %v5128_v38 = vrot.slane %v4928_v14, 3  ;;  %v5129_v41 = vrot.slane %v4928_v14, 4 }
 0xea1   :  { %v5117_v4 = vpop.f32.mrf.mxu1  ;;  %v5130_v47 = vrot.slane %v4928_v14, 5 }
 0xea3   :  { %v4904_v35 = vpop.f32.mrf.mxu2  ;;  %v5057_v59 = vpop.f32.mrf.mxu3 }
 0xea4   :  { %v4905_v44 = vadd.f32 %v4904_v35, %v4874_v63  ;;  %v4373_v63 = vadd.f32 %v9462_v37, %v4345_v55  ;;  %v4499_v55 = vadd.f32 %v9476_v27, %v9506_v1 }
 0xeab   :  { %v5027_v50 = vpop.f32.mrf.mxu2 }
 0xeac   :  { %v5028_v56 = vadd.f32 %v5027_v50, %v4998_v20 }
 0xeae   :  { %v5058_v11 = vadd.f32 %v5057_v59, %v5028_v56 }
 0xeb0   :  { %v5091_v42 = vadd.f32 %v5090_v30, %v5058_v11  ;;  %v5131_v11 = vrot.slane %v4928_v14, 6 }
 0xeb2   :  { %v5118_v33 = vadd.f32 %v5117_v4, %v5091_v42  ;;  %v5132_v42 = vrot.slane %v4928_v14, 7  ;;  %v5063_v4 = vpop.f32.mrf.mxu3 }
 0xeb3   :  { %v5032_v48 = vpop.f32.mrf.mxu2 }
 0xeb4   :  { %v5156_v31 = vrot.slane %v5118_v33, 1  ;;  %v5157_v49 = vrot.slane %v5118_v33, 2  ;;  %v5158_v39 = vrot.slane %v5118_v33, 3  ;;  %v5159_v53 = vrot.slane %v5118_v33, 4 }
 0xeb5   :  { %v5160_v22 = vrot.slane %v5118_v33, 5  ;;  %v5161_v40 = vrot.slane %v5118_v33, 6  ;;  %v5162_v45 = vrot.slane %v5118_v33, 7  ;;  %v5170_v20 = vperm.slane %v5118_v33, 0 }
 0xeb6   :  { %v5171_v52 = vperm.slane %v5156_v31, 0  ;;  %v5172_v0 = vperm.slane %v5157_v49, 0  ;;  %v5173_v5 = vperm.slane %v5158_v39, 0  ;;  %v5174_v51 = vperm.slane %v5159_v53, 0  ;;  %v5094_v31 = vpop.f32.mrf.mxu0 }
 0xeb7   :  { %v5175_v25 = vperm.slane %v5160_v22, 0  ;;  %v5176_v50 = vperm.slane %v5161_v40, 0  ;;  %v5202_v56 = vsel %vm397_vm3, %v4928_v14, %v5170_v20  ;;  %v5177_v57 = vperm.slane %v5162_v45, 0 }
 0xeb8   :  { %v5203_v59 = vsel %vm397_vm3, %v5126_v15, %v5171_v52  ;;  %v5204_v60 = vsel %vm397_vm3, %v5127_v36, %v5172_v0  ;;  %v5205_v8 = vsel %vm397_vm3, %v5128_v38, %v5173_v5  ;;  %5234 = vst [vmem:[#allocation1] ss:$4 sm:$0xff] %v5202_v56  ;;  %v5206_v9 = vsel %vm397_vm3, %v5129_v41, %v5174_v51 }
 0xeb9   :  { %5236 = vst [vmem:[#allocation1 + $0x1] ss:$4 sm:$0xff] %v5203_v59  ;;  %v5033_v30 = vadd.f32 %v5032_v48, %v5002_v46  ;;  %v5207_v35 = vsel %vm397_vm3, %v5130_v47, %v5175_v25  ;;  %v5208_v33 = vsel %vm397_vm3, %v5131_v11, %v5176_v50  ;;  %v4582_v36 = vadd.f32 %v9488_v62, %v4553_v54  ;;  %v5121_v46 = vpop.f32.mrf.mxu1 }
 0xeba   :  { %5238 = vst [vmem:[#allocation1 + $0x2] ss:$4 sm:$0xff] %v5204_v60  ;;  %v4932_v38 = vadd.f32 %v9503_v34, %v4905_v44  ;;  %v5209_v41 = vsel %vm397_vm3, %v5132_v42, %v5177_v57  ;;  %v4402_v47 = vadd.f32 %v9464_v29, %v4373_v63  ;;  %v4529_v60 = vadd.f32 %v9478_v23, %v4499_v55 }
 0xebb   :  { %5240 = vst [vmem:[#allocation1 + $0x3] ss:$4 sm:$0xff] %v5205_v8  ;;  %v5064_v15 = vadd.f32 %v5063_v4, %v5033_v30  ;;  %v4612_v49 = vadd.f32 %v9484_v18, %v4582_v36  ;;  %v4319_v30 = vadd.f32 %v9472_v58, %v9506_v1 }
 0xebc   :  { %5242 = vst [vmem:[#allocation1 + $0x20] ss:$4 sm:$0xff] %v5206_v9  ;;  %v5133_v62 = vrot.slane %v4932_v38, 1  ;;  %v5136_v54 = vrot.slane %v4932_v38, 4  ;;  %v5137_v0 = vrot.slane %v4932_v38, 5  ;;  %v5138_v5 = vrot.slane %v4932_v38, 6 }
 0xebd   :  { %5244 = vst [vmem:[#allocation1 + $0x21] ss:$4 sm:$0xff] %v5207_v35  ;;  %v5095_v14 = vadd.f32 %v5094_v31, %v5064_v15  ;;  %v9526_v48 = vadd.f32 %v9490_v32, %v4612_v49  ;;  %v5139_v50 = vrot.slane %v4932_v38, 7  ;;  %v4432_v42 = vadd.f32 %v9480_v16, %v4402_v47 }
 0xebe   :  { %5246 = vst [vmem:[#allocation1 + $0x22] ss:$4 sm:$0xff] %v5208_v33  ;;  %v5134_v35 = vrot.slane %v4932_v38, 2  ;;  %v4558_v23 = vadd.f32 %v9498_v43, %v4529_v60  ;;  %v5135_v63 = vrot.slane %v4932_v38, 3  ;;  %v4349_v1 = vadd.f32 %v9470_v6, %v4319_v30 }
 0xebf   :  { %5248 = vst [vmem:[#allocation1 + $0x23] ss:$4 sm:$0xff] %v5209_v41  ;;  %v5122_v37 = vadd.f32 %v5121_v46, %v5095_v14  ;;  %v4679_v15 = vrot.slane %v9526_v48, 4  ;;  %v4680_v58 = vrot.slane %v9526_v48, 5  ;;  %v4458_v31 = vadd.f32 %v9474_v13, %v4432_v42 }
 0xec0   :  { %v4681_v43 = vrot.slane %v9526_v48, 6  ;;  %v4676_v41 = vrot.slane %v9526_v48, 1  ;;  %v4677_v46 = vrot.slane %v9526_v48, 2  ;;  %v4378_v55 = vadd.f32 %v9466_v10, %v4349_v1 }
 0xec1   :  { %v5163_v34 = vrot.slane %v5122_v37, 1  ;;  %v5164_v39 = vrot.slane %v5122_v37, 2  ;;  %v5165_v53 = vrot.slane %v5122_v37, 3  ;;  %v5166_v22 = vrot.slane %v5122_v37, 4 }
 0xec2   :  { %v5167_v40 = vrot.slane %v5122_v37, 5  ;;  %v5168_v45 = vrot.slane %v5122_v37, 6  ;;  %v5169_v20 = vrot.slane %v5122_v37, 7  ;;  %v5178_v52 = vperm.slane %v5122_v37, 0 }
 0xec3   :  { %v5179_v29 = vperm.slane %v5163_v34, 0  ;;  %v5182_v51 = vperm.slane %v5166_v22, 0  ;;  %v5249_v25 = vld.sshfl [vmem:[#allocation1] sm:$0xff pattern:$0x73625140]  ;;  %v5180_v56 = vperm.slane %v5164_v39, 0 }
 0xec4   :  { %v5183_v27 = vperm.slane %v5167_v40, 0  ;;  %v5184_v44 = vperm.slane %v5168_v45, 0  ;;  %v5185_v18 = vperm.slane %v5169_v20, 0  ;;  %v5210_v57 = vsel %vm397_vm3, %v4932_v38, %v5178_v52  ;;  %5261 = vrot.lane.b32.xlu0 %v5249_v25, %s8356_s13 }
 0xec5   :  { %v5214_v59 = vsel %vm397_vm3, %v5136_v54, %v5182_v51  ;;  %v5181_v8 = vperm.slane %v5165_v53, 0  ;;  %5251 = vst [vmem:[#allocation1] ss:$4 sm:$0xff] %v5210_v57  ;;  %v5211_v33 = vsel %vm397_vm3, %v5133_v62, %v5179_v29  ;;  %v5212_v36 = vsel %vm397_vm3, %v5134_v35, %v5180_v56 }
 0xec6   :  { %v5215_v11 = vsel %vm397_vm3, %v5137_v0, %v5183_v27  ;;  %v5216_v32 = vsel %vm397_vm3, %v5138_v5, %v5184_v44  ;;  %v5250_v9 = vld.sshfl [vmem:[#allocation1 + $0x20] sm:$0xff pattern:$0x73625140]  ;;  %v5217_v4 = vsel %vm397_vm3, %v5139_v50, %v5185_v18  ;;  %5252 = vst [vmem:[#allocation1 + $0x1] ss:$4 sm:$0xff] %v5211_v33  ;;  %v4588_v38 = vadd.f32 %v9492_v26, %v4558_v23 }
 0xec7   :  { %5263 = vrot.lane.b32.xlu1 %v5250_v9, %s8356_s13  ;;  %5255 = vst [vmem:[#allocation1 + $0x20] ss:$4 sm:$0xff] %v5214_v59  ;;  %v5213_v16 = vsel %vm397_vm3, %v5135_v63, %v5181_v8  ;;  %v4694_v14 = vperm.slane %v4679_v15, 0  ;;  %v4695_v47 = vperm.slane %v4680_v58, 0  ;;  %v4649_v37 = vrot.slane %v4458_v31, 4 }
 0xec8   :  { %5256 = vst [vmem:[#allocation1 + $0x21] ss:$4 sm:$0xff] %v5215_v11  ;;  %v4678_v6 = vrot.slane %v9526_v48, 3  ;;  %v4696_v49 = vperm.slane %v4681_v43, 0  ;;  %v4650_v13 = vrot.slane %v4458_v31, 5  ;;  %v4682_v62 = vrot.slane %v9526_v48, 7 }
 0xec9   :  { %5257 = vst [vmem:[#allocation1 + $0x22] ss:$4 sm:$0xff] %v5216_v32  ;;  %v4690_v54 = vperm.slane %v9526_v48, 0  ;;  %v4616_v26 = vadd.f32 %v9494_v24, %v4588_v38  ;;  %v4651_v34 = vrot.slane %v4458_v31, 6  ;;  %v4691_v39 = vperm.slane %v4676_v41, 0 }
 0xeca   :  { %5258 = vst [vmem:[#allocation1 + $0x23] ss:$4 sm:$0xff] %v5217_v4  ;;  %v4726_v22 = vsel %vm397_vm3, %v4649_v37, %v4694_v14  ;;  %v4692_v40 = vperm.slane %v4677_v46, 0  ;;  %v4727_v10 = vsel %vm397_vm3, %v4650_v13, %v4695_v47  ;;  %v4646_v45 = vrot.slane %v4458_v31, 1 }
 0xecb   :  { %5253 = vst [vmem:[#allocation1 + $0x2] ss:$4 sm:$0xff] %v5212_v36  ;;  %v4647_v20 = vrot.slane %v4458_v31, 2  ;;  %v4693_v52 = vperm.slane %v4678_v6, 0  ;;  %v4728_v0 = vsel %vm397_vm3, %v4651_v34, %v4696_v49  ;;  %v4408_v5 = vadd.f32 %v9468_v2, %v4378_v55 }
 0xecc   :  { %5254 = vst [vmem:[#allocation1 + $0x3] ss:$4 sm:$0xff] %v5213_v16  ;;  %v4697_v24 = vperm.slane %v4682_v62, 0  ;;  %v4722_v29 = vsel %vm397_vm3, %v4458_v31, %v4690_v54  ;;  %v4642_v51 = vadd.f32 %v9496_v28, %v4616_v26  ;;  %v4648_v27 = vrot.slane %v4458_v31, 3 }
 0xecd   :  { %v4723_v44 = vsel %vm397_vm3, %v4646_v45, %v4691_v39  ;;  %v4652_v18 = vrot.slane %v4458_v31, 7  ;;  %v4436_v25 = vadd.f32 %v9486_v21, %v4408_v5  ;;  %v4724_v50 = vsel %vm397_vm3, %v4647_v20, %v4692_v40 }
 0xece   :  { %v4725_v2 = vsel %vm397_vm3, %v4648_v27, %v4693_v52  ;;  %v4686_v56 = vrot.slane %v4642_v51, 4  ;;  %v4687_v57 = vrot.slane %v4642_v51, 5  ;;  %v4688_v60 = vrot.slane %v4642_v51, 6 }
 0xecf   :  { %v4729_v28 = vsel %vm397_vm3, %v4652_v18, %v4697_v24  ;;  %v4462_v59 = vadd.f32 %v9482_v17, %v4436_v25  ;;  %v4698_v8 = vperm.slane %v4642_v51, 0  ;;  %v4689_v11 = vrot.slane %v4642_v51, 7 }
 0xed0   :  { %v4683_v32 = vrot.slane %v4642_v51, 1  ;;  %v4702_v9 = vperm.slane %v4686_v56, 0  ;;  %v4684_v21 = vrot.slane %v4642_v51, 2  ;;  %v4703_v30 = vperm.slane %v4687_v57, 0 }
 0xed1   :  { %v5260_v53 = vld.sshfl [vmem:[#allocation1 + $0x20] sm:$0xff pattern:$0x73625140]  ;;  %v4656_v42 = vrot.slane %v4462_v59, 4  ;;  %v4685_v35 = vrot.slane %v4642_v51, 3  ;;  %v4704_v4 = vperm.slane %v4688_v60, 0  ;;  %v4730_v33 = vsel %vm397_vm3, %v4462_v59, %v4698_v8 }
 0xed2   :  { %5267 = vrot.lane.b32.xlu0 %v5260_v53, %s8356_s13  ;;  %7253 = vst [vmem:[#allocation1 + $0x20] ss:$4 sm:$0xff] %v4726_v22  ;;  %v4657_v23 = vrot.slane %v4462_v59, 5  ;;  %v4658_v63 = vrot.slane %v4462_v59, 6  ;;  %v4705_v15 = vperm.slane %v4689_v11, 0  ;;  %v4699_v58 = vperm.slane %v4683_v32, 0 }
 0xed3   :  { %7255 = vst [vmem:[#allocation1 + $0x21] ss:$4 sm:$0xff] %v4727_v10  ;;  %v5259_v48 = vld.sshfl [vmem:[#allocation1] sm:$0xff pattern:$0x73625140]  ;;  %v4734_v17 = vsel %vm397_vm3, %v4656_v42, %v4702_v9  ;;  %v4659_v1 = vrot.slane %v4462_v59, 7 }
 0xed4   :  { %7257 = vst [vmem:[#allocation1 + $0x22] ss:$4 sm:$0xff] %v4728_v0  ;;  %5265 = vrot.lane.b32.xlu2 %v5259_v48, %s8356_s13  ;;  %v4700_v31 = vperm.slane %v4684_v21, 0  ;;  %v4735_v43 = vsel %vm397_vm3, %v4657_v23, %v4703_v30  ;;  %v4653_v38 = vrot.slane %v4462_v59, 1  ;;  %v4701_v41 = vperm.slane %v4685_v35, 0  ;;  %v5282_v21 = vld [vmem:[%s10135_s1 + $0x260] sm:$0xff] }
 0xed5   :  { %7245 = vst [vmem:[#allocation1] ss:$4 sm:$0xff] %v4722_v29  ;;  %v4736_v14 = vsel %vm397_vm3, %v4658_v63, %v4704_v4  ;;  %v4654_v46 = vrot.slane %v4462_v59, 2  ;;  %v4737_v47 = vsel %vm397_vm3, %v4659_v1, %v4705_v15  ;;  %v4655_v37 = vrot.slane %v4462_v59, 3  ;;  %v5281_v42 = vld [vmem:[%s10135_s1 + $0x258] sm:$0xff]  ;;  %v5280_v35 = vld [vmem:[%s10135_s1 + $0x250] sm:$0xff] }
 0xed6   :  { %7247 = vst [vmem:[#allocation1 + $0x1] ss:$4 sm:$0xff] %v4723_v44  ;;  %v4731_v55 = vsel %vm397_vm3, %v4653_v38, %v4699_v58  ;;  %v5382_v30 = vand.u32 4294901760, %v5282_v21  ;;  %v5384_v23 = vand.u32 4294901760, %v5281_v42  ;;  %v5386_v63 = vand.u32 4294901760, %v5280_v35 }
 0xed7   :  { %7249 = vst [vmem:[#allocation1 + $0x2] ss:$4 sm:$0xff] %v4724_v50  ;;  %v4732_v6 = vsel %vm397_vm3, %v4654_v46, %v4700_v31  ;;  %v4733_v49 = vsel %vm397_vm3, %v4655_v37, %v4701_v41  ;;  %v5278_v41 = vld [vmem:[%s10135_s1 + $0x240] sm:$0xff] }
 0xed8   :  { %7251 = vst [vmem:[#allocation1 + $0x3] ss:$4 sm:$0xff] %v4725_v2  ;;  %v5438_v4 = vsub.f32 %v5282_v21, %v5382_v30  ;;  %5383 = vmatpush.msra.mxu2 %v5382_v30  ;;  %5550 = vmatpush.msrb.mxu1 %v5382_v30  ;;  %v5444_v15 = vsub.f32 %v5281_v42, %v5384_v23 }
 0xed9   :  { %7259 = vst [vmem:[#allocation1 + $0x23] ss:$4 sm:$0xff] %v4729_v28  ;;  %v5450_v58 = vsub.f32 %v5280_v35, %v5386_v63 }
 0xeda   :  { %5502 = vmatpush.msrb.mxu0 %v5438_v4  ;;  %5552 = vmatpush.msrb.mxu1 %v5384_v23  ;;  %v5445_v31 = vand.u32 4294901760, %v5444_v15 }
 0xedb   :  { %5385 = vmatpush.msra.mxu2 %v5384_v23 }
 0xedc   :  { %5505 = vmatpush.msrb.mxu0 %v5444_v15  ;;  %5554 = vmatpush.msrb.mxu1 %v5386_v63  ;;  %v5446_v46 = vsub.f32 %v5444_v15, %v5445_v31 }
 0xedd   :  { %5387 = vmatpush.msra.mxu2 %v5386_v63 }
 0xede   :  { %5508 = vmatpush.msrb.mxu0 %v5450_v58 }
 0xedf   :  { %v9571_v36 = vld.sshfl [vmem:[#allocation1] sm:$0xff pattern:$0x73625140] }
 0xee0   :  { %v9574_v16 = vld.sshfl [vmem:[#allocation1 + $0x20] sm:$0xff pattern:$0x73625140]  ;;  %7433 = vst [vmem:[#allocation1] ss:$4 sm:$0xff] %v4730_v33  ;;  %v5439_v33 = vand.u32 4294901760, %v5438_v4 }
 0xee1   :  { %7441 = vst [vmem:[#allocation1 + $0x20] ss:$4 sm:$0xff] %v4734_v17  ;;  %v5279_v17 = vld [vmem:[%s10135_s1 + $0x248] sm:$0xff] }
 0xee2   :  { %7443 = vst [vmem:[#allocation1 + $0x21] ss:$4 sm:$0xff] %v4735_v43  ;;  %v5440_v1 = vsub.f32 %v5438_v4, %v5439_v33  ;;  %v5451_v43 = vand.u32 4294901760, %v5450_v58  ;;  %v5388_v38 = vand.u32 4294901760, %v5279_v17 }
 0xee3   :  { %7445 = vst [vmem:[#allocation1 + $0x22] ss:$4 sm:$0xff] %v4736_v14 }
 0xee4   :  { %7447 = vst [vmem:[#allocation1 + $0x23] ss:$4 sm:$0xff] %v4737_v47  ;;  %v5441_v14 = vand.u32 4294901760, %v5440_v1  ;;  %v5452_v47 = vsub.f32 %v5450_v58, %v5451_v43  ;;  %v5456_v37 = vsub.f32 %v5279_v17, %v5388_v38  ;;  %5556 = vmatpush.msrb.mxu1 %v5388_v38  ;;  %5389 = vmatpush.msra.mxu2 %v5388_v38 }
 0xee5   :  { %7435 = vst [vmem:[#allocation1 + $0x1] ss:$4 sm:$0xff] %v4731_v55  ;;  %v5390_v55 = vand.u32 4294901760, %v5278_v41 }
 0xee6   :  { %7437 = vst [vmem:[#allocation1 + $0x2] ss:$4 sm:$0xff] %v4732_v6  ;;  %v5277_v6 = vld [vmem:[%s10135_s1 + $0x238] sm:$0xff]  ;;  %5442 = vmatpush.msra.mxu3 %v5441_v14  ;;  %5511 = vmatpush.msrb.mxu0 %v5456_v37 }
 0xee7   :  { %7439 = vst [vmem:[#allocation1 + $0x3] ss:$4 sm:$0xff] %v4733_v49  ;;  %v5447_v49 = vand.u32 4294901760, %v5446_v46  ;;  %5558 = vmatpush.msrb.mxu1 %v5390_v55  ;;  %5391 = vmatpush.msra.mxu2 %v5390_v55 }
 0xee9   :  { %5448 = vmatpush.msra.mxu3 %v5447_v49 }
 0xf2e   :  { %v5266_v39 = vpop.permute.xlu2 %5265 }
 0xf36   :  { %v5262_v13 = vpop.permute.xlu0 %5261 }
 0xf37   :  { %v5273_v62 = vsel %vm469_vm8, %v8570_v7, %v5262_v13  ;;  %v5275_v7 = vsel %vm469_vm8, %v8566_v61, %v5266_v39  ;;  %v5453_v13 = vand.u32 4294901760, %v5452_v47 }
 0xf38   :  { %v5288_v26 = vrot.slane %v5273_v62, 7  ;;  %v5291_v51 = vrot.slane %v5275_v7, 7  ;;  %v5457_v62 = vand.u32 4294901760, %v5456_v37 }
 0xf39   :  { %v5264_v54 = vpop.permute.xlu1 %5263  ;;  %5454 = vmatpush.msra.mxu3 %v5453_v13 }
 0xf3a   :  { %v5274_v34 = vsel %vm469_vm8, %v8572_v19, %v5264_v54  ;;  %v9587_v22 = vsel %vm397_vm3, 0.0, %v5288_v26  ;;  %v9606_v27 = vsel %vm397_vm3, 0.0, %v5291_v51  ;;  %v5392_v54 = vand.u32 4294901760, %v5277_v6 }
 0xf3b   :  { %v5289_v53 = vrot.slane %v5274_v34, 7  ;;  %v5308_v40 = vrot.slane %v9587_v22, 1  ;;  %v5330_v10 = vrot.slane %v9587_v22, 2  ;;  %v5335_v2 = vrot.slane %v9606_v27, 2 }
 0xf3c   :  { %v5313_v57 = vrot.slane %v9606_v27, 1  ;;  %v5458_v34 = vsub.f32 %v5456_v37, %v5457_v62  ;;  %v5468_v39 = vsub.f32 %v5277_v6, %v5392_v54  ;;  %5560 = vmatpush.msrb.mxu1 %v5392_v54  ;;  %5393 = vmatpush.msra.mxu2 %v5392_v54 }
 0xf3d   :  { %v5302_v45 = vsel %vm397_vm3, %v5289_v53, 0.0  ;;  %v9593_v20 = vsel %vm397_vm3, %v5288_v26, %v5289_v53  ;;  %v5462_v26 = vsub.f32 %v5278_v41, %v5390_v55 }
 0xf3e   :  { %v5311_v52 = vrot.slane %v5302_v45, 1  ;;  %v5309_v19 = vrot.slane %v9593_v20, 1  ;;  %v5331_v0 = vrot.slane %v9593_v20, 2  ;;  %v5333_v48 = vrot.slane %v5302_v45, 2  ;;  %5599 = vmatpush.msrb.mxu2 %v5439_v33 }
 0xf3f   :  { %v5463_v53 = vand.u32 4294901760, %v5462_v26  ;;  %5514 = vmatpush.msrb.mxu0 %v5462_v26 }
 0xf40   :  { %v5312_v5 = vsel %vm418_vm4, %v5309_v19, %v5311_v52  ;;  %v5310_v24 = vsel %vm418_vm4, %v5308_v40, %v5309_v19  ;;  %v5332_v29 = vsel %vm441_vm5, %v5330_v10, %v5331_v0  ;;  %v5334_v50 = vsel %vm441_vm5, %v5331_v0, %v5333_v48  ;;  %5603 = vmatpush.msrb.mxu2 %v5445_v31 }
 0xf41   :  { %5320 = vrot.lane.b32.xlu0 %v5312_v5, %s8357_s18  ;;  %5318 = vrot.lane.b32.xlu1 %v5310_v24, %s8357_s18  ;;  %v5459_v40 = vand.u32 4294901760, %v5458_v34  ;;  %v5469_v10 = vand.u32 4294901760, %v5468_v39  ;;  %v5464_v45 = vsub.f32 %v5462_v26, %v5463_v53 }
 0xf42   :  { %5340 = vrot.lane.b32.xlu2 %v5332_v29, %s8358_s7  ;;  %5517 = vmatpush.msrb.mxu0 %v5468_v39 }
 0xf43   :  { %5460 = vmatpush.msra.mxu3 %v5459_v40  ;;  %v5470_v7 = vsub.f32 %v5468_v39, %v5469_v10  ;;  %v5465_v52 = vand.u32 4294901760, %v5464_v45  ;;  %5607 = vmatpush.msrb.mxu2 %v5451_v43 }
 0xf44   :  { %v5268_v61 = vpop.permute.xlu0 %5267 }
 0xf45   :  { %v5276_v44 = vsel %vm469_vm8, %v8568_v3, %v5268_v61  ;;  %v5471_v19 = vand.u32 4294901760, %v5470_v7  ;;  %5466 = vmatpush.msra.mxu3 %v5465_v52  ;;  %5611 = vmatpush.msrb.mxu2 %v5457_v62 }
 0xf46   :  { %v5292_v18 = vrot.slane %v5276_v44, 7 }
 0xf47   :  { %5472 = vmatpush.msra.mxu3 %v5471_v19  ;;  %5615 = vmatpush.msrb.mxu2 %v5463_v53 }
 0xf48   :  { %v9611_v25 = vsel %vm397_vm3, %v5291_v51, %v5292_v18  ;;  %v5303_v56 = vsel %vm397_vm3, %v5292_v18, 0.0 }
 0xf49   :  { %5342 = vrot.lane.b32.xlu1 %v5334_v50, %s8358_s7  ;;  %v5336_v28 = vrot.slane %v9611_v25, 2  ;;  %v5314_v59 = vrot.slane %v9611_v25, 1  ;;  %v5316_v8 = vrot.slane %v5303_v56, 1  ;;  %v5338_v11 = vrot.slane %v5303_v56, 2  ;;  %5648 = vmatpush.msrb.mxu3 %v5382_v30 }
 0xf4a   :  { %5619 = vmatpush.msrb.mxu2 %v5469_v10 }
 0xf4b   :  { %v5337_v3 = vsel %vm441_vm5, %v5335_v2, %v5336_v28  ;;  %v5315_v60 = vsel %vm418_vm4, %v5313_v57, %v5314_v59  ;;  %v5317_v32 = vsel %vm418_vm4, %v5314_v59, %v5316_v8  ;;  %v5339_v9 = vsel %vm441_vm5, %v5336_v28, %v5338_v11  ;;  %5650 = vmatpush.msrb.mxu3 %v5384_v23 }
 0xf4c   :  { %5344 = vrot.lane.b32.xlu0 %v5337_v3, %s8358_s7  ;;  %5322 = vrot.lane.b32.xlu2 %v5315_v60, %s8357_s18 }
 0xf4d   :  { %5652 = vmatpush.msrb.mxu3 %v5386_v63 }
 0xf4f   :  { %5654 = vmatpush.msrb.mxu3 %v5388_v38 }
 0xf51   :  { %5324 = vrot.lane.b32.xlu1 %v5317_v32, %s8357_s18  ;;  %5656 = vmatpush.msrb.mxu3 %v5390_v55 }
 0xf53   :  { %5658 = vmatpush.msrb.mxu3 %v5392_v54 }
 0xf54   :  { %5346 = vrot.lane.b32.xlu2 %v5339_v9, %s8358_s7 }
 0xf9c   :  { %v5341_v0 = vpop.permute.xlu2 %5340 }
 0xfa6   :  { %v5323_v18 = vpop.permute.xlu2 %5322 }
 0xfa7   :  { %v5354_v59 = vsel %vm24_vm0, %v9606_v27, %v5323_v18 }
 0xfae   :  { %v5347_v35 = vpop.permute.xlu2 %5346 }
 0xfb3   :  { %v5319_v5 = vpop.permute.xlu1 %5318  ;;  %v5321_v29 = vpop.permute.xlu0 %5320 }
 0xfb4   :  { %v5352_v24 = vsel %vm24_vm0, %v9587_v22, %v5319_v5  ;;  %v5353_v2 = vsel %vm24_vm0, %v9593_v20, %v5321_v29 }
 0xfb5   :  { %v5356_v51 = vsel %vm1758_vm2, %v5352_v24, %v5341_v0 }
 0xfb6   :  { %v5361_v48 = vsel %vm1761_vm10, %v5356_v51, 0 }
 0xfb7   :  { %v5394_v61 = vand.u32 4294901760, %v5361_v48 }
 0xfb9   :  { %v5395_v44 = vsub.f32 %v5361_v48, %v5394_v61  ;;  %5474 = vmatmul.f32.vlgmr.msra.gmra.mxu3 %v5394_v61 }
 0xfbb   :  { %v5396_v50 = vand.u32 4294901760, %v5395_v44  ;;  %v5343_v56 = vpop.permute.xlu1 %5342  ;;  %5520 = vmatmul.f32.vlgmr.msrb.gmra.mxu0 %v5395_v44 }
 0xfbc   :  { %v5357_v28 = vsel %vm1758_vm2, %v5353_v2, %v5343_v56 }
 0xfbd   :  { %v5397_v57 = vsub.f32 %v5395_v44, %v5396_v50  ;;  %v5364_v22 = vsel %vm1761_vm10, %v5357_v28, 0  ;;  %5564 = vmatmul.f32.vlgmr.msrb.gmra.mxu1 %v5396_v50 }
 0xfbe   :  { %v5402_v3 = vand.u32 4294901760, %v5364_v22  ;;  %v5345_v60 = vpop.permute.xlu0 %5344 }
 0xfbf   :  { %v5398_v8 = vand.u32 4294901760, %v5397_v57  ;;  %v5358_v11 = vsel %vm1758_vm2, %v5354_v59, %v5345_v60 }
 0xfc0   :  { %v5403_v32 = vsub.f32 %v5364_v22, %v5402_v3  ;;  %v5367_v9 = vsel %vm1761_vm10, %v5358_v11, 0 }
 0xfc1   :  { %v5410_v20 = vand.u32 4294901760, %v5367_v9  ;;  %5399 = vmatmul.f32.vlgmr.msra.gmra.mxu2 %v5398_v8  ;;  %5478 = vmatmul.f32.gmra.mxu3 %v5402_v3 }
 0xfc2   :  { %v5404_v21 = vand.u32 4294901760, %v5403_v32 }
 0xfc3   :  { %v5411_v30 = vsub.f32 %v5367_v9, %v5410_v20  ;;  %v5325_v42 = vpop.permute.xlu1 %5324  ;;  %5525 = vmatmul.f32.gmra.mxu0 %v5403_v32 }
 0xfc4   :  { %v5355_v4 = vsel %vm24_vm0, %v9611_v25, %v5325_v42  ;;  %v5405_v27 = vsub.f32 %v5403_v32, %v5404_v21 }
 0xfc5   :  { %v5359_v23 = vsel %vm1758_vm2, %v5355_v4, %v5347_v35  ;;  %5570 = vmatmul.f32.gmra.mxu1 %v5404_v21  ;;  %v5412_v58 = vand.u32 4294901760, %v5411_v30 }
 0xfc6   :  { %v5370_v63 = vsel %vm1761_vm10, %v5359_v23, 0  ;;  %v5406_v33 = vand.u32 4294901760, %v5405_v27 }
 0xfc7   :  { %v5418_v15 = vand.u32 4294901760, %v5370_v63  ;;  %v5413_v17 = vsub.f32 %v5411_v30, %v5412_v58 }
 0xfc9   :  { %5407 = vmatmul.f32.gmra.mxu2 %v5406_v33  ;;  %5482 = vmatmul.f32.gmra.mxu3 %v5410_v20  ;;  %v5419_v1 = vsub.f32 %v5370_v63, %v5418_v15  ;;  %v5414_v31 = vand.u32 4294901760, %v5413_v17 }
 0xfcb   :  { %5530 = vmatmul.f32.gmra.mxu0 %v5411_v30  ;;  %v5420_v43 = vand.u32 4294901760, %v5419_v1 }
 0xfcd   :  { %5576 = vmatmul.f32.gmra.mxu1 %v5412_v58  ;;  %v5421_v25 = vsub.f32 %v5419_v1, %v5420_v43 }
 0xfcf   :  { %v5422_v38 = vand.u32 4294901760, %v5421_v25 }
 0xfd1   :  { %5415 = vmatmul.f32.gmra.mxu2 %v5414_v31  ;;  %5486 = vmatmul.f32.gmra.mxu3 %v5418_v15 }
 0xfd3   :  { %5535 = vmatmul.f32.gmra.mxu0 %v5419_v1 }
 0xfd5   :  { %5582 = vmatmul.f32.gmra.mxu1 %v5420_v43 }
 0xfd9   :  { %5423 = vmatmul.f32.gmra.mxu2 %v5422_v38  ;;  %5660 = vmatmul.f32.vlgmr.msrb.gmra.mxu3 %v5394_v61 }
 0xfe1   :  { %5621 = vmatmul.f32.vlgmr.msrb.gmra.mxu2 %v5394_v61  ;;  %5664 = vmatmul.f32.gmra.mxu3 %v5402_v3 }
 0xfe9   :  { %5625 = vmatmul.f32.gmra.mxu2 %v5402_v3  ;;  %5668 = vmatmul.f32.gmra.mxu3 %v5410_v20 }
 0xff1   :  { %5629 = vmatmul.f32.gmra.mxu2 %v5410_v20  ;;  %5672 = vmatmul.f32.gmra.mxu3 %v5418_v15 }
 0xff9   :  { %5633 = vmatmul.f32.gmra.mxu2 %v5418_v15 }
0x1038   :  { %v5521_v49 = vpop.f32.mrf.mxu0 }
0x103a   :  { %v5565_v13 = vpop.f32.mrf.mxu1 }
0x103c   :  { %v5475_v41 = vpop.f32.mrf.mxu3 }
0x1040   :  { %v5526_v26 = vpop.f32.mrf.mxu0 }
0x1042   :  { %v5571_v39 = vpop.f32.mrf.mxu1 }
0x1044   :  { %v5400_v14 = vpop.f32.mrf.mxu2  ;;  %v5479_v46 = vpop.f32.mrf.mxu3 }
0x1045   :  { %v5476_v40 = vadd.f32 %v5475_v41, %v5400_v14 }
0x1047   :  { %v5522_v0 = vadd.f32 %v5521_v49, %v5476_v40 }
0x1048   :  { %v5531_v52 = vpop.f32.mrf.mxu0 }
0x1049   :  { %v5566_v51 = vadd.f32 %v5565_v13, %v5522_v0 }
0x104a   :  { %v5577_v29 = vpop.f32.mrf.mxu1 }
0x104c   :  { %v5408_v47 = vpop.f32.mrf.mxu2  ;;  %v5483_v37 = vpop.f32.mrf.mxu3 }
0x104d   :  { %v5480_v53 = vadd.f32 %v5479_v46, %v5408_v47 }
0x104f   :  { %v5527_v45 = vadd.f32 %v5526_v26, %v5480_v53 }
0x1050   :  { %v5536_v57 = vpop.f32.mrf.mxu0 }
0x1051   :  { %v5572_v24 = vadd.f32 %v5571_v39, %v5527_v45 }
0x1052   :  { %v5583_v8 = vpop.f32.mrf.mxu1 }
0x1054   :  { %v5416_v55 = vpop.f32.mrf.mxu2  ;;  %v5487_v6 = vpop.f32.mrf.mxu3 }
0x1055   :  { %v5484_v7 = vadd.f32 %v5483_v37, %v5416_v55 }
0x1057   :  { %v5532_v5 = vadd.f32 %v5531_v52, %v5484_v7 }
0x1059   :  { %v5578_v18 = vadd.f32 %v5577_v29, %v5532_v5  ;;  %v5283_v29 = vld [vmem:[%s10135_s1 + $0x268] sm:$0x3] }
0x105c   :  { %v5424_v62 = vpop.f32.mrf.mxu2  ;;  %v5661_v54 = vpop.f32.mrf.mxu3 }
0x105d   :  { %v5488_v61 = vadd.f32 %v5487_v6, %v5424_v62 }
0x105f   :  { %v5537_v22 = vadd.f32 %v5536_v57, %v5488_v61 }
0x1061   :  { %v5584_v20 = vadd.f32 %v5583_v8, %v5537_v22 }
0x1064   :  { %v5622_v34 = vpop.f32.mrf.mxu2  ;;  %v5665_v10 = vpop.f32.mrf.mxu3 }
0x1065   :  { %v5623_v44 = vadd.f32 %v5622_v34, %v5566_v51 }
0x1067   :  { %v9664_v59 = vadd.f32 %v5661_v54, %v5623_v44 }
0x1069   :  { %v5690_v11 = vmul.f32 %v9664_v59, %v9664_v59  ;;  %v5676_v30 = vsel %vm469_vm8, %v9664_v59, 0.0 }
0x106b   :  { %v5694_v63 = vsel %vm469_vm8, %v5690_v11, 0.0 }
0x106c   :  { %v5626_v19 = vpop.f32.mrf.mxu2  ;;  %v5669_v50 = vpop.f32.mrf.mxu3 }
0x106d   :  { %v5627_v48 = vadd.f32 %v5626_v19, %v5572_v24 }
0x106f   :  { %v9662_v56 = vadd.f32 %v5665_v10, %v5627_v48 }
0x1071   :  { %v5691_v60 = vmul.f32 %v9662_v56, %v9662_v56  ;;  %v5677_v32 = vsel %vm469_vm8, %v9662_v56, 0.0 }
0x1072   :  { %v5678_v27 = vadd.f32 %v5677_v32, %v5676_v30 }
0x1073   :  { %v5695_v42 = vsel %vm469_vm8, %v5691_v60, 0.0 }
0x1074   :  { %v5630_v2 = vpop.f32.mrf.mxu2  ;;  %v5673_v23 = vpop.f32.mrf.mxu3  ;;  %v5696_v58 = vadd.f32 %v5695_v42, %v5694_v63 }
0x1075   :  { %v5631_v28 = vadd.f32 %v5630_v2, %v5578_v18 }
0x1077   :  { %v9666_v3 = vadd.f32 %v5669_v50, %v5631_v28 }
0x1079   :  { %v5692_v9 = vmul.f32 %v9666_v3, %v9666_v3  ;;  %v5679_v35 = vsel %vm469_vm8, %v9666_v3, 0.0 }
0x107a   :  { %v5680_v17 = vadd.f32 %v5679_v35, %v5678_v27 }
0x107b   :  { %v5697_v33 = vsel %vm469_vm8, %v5692_v9, 0.0 }
0x107c   :  { %v5634_v21 = vpop.f32.mrf.mxu2  ;;  %v5698_v43 = vadd.f32 %v5697_v33, %v5696_v58 }
0x107d   :  { %v5635_v4 = vadd.f32 %v5634_v21, %v5584_v20 }
0x107f   :  { %v5674_v15 = vadd.f32 %v5673_v23, %v5635_v4 }
0x1081   :  { %v5681_v1 = vsel %vm469_vm8, %v5674_v15, 0.0  ;;  %v5693_v31 = vmul.f32 %v5674_v15, %v5674_v15 }
0x1082   :  { %v5682_v25 = vadd.f32 %v5681_v1, %v5680_v17 }
0x1083   :  { %v5699_v38 = vsel %vm469_vm8, %v5693_v31, 0.0 }
0x1084   :  { %v5683_v41 = vrot.slane %v5682_v25, 4  ;;  %v5700_v14 = vadd.f32 %v5699_v38, %v5698_v43 }
0x1086   :  { %v5684_v46 = vadd.f32 %v5683_v41, %v5682_v25  ;;  %v5701_v47 = vrot.slane %v5700_v14, 4 }
0x1088   :  { %v5685_v37 = vrot.slane %v5684_v46, 2  ;;  %v5702_v55 = vadd.f32 %v5701_v47, %v5700_v14 }
0x108a   :  { %v5686_v6 = vadd.f32 %v5685_v37, %v5684_v46  ;;  %v5703_v49 = vrot.slane %v5702_v55, 2 }
0x108c   :  { %v5687_v13 = vrot.slane %v5686_v6, 1  ;;  %v5704_v62 = vadd.f32 %v5703_v49, %v5702_v55 }
0x108e   :  { %v5688_v54 = vadd.f32 %v5687_v13, %v5686_v6  ;;  %v5705_v26 = vrot.slane %v5704_v62, 1 }
0x1090   :  { %v5689_v34 = vmul.f32 0.03125, %v5688_v54  ;;  %v5706_v39 = vadd.f32 %v5705_v26, %v5704_v62 }
0x1092   :  { %v5707_v53 = vmul.f32 0.03125, %v5706_v39  ;;  %v5708_v40 = vmul.f32 %v5689_v34, %v5689_v34 }
0x1094   :  { %v5709_v10 = vsub.f32 %v5707_v53, %v5708_v40  ;;  %v5744_v53 = vld [vmem:[%s10135_s1 + $0x280] sm:$0xff] }
0x1095   :  { %v5847_v40 = vand.u32 4294901760, %v5744_v53 }
0x1096   :  { %v5710_v45 = vmax.f32 %v5709_v10, 0.0 }
0x1097   :  { %5848 = vmatpush.msra.mxu0 %v5847_v40  ;;  %v5900_v10 = vsub.f32 %v5744_v53, %v5847_v40  ;;  %5991 = vmatpush.msra.mxu3 %v5847_v40 }
0x1098   :  { %v5711_v7 = vadd.f32 1e-05, %v5710_v45 }
0x1099   :  { %5949 = vmatpush.msra.mxu2 %v5900_v10  ;;  %v5901_v45 = vand.u32 4294901760, %v5900_v10 }
0x109a   :  { %8350 = vrsqrt.f32 %v5711_v7  ;;  %vm5718_vm10 = vweird.f32 %v5711_v7 }
0x10a0   :  { %v8351_v52 = vpop.eup %8350 }
0x10a1   :  { %v5713_v19 = vmul.f32 %v8351_v52, %v5711_v7  ;;  %vm5719_vm2 = vweird.f32 %v8351_v52  ;;  %v5743_v7 = vld [vmem:[%s10135_s1 + $0x278] sm:$0xff] }
0x10a2   :  { %vm5720_vm9 = vmor %vm5718_vm10, %vm5719_vm2 }
0x10a3   :  { %v5714_v0 = vmul.f32 %v8351_v52, %v5713_v19  ;;  %v5902_v19 = vsub.f32 %v5900_v10, %v5901_v45 }
0x10a5   :  { %v5715_v5 = vmul.f32 0.5, %v5714_v0 }
0x10a7   :  { %v5716_v24 = vsub.f32 1.5, %v5715_v5  ;;  %v5903_v5 = vand.u32 4294901760, %v5902_v19 }
0x10a9   :  { %v5717_v51 = vmul.f32 %v8351_v52, %v5716_v24  ;;  %5904 = vmatpush.msra.mxu1 %v5903_v5 }
0x10ab   :  { %v5721_v48 = vsel %vm5720_vm9, %v8351_v52, %v5717_v51  ;;  %v5849_v52 = vand.u32 4294901760, %v5743_v7 }
0x10ac   :  { %v5722_v61 = vmul.f32 %v5721_v48, %v5283_v29  ;;  %v5742_v48 = vld [vmem:[%s10135_s1 + $0x270] sm:$0xff] }
0x10ad   :  { %5850 = vmatpush.msra.mxu0 %v5849_v52  ;;  %v5906_v0 = vsub.f32 %v5743_v7, %v5849_v52  ;;  %5993 = vmatpush.msra.mxu3 %v5849_v52 }
0x10ae   :  { %v5728_v44 = vmul.f32 %v5722_v61, %v5689_v34  ;;  %v5723_v18 = vperm.slane %v5722_v61, 0  ;;  %v5851_v61 = vand.u32 4294901760, %v5742_v48 }
0x10af   :  { %v5907_v24 = vand.u32 4294901760, %v5906_v0  ;;  %5952 = vmatpush.msra.mxu2 %v5906_v0 }
0x10b0   :  { %v5730_v50 = vrot.slane %v5728_v44, 7  ;;  %v5727_v28 = vmul.f32 %v5723_v18, %v5674_v15  ;;  %v5724_v22 = vmul.f32 %v5723_v18, %v9664_v59  ;;  %v5725_v60 = vmul.f32 %v5723_v18, %v9662_v56  ;;  %5852 = vmatpush.msra.mxu0 %v5851_v61  ;;  %5995 = vmatpush.msra.mxu3 %v5851_v61 }
0x10b1   :  { %v5726_v8 = vmul.f32 %v5723_v18, %v9666_v3  ;;  %v5912_v44 = vsub.f32 %v5742_v48, %v5851_v61 }
0x10b2   :  { %v5732_v2 = vsub.f32 %v5283_v29, %v5730_v50  ;;  %v5908_v29 = vsub.f32 %v5906_v0, %v5907_v24  ;;  %6037 = vmatpush.msrb.mxu0 %v5901_v45 }
0x10b3   :  { %v5913_v18 = vand.u32 4294901760, %v5912_v44  ;;  %5955 = vmatpush.msra.mxu2 %v5912_v44 }
0x10b4   :  { %v5733_v57 = vperm.slane %v5732_v2, 1  ;;  %v5909_v51 = vand.u32 4294901760, %v5908_v29  ;;  %6041 = vmatpush.msrb.mxu0 %v5907_v24 }
0x10b5   :  { %v5914_v50 = vsub.f32 %v5912_v44, %v5913_v18 }
0x10b6   :  { %v5737_v11 = vadd.f32 %v5733_v57, %v5727_v28  ;;  %v5734_v32 = vadd.f32 %v5733_v57, %v5724_v22  ;;  %v5735_v9 = vadd.f32 %v5733_v57, %v5725_v60  ;;  %v5736_v20 = vadd.f32 %v5733_v57, %v5726_v8  ;;  %5910 = vmatpush.msra.mxu1 %v5909_v51 }
0x10b7   :  { %6045 = vmatpush.msrb.mxu0 %v5913_v18  ;;  %v5915_v2 = vand.u32 4294901760, %v5914_v50 }
0x10b8   :  { %v5741_v21 = vmax.f32 %v5737_v11, 0.0  ;;  %v5738_v30 = vmax.f32 %v5734_v32, 0.0  ;;  %v5739_v42 = vmax.f32 %v5735_v9, 0.0  ;;  %v5740_v35 = vmax.f32 %v5736_v20, 0.0 }
0x10b9   :  { %5916 = vmatpush.msra.mxu1 %v5915_v2 }
0x10ba   :  { %v5750_v4 = vrot.slane %v5738_v30, 7  ;;  %v5751_v27 = vrot.slane %v5739_v42, 7  ;;  %v5754_v23 = vrot.slane %v5741_v21, 7  ;;  %v5753_v3 = vrot.slane %v5740_v35, 7 }
0x10bb   :  { %6077 = vmatpush.msrb.mxu1 %v5847_v40 }
0x10bc   :  { %v9692_v63 = vsel %vm397_vm3, %v5750_v4, %v5751_v27  ;;  %v9695_v59 = vsel %vm397_vm3, 0.0, %v5750_v4  ;;  %v5764_v56 = vsel %vm397_vm3, %v5751_v27, 0.0  ;;  %v9708_v38 = vsel %vm397_vm3, %v5753_v3, %v5754_v23 }
0x10bd   :  { %v5792_v33 = vrot.slane %v9695_v59, 2  ;;  %v5793_v15 = vrot.slane %v9692_v63, 2  ;;  %v5771_v58 = vrot.slane %v9692_v63, 1  ;;  %v5773_v17 = vrot.slane %v5764_v56, 1  ;;  %6079 = vmatpush.msrb.mxu1 %v5849_v52 }
0x10be   :  { %v5770_v1 = vrot.slane %v9695_v59, 1  ;;  %v9711_v41 = vsel %vm397_vm3, 0.0, %v5753_v3  ;;  %v5776_v46 = vrot.slane %v9708_v38, 1  ;;  %v5798_v37 = vrot.slane %v9708_v38, 2 }
0x10bf   :  { %v5794_v31 = vsel %vm441_vm5, %v5792_v33, %v5793_v15  ;;  %v5774_v43 = vsel %vm418_vm4, %v5771_v58, %v5773_v17  ;;  %v5775_v14 = vrot.slane %v9711_v41, 1  ;;  %v5797_v47 = vrot.slane %v9711_v41, 2  ;;  %6081 = vmatpush.msrb.mxu1 %v5851_v61 }
0x10c0   :  { %5802 = vrot.lane.b32.xlu1 %v5794_v31, %s8357_s18  ;;  %5782 = vrot.lane.b32.xlu2 %v5774_v43, %s8356_s13  ;;  %v5772_v25 = vsel %vm418_vm4, %v5770_v1, %v5771_v58  ;;  %v5795_v55 = vrot.slane %v5764_v56, 2  ;;  %v5765_v62 = vsel %vm397_vm3, %v5754_v23, 0.0 }
0x10c1   :  { %5780 = vrot.lane.b32.xlu0 %v5772_v25, %s8356_s13  ;;  %v5777_v6 = vsel %vm418_vm4, %v5775_v14, %v5776_v46  ;;  %v5799_v49 = vsel %vm441_vm5, %v5797_v47, %v5798_v37  ;;  %v5800_v54 = vrot.slane %v5765_v62, 2  ;;  %v5778_v26 = vrot.slane %v5765_v62, 1 }
0x10c2   :  { %v5796_v13 = vsel %vm441_vm5, %v5793_v15, %v5795_v55 }
0x10c3   :  { %v5801_v34 = vsel %vm441_vm5, %v5798_v37, %v5800_v54  ;;  %v5779_v39 = vsel %vm418_vm4, %v5776_v46, %v5778_v26 }
0x10c8   :  { %5784 = vrot.lane.b32.xlu1 %v5777_v6, %s8356_s13  ;;  %5806 = vrot.lane.b32.xlu2 %v5799_v49, %s8357_s18 }
0x10c9   :  { %5804 = vrot.lane.b32.xlu0 %v5796_v13, %s8357_s18 }
0x10d0   :  { %5808 = vrot.lane.b32.xlu1 %v5801_v34, %s8357_s18 }
0x10d1   :  { %5786 = vrot.lane.b32.xlu0 %v5779_v39, %s8356_s13 }
0x111a   :  { %v5783_v28 = vpop.permute.xlu2 %5782 }
0x111b   :  { %v5815_v21 = vsel %vm469_vm8, %v9692_v63, %v5783_v28 }
0x1122   :  { %v5807_v30 = vpop.permute.xlu2 %5806 }
0x1132   :  { %v5803_v57 = vpop.permute.xlu1 %5802 }
0x1133   :  { %v5781_v22 = vpop.permute.xlu0 %5780 }
0x1134   :  { %v5814_v60 = vsel %vm469_vm8, %v9695_v59, %v5781_v22 }
0x1135   :  { %v5818_v8 = vsel %vm24_vm0, %v5814_v60, %v5803_v57 }
0x1136   :  { %v5823_v11 = vsel %vm889_vm13, %v5818_v8, 0 }
0x1137   :  { %v5853_v32 = vand.u32 4294901760, %v5823_v11 }
0x1139   :  { %v5854_v9 = vsub.f32 %v5823_v11, %v5853_v32  ;;  %5918 = vmatmul.f32.vlgmr.msra.gmra.mxu1 %v5853_v32 }
0x113a   :  { %v5785_v20 = vpop.permute.xlu1 %5784 }
0x113b   :  { %v5855_v42 = vand.u32 4294901760, %v5854_v9  ;;  %v5816_v35 = vsel %vm469_vm8, %v9711_v41, %v5785_v20  ;;  %5958 = vmatmul.f32.vlgmr.msra.gmra.mxu2 %v5854_v9  ;;  %v5805_v4 = vpop.permute.xlu0 %5804 }
0x113c   :  { %v5820_v27 = vsel %vm24_vm0, %v5816_v35, %v5807_v30  ;;  %v5819_v23 = vsel %vm24_vm0, %v5815_v21, %v5805_v4 }
0x113d   :  { %v5856_v59 = vsub.f32 %v5854_v9, %v5855_v42  ;;  %v5829_v56 = vsel %vm889_vm13, %v5820_v27, 0  ;;  %v5826_v3 = vsel %vm889_vm13, %v5819_v23, 0  ;;  %5999 = vmatmul.f32.vlgmr.msra.gmra.mxu3 %v5855_v42 }
0x113e   :  { %v5861_v33 = vand.u32 4294901760, %v5826_v3  ;;  %v5869_v63 = vand.u32 4294901760, %v5829_v56 }
0x113f   :  { %v5857_v15 = vand.u32 4294901760, %v5856_v59 }
0x1140   :  { %v5862_v58 = vsub.f32 %v5826_v3, %v5861_v33  ;;  %v5870_v43 = vsub.f32 %v5829_v56, %v5869_v63 }
0x1141   :  { %5858 = vmatmul.f32.vlgmr.msra.gmra.mxu0 %v5857_v15  ;;  %5922 = vmatmul.f32.gmra.mxu1 %v5861_v33 }
0x1142   :  { %v5809_v17 = vpop.permute.xlu1 %5808  ;;  %v5863_v1 = vand.u32 4294901760, %v5862_v58  ;;  %v5871_v55 = vand.u32 4294901760, %v5870_v43 }
0x1143   :  { %5963 = vmatmul.f32.gmra.mxu2 %v5862_v58  ;;  %v5787_v31 = vpop.permute.xlu0 %5786 }
0x1144   :  { %v5817_v25 = vsel %vm469_vm8, %v9708_v38, %v5787_v31  ;;  %v5864_v41 = vsub.f32 %v5862_v58, %v5863_v1  ;;  %v5872_v6 = vsub.f32 %v5870_v43, %v5871_v55 }
0x1145   :  { %v5821_v14 = vsel %vm24_vm0, %v5817_v25, %v5809_v17  ;;  %6005 = vmatmul.f32.gmra.mxu3 %v5863_v1 }
0x1146   :  { %v5832_v46 = vsel %vm889_vm13, %v5821_v14, 0  ;;  %v5865_v47 = vand.u32 4294901760, %v5864_v41  ;;  %v5873_v13 = vand.u32 4294901760, %v5872_v6 }
0x1147   :  { %v5877_v37 = vand.u32 4294901760, %v5832_v46 }
0x1149   :  { %5866 = vmatmul.f32.gmra.mxu0 %v5865_v47  ;;  %5926 = vmatmul.f32.gmra.mxu1 %v5869_v63  ;;  %v5878_v49 = vsub.f32 %v5832_v46, %v5877_v37 }
0x114b   :  { %5968 = vmatmul.f32.gmra.mxu2 %v5870_v43  ;;  %v5879_v62 = vand.u32 4294901760, %v5878_v49 }
0x114d   :  { %6011 = vmatmul.f32.gmra.mxu3 %v5871_v55  ;;  %v5880_v38 = vsub.f32 %v5878_v49, %v5879_v62 }
0x114f   :  { %v5881_v54 = vand.u32 4294901760, %v5880_v38 }
0x1151   :  { %5874 = vmatmul.f32.gmra.mxu0 %v5873_v13  ;;  %5930 = vmatmul.f32.gmra.mxu1 %v5877_v37 }
0x1153   :  { %5973 = vmatmul.f32.gmra.mxu2 %v5878_v49 }
0x1155   :  { %6017 = vmatmul.f32.gmra.mxu3 %v5879_v62 }
0x1159   :  { %5882 = vmatmul.f32.gmra.mxu0 %v5881_v54  ;;  %6083 = vmatmul.f32.vlgmr.msrb.gmra.mxu1 %v5853_v32 }
0x1161   :  { %6047 = vmatmul.f32.vlgmr.msrb.gmra.mxu0 %v5853_v32  ;;  %6087 = vmatmul.f32.gmra.mxu1 %v5861_v33 }
0x1169   :  { %6051 = vmatmul.f32.gmra.mxu0 %v5861_v33  ;;  %6091 = vmatmul.f32.gmra.mxu1 %v5869_v63 }
0x1171   :  { %6055 = vmatmul.f32.gmra.mxu0 %v5869_v63  ;;  %6095 = vmatmul.f32.gmra.mxu1 %v5877_v37 }
0x1179   :  { %6059 = vmatmul.f32.gmra.mxu0 %v5877_v37 }
0x11b6   :  { %v5919_v26 = vpop.f32.mrf.mxu1 }
0x11be   :  { %v5859_v34 = vpop.f32.mrf.mxu0  ;;  %v5923_v39 = vpop.f32.mrf.mxu1 }
0x11bf   :  { %v5959_v7 = vpop.f32.mrf.mxu2  ;;  %v5920_v48 = vadd.f32 %v5919_v26, %v5859_v34 }
0x11c0   :  { %v6000_v52 = vpop.f32.mrf.mxu3 }
0x11c1   :  { %v5960_v28 = vadd.f32 %v5959_v7, %v5920_v48 }
0x11c3   :  { %v6001_v8 = vadd.f32 %v6000_v52, %v5960_v28 }
0x11c6   :  { %v5867_v53 = vpop.f32.mrf.mxu0  ;;  %v5927_v40 = vpop.f32.mrf.mxu1 }
0x11c7   :  { %v5964_v5 = vpop.f32.mrf.mxu2  ;;  %v5924_v51 = vadd.f32 %v5923_v39, %v5867_v53 }
0x11c8   :  { %v6006_v29 = vpop.f32.mrf.mxu3 }
0x11c9   :  { %v5965_v44 = vadd.f32 %v5964_v5, %v5924_v51 }
0x11cb   :  { %v6007_v57 = vadd.f32 %v6006_v29, %v5965_v44 }
0x11ce   :  { %v5875_v10 = vpop.f32.mrf.mxu0  ;;  %v5931_v45 = vpop.f32.mrf.mxu1 }
0x11cf   :  { %v5928_v18 = vadd.f32 %v5927_v40, %v5875_v10  ;;  %v5969_v50 = vpop.f32.mrf.mxu2 }
0x11d0   :  { %v6012_v60 = vpop.f32.mrf.mxu3 }
0x11d1   :  { %v5970_v22 = vadd.f32 %v5969_v50, %v5928_v18  ;;  %v6165_v50 = vld [vmem:[%s10135_s1 + $0x2c0] sm:$0xff] }
0x11d3   :  { %v6013_v32 = vadd.f32 %v6012_v60, %v5970_v22 }
0x11d6   :  { %v5883_v19 = vpop.f32.mrf.mxu0  ;;  %v6084_v0 = vpop.f32.mrf.mxu1 }
0x11d7   :  { %v5932_v9 = vadd.f32 %v5931_v45, %v5883_v19  ;;  %v5974_v4 = vpop.f32.mrf.mxu2 }
0x11d8   :  { %v6018_v3 = vpop.f32.mrf.mxu3 }
0x11d9   :  { %v5975_v27 = vadd.f32 %v5974_v4, %v5932_v9 }
0x11db   :  { %v6019_v33 = vadd.f32 %v6018_v3, %v5975_v27 }
0x11de   :  { %v6048_v24 = vpop.f32.mrf.mxu0  ;;  %v6088_v61 = vpop.f32.mrf.mxu1 }
0x11df   :  { %v6049_v20 = vadd.f32 %v6048_v24, %v6001_v8 }
0x11e1   :  { %v9756_v23 = vadd.f32 %v6084_v0, %v6049_v20 }
0x11e3   :  { %v6113_v15 = vmul.f32 %v9756_v23, %v9756_v23  ;;  %v6099_v1 = vsel %vm469_vm8, %v9756_v23, 0.0 }
0x11e5   :  { %v6117_v46 = vsel %vm469_vm8, %v6113_v15, 0.0 }
0x11e6   :  { %v6052_v2 = vpop.f32.mrf.mxu0  ;;  %v6092_v21 = vpop.f32.mrf.mxu1 }
0x11e7   :  { %v6053_v11 = vadd.f32 %v6052_v2, %v6007_v57  ;;  %v6195_v2 = vand.u32 4294901760, %v6165_v50 }
0x11e9   :  { %v9754_v42 = vadd.f32 %v6088_v61, %v6053_v11  ;;  %6196 = vmatpush.msrb.mxu2 %v6195_v2  ;;  %v6246_v28 = vsub.f32 %v6165_v50, %v6195_v2  ;;  %6323 = vmatpush.msra.mxu1 %v6195_v2 }
0x11eb   :  { %v6114_v56 = vmul.f32 %v9754_v42, %v9754_v42  ;;  %v6100_v63 = vsel %vm469_vm8, %v9754_v42, 0.0  ;;  %v6247_v57 = vand.u32 4294901760, %v6246_v28  ;;  %6285 = vmatpush.msra.mxu0 %v6246_v28 }
0x11ec   :  { %v6101_v41 = vadd.f32 %v6100_v63, %v6099_v1 }
0x11ed   :  { %v6118_v31 = vsel %vm469_vm8, %v6114_v56, 0.0  ;;  %v6248_v60 = vsub.f32 %v6246_v28, %v6247_v57  ;;  %6367 = vmatpush.msra.mxu2 %v6247_v57  ;;  %v6419_v56 = vld [vmem:[%s10135_s1 + $0x290] sm:$0xff] }
0x11ee   :  { %v6056_v30 = vpop.f32.mrf.mxu0  ;;  %v6096_v14 = vpop.f32.mrf.mxu1  ;;  %v6119_v55 = vadd.f32 %v6118_v31, %v6117_v46  ;;  %v6437_v15 = vand.u32 4294901760, %v6419_v56 }
0x11ef   :  { %v6057_v35 = vadd.f32 %v6056_v30, %v6013_v32  ;;  %v6249_v11 = vand.u32 4294901760, %v6248_v60 }
0x11f0   :  { %6438 = vmatpush.msrb.mxu0 %v6437_v15 }
0x11f1   :  { %v9758_v59 = vadd.f32 %v6092_v21, %v6057_v35  ;;  %6250 = vmatpush.msrb.mxu3 %v6249_v11  ;;  %v5745_v21 = vld [vmem:[%s10135_s1 + $0x288] sm:$0x3] }
0x11f3   :  { %v6115_v58 = vmul.f32 %v9758_v59, %v9758_v59  ;;  %v6102_v43 = vsel %vm469_vm8, %v9758_v59, 0.0  ;;  %6401 = vmatpush.msra.mxu3 %v6195_v2 }
0x11f4   :  { %v6103_v6 = vadd.f32 %v6102_v43, %v6101_v41 }
0x11f5   :  { %v6120_v47 = vsel %vm469_vm8, %v6115_v58, 0.0  ;;  %v6488_v58 = vsub.f32 %v6419_v56, %v6437_v15  ;;  %v9844_v56 = vld [vmem:[%s10135_s1 + $0x2d0] sm:$0x7] }
0x11f6   :  { %v6060_v17 = vpop.f32.mrf.mxu0  ;;  %v6121_v62 = vadd.f32 %v6120_v47, %v6119_v55 }
0x11f7   :  { %v6061_v25 = vadd.f32 %v6060_v17, %v6019_v33  ;;  %v6489_v43 = vand.u32 4294901760, %v6488_v58 }
0x11f9   :  { %v9775_v37 = vadd.f32 %v6096_v14, %v6061_v25  ;;  %v6490_v46 = vsub.f32 %v6488_v58, %v6489_v43 }
0x11fb   :  { %v6104_v49 = vsel %vm469_vm8, %v9775_v37, 0.0  ;;  %v6116_v13 = vmul.f32 %v9775_v37, %v9775_v37 }
0x11fc   :  { %v6105_v38 = vadd.f32 %v6104_v49, %v6103_v6  ;;  %v6491_v49 = vand.u32 4294901760, %v6490_v46 }
0x11fd   :  { %v6122_v54 = vsel %vm469_vm8, %v6116_v13, 0.0 }
0x11fe   :  { %v6106_v26 = vrot.slane %v6105_v38, 4  ;;  %v6123_v34 = vadd.f32 %v6122_v54, %v6121_v62  ;;  %6492 = vmatpush.msrb.mxu1 %v6491_v49  ;;  %v9861_v49 = vld [vmem:[%s10135_s1 + $0x2c8] ss:$0 sm:$0xff] }
0x1200   :  { %v6107_v39 = vadd.f32 %v6106_v26, %v6105_v38  ;;  %v6124_v53 = vrot.slane %v6123_v34, 4 }
0x1202   :  { %v6108_v40 = vrot.slane %v6107_v39, 2  ;;  %v6125_v10 = vadd.f32 %v6124_v53, %v6123_v34 }
0x1204   :  { %v6109_v45 = vadd.f32 %v6108_v40, %v6107_v39  ;;  %v6126_v7 = vrot.slane %v6125_v10, 2 }
0x1206   :  { %v6110_v52 = vrot.slane %v6109_v45, 1  ;;  %v6127_v19 = vadd.f32 %v6126_v7, %v6125_v10 }
0x1208   :  { %v6111_v0 = vadd.f32 %v6110_v52, %v6109_v45  ;;  %v6128_v5 = vrot.slane %v6127_v19, 1 }
0x120a   :  { %v6112_v24 = vmul.f32 0.03125, %v6111_v0  ;;  %v6129_v29 = vadd.f32 %v6128_v5, %v6127_v19 }
0x120c   :  { %v6130_v51 = vmul.f32 0.03125, %v6129_v29  ;;  %v6131_v48 = vmul.f32 %v6112_v24, %v6112_v24 }
0x120e   :  { %v6132_v61 = vsub.f32 %v6130_v51, %v6131_v48 }
0x1210   :  { %v6133_v44 = vmax.f32 %v6132_v61, 0.0 }
0x1212   :  { %v6134_v18 = vadd.f32 1e-05, %v6133_v44 }
0x1214   :  { %8352 = vrsqrt.f32 %v6134_v18  ;;  %vm6141_vm3 = vweird.f32 %v6134_v18 }
0x121a   :  { %v8353_v22 = vpop.eup %8352 }
0x121b   :  { %v6136_v8 = vmul.f32 %v8353_v22, %v6134_v18  ;;  %vm6142_vm0 = vweird.f32 %v8353_v22 }
0x121c   :  { %vm6143_vm4 = vmor %vm6141_vm3, %vm6142_vm0 }
0x121d   :  { %v6137_v32 = vmul.f32 %v8353_v22, %v6136_v8 }
0x121f   :  { %v6138_v9 = vmul.f32 0.5, %v6137_v32 }
0x1221   :  { %v6139_v20 = vsub.f32 1.5, %v6138_v9 }
0x1223   :  { %v6140_v30 = vmul.f32 %v8353_v22, %v6139_v20 }
0x1225   :  { %v6144_v35 = vsel %vm6143_vm4, %v8353_v22, %v6140_v30 }
0x1226   :  { %v6145_v4 = vmul.f32 %v6144_v35, %v5745_v21 }
0x1228   :  { %v6151_v27 = vmul.f32 %v6145_v4, %v6112_v24  ;;  %v6146_v3 = vperm.slane %v6145_v4, 0 }
0x122a   :  { %v6153_v33 = vrot.slane %v6151_v27, 7  ;;  %v6147_v17 = vmul.f32 %v6146_v3, %v9756_v23  ;;  %v6148_v1 = vmul.f32 %v6146_v3, %v9754_v42  ;;  %v6149_v25 = vmul.f32 %v6146_v3, %v9758_v59 }
0x122b   :  { %v6150_v54 = vmul.f32 %v6146_v3, %v9775_v37 }
0x122c   :  { %v6155_v63 = vsub.f32 %v5745_v21, %v6153_v33  ;;  %v6676_v33 = vsel %vm4283_vm6, %v9844_v56, 0 }
0x122e   :  { %v6156_v31 = vperm.slane %v6155_v63, 1 }
0x1230   :  { %v6157_v41 = vadd.f32 %v6156_v31, %v6147_v17  ;;  %v6158_v14 = vadd.f32 %v6156_v31, %v6148_v1  ;;  %v6159_v47 = vadd.f32 %v6156_v31, %v6149_v25  ;;  %v6160_v39 = vadd.f32 %v6156_v31, %v6150_v54 }
0x1232   :  { %v6161_v55 = vmax.f32 %v6157_v41, 0.0  ;;  %v6162_v6 = vmax.f32 %v6158_v14, 0.0  ;;  %v6163_v42 = vmax.f32 %v6159_v47, 0.0  ;;  %v6164_v52 = vmax.f32 %v6160_v39, 0.0  ;;  %v8333_v39 = vld [vmem:[%s10135_s1 + $0x298] ss:$0 sm:$0xff] }
0x1234   :  { %v6169_v13 = vsel %vm469_vm8, %v6161_v55, 0  ;;  %v6172_v62 = vsel %vm469_vm8, %v6162_v6, 0  ;;  %v6175_v53 = vsel %vm469_vm8, %v6163_v42, 0  ;;  %v6178_v0 = vsel %vm469_vm8, %v6164_v52, 0 }
0x1235   :  { %v9796_v38 = vand.u32 4294901760, %v6169_v13  ;;  %v9798_v23 = vand.u32 4294901760, %v6172_v62  ;;  %v6213_v7 = vand.u32 4294901760, %v6175_v53  ;;  %v6221_v5 = vand.u32 4294901760, %v6178_v0 }
0x1237   :  { %6252 = vmatmul.f32.vlgmr.msrb.gmra.mxu3 %v9796_v38  ;;  %v6198_v59 = vsub.f32 %v6169_v13, %v9796_v38  ;;  %v6206_v34 = vsub.f32 %v6172_v62, %v9798_v23  ;;  %v6214_v19 = vsub.f32 %v6175_v53, %v6213_v7  ;;  %v6222_v48 = vsub.f32 %v6178_v0, %v6221_v5 }
0x1238   :  { %6565 = vmatpush.msrb.mxu3 %v6437_v15 }
0x1239   :  { %6288 = vmatmul.f32.vlgmr.msra.gmra.mxu0 %v6198_v59  ;;  %v6199_v26 = vand.u32 4294901760, %v6198_v59  ;;  %v6207_v45 = vand.u32 4294901760, %v6206_v34  ;;  %v6215_v29 = vand.u32 4294901760, %v6214_v19  ;;  %v6223_v44 = vand.u32 4294901760, %v6222_v48 }
0x123a   :  { %6609 = vmatpush.msra.mxu0 %v6489_v43 }
0x123b   :  { %6327 = vmatmul.f32.vlgmr.msra.gmra.mxu1 %v6199_v26  ;;  %v6200_v40 = vsub.f32 %v6198_v59, %v6199_v26  ;;  %v6208_v37 = vsub.f32 %v6206_v34, %v6207_v45  ;;  %v6216_v51 = vsub.f32 %v6214_v19, %v6215_v29  ;;  %v6224_v18 = vsub.f32 %v6222_v48, %v6223_v44 }
0x123c   :  { %6643 = vmatpush.msra.mxu1 %v6437_v15  ;;  %v6693_v15 = vand.u32 4294901760, %v6676_v33 }
0x123d   :  { %v6201_v10 = vand.u32 4294901760, %v6200_v40  ;;  %v6209_v24 = vand.u32 4294901760, %v6208_v37  ;;  %v6217_v61 = vand.u32 4294901760, %v6216_v51  ;;  %v6225_v50 = vand.u32 4294901760, %v6224_v18 }
0x123e   :  { %v6744_v1 = vsub.f32 %v6676_v33, %v6693_v15 }
0x123f   :  { %6202 = vmatmul.f32.vlgmr.msrb.gmra.mxu2 %v6201_v10  ;;  %6256 = vmatmul.f32.gmra.mxu3 %v9798_v23 }
0x1240   :  { %6527 = vmatpush.msrb.mxu2 %v6488_v58  ;;  %v6745_v31 = vand.u32 4294901760, %v6744_v1 }
0x1241   :  { %6293 = vmatmul.f32.gmra.mxu0 %v6206_v34 }
0x1242   :  { %v6746_v43 = vsub.f32 %v6744_v1, %v6745_v31 }
0x1243   :  { %6333 = vmatmul.f32.gmra.mxu1 %v6207_v45 }
0x1244   :  { %v6747_v25 = vand.u32 4294901760, %v6746_v43 }
0x1247   :  { %6210 = vmatmul.f32.gmra.mxu2 %v6209_v24  ;;  %6260 = vmatmul.f32.gmra.mxu3 %v6213_v7 }
0x1249   :  { %6298 = vmatmul.f32.gmra.mxu0 %v6214_v19 }
0x124b   :  { %6339 = vmatmul.f32.gmra.mxu1 %v6215_v29 }
0x124f   :  { %6218 = vmatmul.f32.gmra.mxu2 %v6217_v61  ;;  %6264 = vmatmul.f32.gmra.mxu3 %v6221_v5 }
0x1251   :  { %6303 = vmatmul.f32.gmra.mxu0 %v6222_v48 }
0x1253   :  { %6345 = vmatmul.f32.gmra.mxu1 %v6223_v44 }
0x1257   :  { %6226 = vmatmul.f32.gmra.mxu2 %v6225_v50  ;;  %6403 = vmatmul.f32.vlgmr.msra.gmra.mxu3 %v9796_v38 }
0x1258   :  { %6748 = vmatpush.msra.mxu3 %v6747_v25 }
0x1259   :  { %6444 = vmatmul.f32.vlgmr.msrb.gmra.mxu0 %v6201_v10 }
0x125a   :  { %6783 = vmatpush.msrb.mxu0 %v6744_v1 }
0x125b   :  { %6494 = vmatmul.f32.vlgmr.msrb.gmra.mxu1 %v9796_v38 }
0x125c   :  { %6821 = vmatpush.msrb.mxu1 %v6693_v15 }
0x125f   :  { %6369 = vmatmul.f32.vlgmr.msra.gmra.mxu2 %v9796_v38  ;;  %6407 = vmatmul.f32.gmra.mxu3 %v9798_v23 }
0x1260   :  { %6694 = vmatpush.msra.mxu2 %v6693_v15 }
0x1261   :  { %6452 = vmatmul.f32.gmra.mxu0 %v6209_v24 }
0x1263   :  { %6498 = vmatmul.f32.gmra.mxu1 %v9798_v23 }
0x1267   :  { %6373 = vmatmul.f32.gmra.mxu2 %v9798_v23  ;;  %6411 = vmatmul.f32.gmra.mxu3 %v6213_v7 }
0x1269   :  { %6460 = vmatmul.f32.gmra.mxu0 %v6217_v61 }
0x126b   :  { %6502 = vmatmul.f32.gmra.mxu1 %v6213_v7 }
0x126f   :  { %6377 = vmatmul.f32.gmra.mxu2 %v6213_v7  ;;  %6415 = vmatmul.f32.gmra.mxu3 %v6221_v5 }
0x1271   :  { %6468 = vmatmul.f32.gmra.mxu0 %v6225_v50 }
0x1273   :  { %6506 = vmatmul.f32.gmra.mxu1 %v6221_v5 }
0x1277   :  { %6381 = vmatmul.f32.gmra.mxu2 %v6221_v5  ;;  %6569 = vmatmul.f32.vlgmr.msrb.gmra.mxu3 %v6199_v26 }
0x1278   :  { %6899 = vmatpush.msrb.mxu3 %v6693_v15 }
0x1279   :  { %6611 = vmatmul.f32.vlgmr.msra.gmra.mxu0 %v9796_v38 }
0x127b   :  { %6645 = vmatmul.f32.vlgmr.msra.gmra.mxu1 %v9796_v38 }
0x127f   :  { %6530 = vmatmul.f32.vlgmr.msrb.gmra.mxu2 %v6198_v59  ;;  %6575 = vmatmul.f32.gmra.mxu3 %v6207_v45 }
0x1280   :  { %6865 = vmatpush.msrb.mxu2 %v6745_v31 }
0x1281   :  { %6615 = vmatmul.f32.gmra.mxu0 %v9798_v23 }
0x1283   :  { %6649 = vmatmul.f32.gmra.mxu1 %v9798_v23 }
0x1287   :  { %6535 = vmatmul.f32.gmra.mxu2 %v6206_v34  ;;  %6581 = vmatmul.f32.gmra.mxu3 %v6215_v29 }
0x1289   :  { %6619 = vmatmul.f32.gmra.mxu0 %v6213_v7 }
0x128b   :  { %6653 = vmatmul.f32.gmra.mxu1 %v6213_v7 }
0x128f   :  { %6540 = vmatmul.f32.gmra.mxu2 %v6214_v19  ;;  %6587 = vmatmul.f32.gmra.mxu3 %v6223_v44 }
0x1291   :  { %6623 = vmatmul.f32.gmra.mxu0 %v6221_v5 }
0x1293   :  { %6657 = vmatmul.f32.gmra.mxu1 %v6221_v5 }
0x1297   :  { %6545 = vmatmul.f32.gmra.mxu2 %v6222_v48 }
0x12b6   :  { %v9817_v2 = vpop.f32.mrf.mxu0 }
0x12b8   :  { %v9819_v28 = vpop.f32.mrf.mxu1 }
0x12ba   :  { %v9821_v57 = vpop.f32.mrf.mxu3 }
0x12be   :  { %v9823_v22 = vpop.f32.mrf.mxu0 }
0x12c0   :  { %v9825_v60 = vpop.f32.mrf.mxu1 }
0x12c2   :  { %v9827_v8 = vpop.f32.mrf.mxu2  ;;  %v9829_v11 = vpop.f32.mrf.mxu3 }
0x12c6   :  { %v9831_v32 = vpop.f32.mrf.mxu0 }
0x12c8   :  { %v9833_v9 = vpop.f32.mrf.mxu1 }
0x12ca   :  { %v9835_v20 = vpop.f32.mrf.mxu2  ;;  %v9837_v21 = vpop.f32.mrf.mxu3 }
0x12ce   :  { %v6304_v30 = vpop.f32.mrf.mxu0 }
0x12d0   :  { %v6346_v35 = vpop.f32.mrf.mxu1 }
0x12d2   :  { %v9839_v4 = vpop.f32.mrf.mxu2  ;;  %v6265_v27 = vpop.f32.mrf.mxu3 }
0x12d6   :  { %v6445_v3 = vpop.f32.mrf.mxu0 }
0x12d7   :  { %v6446_v45 = vadd.f32 %v8333_v39, %v6445_v3 }
0x12d8   :  { %v6495_v63 = vpop.f32.mrf.mxu1 }
0x12d9   :  { %v6496_v19 = vadd.f32 %v6495_v63, %v6446_v45 }
0x12da   :  { %v6227_v58 = vpop.f32.mrf.mxu2  ;;  %v9848_v17 = vpop.f32.mrf.mxu3 }
0x12db   :  { %v6228_v62 = vadd.f32 %v9861_v49, %v6227_v58 }
0x12dd   :  { %v6266_v23 = vadd.f32 %v6265_v27, %v6228_v62 }
0x12de   :  { %v6453_v41 = vpop.f32.mrf.mxu0 }
0x12df   :  { %v6305_v54 = vadd.f32 %v6304_v30, %v6266_v23  ;;  %v6454_v29 = vadd.f32 %v8333_v39, %v6453_v41 }
0x12e0   :  { %v6499_v47 = vpop.f32.mrf.mxu1 }
0x12e1   :  { %v6347_v53 = vadd.f32 %v6346_v35, %v6305_v54  ;;  %v6500_v44 = vadd.f32 %v6499_v47, %v6454_v29 }
0x12e2   :  { %v9850_v14 = vpop.f32.mrf.mxu2  ;;  %v9852_v46 = vpop.f32.mrf.mxu3 }
0x12e6   :  { %v6461_v13 = vpop.f32.mrf.mxu0 }
0x12e7   :  { %v6462_v15 = vadd.f32 %v8333_v39, %v6461_v13 }
0x12e8   :  { %v6503_v38 = vpop.f32.mrf.mxu1 }
0x12e9   :  { %v6504_v43 = vadd.f32 %v6503_v38, %v6462_v15 }
0x12ea   :  { %v9854_v55 = vpop.f32.mrf.mxu2  ;;  %v9856_v6 = vpop.f32.mrf.mxu3 }
0x12ee   :  { %v6469_v26 = vpop.f32.mrf.mxu0 }
0x12f0   :  { %v6507_v34 = vpop.f32.mrf.mxu1 }
0x12f2   :  { %v9864_v42 = vpop.f32.mrf.mxu2  ;;  %v6416_v59 = vpop.f32.mrf.mxu3 }
0x12f6   :  { %v6612_v37 = vpop.f32.mrf.mxu0 }
0x12f8   :  { %v6646_v0 = vpop.f32.mrf.mxu1 }
0x12fa   :  { %v6382_v40 = vpop.f32.mrf.mxu2  ;;  %v6570_v52 = vpop.f32.mrf.mxu3 }
0x12fb   :  { %v6383_v10 = vadd.f32 %v6382_v40, %v6347_v53  ;;  %v6470_v40 = vadd.f32 %v8333_v39, %v6469_v26 }
0x12fd   :  { %v9869_v7 = vadd.f32 %v6416_v59, %v6383_v10 }
0x12fe   :  { %v6616_v50 = vpop.f32.mrf.mxu0 }
0x1300   :  { %v6650_v3 = vpop.f32.mrf.mxu1 }
0x1302   :  { %v6531_v5 = vpop.f32.mrf.mxu2  ;;  %v6576_v61 = vpop.f32.mrf.mxu3 }
0x1303   :  { %v6532_v24 = vadd.f32 %v6531_v5, %v6496_v19  ;;  %v6508_v19 = vadd.f32 %v6507_v34, %v6470_v40 }
0x1305   :  { %v6571_v51 = vadd.f32 %v6570_v52, %v6532_v24 }
0x1306   :  { %v6620_v59 = vpop.f32.mrf.mxu0 }
0x1307   :  { %v6613_v48 = vadd.f32 %v6612_v37, %v6571_v51 }
0x1308   :  { %v6654_v45 = vpop.f32.mrf.mxu1 }
0x1309   :  { %v6647_v18 = vadd.f32 %v6646_v0, %v6613_v48 }
0x130a   :  { %v6536_v30 = vpop.f32.mrf.mxu2  ;;  %v6582_v41 = vpop.f32.mrf.mxu3 }
0x130b   :  { %v6664_v35 = vsel %vm4276_vm7, %v6647_v18, 0  ;;  %v6537_v27 = vadd.f32 %v6536_v30, %v6500_v44  ;;  %v6917_v18 = vsel %vm4276_vm7, %v8383_v12, 0 }
0x130c   :  { %v9872_v33 = vand.u32 4294901760, %v6664_v35 }
0x130d   :  { %v6577_v58 = vadd.f32 %v6576_v61, %v6537_v27 }
0x130e   :  { %v6696_v63 = vsub.f32 %v6664_v35, %v9872_v33  ;;  %6750 = vmatmul.f32.vlgmr.msra.gmra.mxu3 %v9872_v33  ;;  %v6624_v44 = vpop.f32.mrf.mxu0 }
0x130f   :  { %v6617_v1 = vadd.f32 %v6616_v50, %v6577_v58 }
0x1310   :  { %6786 = vmatmul.f32.vlgmr.msrb.gmra.mxu0 %v6696_v63  ;;  %v9876_v31 = vand.u32 4294901760, %v6696_v63  ;;  %v6658_v30 = vpop.f32.mrf.mxu1 }
0x1311   :  { %v6651_v25 = vadd.f32 %v6650_v3, %v6617_v1  ;;  %v9898_v3 = vsub.f32 %v6917_v18, %v6917_v18 }
0x1312   :  { %v6541_v47 = vpop.f32.mrf.mxu2  ;;  %6825 = vmatmul.f32.vlgmr.msrb.gmra.mxu1 %v9876_v31  ;;  %v6698_v62 = vsub.f32 %v6696_v63, %v9876_v31  ;;  %v6588_v51 = vpop.f32.mrf.mxu3 }
0x1313   :  { %v6667_v23 = vsel %vm4276_vm7, %v6651_v25, 0  ;;  %v6542_v13 = vadd.f32 %v6541_v47, %v6504_v43 }
0x1314   :  { %v9881_v54 = vand.u32 4294901760, %v6667_v23  ;;  %v6699_v53 = vand.u32 4294901760, %v6698_v62 }
0x1315   :  { %v6583_v10 = vadd.f32 %v6582_v41, %v6542_v13 }
0x1316   :  { %6700 = vmatmul.f32.vlgmr.msra.gmra.mxu2 %v6699_v53  ;;  %6754 = vmatmul.f32.gmra.mxu3 %v9881_v54  ;;  %v6704_v38 = vsub.f32 %v6667_v23, %v9881_v54 }
0x1317   :  { %v6621_v52 = vadd.f32 %v6620_v59, %v6583_v10  ;;  %6934 = vmatpush.xpose.msra.mxu0 %v9881_v54  ;;  %v7264_v59 = vsel %vm4276_vm7, %v9574_v16, 0  ;;  %v7262_v10 = vsel %vm4276_vm7, %v9571_v36, 0 }
0x1318   :  { %6791 = vmatmul.f32.gmra.mxu0 %v6704_v38  ;;  %v6705_v37 = vand.u32 4294901760, %v6704_v38  ;;  %v9923_v40 = vand.u32 4294901760, %v7264_v59 }
0x1319   :  { %v6655_v0 = vadd.f32 %v6654_v45, %v6621_v52 }
0x131a   :  { %v6546_v5 = vpop.f32.mrf.mxu2  ;;  %6831 = vmatmul.f32.gmra.mxu1 %v6705_v37  ;;  %v6706_v24 = vsub.f32 %v6704_v38, %v6705_v37  ;;  %v9935_v45 = vsub.f32 %v7264_v59, %v9923_v40 }
0x131b   :  { %v6670_v29 = vsel %vm4276_vm7, %v6655_v0, 0  ;;  %v6547_v26 = vadd.f32 %v6546_v5, %v6508_v19  ;;  %6936 = vmatpush.xpose.msra.mxu0 %v9872_v33  ;;  %v7449_v19 = vld.sshfl [vmem:[#allocation1 + $0x20] sm:$0xff pattern:$0x73625140] }
0x131c   :  { %v9888_v39 = vand.u32 4294901760, %v6670_v29  ;;  %v6707_v48 = vand.u32 4294901760, %v6706_v24  ;;  %v7448_v24 = vld.sshfl [vmem:[#allocation1] sm:$0xff pattern:$0x73625140] }
0x131d   :  { %v6589_v61 = vadd.f32 %v6588_v51, %v6547_v26  ;;  %v6220_v51 = vadd.f32 %v9861_v49, %v9839_v4 }
0x131e   :  { %6708 = vmatmul.f32.gmra.mxu2 %v6707_v48  ;;  %6758 = vmatmul.f32.gmra.mxu3 %v9888_v39  ;;  %v9892_v34 = vsub.f32 %v6670_v29, %v9888_v39 }
0x131f   :  { %6993 = vmatpush.xpose.msrb.mxu0 %v6704_v38  ;;  %v6625_v50 = vadd.f32 %v6624_v44, %v6589_v61  ;;  %6965 = vmatpush.xpose.msra.mxu1 %v6707_v48  ;;  %v9937_v38 = vand.u32 4294901760, %v7262_v10  ;;  %v6262_v44 = vadd.f32 %v9837_v21, %v6220_v51 }
0x1320   :  { %v6713_v35 = vand.u32 4294901760, %v9892_v34  ;;  %6796 = vmatmul.f32.gmra.mxu0 %v9892_v34 }
0x1321   :  { %v6659_v27 = vadd.f32 %v6658_v30, %v6625_v50  ;;  %v9949_v52 = vsub.f32 %v7262_v10, %v9937_v38  ;;  %v6300_v21 = vadd.f32 %v9831_v32, %v6262_v44 }
0x1322   :  { %6837 = vmatmul.f32.gmra.mxu1 %v6713_v35  ;;  %v6714_v15 = vsub.f32 %v9892_v34, %v6713_v35 }
0x1323   :  { %6996 = vmatpush.xpose.msrb.mxu0 %v6696_v63  ;;  %v6673_v58 = vsel %vm4276_vm7, %v6659_v27, 0  ;;  %6971 = vmatpush.xpose.msra.mxu1 %v6699_v53  ;;  %v9906_v63 = vand.u32 4294901760, %v9898_v3  ;;  %v6212_v53 = vadd.f32 %v9861_v49, %v9835_v20  ;;  %v6204_v20 = vadd.f32 %v9861_v49, %v9827_v8 }
0x1324   :  { %v9902_v1 = vand.u32 4294901760, %v6673_v58  ;;  %v6715_v43 = vand.u32 4294901760, %v6714_v15  ;;  %v6341_v32 = vadd.f32 %v9833_v9, %v6300_v21 }
0x1325   :  { %v6940_v47 = vsub.f32 %v9898_v3, %v9906_v63  ;;  %v6258_v16 = vadd.f32 %v9829_v11, %v6212_v53  ;;  %v6254_v8 = vadd.f32 %v9821_v57, %v6204_v20  ;;  %v7309_v11 = vand.u32 4294901760, %v9935_v45 }
0x1326   :  { %6716 = vmatmul.f32.gmra.mxu2 %v6715_v43  ;;  %6762 = vmatmul.f32.gmra.mxu3 %v9902_v1  ;;  %v6720_v25 = vsub.f32 %v6673_v58, %v9902_v1  ;;  %v7315_v57 = vand.u32 4294901760, %v9949_v52 }
0x1327   :  { %7018 = vmatpush.xpose.msrb.mxu1 %v9881_v54  ;;  %7093 = vmatpush.xpose.msra.mxu2 %v9902_v1  ;;  %v9915_v13 = vand.u32 4294901760, %v6940_v47  ;;  %v6295_v36 = vadd.f32 %v9823_v22, %v6258_v16  ;;  %v6290_v22 = vadd.f32 %v9817_v2, %v6254_v8 }
0x1328   :  { %v6721_v41 = vand.u32 4294901760, %v6720_v25  ;;  %6801 = vmatmul.f32.gmra.mxu0 %v6720_v25  ;;  %v7316_v0 = vsub.f32 %v9949_v52, %v7315_v57 }
0x132a   :  { %6843 = vmatmul.f32.gmra.mxu1 %v6721_v41  ;;  %v6722_v62 = vsub.f32 %v6720_v25, %v6721_v41 }
0x132b   :  { %7020 = vmatpush.xpose.msrb.mxu1 %v9872_v33  ;;  %7095 = vmatpush.xpose.msra.mxu2 %v9888_v39 }
0x132c   :  { %v6723_v23 = vand.u32 4294901760, %v6722_v62  ;;  %v7782_v62 = vsel %vm4276_vm7, %v9869_v7, 0 }
0x132e   :  { %6724 = vmatmul.f32.gmra.mxu2 %v6723_v23  ;;  %6901 = vmatmul.f32.vlgmr.msrb.gmra.mxu3 %v9872_v33 }
0x132f   :  { %7124 = vmatpush.xpose.msra.mxu3 %v6723_v23  ;;  %v7798_v23 = vand.u32 4294901760, %v7782_v62 }
0x1330   :  { %6942 = vmatmul.f32.vlgmr.msra.gmra.mxu0 %v9915_v13 }
0x1331   :  { %7045 = vmatpush.xpose.msra.mxu0 %v6705_v37  ;;  %v7826_v7 = vsub.f32 %v7782_v62, %v7798_v23 }
0x1332   :  { %8299 = vmatmul.msk.f32.vlgmr.msra.gmra.mxu1 %vm4276_vm7, %v8383_v12 }
0x1333   :  { %7070 = vmatpush.xpose.msra.mxu1 %v9881_v54  ;;  %7130 = vmatpush.xpose.msra.mxu3 %v6715_v43  ;;  %v7827_v10 = vand.u32 4294901760, %v7826_v7 }
0x1335   :  { %7049 = vmatpush.xpose.msra.mxu0 %v9876_v31  ;;  %v7310_v31 = vsub.f32 %v9935_v45, %v7309_v11  ;;  %v7828_v16 = vsub.f32 %v7826_v7, %v7827_v10 }
0x1336   :  { %6867 = vmatmul.f32.vlgmr.msrb.gmra.mxu2 %v9872_v33  ;;  %6905 = vmatmul.f32.gmra.mxu3 %v9881_v54 }
0x1337   :  { %7229 = vmatpush.xpose.msrb.mxu3 %v9902_v1  ;;  %7072 = vmatpush.xpose.msra.mxu1 %v9872_v33  ;;  %v6335_v33 = vadd.f32 %v9825_v60, %v6295_v36  ;;  %v6329_v60 = vadd.f32 %v9819_v28, %v6290_v22  ;;  %v7311_v2 = vand.u32 4294901760, %v7310_v31  ;;  %v7317_v28 = vand.u32 4294901760, %v7316_v0 }
0x1338   :  { %7204 = vmatpush.xpose.msrb.mxu2 %v6721_v41  ;;  %6999 = vmatmul.f32.vlgmr.msrb.gmra.mxu0 %v9898_v3  ;;  %v6662_v31 = vperm.slane %v9844_v56, 2 }
0x1339   :  { %7152 = vmatpush.xpose.msrb.mxu0 %v6720_v25  ;;  %v6375_v37 = vadd.f32 %v9854_v55, %v6335_v33  ;;  %v6371_v55 = vadd.f32 %v9850_v14, %v6329_v60  ;;  %v7450_v14 = vsel %vm4276_vm7, %v7448_v24, 0  ;;  %v6379_v25 = vadd.f32 %v9864_v42, %v6341_v32 }
0x133a   :  { %7024 = vmatmul.f32.vlgmr.msrb.gmra.mxu1 %v9906_v63  ;;  %v7470_v61 = vand.u32 4294901760, %v7450_v14 }
0x133b   :  { %7231 = vmatpush.xpose.msrb.mxu3 %v9888_v39  ;;  %7177 = vmatpush.xpose.msrb.mxu1 %v9902_v1  ;;  %v6409_v5 = vadd.f32 %v9852_v46, %v6375_v37  ;;  %v6405_v46 = vadd.f32 %v9848_v17, %v6371_v55  ;;  %v6413_v42 = vadd.f32 %v9856_v6, %v6379_v25 }
0x133c   :  { %7208 = vmatpush.xpose.msrb.mxu2 %v6713_v35  ;;  %v9998_v49 = vsub.f32 %v7450_v14, %v7470_v61 }
0x133d   :  { %7155 = vmatpush.xpose.msrb.mxu0 %v9892_v34  ;;  %v7617_v29 = vsel %vm4276_vm7, %v6409_v5, 0  ;;  %v7614_v17 = vsel %vm4276_vm7, %v6405_v46, 0  ;;  %v7779_v6 = vsel %vm4276_vm7, %v6413_v42, 0 }
0x133e   :  { %6871 = vmatmul.f32.gmra.mxu2 %v9881_v54  ;;  %6909 = vmatmul.f32.gmra.mxu3 %v9888_v39  ;;  %v7452_v54 = vsel %vm4276_vm7, %v7449_v19, 0  ;;  %v9982_v48 = vand.u32 4294901760, %v7617_v29  ;;  %v9995_v4 = vand.u32 4294901760, %v7614_v17  ;;  %v7503_v27 = vand.u32 4294901760, %v9998_v49 }
0x133f   :  { %7179 = vmatpush.xpose.msrb.mxu1 %v9888_v39  ;;  %v9975_v26 = vand.u32 4294901760, %v7452_v54  ;;  %v7800_v53 = vand.u32 4294901760, %v7779_v6 }
0x1340   :  { %8300 = vmatmul.msk.f32.vlgmr.msra.gmra.mxu0 %vm4276_vm7, %v8383_v12  ;;  %v9993_v34 = vsub.f32 %v7617_v29, %v9982_v48  ;;  %v10009_v30 = vsub.f32 %v7614_v17, %v9995_v4 }
0x1341   :  { %7281 = vmatpush.xpose.msra.mxu0 %v9923_v40 }
0x1342   :  { %8301 = vmatmul.msk.f32.vlgmr.msra.gmra.mxu1 %vm4276_vm7, %v8383_v12  ;;  %v7662_v50 = vand.u32 4294901760, %v9993_v34  ;;  %v7668_v43 = vand.u32 4294901760, %v10009_v30 }
0x1343   :  { %7312 = vmatpush.xpose.msra.mxu1 %v7311_v2 }
0x1344   :  { %v7663_v15 = vsub.f32 %v9993_v34, %v7662_v50  ;;  %v7669_v47 = vsub.f32 %v10009_v30, %v7668_v43 }
0x1345   :  { %7283 = vmatpush.xpose.msra.mxu0 %v9937_v38 }
0x1346   :  { %6875 = vmatmul.f32.gmra.mxu2 %v9888_v39  ;;  %6913 = vmatmul.f32.gmra.mxu3 %v9902_v1  ;;  %v9987_v39 = vsub.f32 %v7452_v54, %v9975_v26  ;;  %v7664_v9 = vand.u32 4294901760, %v7663_v15  ;;  %v7670_v59 = vand.u32 4294901760, %v7669_v47 }
0x1347   :  { %7318 = vmatpush.xpose.msra.mxu1 %v7317_v28 }
0x1348   :  { %7158 = vmatmul.f32.vlgmr.msrb.gmra.mxu0 %v9898_v3  ;;  %v7497_v18 = vand.u32 4294901760, %v9987_v39 }
0x1349   :  { %7392 = vmatpush.xpose.msrb.mxu0 %v7309_v11 }
0x134a   :  { %7183 = vmatmul.f32.vlgmr.msrb.gmra.mxu1 %v9906_v63  ;;  %v7498_v35 = vsub.f32 %v9987_v39, %v7497_v18 }
0x134b   :  { %7417 = vmatpush.xpose.msrb.mxu1 %v9923_v40 }
0x134c   :  { %v7499_v58 = vand.u32 4294901760, %v7498_v35 }
0x134d   :  { %7396 = vmatpush.xpose.msrb.mxu0 %v7315_v57 }
0x134e   :  { %6879 = vmatmul.f32.gmra.mxu2 %v9902_v1  ;;  %8302 = vmatmul.msk.f32.vlgmr.msra.gmra.mxu3 %vm4276_vm7, %v8383_v12  ;;  %v7504_v1 = vsub.f32 %v9998_v49, %v7503_v27 }
0x134f   :  { %7419 = vmatpush.xpose.msrb.mxu1 %v9937_v38  ;;  %7365 = vmatpush.xpose.msra.mxu3 %v9923_v40  ;;  %v7832_v40 = vsub.f32 %v7779_v6, %v7800_v53 }
0x1350   :  { %7289 = vmatmul.f32.vlgmr.msra.gmra.mxu0 %v9915_v13  ;;  %v7505_v41 = vand.u32 4294901760, %v7504_v1 }
0x1351   :  { %7528 = vmatpush.xpose.msra.mxu0 %v9987_v39  ;;  %v7833_v20 = vand.u32 4294901760, %v7832_v40 }
0x1352   :  { %8305 = vmatmul.msk.f32.vlgmr.msra.gmra.mxu1 %vm4276_vm7, %v8383_v12 }
0x1353   :  { %7553 = vmatpush.xpose.msra.mxu1 %v9975_v26  ;;  %7367 = vmatpush.xpose.msra.mxu3 %v9937_v38  ;;  %v7834_v38 = vsub.f32 %v7832_v40, %v7833_v20 }
0x1355   :  { %7531 = vmatpush.xpose.msra.mxu0 %v9998_v49  ;;  %v7835_v36 = vand.u32 4294901760, %v7834_v38 }
0x1356   :  { %7101 = vmatmul.f32.vlgmr.msra.gmra.mxu2 %v9915_v13  ;;  %8304 = vmatmul.msk.f32.vlgmr.msrb.gmra.mxu3 %vm4276_vm7, %v8383_v12 }
0x1357   :  { %7340 = vmatpush.xpose.msra.mxu2 %v9935_v45  ;;  %7500 = vmatpush.xpose.msrb.mxu3 %v7499_v58  ;;  %v7829_v45 = vand.u32 4294901760, %v7828_v16 }
0x1358   :  { %7555 = vmatpush.xpose.msra.mxu1 %v7470_v61  ;;  %8306 = vmatmul.msk.f32.vlgmr.msrb.gmra.mxu0 %vm4276_vm7, %v8383_v12 }
0x1359   :  { %7634 = vmatpush.xpose.msrb.mxu0 %v9982_v48 }
0x135a   :  { %8307 = vmatmul.msk.f32.vlgmr.msrb.gmra.mxu1 %vm4276_vm7, %v8383_v12 }
0x135b   :  { %7343 = vmatpush.xpose.msra.mxu2 %v9949_v52  ;;  %7506 = vmatpush.xpose.msrb.mxu3 %v7505_v41 }
0x135c   :  { %7665 = vmatpush.xpose.msrb.mxu1 %v7664_v9 }
0x135d   :  { %7636 = vmatpush.xpose.msrb.mxu0 %v9995_v4 }
0x135e   :  { %8303 = vmatmul.msk.f32.vlgmr.msrb.gmra.mxu2 %vm4276_vm7, %v8383_v12  ;;  %7371 = vmatmul.f32.vlgmr.msra.gmra.mxu3 %v9906_v63 }
0x135f   :  { %7469 = vmatpush.xpose.msrb.mxu2 %v9975_v26  ;;  %7605 = vmatpush.xpose.msra.mxu3 %v9975_v26 }
0x1360   :  { %7671 = vmatpush.xpose.msrb.mxu1 %v7670_v59  ;;  %7534 = vmatmul.f32.vlgmr.msra.gmra.mxu0 %v9898_v3 }
0x1361   :  { %7745 = vmatpush.xpose.msra.mxu0 %v7662_v50 }
0x1362   :  { %7559 = vmatmul.f32.vlgmr.msra.gmra.mxu1 %v9906_v63 }
0x1363   :  { %7471 = vmatpush.xpose.msrb.mxu2 %v7470_v61  ;;  %7607 = vmatpush.xpose.msra.mxu3 %v7470_v61 }
0x1364   :  { %7770 = vmatpush.xpose.msra.mxu1 %v9982_v48 }
0x1365   :  { %7749 = vmatpush.xpose.msra.mxu0 %v7668_v43 }
0x1366   :  { %7346 = vmatmul.f32.vlgmr.msra.gmra.mxu2 %v9898_v3  ;;  %8308 = vmatmul.msk.f32.vlgmr.msrb.gmra.mxu3 %vm4276_vm7, %v8383_v12 }
0x1367   :  { %7580 = vmatpush.xpose.msra.mxu2 %v7497_v18  ;;  %7718 = vmatpush.xpose.msrb.mxu3 %v9982_v48 }
0x1368   :  { %7772 = vmatpush.xpose.msra.mxu1 %v9995_v4  ;;  %7642 = vmatmul.f32.vlgmr.msrb.gmra.mxu0 %v9915_v13 }
0x1369   :  { %7858 = vmatpush.xpose.msrb.mxu0 %v7826_v7 }
0x136a   :  { %8311 = vmatmul.msk.f32.vlgmr.msrb.gmra.mxu1 %vm4276_vm7, %v8383_v12 }
0x136b   :  { %7584 = vmatpush.xpose.msra.mxu2 %v7503_v27  ;;  %7720 = vmatpush.xpose.msrb.mxu3 %v9995_v4 }
0x136c   :  { %7883 = vmatpush.xpose.msrb.mxu1 %v7798_v23 }
0x136d   :  { %7861 = vmatpush.xpose.msrb.mxu0 %v7832_v40 }
0x136e   :  { %7477 = vmatmul.f32.vlgmr.msrb.gmra.mxu2 %v9915_v13  ;;  %8310 = vmatmul.msk.f32.vlgmr.msra.gmra.mxu3 %vm4276_vm7, %v8383_v12 }
0x136f   :  { %7693 = vmatpush.xpose.msrb.mxu2 %v9993_v34  ;;  %7830 = vmatpush.xpose.msra.mxu3 %v7829_v45 }
0x1370   :  { %7885 = vmatpush.xpose.msrb.mxu1 %v7800_v53  ;;  %8312 = vmatmul.msk.f32.vlgmr.msra.gmra.mxu0 %vm4276_vm7, %v8383_v12 }
0x1372   :  { %8313 = vmatmul.msk.f32.vlgmr.msra.gmra.mxu1 %vm4276_vm7, %v8383_v12 }
0x1373   :  { %7696 = vmatpush.xpose.msrb.mxu2 %v10009_v30  ;;  %7836 = vmatpush.xpose.msra.mxu3 %v7835_v36 }
0x1376   :  { %8309 = vmatmul.msk.f32.vlgmr.msra.gmra.mxu2 %vm4276_vm7, %v8383_v12  ;;  %7724 = vmatmul.f32.vlgmr.msrb.gmra.mxu3 %v9906_v63 }
0x1377   :  { %7799 = vmatpush.xpose.msra.mxu2 %v7798_v23  ;;  %7935 = vmatpush.xpose.msrb.mxu3 %v7798_v23 }
0x1378   :  { %7864 = vmatmul.f32.vlgmr.msrb.gmra.mxu0 %v9898_v3 }
0x137a   :  { %7889 = vmatmul.f32.vlgmr.msrb.gmra.mxu1 %v9906_v63 }
0x137b   :  { %7801 = vmatpush.xpose.msra.mxu2 %v7800_v53  ;;  %7937 = vmatpush.xpose.msrb.mxu3 %v7800_v53 }
0x137e   :  { %7699 = vmatmul.f32.vlgmr.msrb.gmra.mxu2 %v9898_v3  ;;  %8314 = vmatmul.msk.f32.vlgmr.msra.gmra.mxu3 %vm4276_vm7, %v8383_v12 }
0x137f   :  { %7910 = vmatpush.xpose.msrb.mxu2 %v7827_v10 }
0x1383   :  { %7914 = vmatpush.xpose.msrb.mxu2 %v7833_v20 }
0x1386   :  { %7807 = vmatmul.f32.vlgmr.msra.gmra.mxu2 %v9915_v13  ;;  %8316 = vmatmul.msk.f32.vlgmr.msrb.gmra.mxu3 %vm4276_vm7, %v8383_v12 }
0x138d   :  { %v6787_v19 = vpop.f32.mrf.mxu0 }
0x138e   :  { %8315 = vmatmul.msk.f32.vlgmr.msrb.gmra.mxu2 %vm4276_vm7, %v8383_v12 }
0x138f   :  { %v6826_v60 = vpop.f32.mrf.mxu1 }
0x1391   :  { %v6751_v8 = vpop.f32.mrf.mxu3 }
0x1395   :  { %v6792_v54 = vpop.f32.mrf.mxu0 }
0x1397   :  { %v6832_v24 = vpop.f32.mrf.mxu1 }
0x1399   :  { %v6701_v11 = vpop.f32.mrf.mxu2  ;;  %v6755_v52 = vpop.f32.mrf.mxu3 }
0x139a   :  { %v6702_v2 = vadd.f32 %v6701_v11, %v6662_v31 }
0x139c   :  { %v6752_v0 = vadd.f32 %v6751_v8, %v6702_v2 }
0x139d   :  { %v6797_v17 = vpop.f32.mrf.mxu0 }
0x139e   :  { %v6788_v29 = vadd.f32 %v6787_v19, %v6752_v0 }
0x139f   :  { %v6838_v44 = vpop.f32.mrf.mxu1 }
0x13a0   :  { %v6827_v46 = vadd.f32 %v6826_v60, %v6788_v29 }
0x13a1   :  { %v6709_v33 = vpop.f32.mrf.mxu2  ;;  %v6759_v22 = vpop.f32.mrf.mxu3 }
0x13a2   :  { %v6710_v28 = vadd.f32 %v6709_v33, %v6662_v31 }
0x13a4   :  { %v6756_v26 = vadd.f32 %v6755_v52, %v6710_v28 }
0x13a5   :  { %v6802_v43 = vpop.f32.mrf.mxu0 }
0x13a6   :  { %v6793_v56 = vadd.f32 %v6792_v54, %v6756_v26 }
0x13a7   :  { %v6844_v25 = vpop.f32.mrf.mxu1 }
0x13a8   :  { %v6833_v49 = vadd.f32 %v6832_v24, %v6793_v56 }
0x13a9   :  { %v6717_v57 = vpop.f32.mrf.mxu2  ;;  %v6763_v37 = vpop.f32.mrf.mxu3 }
0x13aa   :  { %v6718_v39 = vadd.f32 %v6717_v57, %v6662_v31 }
0x13ac   :  { %v6760_v34 = vadd.f32 %v6759_v22, %v6718_v39 }
0x13ad   :  { %v6943_v38 = vpop.f32.mrf.mxu0 }
0x13ae   :  { %v6798_v32 = vadd.f32 %v6797_v17, %v6760_v34 }
0x13af   :  { %v6974_v36 = vpop.f32.mrf.mxu1 }
0x13b0   :  { %v6839_v41 = vadd.f32 %v6838_v44, %v6798_v32 }
0x13b1   :  { %v6725_v5 = vpop.f32.mrf.mxu2  ;;  %v6902_v55 = vpop.f32.mrf.mxu3 }
0x13b2   :  { %v6726_v35 = vadd.f32 %v6725_v5, %v6662_v31  ;;  %v6975_v31 = vadd.f32 %v6974_v36, %v6943_v38 }
0x13b4   :  { %v6764_v9 = vadd.f32 %v6763_v37, %v6726_v35 }
0x13b5   :  { %v7000_v2 = vpop.f32.mrf.mxu0 }
0x13b6   :  { %v6803_v7 = vadd.f32 %v6802_v43, %v6764_v9 }
0x13b7   :  { %v7025_v0 = vpop.f32.mrf.mxu1 }
0x13b8   :  { %v6845_v45 = vadd.f32 %v6844_v25, %v6803_v7 }
0x13b9   :  { %v6868_v14 = vpop.f32.mrf.mxu2  ;;  %v6906_v48 = vpop.f32.mrf.mxu3 }
0x13ba   :  { %v6869_v51 = vadd.f32 %v6868_v14, %v6827_v46 }
0x13bc   :  { %v6903_v61 = vadd.f32 %v6902_v55, %v6869_v51  ;;  %v7001_v55 = vadd.f32 %v7000_v2, %v6975_v31 }
0x13be   :  { %v7944_v4 = vsel %vm4276_vm7, %v6903_v61, 0  ;;  %v7026_v26 = vadd.f32 %v7025_v0, %v7001_v55 }
0x13bf   :  { %v7965_v50 = vand.u32 4294901760, %v7944_v4  ;;  %v7075_v39 = vpop.f32.mrf.mxu1 }
0x13c1   :  { %v6872_v18 = vpop.f32.mrf.mxu2  ;;  %v6910_v30 = vpop.f32.mrf.mxu3  ;;  %v7997_v1 = vsub.f32 %v7944_v4, %v7965_v50 }
0x13c2   :  { %v6873_v21 = vadd.f32 %v6872_v18, %v6833_v49 }
0x13c3   :  { %v7998_v59 = vand.u32 4294901760, %v7997_v1 }
0x13c4   :  { %v6907_v27 = vadd.f32 %v6906_v48, %v6873_v21  ;;  %v7052_v48 = vpop.f32.mrf.mxu0 }
0x13c5   :  { %v7999_v16 = vsub.f32 %v7997_v1, %v7998_v59  ;;  %v7053_v61 = vadd.f32 %v7052_v48, %v7026_v26 }
0x13c6   :  { %v7947_v15 = vsel %vm4276_vm7, %v6907_v27, 0 }
0x13c7   :  { %v7963_v58 = vand.u32 4294901760, %v7947_v15  ;;  %v8000_v33 = vand.u32 4294901760, %v7999_v16  ;;  %v7076_v44 = vadd.f32 %v7075_v39, %v7053_v61  ;;  %v7184_v4 = vpop.f32.mrf.mxu1 }
0x13c9   :  { %v7991_v47 = vsub.f32 %v7947_v15, %v7963_v58  ;;  %v6876_v42 = vpop.f32.mrf.mxu2  ;;  %7964 = vmatpush.xpose.msra.mxu0 %v7963_v58  ;;  %8048 = vmatpush.xpose.msra.mxu3 %v7963_v58  ;;  %v6914_v53 = vpop.f32.mrf.mxu3  ;;  %8273 = vst.msk [vmem:[%s10136_s2] sm:$0x3] %vm2074_vm15, %v7076_v44 }
0x13ca   :  { %v6877_v62 = vadd.f32 %v6876_v42, %v6839_v41 }
0x13cb   :  { %8023 = vmatpush.xpose.msra.mxu2 %v7991_v47  ;;  %v7992_v23 = vand.u32 4294901760, %v7991_v47 }
0x13cc   :  { %v6911_v6 = vadd.f32 %v6910_v30, %v6877_v62  ;;  %v7159_v34 = vpop.f32.mrf.mxu0 }
0x13cd   :  { %7966 = vmatpush.xpose.msra.mxu0 %v7965_v50  ;;  %8050 = vmatpush.xpose.msra.mxu3 %v7965_v50  ;;  %v7993_v40 = vsub.f32 %v7991_v47, %v7992_v23 }
0x13ce   :  { %v8109_v20 = vsel %vm4276_vm7, %v6911_v6, 0 }
0x13cf   :  { %8026 = vmatpush.xpose.msra.mxu2 %v7997_v1  ;;  %v7994_v10 = vand.u32 4294901760, %v7993_v40  ;;  %v8130_v52 = vand.u32 4294901760, %v8109_v20  ;;  %v7321_v27 = vpop.f32.mrf.mxu1 }
0x13d0   :  { %7972 = vmatmul.f32.vlgmr.msra.gmra.mxu0 %v9915_v13  ;;  %8054 = vmatmul.f32.vlgmr.msra.gmra.mxu3 %v9906_v63 }
0x13d1   :  { %8075 = vmatpush.xpose.msrb.mxu0 %v7992_v23  ;;  %v6880_v8 = vpop.f32.mrf.mxu2  ;;  %7995 = vmatpush.xpose.msra.mxu1 %v7994_v10  ;;  %v7133_v57 = vpop.f32.mrf.mxu3  ;;  %v8162_v60 = vsub.f32 %v8109_v20, %v8130_v52 }
0x13d2   :  { %v6881_v11 = vadd.f32 %v6880_v8, %v6845_v45  ;;  %8029 = vmatmul.f32.vlgmr.msra.gmra.mxu2 %v9898_v3 }
0x13d3   :  { %v8163_v28 = vand.u32 4294901760, %v8162_v60 }
0x13d4   :  { %v6915_v22 = vadd.f32 %v6914_v53, %v6881_v11  ;;  %v7290_v35 = vpop.f32.mrf.mxu0 }
0x13d5   :  { %8079 = vmatpush.xpose.msrb.mxu0 %v7998_v59  ;;  %8001 = vmatpush.xpose.msra.mxu1 %v8000_v33  ;;  %v8164_v14 = vsub.f32 %v8162_v60, %v8163_v28  ;;  %v7322_v32 = vadd.f32 %v7321_v27, %v7290_v35 }
0x13d6   :  { %v8112_v37 = vsel %vm4276_vm7, %v6915_v22, 0 }
0x13d7   :  { %v8128_v19 = vand.u32 4294901760, %v8112_v37  ;;  %v8165_v17 = vand.u32 4294901760, %v8164_v14  ;;  %v7422_v25 = vpop.f32.mrf.mxu1 }
0x13d8   :  { %8317 = vmatmul.msk.f32.vlgmr.msra.gmra.mxu1 %vm4276_vm7, %v8383_v12  ;;  %8318 = vmatmul.msk.f32.vlgmr.msrb.gmra.mxu0 %vm4276_vm7, %v8383_v12 }
0x13d9   :  { %8100 = vmatpush.xpose.msrb.mxu1 %v7963_v58  ;;  %v8156_v5 = vsub.f32 %v8112_v37, %v8128_v19  ;;  %8129 = vmatpush.xpose.msrb.mxu2 %v8128_v19  ;;  %v7102_v54 = vpop.f32.mrf.mxu2  ;;  %v7234_v51 = vpop.f32.mrf.mxu3 }
0x13db   :  { %8188 = vmatpush.xpose.msra.mxu0 %v8156_v5  ;;  %v8157_v24 = vand.u32 4294901760, %v8156_v5 }
0x13dc   :  { %v7399_v43 = vpop.f32.mrf.mxu0 }
0x13dd   :  { %8102 = vmatpush.xpose.msrb.mxu1 %v7965_v50  ;;  %8131 = vmatpush.xpose.msrb.mxu2 %v8130_v52  ;;  %v8158_v29 = vsub.f32 %v8156_v5, %v8157_v24 }
0x13df   :  { %8191 = vmatpush.xpose.msra.mxu0 %v8162_v60  ;;  %v8159_v46 = vand.u32 4294901760, %v8158_v29  ;;  %v7560_v23 = vpop.f32.mrf.mxu1 }
0x13e0   :  { %8137 = vmatmul.f32.vlgmr.msrb.gmra.mxu2 %v9915_v13  ;;  %8319 = vmatmul.msk.f32.vlgmr.msrb.gmra.mxu1 %vm4276_vm7, %v8383_v12  ;;  %v7134_v13 = vadd.f32 %v7133_v57, %v7102_v54 }
0x13e1   :  { %8213 = vmatpush.xpose.msra.mxu1 %v8128_v19  ;;  %8240 = vmatpush.xpose.msra.mxu2 %v8157_v24  ;;  %v7211_v56 = vpop.f32.mrf.mxu2  ;;  %v7372_v18 = vpop.f32.mrf.mxu3 }
0x13e2   :  { %8160 = vmatpush.xpose.msrb.mxu3 %v8159_v46  ;;  %8194 = vmatmul.f32.vlgmr.msra.gmra.mxu0 %v9898_v3  ;;  %v7160_v3 = vadd.f32 %v7159_v34, %v7134_v13 }
0x13e4   :  { %v7185_v21 = vadd.f32 %v7184_v4, %v7160_v3  ;;  %v7535_v62 = vpop.f32.mrf.mxu0 }
0x13e5   :  { %8215 = vmatpush.xpose.msra.mxu1 %v8130_v52  ;;  %8244 = vmatpush.xpose.msra.mxu2 %v8163_v28 }
0x13e6   :  { %8166 = vmatpush.xpose.msrb.mxu3 %v8165_v17  ;;  %v7212_v50 = vadd.f32 %v7211_v56, %v7185_v21 }
0x13e7   :  { %v7674_v20 = vpop.f32.mrf.mxu1 }
0x13e8   :  { %8321 = vmatmul.msk.f32.vlgmr.msra.gmra.mxu2 %vm4276_vm7, %v8383_v12  ;;  %8219 = vmatmul.f32.vlgmr.msra.gmra.mxu1 %v9906_v63  ;;  %v7235_v30 = vadd.f32 %v7234_v51, %v7212_v50 }
0x13e9   :  { %8320 = vmatmul.msk.f32.vlgmr.msrb.gmra.mxu3 %vm4276_vm7, %v8383_v12  ;;  %v7347_v49 = vpop.f32.mrf.mxu2  ;;  %v7509_v58 = vpop.f32.mrf.mxu3 }
0x13ea   :  { %8265 = vmatpush.xpose.msra.mxu3 %v8128_v19  ;;  %8274 = vst.msk [vmem:[%s10136_s2 + $0x2] sm:$0x3] %vm2074_vm15, %v7235_v30  ;;  %v7348_v63 = vadd.f32 %v7347_v49, %v7322_v32 }
0x13ec   :  { %v7373_v1 = vadd.f32 %v7372_v18, %v7348_v63  ;;  %v7643_v16 = vpop.f32.mrf.mxu0 }
0x13ed   :  { %v7675_v45 = vadd.f32 %v7674_v20, %v7643_v16 }
0x13ee   :  { %8267 = vmatpush.xpose.msra.mxu3 %v8130_v52  ;;  %v7400_v9 = vadd.f32 %v7399_v43, %v7373_v1 }
0x13ef   :  { %v7775_v52 = vpop.f32.mrf.mxu1 }
0x13f0   :  { %v7423_v41 = vadd.f32 %v7422_v25, %v7400_v9 }
0x13f1   :  { %8322 = vmatmul.msk.f32.vlgmr.msra.gmra.mxu3 %vm4276_vm7, %v8383_v12  ;;  %v7478_v15 = vpop.f32.mrf.mxu2  ;;  %v7610_v42 = vpop.f32.mrf.mxu3 }
0x13f2   :  { %8275 = vst.msk [vmem:[%s10136_s2 + $0x4] sm:$0x3] %vm2074_vm15, %v7423_v41  ;;  %v7510_v12 = vadd.f32 %v7509_v58, %v7478_v15 }
0x13f4   :  { %v7536_v59 = vadd.f32 %v7535_v62, %v7510_v12  ;;  %v7752_v11 = vpop.f32.mrf.mxu0 }
0x13f6   :  { %v7561_v6 = vadd.f32 %v7560_v23, %v7536_v59 }
0x13f7   :  { %v7890_v19 = vpop.f32.mrf.mxu1 }
0x13f9   :  { %v7587_v47 = vpop.f32.mrf.mxu2  ;;  %v7725_v10 = vpop.f32.mrf.mxu3 }
0x13fa   :  { %v7588_v7 = vadd.f32 %v7587_v47, %v7561_v6 }
0x13fc   :  { %v7611_v40 = vadd.f32 %v7610_v42, %v7588_v7  ;;  %v7865_v37 = vpop.f32.mrf.mxu0 }
0x13fe   :  { %8276 = vst.msk [vmem:[%s10136_s2 + $0x6] sm:$0x3] %vm2074_vm15, %v7611_v40 }
0x1401   :  { %v7700_v53 = vpop.f32.mrf.mxu2  ;;  %v7839_v22 = vpop.f32.mrf.mxu3 }
0x1402   :  { %v7701_v38 = vadd.f32 %v7700_v53, %v7675_v45 }
0x1404   :  { %v7726_v36 = vadd.f32 %v7725_v10, %v7701_v38 }
0x1406   :  { %v7753_v33 = vadd.f32 %v7752_v11, %v7726_v36 }
0x1408   :  { %v7776_v31 = vadd.f32 %v7775_v52, %v7753_v33 }
0x1409   :  { %v7808_v8 = vpop.f32.mrf.mxu2  ;;  %v7940_v5 = vpop.f32.mrf.mxu3 }
0x140a   :  { %8277 = vst.msk [vmem:[%s10136_s2 + $0x8] sm:$0x3] %vm2074_vm15, %v7776_v31  ;;  %v7840_v57 = vadd.f32 %v7839_v22, %v7808_v8 }
0x140c   :  { %v7866_v60 = vadd.f32 %v7865_v37, %v7840_v57 }
0x140e   :  { %v7891_v0 = vadd.f32 %v7890_v19, %v7866_v60 }
0x1411   :  { %v7917_v2 = vpop.f32.mrf.mxu2 }
0x1412   :  { %v7918_v55 = vadd.f32 %v7917_v2, %v7891_v0 }
0x1414   :  { %v7941_v54 = vadd.f32 %v7940_v5, %v7918_v55 }
0x1416   :  { %8278 = vst.msk [vmem:[%s10136_s2 + $0xa] sm:$0x3] %vm2074_vm15, %v7941_v54 }
0x144d   :  { %v7973_v24 = vpop.f32.mrf.mxu0 }
0x1453   :  { %v8055_v46 = vpop.f32.mrf.mxu3 }
0x1455   :  { %v8004_v28 = vpop.f32.mrf.mxu1  ;;  %v8030_v29 = vpop.f32.mrf.mxu2 }
0x1456   :  { %v8005_v26 = vadd.f32 %v8004_v28, %v7973_v24  ;;  %v8082_v51 = vpop.f32.mrf.mxu0 }
0x1458   :  { %v8031_v14 = vadd.f32 %v8030_v29, %v8005_v26 }
0x145a   :  { %v8056_v48 = vadd.f32 %v8055_v46, %v8031_v14 }
0x145c   :  { %v8083_v39 = vadd.f32 %v8082_v51, %v8056_v48 }
0x145d   :  { %v8105_v61 = vpop.f32.mrf.mxu1 }
0x145e   :  { %v8106_v56 = vadd.f32 %v8105_v61, %v8083_v39 }
0x145f   :  { %v8195_v13 = vpop.f32.mrf.mxu0 }
0x1460   :  { %8279 = vst.msk [vmem:[%s10136_s2 + $0xc] sm:$0x3] %vm2074_vm15, %v8106_v56 }
0x1463   :  { %v8138_v17 = vpop.f32.mrf.mxu2 }
0x1465   :  { %v8220_v4 = vpop.f32.mrf.mxu1 }
0x146b   :  { %v8247_v49 = vpop.f32.mrf.mxu2 }
0x146c   :  { %v8169_v44 = vpop.f32.mrf.mxu3 }
0x146d   :  { %v8170_v34 = vadd.f32 %v8169_v44, %v8138_v17 }
0x146f   :  { %v8196_v3 = vadd.f32 %v8195_v13, %v8170_v34 }
0x1471   :  { %v8221_v18 = vadd.f32 %v8220_v4, %v8196_v3 }
0x1473   :  { %v8248_v21 = vadd.f32 %v8247_v49, %v8221_v18 }
0x1474   :  { %v8270_v50 = vpop.f32.mrf.mxu3 }
0x1475   :  { %v8271_v30 = vadd.f32 %v8270_v50, %v8248_v21 }
0x1477   :  { %8280 = vst.msk [vmem:[%s10136_s2 + $0xe] sm:$0x3] %vm2074_vm15, %v8271_v30 }

</bundles_post_ra>
